<compile_context>
chip_gen: v6e
topology: v6e:2x2x1
jax: 0.10.0
libtpu: 0.0.40
codegen_flags: <defaults>
</compile_context>

<pallas_src>
import functools

import jax
import jax.numpy as jnp
import numpy as np
from jax import lax
from jax.experimental import pallas as pl
from jax.experimental.pallas import tpu as pltpu

OUT_W = 128  # lane-dense packed output width (multiple of 128)


# ---------------------------------------------------------------------------
# Pallas kernel: fused frames_2d + frames_3d + glove encoders for the batch.
# ---------------------------------------------------------------------------
def _backbone_kernel(x2d_ref, x3d_ref, xg_ref,
                     w2d_ref, b2d_ref, w3d_ref, b3d_ref, wg_ref, bg_ref,
                     o_ref, *, H, W, C2, F2D, F3D, FG):
    f32 = jnp.float32
    B = o_ref.shape[0]           # batch items (static)
    Q = W + 2                    # padded row width
    HQ = H * Q                   # flattened conv-output rows (incl. phantom cols)
    pad = o_ref.shape[1] - (F2D + F3D + FG)
    inv_hw = 1.0 / float(H * W)

    # Validity mask for the flattened-padded conv trick (hoisted out of loops):
    # flat position j = y*Q + x is a real output pixel iff (j mod Q) < W.
    col = lax.broadcasted_iota(jnp.int32, (HQ, 1), 0) % Q
    valid = (col < W).astype(f32)                                   # [HQ, 1]

    # Load weights / biases once (tiny, stay resident in vregs/VMEM).
    w2d = w2d_ref[...]                                              # [9*C2, F2D] bf16
    b2d = b2d_ref[...]                                              # [1, F2D]    f32
    w3d = w3d_ref[...]                                              # [C3, F3D]   bf16
    b3d = b3d_ref[...]                                              # [1, F3D]    f32
    wg = wg_ref[...]                                                # [E, FG]     bf16
    bg = bg_ref[...]                                                # [1, FG]     f32

    rows = []
    for b in range(B):           # static unroll over the (small) batch
        # ---- frames_2d: 3x3 SAME conv as 9 shifted-slice matmuls (in-kernel
        #      im2col), then bias + ReLU + masked global average pool.
        xb = x2d_ref[b]                                             # [SP, C2] bf16
        acc = jnp.zeros((HQ, F2D), f32)
        for dy in range(3):
            for dx in range(3):
                t = dy * 3 + dx
                off = dy * Q + dx                                   # static offset
                xs = xb[off:off + HQ, :]                            # [HQ, C2] bf16
                wt = w2d[t * C2:(t + 1) * C2, :]                    # [C2, F2D] bf16
                acc = acc + jnp.dot(xs, wt, preferred_element_type=f32)
        y2d = jnp.maximum(acc + b2d, 0.0)                           # [HQ, F2D] f32
        f2d = jnp.sum(y2d * valid, axis=0, keepdims=True) * inv_hw  # [1, F2D]

        # ---- frames_3d: 1x1x1 conv (pointwise linear) + ReLU + global avg pool.
        y3d = jnp.dot(x3d_ref[b], w3d, preferred_element_type=f32)  # [S3, F3D]
        y3d = jnp.maximum(y3d + b3d, 0.0)
        f3d = jnp.mean(y3d, axis=0, keepdims=True)                  # [1, F3D]

        # ---- glove_embeddings: Linear + ReLU + mean over sequence.
        yg = jnp.dot(xg_ref[b], wg, preferred_element_type=f32)     # [L, FG]
        yg = jnp.maximum(yg + bg, 0.0)
        fg = jnp.mean(yg, axis=0, keepdims=True)                    # [1, FG]

        # ---- pack all modality features into one lane-dense 128-wide row.
        pieces = [f2d, f3d, fg]
        if pad > 0:
            pieces.append(jnp.zeros((1, pad), f32))
        rows.append(jnp.concatenate(pieces, axis=1))                # [1, OUT_W]

    # Single unmasked, lane-dense store of the whole output block.
    o_ref[...] = jnp.concatenate(rows, axis=0)                      # [B, OUT_W]


# ---------------------------------------------------------------------------
# Wrapper: layout glue (1x HBM traffic, no host-side 9x im2col) + pallas_call.
# ---------------------------------------------------------------------------
@functools.partial(jax.jit, static_argnames=())
def _fused_backbone(x2d, x3d, xgl, params):
    B, C2, H, W = x2d.shape
    _, C3, T, H3, W3 = x3d.shape
    _, L, E = xgl.shape
    F2D = params["frames_2d"]["b"].shape[0]
    F3D = params["frames_3d"]["b"].shape[0]
    FG = params["glove"]["b"].shape[0]
    assert F2D + F3D + FG <= OUT_W

    Q = W + 2
    SP = (H + 3) * Q            # top pad 1, bottom pad 2 keeps every tap slice in-bounds
    S3 = T * H3 * W3

    bf16 = jnp.bfloat16
    # frames_2d: zero-pad (top 1 / bottom 2, left 1 / right 1), NCHW -> flat NHWC.
    xp = jnp.pad(x2d, ((0, 0), (0, 0), (1, 2), (1, 1)))
    xp = jnp.transpose(xp, (0, 2, 3, 1)).reshape(B, SP, C2).astype(bf16)
    # frames_3d: NCDHW -> [B, T*H*W, C].
    x3r = jnp.transpose(x3d, (0, 2, 3, 4, 1)).reshape(B, S3, C3).astype(bf16)
    xg = xgl.astype(bf16)

    w2d = params["frames_2d"]["w_mat"].astype(bf16)                 # [9*C2, F2D]
    w3d = params["frames_3d"]["w_mat"].astype(bf16)                 # [C3, F3D]
    wg = params["glove"]["w_mat"].astype(bf16)                      # [E, FG]
    b2d = params["frames_2d"]["b"].reshape(1, F2D).astype(jnp.float32)
    b3d = params["frames_3d"]["b"].reshape(1, F3D).astype(jnp.float32)
    bg = params["glove"]["b"].reshape(1, FG).astype(jnp.float32)

    kernel = functools.partial(_backbone_kernel, H=H, W=W, C2=C2,
                               F2D=F2D, F3D=F3D, FG=FG)

    flops = 2 * B * (H * Q * 9 * C2 * F2D + S3 * C3 * F3D + L * E * FG)
    bytes_accessed = (
        2 * (B * SP * C2 + B * S3 * C3 + B * L * E
             + 9 * C2 * F2D + C3 * F3D + E * FG)
        + 4 * (F2D + F3D + FG) + 4 * B * OUT_W)

    out = pl.pallas_call(
        kernel,
        out_shape=jax.ShapeDtypeStruct((B, OUT_W), jnp.float32),
        grid=(1,),
        in_specs=[
            pl.BlockSpec((B, SP, C2), lambda i: (0, 0, 0)),
            pl.BlockSpec((B, S3, C3), lambda i: (0, 0, 0)),
            pl.BlockSpec((B, L, E), lambda i: (0, 0, 0)),
            pl.BlockSpec((9 * C2, F2D), lambda i: (0, 0)),
            pl.BlockSpec((1, F2D), lambda i: (0, 0)),
            pl.BlockSpec((C3, F3D), lambda i: (0, 0)),
            pl.BlockSpec((1, F3D), lambda i: (0, 0)),
            pl.BlockSpec((E, FG), lambda i: (0, 0)),
            pl.BlockSpec((1, FG), lambda i: (0, 0)),
        ],
        out_specs=pl.BlockSpec((B, OUT_W), lambda i: (0, 0)),
        compiler_params=pltpu.CompilerParams(
            dimension_semantics=("arbitrary",)),
        cost_estimate=pl.CostEstimate(flops=flops, transcendentals=0,
                                      bytes_accessed=bytes_accessed),
    )(xp, x3r, xg, w2d, b2d, w3d, b3d, wg, bg)

    frames_feat = out[:, :F2D + F3D]                 # FramesEncoder concat(2d, 3d)
    glove_feat = out[:, F2D + F3D:F2D + F3D + FG]
    return frames_feat, glove_feat


def con_clu_backbone_forward(inputs, params):
    """ConCluBackbone.forward: dict(modality -> features).

    TODO(synk): backbone_loader.load_backbone is config-driven; encoders here
    are deterministic synthetic stand-ins (audio/text/landmark modalities not
    built).  All modalities present are fused into ONE pallas_call.
    """
    x2d, x3d = inputs["frames_2d_3d"]
    xgl = inputs["glove_embeddings"]
    frames_feat, glove_feat = _fused_backbone(x2d, x3d, xgl, params)
    return {"frames_2d_3d": frames_feat, "glove_embeddings": glove_feat}


# ---------------------------------------------------------------------------
# Deterministic parameter construction.
# ---------------------------------------------------------------------------
def _init_params(key, c2d, f2d, c3d, f3d, e_glove, f_glove):
    ks = jax.random.split(key, 6)
    # Conv2d weight in PyTorch layout [F, C, kh, kw] -> per-tap matmul form
    # [(kh*kw)*C, F] with rows ordered (tap, c).
    w2d_conv = 0.1 * jax.random.normal(ks[0], (f2d, c2d, 3, 3), jnp.float32)
    w2d_mat = jnp.transpose(w2d_conv, (2, 3, 1, 0)).reshape(9 * c2d, f2d)
    b2d = 0.1 * jax.random.normal(ks[1], (f2d,), jnp.float32)
    # Conv3d 1x1x1 weight [F, C, 1, 1, 1] -> [C, F]
    w3d_conv = 0.1 * jax.random.normal(ks[2], (f3d, c3d, 1, 1, 1), jnp.float32)
    w3d_mat = jnp.transpose(w3d_conv.reshape(f3d, c3d), (1, 0))
    b3d = 0.1 * jax.random.normal(ks[3], (f3d,), jnp.float32)
    # Linear for glove embeddings [E, F]
    wg = 0.1 * jax.random.normal(ks[4], (e_glove, f_glove), jnp.float32)
    bg = 0.1 * jax.random.normal(ks[5], (f_glove,), jnp.float32)
    return {
        "frames_2d": {"w_conv": w2d_conv, "w_mat": w2d_mat, "b": b2d},
        "frames_3d": {"w_conv": w3d_conv, "w_mat": w3d_mat, "b": b3d},
        "glove": {"w_mat": wg, "b": bg},
    }


# ---------------------------------------------------------------------------
# Pure-JAX reference (bf16-rounded operands to match the MXU path, f32 math).
# ---------------------------------------------------------------------------
def _bf16_round(x):
    return x.astype(jnp.bfloat16).astype(jnp.float32)


def _ref_frames_2d(x, p):
    y = lax.conv_general_dilated(
        _bf16_round(x), _bf16_round(p["w_conv"]), (1, 1), "SAME",
        dimension_numbers=("NCHW", "OIHW", "NCHW"))
    y = jnp.maximum(y + p["b"][None, :, None, None], 0.0)
    return jnp.mean(y, axis=(2, 3))


def _ref_frames_3d(x, p):
    B, C, T, H, W = x.shape
    xr = jnp.transpose(x, (0, 2, 3, 4, 1)).reshape(B, T * H * W, C)
    y = jnp.maximum(_bf16_round(xr) @ _bf16_round(p["w_mat"]) + p["b"], 0.0)
    return jnp.mean(y, axis=1)


def _ref_glove(x, p):
    y = jnp.maximum(_bf16_round(x) @ _bf16_round(p["w_mat"]) + p["b"], 0.0)
    return jnp.mean(y, axis=1)


# ---------------------------------------------------------------------------
if __name__ == "__main__":
    key = jax.random.PRNGKey(0)
    k_in2, k_in3, k_ing, k_par = jax.random.split(key, 4)

    # Small shapes consistent with the module's modalities.
    B, C2, H2, W2 = 2, 4, 16, 16          # frames_2d (NCHW)
    C3, T3, H3, W3 = 4, 4, 8, 8           # frames_3d (NCDHW)
    L, E = 8, 32                          # glove embedding sequence
    F2D, F3D, FG = 32, 32, 32             # encoder feature widths

    x2d = jax.random.normal(k_in2, (B, C2, H2, W2), jnp.float32)
    x3d = jax.random.normal(k_in3, (B, C3, T3, H3, W3), jnp.float32)
    xgl = jax.random.normal(k_ing, (B, L, E), jnp.float32)

    params = _init_params(k_par, C2, F2D, C3, F3D, E, FG)

    inputs = {"frames_2d_3d": (x2d, x3d), "glove_embeddings": xgl}
    features = con_clu_backbone_forward(inputs, params)
    features = jax.tree_util.tree_map(jax.block_until_ready, features)

    # Correctness check against pure-JAX reference.
    ref_2d3d = jnp.concatenate(
        [_ref_frames_2d(x2d, params["frames_2d"]),
         _ref_frames_3d(x3d, params["frames_3d"])], axis=1)
    ref_gl = _ref_glove(xgl, params["glove"])

    assert features["frames_2d_3d"].shape == (B, F2D + F3D)
    assert features["glove_embeddings"].shape == (B, FG)
    np.testing.assert_allclose(np.asarray(features["frames_2d_3d"]),
                               np.asarray(ref_2d3d), rtol=1e-4, atol=1e-4)
    np.testing.assert_allclose(np.asarray(features["glove_embeddings"]),
                               np.asarray(ref_gl), rtol=1e-4, atol=1e-4)

    print("KERNEL_OK")
</pallas_src>

<mosaic_0001>
module attributes {stable_mosaic.version = 11 : i64} {
  func.func @_backbone_kernel(%arg0: i32, %arg1: memref<2x342x4xbf16, #tpu.memory_space<vmem>>, %arg2: memref<2x256x4xbf16, #tpu.memory_space<vmem>>, %arg3: memref<2x8x32xbf16, #tpu.memory_space<vmem>>, %arg4: memref<36x32xbf16, #tpu.memory_space<vmem>>, %arg5: memref<1x32xf32, #tpu.memory_space<vmem>>, %arg6: memref<4x32xbf16, #tpu.memory_space<vmem>>, %arg7: memref<1x32xf32, #tpu.memory_space<vmem>>, %arg8: memref<32x32xbf16, #tpu.memory_space<vmem>>, %arg9: memref<1x32xf32, #tpu.memory_space<vmem>>, %arg10: memref<2x128xf32, #tpu.memory_space<vmem>>) attributes {dimension_semantics = [#tpu.dimension_semantics<arbitrary>], iteration_bounds = array<i64: 1>, scalar_prefetch = 0 : i64, scratch_operands = 0 : i64, tpu.core_type = #tpu.core_type<tc>, window_params = [{pipeline_mode = #tpu.pipeline_mode<synchronous>, transform_indices = @transform_0, window_bounds = array<i64: 2, 342, 4>}, {pipeline_mode = #tpu.pipeline_mode<synchronous>, transform_indices = @transform_1, window_bounds = array<i64: 2, 256, 4>}, {pipeline_mode = #tpu.pipeline_mode<synchronous>, transform_indices = @transform_2, window_bounds = array<i64: 2, 8, 32>}, {pipeline_mode = #tpu.pipeline_mode<synchronous>, transform_indices = @transform_3, window_bounds = array<i64: 36, 32>}, {pipeline_mode = #tpu.pipeline_mode<synchronous>, transform_indices = @transform_4, window_bounds = array<i64: 1, 32>}, {pipeline_mode = #tpu.pipeline_mode<synchronous>, transform_indices = @transform_5, window_bounds = array<i64: 4, 32>}, {pipeline_mode = #tpu.pipeline_mode<synchronous>, transform_indices = @transform_6, window_bounds = array<i64: 1, 32>}, {pipeline_mode = #tpu.pipeline_mode<synchronous>, transform_indices = @transform_7, window_bounds = array<i64: 32, 32>}, {pipeline_mode = #tpu.pipeline_mode<synchronous>, transform_indices = @transform_8, window_bounds = array<i64: 1, 32>}, {pipeline_mode = #tpu.pipeline_mode<synchronous>, transform_indices = @transform_9, window_bounds = array<i64: 2, 128>}]} {
    %0 = tpu.iota {dimensions = array<i32: 0>} : vector<288x1xi32>
    %c18_i32 = arith.constant 18 : i32
    %c0_i32 = arith.constant 0 : i32
    %1 = arith.cmpi eq, %c18_i32, %c0_i32 : i32
    %c1_i32 = arith.constant 1 : i32
    %2 = arith.select %1, %c1_i32, %c18_i32 : i32
    %3 = vector.broadcast %2 : i32 to vector<288x1xi32>
    %4 = arith.remsi %0, %3 : vector<288x1xi32>
    %c0_i32_0 = arith.constant 0 : i32
    %5 = vector.broadcast %c0_i32_0 : i32 to vector<288x1xi32>
    %6 = arith.cmpi ne, %4, %5 : vector<288x1xi32>
    %c0_i32_1 = arith.constant 0 : i32
    %7 = vector.broadcast %c0_i32_1 : i32 to vector<288x1xi32>
    %8 = arith.cmpi slt, %4, %7 : vector<288x1xi32>
    %c0_i32_2 = arith.constant 0 : i32
    %9 = arith.cmpi slt, %2, %c0_i32_2 : i32
    %10 = vector.broadcast %9 : i1 to vector<288x1xi1>
    %11 = vector.broadcast %10 : vector<288x1xi1> to vector<288x1xi1>
    %12 = arith.xori %8, %11 : vector<288x1xi1>
    %13 = arith.andi %12, %6 : vector<288x1xi1>
    %14 = vector.broadcast %2 : i32 to vector<288x1xi32>
    %15 = arith.addi %4, %14 : vector<288x1xi32>
    %16 = arith.select %13, %15, %4 : vector<288x1xi1>, vector<288x1xi32>
    %c16_i32 = arith.constant 16 : i32
    %17 = vector.broadcast %c16_i32 : i32 to vector<288x1xi32>
    %18 = arith.cmpi slt, %16, %17 : vector<288x1xi32>
    %19 = arith.extui %18 : vector<288x1xi1> to vector<288x1xi32>
    %20 = arith.sitofp %19 : vector<288x1xi32> to vector<288x1xf32>
    %c0 = arith.constant 0 : index
    %c0_3 = arith.constant 0 : index
    %21 = vector.load %arg4[%c0, %c0_3] : memref<36x32xbf16, #tpu.memory_space<vmem>>, vector<36x32xbf16>
    %c0_4 = arith.constant 0 : index
    %c0_5 = arith.constant 0 : index
    %22 = vector.load %arg5[%c0_4, %c0_5] : memref<1x32xf32, #tpu.memory_space<vmem>>, vector<1x32xf32>
    %c0_6 = arith.constant 0 : index
    %c0_7 = arith.constant 0 : index
    %23 = vector.load %arg6[%c0_6, %c0_7] : memref<4x32xbf16, #tpu.memory_space<vmem>>, vector<4x32xbf16>
    %c0_8 = arith.constant 0 : index
    %c0_9 = arith.constant 0 : index
    %24 = vector.load %arg7[%c0_8, %c0_9] : memref<1x32xf32, #tpu.memory_space<vmem>>, vector<1x32xf32>
    %c0_10 = arith.constant 0 : index
    %c0_11 = arith.constant 0 : index
    %25 = vector.load %arg8[%c0_10, %c0_11] : memref<32x32xbf16, #tpu.memory_space<vmem>>, vector<32x32xbf16>
    %c0_12 = arith.constant 0 : index
    %c0_13 = arith.constant 0 : index
    %26 = vector.load %arg9[%c0_12, %c0_13] : memref<1x32xf32, #tpu.memory_space<vmem>>, vector<1x32xf32>
    %c0_14 = arith.constant 0 : index
    %c0_15 = arith.constant 0 : index
    %c0_16 = arith.constant 0 : index
    %27 = vector.load %arg1[%c0_14, %c0_15, %c0_16] : memref<2x342x4xbf16, #tpu.memory_space<vmem>>, vector<1x342x4xbf16>
    %28 = vector.shape_cast %27 : vector<1x342x4xbf16> to vector<342x4xbf16>
    %cst = arith.constant 0.000000e+00 : f32
    %29 = vector.broadcast %cst : f32 to vector<288x32xf32>
    %30 = vector.extract_strided_slice %28 {offsets = [0, 0], sizes = [288, 4], strides = [1, 1]} : vector<342x4xbf16> to vector<288x4xbf16>
    %31 = vector.extract_strided_slice %21 {offsets = [0, 0], sizes = [4, 32], strides = [1, 1]} : vector<36x32xbf16> to vector<4x32xbf16>
    %cst_17 = arith.constant dense<0.000000e+00> : vector<288x32xf32>
    %32 = tpu.matmul %30, %31, %cst_17 {dimension_numbers = #tpu.dot_dimension_numbers<[1], [0], [0], [1], [0, 0, 1, 1], [], []>} : vector<288x4xbf16>, vector<4x32xbf16>, vector<288x32xf32> -> vector<288x32xf32>
    %33 = arith.addf %29, %32 : vector<288x32xf32>
    %34 = vector.extract_strided_slice %28 {offsets = [1, 0], sizes = [288, 4], strides = [1, 1]} : vector<342x4xbf16> to vector<288x4xbf16>
    %35 = vector.extract_strided_slice %21 {offsets = [4, 0], sizes = [4, 32], strides = [1, 1]} : vector<36x32xbf16> to vector<4x32xbf16>
    %cst_18 = arith.constant dense<0.000000e+00> : vector<288x32xf32>
    %36 = tpu.matmul %34, %35, %cst_18 {dimension_numbers = #tpu.dot_dimension_numbers<[1], [0], [0], [1], [0, 0, 1, 1], [], []>} : vector<288x4xbf16>, vector<4x32xbf16>, vector<288x32xf32> -> vector<288x32xf32>
    %37 = arith.addf %33, %36 : vector<288x32xf32>
    %38 = vector.extract_strided_slice %28 {offsets = [2, 0], sizes = [288, 4], strides = [1, 1]} : vector<342x4xbf16> to vector<288x4xbf16>
    %39 = vector.extract_strided_slice %21 {offsets = [8, 0], sizes = [4, 32], strides = [1, 1]} : vector<36x32xbf16> to vector<4x32xbf16>
    %cst_19 = arith.constant dense<0.000000e+00> : vector<288x32xf32>
    %40 = tpu.matmul %38, %39, %cst_19 {dimension_numbers = #tpu.dot_dimension_numbers<[1], [0], [0], [1], [0, 0, 1, 1], [], []>} : vector<288x4xbf16>, vector<4x32xbf16>, vector<288x32xf32> -> vector<288x32xf32>
    %41 = arith.addf %37, %40 : vector<288x32xf32>
    %42 = vector.extract_strided_slice %28 {offsets = [18, 0], sizes = [288, 4], strides = [1, 1]} : vector<342x4xbf16> to vector<288x4xbf16>
    %43 = vector.extract_strided_slice %21 {offsets = [12, 0], sizes = [4, 32], strides = [1, 1]} : vector<36x32xbf16> to vector<4x32xbf16>
    %cst_20 = arith.constant dense<0.000000e+00> : vector<288x32xf32>
    %44 = tpu.matmul %42, %43, %cst_20 {dimension_numbers = #tpu.dot_dimension_numbers<[1], [0], [0], [1], [0, 0, 1, 1], [], []>} : vector<288x4xbf16>, vector<4x32xbf16>, vector<288x32xf32> -> vector<288x32xf32>
    %45 = arith.addf %41, %44 : vector<288x32xf32>
    %46 = vector.extract_strided_slice %28 {offsets = [19, 0], sizes = [288, 4], strides = [1, 1]} : vector<342x4xbf16> to vector<288x4xbf16>
    %47 = vector.extract_strided_slice %21 {offsets = [16, 0], sizes = [4, 32], strides = [1, 1]} : vector<36x32xbf16> to vector<4x32xbf16>
    %cst_21 = arith.constant dense<0.000000e+00> : vector<288x32xf32>
    %48 = tpu.matmul %46, %47, %cst_21 {dimension_numbers = #tpu.dot_dimension_numbers<[1], [0], [0], [1], [0, 0, 1, 1], [], []>} : vector<288x4xbf16>, vector<4x32xbf16>, vector<288x32xf32> -> vector<288x32xf32>
    %49 = arith.addf %45, %48 : vector<288x32xf32>
    %50 = vector.extract_strided_slice %28 {offsets = [20, 0], sizes = [288, 4], strides = [1, 1]} : vector<342x4xbf16> to vector<288x4xbf16>
    %51 = vector.extract_strided_slice %21 {offsets = [20, 0], sizes = [4, 32], strides = [1, 1]} : vector<36x32xbf16> to vector<4x32xbf16>
    %cst_22 = arith.constant dense<0.000000e+00> : vector<288x32xf32>
    %52 = tpu.matmul %50, %51, %cst_22 {dimension_numbers = #tpu.dot_dimension_numbers<[1], [0], [0], [1], [0, 0, 1, 1], [], []>} : vector<288x4xbf16>, vector<4x32xbf16>, vector<288x32xf32> -> vector<288x32xf32>
    %53 = arith.addf %49, %52 : vector<288x32xf32>
    %54 = vector.extract_strided_slice %28 {offsets = [36, 0], sizes = [288, 4], strides = [1, 1]} : vector<342x4xbf16> to vector<288x4xbf16>
    %55 = vector.extract_strided_slice %21 {offsets = [24, 0], sizes = [4, 32], strides = [1, 1]} : vector<36x32xbf16> to vector<4x32xbf16>
    %cst_23 = arith.constant dense<0.000000e+00> : vector<288x32xf32>
    %56 = tpu.matmul %54, %55, %cst_23 {dimension_numbers = #tpu.dot_dimension_numbers<[1], [0], [0], [1], [0, 0, 1, 1], [], []>} : vector<288x4xbf16>, vector<4x32xbf16>, vector<288x32xf32> -> vector<288x32xf32>
    %57 = arith.addf %53, %56 : vector<288x32xf32>
    %58 = vector.extract_strided_slice %28 {offsets = [37, 0], sizes = [288, 4], strides = [1, 1]} : vector<342x4xbf16> to vector<288x4xbf16>
    %59 = vector.extract_strided_slice %21 {offsets = [28, 0], sizes = [4, 32], strides = [1, 1]} : vector<36x32xbf16> to vector<4x32xbf16>
    %cst_24 = arith.constant dense<0.000000e+00> : vector<288x32xf32>
    %60 = tpu.matmul %58, %59, %cst_24 {dimension_numbers = #tpu.dot_dimension_numbers<[1], [0], [0], [1], [0, 0, 1, 1], [], []>} : vector<288x4xbf16>, vector<4x32xbf16>, vector<288x32xf32> -> vector<288x32xf32>
    %61 = arith.addf %57, %60 : vector<288x32xf32>
    %62 = vector.extract_strided_slice %28 {offsets = [38, 0], sizes = [288, 4], strides = [1, 1]} : vector<342x4xbf16> to vector<288x4xbf16>
    %63 = vector.extract_strided_slice %21 {offsets = [32, 0], sizes = [4, 32], strides = [1, 1]} : vector<36x32xbf16> to vector<4x32xbf16>
    %cst_25 = arith.constant dense<0.000000e+00> : vector<288x32xf32>
    %64 = tpu.matmul %62, %63, %cst_25 {dimension_numbers = #tpu.dot_dimension_numbers<[1], [0], [0], [1], [0, 0, 1, 1], [], []>} : vector<288x4xbf16>, vector<4x32xbf16>, vector<288x32xf32> -> vector<288x32xf32>
    %65 = arith.addf %61, %64 : vector<288x32xf32>
    %66 = vector.broadcast %22 : vector<1x32xf32> to vector<288x32xf32>
    %67 = arith.addf %65, %66 : vector<288x32xf32>
    %cst_26 = arith.constant 0.000000e+00 : f32
    %68 = vector.broadcast %cst_26 : f32 to vector<288x32xf32>
    %69 = arith.maximumf %67, %68 : vector<288x32xf32>
    %70 = vector.broadcast %20 : vector<288x1xf32> to vector<288x32xf32>
    %71 = arith.mulf %69, %70 : vector<288x32xf32>
    %cst_27 = arith.constant dense<0.000000e+00> : vector<32xf32>
    %72 = vector.multi_reduction <add>, %71, %cst_27 [0] : vector<288x32xf32> to vector<32xf32>
    %73 = vector.shape_cast %72 : vector<32xf32> to vector<1x32xf32>
    %cst_28 = arith.constant 3.906250e-03 : f32
    %74 = vector.broadcast %cst_28 : f32 to vector<1x32xf32>
    %75 = arith.mulf %73, %74 : vector<1x32xf32>
    %c0_29 = arith.constant 0 : index
    %c0_30 = arith.constant 0 : index
    %c0_31 = arith.constant 0 : index
    %76 = vector.load %arg2[%c0_29, %c0_30, %c0_31] : memref<2x256x4xbf16, #tpu.memory_space<vmem>>, vector<1x256x4xbf16>
    %77 = vector.shape_cast %76 : vector<1x256x4xbf16> to vector<256x4xbf16>
    %cst_32 = arith.constant dense<0.000000e+00> : vector<256x32xf32>
    %78 = tpu.matmul %77, %23, %cst_32 {dimension_numbers = #tpu.dot_dimension_numbers<[1], [0], [0], [1], [0, 0, 1, 1], [], []>} : vector<256x4xbf16>, vector<4x32xbf16>, vector<256x32xf32> -> vector<256x32xf32>
    %79 = vector.broadcast %24 : vector<1x32xf32> to vector<256x32xf32>
    %80 = arith.addf %78, %79 : vector<256x32xf32>
    %cst_33 = arith.constant 0.000000e+00 : f32
    %81 = vector.broadcast %cst_33 : f32 to vector<256x32xf32>
    %82 = arith.maximumf %80, %81 : vector<256x32xf32>
    %cst_34 = arith.constant dense<0.000000e+00> : vector<32xf32>
    %83 = vector.multi_reduction <add>, %82, %cst_34 [0] : vector<256x32xf32> to vector<32xf32>
    %84 = vector.shape_cast %83 : vector<32xf32> to vector<1x32xf32>
    %cst_35 = arith.constant 2.560000e+02 : f32
    %85 = vector.broadcast %cst_35 : f32 to vector<1x32xf32>
    %86 = arith.divf %84, %85 : vector<1x32xf32>
    %c0_36 = arith.constant 0 : index
    %c0_37 = arith.constant 0 : index
    %c0_38 = arith.constant 0 : index
    %87 = vector.load %arg3[%c0_36, %c0_37, %c0_38] : memref<2x8x32xbf16, #tpu.memory_space<vmem>>, vector<1x8x32xbf16>
    %88 = vector.shape_cast %87 : vector<1x8x32xbf16> to vector<8x32xbf16>
    %cst_39 = arith.constant dense<0.000000e+00> : vector<8x32xf32>
    %89 = tpu.matmul %88, %25, %cst_39 {dimension_numbers = #tpu.dot_dimension_numbers<[1], [0], [0], [1], [0, 0, 1, 1], [], []>} : vector<8x32xbf16>, vector<32x32xbf16>, vector<8x32xf32> -> vector<8x32xf32>
    %90 = vector.broadcast %26 : vector<1x32xf32> to vector<8x32xf32>
    %91 = arith.addf %89, %90 : vector<8x32xf32>
    %cst_40 = arith.constant 0.000000e+00 : f32
    %92 = vector.broadcast %cst_40 : f32 to vector<8x32xf32>
    %93 = arith.maximumf %91, %92 : vector<8x32xf32>
    %cst_41 = arith.constant dense<0.000000e+00> : vector<32xf32>
    %94 = vector.multi_reduction <add>, %93, %cst_41 [0] : vector<8x32xf32> to vector<32xf32>
    %95 = vector.shape_cast %94 : vector<32xf32> to vector<1x32xf32>
    %cst_42 = arith.constant 8.000000e+00 : f32
    %96 = vector.broadcast %cst_42 : f32 to vector<1x32xf32>
    %97 = arith.divf %95, %96 : vector<1x32xf32>
    %cst_43 = arith.constant 0.000000e+00 : f32
    %98 = vector.broadcast %cst_43 : f32 to vector<1x32xf32>
    %99 = tpu.concatenate %75, %86, %97, %98 in 1 : vector<1x32xf32>, vector<1x32xf32>, vector<1x32xf32>, vector<1x32xf32> -> vector<1x128xf32>
    %c1 = arith.constant 1 : index
    %c0_44 = arith.constant 0 : index
    %c0_45 = arith.constant 0 : index
    %100 = vector.load %arg1[%c1, %c0_44, %c0_45] : memref<2x342x4xbf16, #tpu.memory_space<vmem>>, vector<1x342x4xbf16>
    %101 = vector.shape_cast %100 : vector<1x342x4xbf16> to vector<342x4xbf16>
    %cst_46 = arith.constant 0.000000e+00 : f32
    %102 = vector.broadcast %cst_46 : f32 to vector<288x32xf32>
    %103 = vector.extract_strided_slice %101 {offsets = [0, 0], sizes = [288, 4], strides = [1, 1]} : vector<342x4xbf16> to vector<288x4xbf16>
    %104 = vector.extract_strided_slice %21 {offsets = [0, 0], sizes = [4, 32], strides = [1, 1]} : vector<36x32xbf16> to vector<4x32xbf16>
    %cst_47 = arith.constant dense<0.000000e+00> : vector<288x32xf32>
    %105 = tpu.matmul %103, %104, %cst_47 {dimension_numbers = #tpu.dot_dimension_numbers<[1], [0], [0], [1], [0, 0, 1, 1], [], []>} : vector<288x4xbf16>, vector<4x32xbf16>, vector<288x32xf32> -> vector<288x32xf32>
    %106 = arith.addf %102, %105 : vector<288x32xf32>
    %107 = vector.extract_strided_slice %101 {offsets = [1, 0], sizes = [288, 4], strides = [1, 1]} : vector<342x4xbf16> to vector<288x4xbf16>
    %108 = vector.extract_strided_slice %21 {offsets = [4, 0], sizes = [4, 32], strides = [1, 1]} : vector<36x32xbf16> to vector<4x32xbf16>
    %cst_48 = arith.constant dense<0.000000e+00> : vector<288x32xf32>
    %109 = tpu.matmul %107, %108, %cst_48 {dimension_numbers = #tpu.dot_dimension_numbers<[1], [0], [0], [1], [0, 0, 1, 1], [], []>} : vector<288x4xbf16>, vector<4x32xbf16>, vector<288x32xf32> -> vector<288x32xf32>
    %110 = arith.addf %106, %109 : vector<288x32xf32>
    %111 = vector.extract_strided_slice %101 {offsets = [2, 0], sizes = [288, 4], strides = [1, 1]} : vector<342x4xbf16> to vector<288x4xbf16>
    %112 = vector.extract_strided_slice %21 {offsets = [8, 0], sizes = [4, 32], strides = [1, 1]} : vector<36x32xbf16> to vector<4x32xbf16>
    %cst_49 = arith.constant dense<0.000000e+00> : vector<288x32xf32>
    %113 = tpu.matmul %111, %112, %cst_49 {dimension_numbers = #tpu.dot_dimension_numbers<[1], [0], [0], [1], [0, 0, 1, 1], [], []>} : vector<288x4xbf16>, vector<4x32xbf16>, vector<288x32xf32> -> vector<288x32xf32>
    %114 = arith.addf %110, %113 : vector<288x32xf32>
    %115 = vector.extract_strided_slice %101 {offsets = [18, 0], sizes = [288, 4], strides = [1, 1]} : vector<342x4xbf16> to vector<288x4xbf16>
    %116 = vector.extract_strided_slice %21 {offsets = [12, 0], sizes = [4, 32], strides = [1, 1]} : vector<36x32xbf16> to vector<4x32xbf16>
    %cst_50 = arith.constant dense<0.000000e+00> : vector<288x32xf32>
    %117 = tpu.matmul %115, %116, %cst_50 {dimension_numbers = #tpu.dot_dimension_numbers<[1], [0], [0], [1], [0, 0, 1, 1], [], []>} : vector<288x4xbf16>, vector<4x32xbf16>, vector<288x32xf32> -> vector<288x32xf32>
    %118 = arith.addf %114, %117 : vector<288x32xf32>
    %119 = vector.extract_strided_slice %101 {offsets = [19, 0], sizes = [288, 4], strides = [1, 1]} : vector<342x4xbf16> to vector<288x4xbf16>
    %120 = vector.extract_strided_slice %21 {offsets = [16, 0], sizes = [4, 32], strides = [1, 1]} : vector<36x32xbf16> to vector<4x32xbf16>
    %cst_51 = arith.constant dense<0.000000e+00> : vector<288x32xf32>
    %121 = tpu.matmul %119, %120, %cst_51 {dimension_numbers = #tpu.dot_dimension_numbers<[1], [0], [0], [1], [0, 0, 1, 1], [], []>} : vector<288x4xbf16>, vector<4x32xbf16>, vector<288x32xf32> -> vector<288x32xf32>
    %122 = arith.addf %118, %121 : vector<288x32xf32>
    %123 = vector.extract_strided_slice %101 {offsets = [20, 0], sizes = [288, 4], strides = [1, 1]} : vector<342x4xbf16> to vector<288x4xbf16>
    %124 = vector.extract_strided_slice %21 {offsets = [20, 0], sizes = [4, 32], strides = [1, 1]} : vector<36x32xbf16> to vector<4x32xbf16>
    %cst_52 = arith.constant dense<0.000000e+00> : vector<288x32xf32>
    %125 = tpu.matmul %123, %124, %cst_52 {dimension_numbers = #tpu.dot_dimension_numbers<[1], [0], [0], [1], [0, 0, 1, 1], [], []>} : vector<288x4xbf16>, vector<4x32xbf16>, vector<288x32xf32> -> vector<288x32xf32>
    %126 = arith.addf %122, %125 : vector<288x32xf32>
    %127 = vector.extract_strided_slice %101 {offsets = [36, 0], sizes = [288, 4], strides = [1, 1]} : vector<342x4xbf16> to vector<288x4xbf16>
    %128 = vector.extract_strided_slice %21 {offsets = [24, 0], sizes = [4, 32], strides = [1, 1]} : vector<36x32xbf16> to vector<4x32xbf16>
    %cst_53 = arith.constant dense<0.000000e+00> : vector<288x32xf32>
    %129 = tpu.matmul %127, %128, %cst_53 {dimension_numbers = #tpu.dot_dimension_numbers<[1], [0], [0], [1], [0, 0, 1, 1], [], []>} : vector<288x4xbf16>, vector<4x32xbf16>, vector<288x32xf32> -> vector<288x32xf32>
    %130 = arith.addf %126, %129 : vector<288x32xf32>
    %131 = vector.extract_strided_slice %101 {offsets = [37, 0], sizes = [288, 4], strides = [1, 1]} : vector<342x4xbf16> to vector<288x4xbf16>
    %132 = vector.extract_strided_slice %21 {offsets = [28, 0], sizes = [4, 32], strides = [1, 1]} : vector<36x32xbf16> to vector<4x32xbf16>
    %cst_54 = arith.constant dense<0.000000e+00> : vector<288x32xf32>
    %133 = tpu.matmul %131, %132, %cst_54 {dimension_numbers = #tpu.dot_dimension_numbers<[1], [0], [0], [1], [0, 0, 1, 1], [], []>} : vector<288x4xbf16>, vector<4x32xbf16>, vector<288x32xf32> -> vector<288x32xf32>
    %134 = arith.addf %130, %133 : vector<288x32xf32>
    %135 = vector.extract_strided_slice %101 {offsets = [38, 0], sizes = [288, 4], strides = [1, 1]} : vector<342x4xbf16> to vector<288x4xbf16>
    %136 = vector.extract_strided_slice %21 {offsets = [32, 0], sizes = [4, 32], strides = [1, 1]} : vector<36x32xbf16> to vector<4x32xbf16>
    %cst_55 = arith.constant dense<0.000000e+00> : vector<288x32xf32>
    %137 = tpu.matmul %135, %136, %cst_55 {dimension_numbers = #tpu.dot_dimension_numbers<[1], [0], [0], [1], [0, 0, 1, 1], [], []>} : vector<288x4xbf16>, vector<4x32xbf16>, vector<288x32xf32> -> vector<288x32xf32>
    %138 = arith.addf %134, %137 : vector<288x32xf32>
    %139 = vector.broadcast %22 : vector<1x32xf32> to vector<288x32xf32>
    %140 = arith.addf %138, %139 : vector<288x32xf32>
    %cst_56 = arith.constant 0.000000e+00 : f32
    %141 = vector.broadcast %cst_56 : f32 to vector<288x32xf32>
    %142 = arith.maximumf %140, %141 : vector<288x32xf32>
    %143 = vector.broadcast %20 : vector<288x1xf32> to vector<288x32xf32>
    %144 = arith.mulf %142, %143 : vector<288x32xf32>
    %cst_57 = arith.constant dense<0.000000e+00> : vector<32xf32>
    %145 = vector.multi_reduction <add>, %144, %cst_57 [0] : vector<288x32xf32> to vector<32xf32>
    %146 = vector.shape_cast %145 : vector<32xf32> to vector<1x32xf32>
    %cst_58 = arith.constant 3.906250e-03 : f32
    %147 = vector.broadcast %cst_58 : f32 to vector<1x32xf32>
    %148 = arith.mulf %146, %147 : vector<1x32xf32>
    %c1_59 = arith.constant 1 : index
    %c0_60 = arith.constant 0 : index
    %c0_61 = arith.constant 0 : index
    %149 = vector.load %arg2[%c1_59, %c0_60, %c0_61] : memref<2x256x4xbf16, #tpu.memory_space<vmem>>, vector<1x256x4xbf16>
    %150 = vector.shape_cast %149 : vector<1x256x4xbf16> to vector<256x4xbf16>
    %cst_62 = arith.constant dense<0.000000e+00> : vector<256x32xf32>
    %151 = tpu.matmul %150, %23, %cst_62 {dimension_numbers = #tpu.dot_dimension_numbers<[1], [0], [0], [1], [0, 0, 1, 1], [], []>} : vector<256x4xbf16>, vector<4x32xbf16>, vector<256x32xf32> -> vector<256x32xf32>
    %152 = vector.broadcast %24 : vector<1x32xf32> to vector<256x32xf32>
    %153 = arith.addf %151, %152 : vector<256x32xf32>
    %cst_63 = arith.constant 0.000000e+00 : f32
    %154 = vector.broadcast %cst_63 : f32 to vector<256x32xf32>
    %155 = arith.maximumf %153, %154 : vector<256x32xf32>
    %cst_64 = arith.constant dense<0.000000e+00> : vector<32xf32>
    %156 = vector.multi_reduction <add>, %155, %cst_64 [0] : vector<256x32xf32> to vector<32xf32>
    %157 = vector.shape_cast %156 : vector<32xf32> to vector<1x32xf32>
    %cst_65 = arith.constant 2.560000e+02 : f32
    %158 = vector.broadcast %cst_65 : f32 to vector<1x32xf32>
    %159 = arith.divf %157, %158 : vector<1x32xf32>
    %c1_66 = arith.constant 1 : index
    %c0_67 = arith.constant 0 : index
    %c0_68 = arith.constant 0 : index
    %160 = vector.load %arg3[%c1_66, %c0_67, %c0_68] : memref<2x8x32xbf16, #tpu.memory_space<vmem>>, vector<1x8x32xbf16>
    %161 = vector.shape_cast %160 : vector<1x8x32xbf16> to vector<8x32xbf16>
    %cst_69 = arith.constant dense<0.000000e+00> : vector<8x32xf32>
    %162 = tpu.matmul %161, %25, %cst_69 {dimension_numbers = #tpu.dot_dimension_numbers<[1], [0], [0], [1], [0, 0, 1, 1], [], []>} : vector<8x32xbf16>, vector<32x32xbf16>, vector<8x32xf32> -> vector<8x32xf32>
    %163 = vector.broadcast %26 : vector<1x32xf32> to vector<8x32xf32>
    %164 = arith.addf %162, %163 : vector<8x32xf32>
    %cst_70 = arith.constant 0.000000e+00 : f32
    %165 = vector.broadcast %cst_70 : f32 to vector<8x32xf32>
    %166 = arith.maximumf %164, %165 : vector<8x32xf32>
    %cst_71 = arith.constant dense<0.000000e+00> : vector<32xf32>
    %167 = vector.multi_reduction <add>, %166, %cst_71 [0] : vector<8x32xf32> to vector<32xf32>
    %168 = vector.shape_cast %167 : vector<32xf32> to vector<1x32xf32>
    %cst_72 = arith.constant 8.000000e+00 : f32
    %169 = vector.broadcast %cst_72 : f32 to vector<1x32xf32>
    %170 = arith.divf %168, %169 : vector<1x32xf32>
    %cst_73 = arith.constant 0.000000e+00 : f32
    %171 = vector.broadcast %cst_73 : f32 to vector<1x32xf32>
    %172 = tpu.concatenate %148, %159, %170, %171 in 1 : vector<1x32xf32>, vector<1x32xf32>, vector<1x32xf32>, vector<1x32xf32> -> vector<1x128xf32>
    %173 = tpu.concatenate %99, %172 in 0 : vector<1x128xf32>, vector<1x128xf32> -> vector<2x128xf32>
    %c0_74 = arith.constant 0 : index
    %c0_75 = arith.constant 0 : index
    %174 = vector.load %arg10[%c0_74, %c0_75] : memref<2x128xf32, #tpu.memory_space<vmem>>, vector<2x128xf32>
    tpu.vector_store %arg10[%c0_74, %c0_75], %173 {strides = array<i32>} : memref<2x128xf32, #tpu.memory_space<vmem>>, vector<2x128xf32>,
    return
  }
  func.func @transform_0(%arg0: i32) -> (i32, i32, i32) {
    %c0_i32 = arith.constant 0 : i32
    %c0_i32_0 = arith.constant 0 : i32
    %c0_i32_1 = arith.constant 0 : i32
    %c0_i32_2 = arith.constant 0 : i32
    return %c0_i32, %c0_i32_0, %c0_i32_1 : i32, i32, i32
  }
  func.func @transform_1(%arg0: i32) -> (i32, i32, i32) {
    %c0_i32 = arith.constant 0 : i32
    %c0_i32_0 = arith.constant 0 : i32
    %c0_i32_1 = arith.constant 0 : i32
    %c0_i32_2 = arith.constant 0 : i32
    return %c0_i32, %c0_i32_0, %c0_i32_1 : i32, i32, i32
  }
  func.func @transform_2(%arg0: i32) -> (i32, i32, i32) {
    %c0_i32 = arith.constant 0 : i32
    %c0_i32_0 = arith.constant 0 : i32
    %c0_i32_1 = arith.constant 0 : i32
    %c0_i32_2 = arith.constant 0 : i32
    return %c0_i32, %c0_i32_0, %c0_i32_1 : i32, i32, i32
  }
  func.func @transform_3(%arg0: i32) -> (i32, i32) {
    %c0_i32 = arith.constant 0 : i32
    %c0_i32_0 = arith.constant 0 : i32
    %c0_i32_1 = arith.constant 0 : i32
    return %c0_i32, %c0_i32_0 : i32, i32
  }
  func.func @transform_4(%arg0: i32) -> (i32, i32) {
    %c0_i32 = arith.constant 0 : i32
    %c0_i32_0 = arith.constant 0 : i32
    %c0_i32_1 = arith.constant 0 : i32
    return %c0_i32, %c0_i32_0 : i32, i32
  }
  func.func @transform_5(%arg0: i32) -> (i32, i32) {
    %c0_i32 = arith.constant 0 : i32
    %c0_i32_0 = arith.constant 0 : i32
    %c0_i32_1 = arith.constant 0 : i32
    return %c0_i32, %c0_i32_0 : i32, i32
  }
  func.func @transform_6(%arg0: i32) -> (i32, i32) {
    %c0_i32 = arith.constant 0 : i32
    %c0_i32_0 = arith.constant 0 : i32
    %c0_i32_1 = arith.constant 0 : i32
    return %c0_i32, %c0_i32_0 : i32, i32
  }
  func.func @transform_7(%arg0: i32) -> (i32, i32) {
    %c0_i32 = arith.constant 0 : i32
    %c0_i32_0 = arith.constant 0 : i32
    %c0_i32_1 = arith.constant 0 : i32
    return %c0_i32, %c0_i32_0 : i32, i32
  }
  func.func @transform_8(%arg0: i32) -> (i32, i32) {
    %c0_i32 = arith.constant 0 : i32
    %c0_i32_0 = arith.constant 0 : i32
    %c0_i32_1 = arith.constant 0 : i32
    return %c0_i32, %c0_i32_0 : i32, i32
  }
  func.func @transform_9(%arg0: i32) -> (i32, i32) {
    %c0_i32 = arith.constant 0 : i32
    %c0_i32_0 = arith.constant 0 : i32
    %c0_i32_1 = arith.constant 0 : i32
    return %c0_i32, %c0_i32_0 : i32, i32
  }
}

</mosaic_0001>

<bundles_post_ra>
// kernel: _fused_backbone.1
= control target key start
LH: loop header
LB: loop body
LE: loop exit
PB: predicated region body
PF: predicated region fallthrough
CT: control target
= control target key end

     0   :  { %vm1109_vm0 = vcmask 1041408   ;;  %vm1054_vm1 = vcmask 31744   ;;  %vm901_vm2 = vsmask.f32 7424  ;;  %vm1506_vm3 = vcmask 1046528   ;;  %s9763_s19 = smov 32   ;;  %s14832_s3 = inlined_call_operand.vmem [shape: bf16[36,32], index: 3, kind: input, shape index: {}]   ;;  %s14833_s0 = inlined_call_operand.vmem [shape: bf16[2,342,4], index: 0, kind: input, shape index: {}]   ;;  %s14834_s5 = inlined_call_operand.vmem [shape: bf16[4,32], index: 5, kind: input, shape index: {}]   ;;  %s14835_s1 = inlined_call_operand.vmem [shape: bf16[2,256,4], index: 1, kind: input, shape index: {}]   ;;  %s14836_s7 = inlined_call_operand.vmem [shape: bf16[32,32], index: 7, kind: input, shape index: {}]   ;;  %s14837_s2 = inlined_call_operand.vmem [shape: bf16[2,8,32], index: 2, kind: input, shape index: {}]   ;;  %s14838_s6 = inlined_call_operand.vmem [shape: f32[1,32], index: 6, kind: input, shape index: {}]   ;;  %s14839_s4 = inlined_call_operand.vmem [shape: f32[1,32], index: 4, kind: input, shape index: {}]   ;;  %s14840_s8 = inlined_call_operand.vmem [shape: f32[1,32], index: 8, kind: input, shape index: {}]   ;;  %s14841_s9 = inlined_call_operand.vmem [shape: f32[2,128], index: 9, kind: output, shape index: {}]  }
   0x1   :  { %v754_v0 = vld [vmem:[%s14832_s3] sm:$0xf]  ;;  %v9831_v4 = vld [vmem:[%s14833_s0 + $0x8] sm:$0xff]   ;;  %v9836_v5 = vld [vmem:[%s14832_s3 + $0x4] sm:$0xf]  ;;  %vm2406_vm4 = vcmask 1045504  }
   0x2   :  { %9521 = vmatprep.subr.msk.bf16.mxu1 %vm1109_vm0, %v754_v0  ;;  %v9820_v1 = vsel %vm1109_vm0, %v754_v0, 0  ;;  %v9825_v2 = vld [vmem:[%s14833_s0] sm:$0xff]   ;;  %v7870_v3 = vcombine.low %v754_v0, %v754_v0  ;;  %v7927_v6 = vcombine.low %v9836_v5, %v9836_v5  ;;  %v9849_v10 = vld [vmem:[%s14833_s0 + $0x10] sm:$0xff]   ;;  %v910_v11 = vshll.u32 %v9831_v4, 16  ;;  %v9869_v17 = vld [vmem:[%s14833_s0 + $0x18] sm:$0xff]   ;;  %s9764_s20 = smov 64  }
   0x3   :  { %15038 = vst [vmem:[#allocation2_spill] sm:$0xff] %v9820_v1  ;;  %8791 = vmatpush3.bf16.msra.mxu1 %v9820_v1  ;;  %8792 = vmatprep.mubr.msk.bf16.mxu1 %vm1054_vm1, %v9825_v2  ;;  %v903_v8 = vshrl.u32 %v9825_v2, 16  ;;  %v905_v9 = vshll.u32 %v9825_v2, 16  ;;  %v914_v12 = vshrl.u32 %v9831_v4, 16  ;;  %v9864_v16 = vshll.u32 %v9849_v10, 16  ;;  %v9874_v18 = vld [vmem:[%s14833_s0 + $0x20] sm:$0xff]  }
   0x4   :  { %v9842_v7 = vrot.slane %v7870_v3, 2  ;;  %v9855_v13 = vrot.slane %v7927_v6, 2  ;;  %v912_v19 = vrot.slane %v910_v11, 1  ;;  %v9882_v20 = vshrl.u32 %v9849_v10, 16  ;;  %v9887_v21 = vld [vmem:[%s14833_s0 + $0x28] sm:$0xff]   ;;  %v9927_v37 = vld [vmem:[%s14833_s0 + $0x30] sm:$0xff]  }
   0x5   :  { %v907_v15 = vrot.slane %v905_v9, 1  ;;  %v920_v24 = vrot.slane %v9864_v16, 1  ;;  %v9897_v25 = vshll.u32 %v9869_v17, 16  ;;  %v9905_v27 = vshrl.u32 %v9869_v17, 16  ;;  %v9938_v41 = vld [vmem:[%s14833_s0 + $0x38] sm:$0xff]   ;;  %v9961_v49 = vld [vmem:[%s14833_s0 + $0x40] sm:$0xff]  }
   0x6   :  { %15039 = vst [vmem:[#allocation3_spill] sm:$0xff] %v9842_v7  ;;  %8793 = vmatmul.mubr.msk.bf16.vlgmr.msra.gmra.mxu1 %vm1054_vm1, %v9831_v4  ;;  %15040 = vst [vmem:[#allocation4_spill] sm:$0xff] %v9855_v13  ;;  %9520 = vmatprep.subr.msk.bf16.mxu0 %vm1109_vm0, %v9842_v7  ;;  %v9861_v14 = vsel %vm1109_vm0, %v9842_v7, 0  ;;  %v9893_v22 = vsel %vm1109_vm0, %v9855_v13, 0  ;;  %v916_v26 = vor.u32 %v914_v12, %v912_v19  ;;  %v9908_v28 = vshll.u32 %v9874_v18, 16  ;;  %v9972_v53 = vld [vmem:[%s14833_s0 + $0x48] sm:$0xff]  }
   0x7   :  { %15041 = vst [vmem:[#allocation5_spill] sm:$0xff] %v9861_v14  ;;  %8753 = vmatpush3.bf16.msra.mxu0 %v9861_v14  ;;  %8796 = vmatprep.mubr.msk.bf16.mxu1 %vm1054_vm1, %v9849_v10  ;;  %15042 = vst [vmem:[#allocation6_spill] sm:$0xff] %v9893_v22  ;;  %v908_v23 = vor.u32 %v907_v15, %v903_v8  ;;  %v924_v30 = vor.u32 %v9882_v20, %v920_v24  ;;  %v928_v31 = vrot.slane %v9897_v25, 1  ;;  %v9993_v60 = vld [vmem:[%s14833_s0 + $0x50] sm:$0xff]   ;;  %v10000_v62 = vld [vmem:[%s14832_s3 + $0x8] sm:$0xf] }
   0x8   :  { %9523 = vmatprep.subr.msk.bf16.mxu1 %vm1109_vm0, %v9855_v13  ;;  %9522 = vmatprep.subr.msk.bf16.mxu0 %vm1109_vm0, %v9836_v5  ;;  %v9914_v32 = vshrl.u32 %v9874_v18, 16  ;;  %v921_v33 = vsel %vm901_vm2, %v916_v26, %v920_v24  ;;  %v9919_v34 = vshll.u32 %v9887_v21, 16  ;;  %v936_v36 = vrot.slane %v9908_v28, 1  ;;  %v10011_v6 = vld [vmem:[%s14833_s0 + $0x58] sm:$0xff]  }
   0x9   :  { %8867 = vmatpush3.bf16.msra.mxu1 %v9893_v22  ;;  %v913_v29 = vsel %vm901_vm2, %v908_v23, %v912_v19  ;;  %v929_v35 = vsel %vm901_vm2, %v924_v30, %v928_v31  ;;  %v932_v38 = vor.u32 %v9905_v27, %v928_v31  ;;  %v9943_v42 = vshll.u32 %v9927_v37, 16  ;;  %v10164_v22 = vld [vmem:[%s14833_s0 + $0x90] sm:$0xf] }
   0xa   :  { %8754 = vmatprep.mubr.msk.bf16.mxu0 %vm1054_vm1, %v913_v29  ;;  %v940_v39 = vor.u32 %v9914_v32, %v936_v36  ;;  %v944_v40 = vrot.slane %v9919_v34, 1  ;;  %v9947_v44 = vshrl.u32 %v9887_v21, 16  ;;  %v9951_v46 = vshrl.u32 %v9927_v37, 16 }
   0xb   :  { %8755 = vmatmul.mubr.msk.bf16.vlgmr.msra.gmra.mxu0 %vm1054_vm1, %v921_v33  ;;  %v937_v43 = vsel %vm901_vm2, %v932_v38, %v936_v36  ;;  %v9954_v47 = vshll.u32 %v9938_v41, 16  ;;  %v952_v48 = vrot.slane %v9943_v42, 1  ;;  %v9977_v54 = vshll.u32 %v9961_v49, 16 }
   0xc   :  { %8758 = vmatprep.mubr.msk.bf16.mxu0 %vm1054_vm1, %v929_v35  ;;  %v945_v45 = vsel %vm901_vm2, %v940_v39, %v944_v40  ;;  %v948_v50 = vor.u32 %v9947_v44, %v944_v40  ;;  %v9981_v56 = vshrl.u32 %v9938_v41, 16  ;;  %v9985_v58 = vshrl.u32 %v9961_v49, 16  ;;  %v10054_v35 = vld [vmem:[%s14833_s0 + $0x60] sm:$0xff]   ;;  %v10065_v40 = vld [vmem:[%s14833_s0 + $0x68] sm:$0xff]  }
   0xd   :  { %v956_v51 = vor.u32 %v9951_v46, %v952_v48  ;;  %v960_v52 = vrot.slane %v9954_v47, 1  ;;  %v9988_v59 = vshll.u32 %v9972_v53, 16  ;;  %v968_v61 = vrot.slane %v9977_v54, 1 }
   0xe   :  { %8797 = vmatmul.mubr.msk.bf16.gmra.mxu1 %vm1054_vm1, %v9869_v17  ;;  %v953_v55 = vsel %vm901_vm2, %v948_v50, %v952_v48  ;;  %v10016_v8 = vshll.u32 %v9993_v60, 16  ;;  %v14842_v9 = vrot.slane %v9831_v4, 1  ;;  %v7964_v15 = vcombine.low %v10000_v62, %v10000_v62 }
   0xf   :  { %8800 = vmatprep.mubr.msk.bf16.mxu1 %vm1054_vm1, %v9874_v18  ;;  %v961_v57 = vsel %vm901_vm2, %v956_v51, %v960_v52  ;;  %v964_v63 = vor.u32 %v9981_v56, %v960_v52  ;;  %v972_v0 = vor.u32 %v9985_v58, %v968_v61  ;;  %v976_v3 = vrot.slane %v9988_v59, 1 }
  0x10   :  { %v10023_v19 = vsel %vm1109_vm0, %v9836_v5, 0  ;;  %v1507_v23 = vrot.slane %v9825_v2, 1  ;;  %v10028_v26 = vshrl.u32 %v9972_v53, 16  ;;  %v10030_v29 = vrot.slane %v7964_v15, 2  ;;  %v10107_v15 = vld [vmem:[%s14833_s0 + $0x78] sm:$0xff]  }
  0x11   :  { %15043 = vst [vmem:[#allocation7_spill] sm:$0xff] %v10023_v19  ;;  %v969_v24 = vsel %vm901_vm2, %v964_v63, %v968_v61  ;;  %8829 = vmatpush3.bf16.msra.mxu0 %v10023_v19  ;;  %v977_v30 = vsel %vm901_vm2, %v972_v0, %v976_v3  ;;  %v10035_v31 = vshrl.u32 %v9993_v60, 16  ;;  %v10038_v5 = vshll.u32 %v10011_v6, 16  ;;  %v10092_v61 = vld [vmem:[%s14833_s0 + $0x70] sm:$0xff]  }
  0x12   :  { %15044 = vst [vmem:[#allocation8_spill] sm:$0xff] %v10030_v29  ;;  %v10043_v2 = vsel %vm1506_vm3, %v1507_v23, %v14842_v9  ;;  %9524 = vmatprep.subr.msk.bf16.mxu0 %vm1109_vm0, %v10000_v62  ;;  %9525 = vmatprep.subr.msk.bf16.mxu1 %vm1109_vm0, %v10030_v29  ;;  %v984_v33 = vrot.slane %v10016_v8, 1  ;;  %v980_v36 = vor.u32 %v10028_v26, %v976_v3  ;;  %v10074_v48 = vshrl.u32 %v10011_v6, 16 }
  0x13   :  { %8759 = vmatmul.mubr.msk.bf16.gmra.mxu0 %vm1054_vm1, %v937_v43  ;;  %v992_v39 = vrot.slane %v10038_v5, 1  ;;  %v10070_v43 = vshll.u32 %v10054_v35, 16  ;;  %v10078_v50 = vrot.slane %v910_v11, 2  ;;  %v10082_v52 = vshrl.u32 %v10054_v35, 16 }
  0x14   :  { %8762 = vmatprep.mubr.msk.bf16.mxu0 %vm1054_vm1, %v945_v45  ;;  %v988_v38 = vor.u32 %v10035_v31, %v984_v33  ;;  %v985_v45 = vsel %vm901_vm2, %v980_v36, %v984_v33  ;;  %v10096_v11 = vrot.slane %v914_v12, 1  ;;  %v10114_v23 = vshll.u32 %v10092_v61, 16 }
  0x15   :  { %v996_v63 = vor.u32 %v10074_v48, %v992_v39  ;;  %v10122_v36 = vshrl.u32 %v10092_v61, 16  ;;  %vm2050_vm5 = vsmask.f32 6400  ;;  %vm2950_vm6 = vsmask.f32 5376 }
  0x16   :  { %8801 = vmatmul.mubr.msk.bf16.gmra.mxu1 %vm1054_vm1, %v9887_v21  ;;  %v993_v51 = vsel %vm901_vm2, %v988_v38, %v992_v39  ;;  %v10125_v38 = vshll.u32 %v10107_v15, 16  ;;  %v1016_v39 = vrot.slane %v10114_v23, 1  ;;  %vm14964_vm7 = vcmask 1044480  }
  0x17   :  { %8804 = vmatprep.mubr.msk.bf16.mxu1 %vm1054_vm1, %v9927_v37  ;;  %vm3732_vm8 = vcmask 261120   ;;  %vm14963_vm9 = vmmov 0  }
  0x18   :  { %15045 = vst [vmem:[#allocation9_spill] sm:$0xff] %v10125_v38 }
  0x1b   :  { %8763 = vmatmul.mubr.msk.bf16.gmra.mxu0 %vm1054_vm1, %v953_v55  ;;  %v10085_v55 = vshll.u32 %v10065_v40, 16 }
  0x1c   :  { %8766 = vmatprep.mubr.msk.bf16.mxu0 %vm1054_vm1, %v961_v57  ;;  %v1000_v57 = vrot.slane %v10070_v43, 1 }
  0x1d   :  { %v1008_v3 = vrot.slane %v10085_v55, 1 }
  0x1e   :  { %8805 = vmatmul.mubr.msk.bf16.gmra.mxu1 %vm1054_vm1, %v9938_v41  ;;  %v1004_v0 = vor.u32 %v10082_v52, %v1000_v57 }
  0x1f   :  { %8808 = vmatprep.mubr.msk.bf16.mxu1 %vm1054_vm1, %v9961_v49 }
  0x20   :  { %v1009_v33 = vsel %vm901_vm2, %v1004_v0, %v1008_v3  ;;  %v10143_v0 = vld [vmem:[%s14833_s0 + $0x88] sm:$0xff]  }
  0x21   :  { %v10159_v19 = vshll.u32 %v10143_v0, 16 }
  0x23   :  { %8767 = vmatmul.mubr.msk.bf16.gmra.mxu0 %vm1054_vm1, %v969_v24  ;;  %v1001_v24 = vsel %vm901_vm2, %v996_v63, %v1000_v57  ;;  %v1020_v57 = vor.u32 %v10122_v36, %v1016_v39  ;;  %v1024_v63 = vrot.slane %v10125_v38, 1  ;;  %15048 = vst [vmem:[#allocation12_spill] sm:$0xff] %v10159_v19  ;;  %v1040_v1 = vrot.slane %v10159_v19, 1 }
  0x24   :  { %8770 = vmatprep.mubr.msk.bf16.mxu0 %vm1054_vm1, %v977_v30  ;;  %v10118_v30 = vshrl.u32 %v10065_v40, 16 }
  0x25   :  { %v1025_v12 = vsel %vm901_vm2, %v1020_v57, %v1024_v63  ;;  %v10172_v57 = vcombine.low %v10164_v22, %v10164_v22 }
  0x26   :  { %8809 = vmatmul.mubr.msk.bf16.gmra.mxu1 %vm1054_vm1, %v9972_v53 }
  0x27   :  { %8812 = vmatprep.mubr.msk.bf16.mxu1 %vm1054_vm1, %v9993_v60  ;;  %v1046_v14 = vshll.u32 %v10172_v57, 16 }
  0x29   :  { %v1048_v38 = vrot.slane %v1046_v14, 1 }
  0x2b   :  { %8771 = vmatmul.mubr.msk.bf16.gmra.mxu0 %vm1054_vm1, %v985_v45  ;;  %v10132_v45 = vld [vmem:[%s14833_s0 + $0x80] sm:$0xff]  }
  0x2c   :  { %8774 = vmatprep.mubr.msk.bf16.mxu0 %vm1054_vm1, %v993_v51  ;;  %v1012_v51 = vor.u32 %v10118_v30, %v1008_v3  ;;  %v10156_v9 = vshrl.u32 %v10132_v45, 16 }
  0x2e   :  { %8813 = vmatmul.mubr.msk.bf16.gmra.mxu1 %vm1054_vm1, %v10011_v6  ;;  %v1017_v3 = vsel %vm901_vm2, %v1012_v51, %v1016_v39  ;;  %15047 = vst [vmem:[#allocation11_spill] sm:$0xff] %v10156_v9 }
  0x2f   :  { %8816 = vmatprep.mubr.msk.bf16.mxu1 %vm1054_vm1, %v10054_v35 }
  0x33   :  { %8775 = vmatmul.mubr.msk.bf16.gmra.mxu0 %vm1054_vm1, %v1001_v24  ;;  %v10148_v24 = vshll.u32 %v10132_v45, 16 }
  0x34   :  { %8778 = vmatprep.mubr.msk.bf16.mxu0 %vm1054_vm1, %v1009_v33  ;;  %v10152_v33 = vshrl.u32 %v10107_v15, 16 }
  0x35   :  { %15046 = vst [vmem:[#allocation10_spill] sm:$0xff] %v10148_v24  ;;  %v1032_v39 = vrot.slane %v10148_v24, 1  ;;  %v15050_v24 = vrot.slane %v9831_v4, 1 }
  0x36   :  { %8817 = vmatmul.mubr.msk.bf16.gmra.mxu1 %vm1054_vm1, %v10065_v40  ;;  %v1028_v51 = vor.u32 %v10152_v33, %v1024_v63  ;;  %v10183_v63 = vshrl.u32 %v10143_v0, 16 }
  0x37   :  { %8820 = vmatprep.mubr.msk.bf16.mxu1 %vm1054_vm1, %v10092_v61  ;;  %v1036_v13 = vor.u32 %v10156_v9, %v1032_v39 }
  0x38   :  { %15049 = vst [vmem:[#allocation13_spill] sm:$0xff] %v10183_v63  ;;  %v1044_v9 = vor.u32 %v10183_v63, %v1040_v1 }
  0x39   :  { %v1041_v7 = vsel %vm901_vm2, %v1036_v13, %v1040_v1  ;;  %v1512_v13 = vrot.slane %v9869_v17, 1 }
  0x3a   :  { %v1049_v1 = vsel %vm901_vm2, %v1044_v9, %v1048_v38  ;;  %v1516_v9 = vrot.slane %v9887_v21, 1  ;;  %v1518_v38 = vrot.slane %v9927_v37, 1 }
  0x3b   :  { %8779 = vmatmul.mubr.msk.bf16.gmra.mxu0 %vm1054_vm1, %v1017_v3  ;;  %v1510_v3 = vrot.slane %v9849_v10, 1 }
  0x3c   :  { %8782 = vmatprep.mubr.msk.bf16.mxu0 %vm1054_vm1, %v1025_v12  ;;  %v1033_v12 = vsel %vm901_vm2, %v1028_v51, %v1032_v39  ;;  %v10196_v39 = vld [vmem:[%s14832_s3 + $0xc] sm:$0xf]  ;;  %v1514_v51 = vrot.slane %v9874_v18, 1 }
  0x3d   :  { %v1511_v19 = vsel %vm1506_vm3, %v15050_v24, %v1510_v3  ;;  %v1513_v14 = vsel %vm1506_vm3, %v1510_v3, %v1512_v13  ;;  %v10210_v24 = vsel %vm1109_vm0, %v10030_v29, 0  ;;  %v10226_v3 = vsel %vm1109_vm0, %v10000_v62, 0 }
  0x3e   :  { %8821 = vmatmul.mubr.msk.bf16.gmra.mxu1 %vm1054_vm1, %v10107_v15  ;;  %15051 = vst [vmem:[#allocation14_spill] sm:$0xff] %v10210_v24  ;;  %15053 = vst [vmem:[#allocation16_spill] sm:$0xff] %v10226_v3  ;;  %v1520_v62 = vrot.slane %v9938_v41, 1  ;;  %v2055_v29 = vrot.slane %v9864_v16, 2 }
  0x3f   :  { %8824 = vmatprep.mubr.msk.bf16.mxu1 %vm1054_vm1, %v10132_v45 }
  0x43   :  { %8783 = vmatmul.mubr.msk.bf16.gmra.mxu0 %vm1054_vm1, %v1033_v12  ;;  %v1515_v12 = vsel %vm1506_vm3, %v1512_v13, %v1514_v51  ;;  %v1517_v13 = vsel %vm1506_vm3, %v1514_v51, %v1516_v9  ;;  %v1521_v51 = vsel %vm1506_vm3, %v1518_v38, %v1520_v62 }
  0x44   :  { %8786 = vmatprep.mubr.msk.bf16.mxu0 %vm1054_vm1, %v1041_v7  ;;  %v8003_v7 = vcombine.low %v10196_v39, %v10196_v39 }
  0x46   :  { %8825 = vmatmul.mubr.msk.bf16.gmra.mxu1 %vm1054_vm1, %v10143_v0  ;;  %v10213_v63 = vrot.slane %v8003_v7, 2  ;;  %v1522_v7 = vrot.slane %v9961_v49, 1 }
  0x47   :  { %8868 = vmatprep.mubr.msk.bf16.mxu1 %vm1054_vm1, %v1511_v19 }
  0x48   :  { %15052 = vst [vmem:[#allocation15_spill] sm:$0xff] %v10213_v63 }
  0x4b   :  { %8787 = vmatmul.mubr.msk.bf16.gmra.mxu0 %vm1054_vm1, %v1049_v1  ;;  %v1524_v1 = vrot.slane %v9972_v53, 1 }
  0x4c   :  { %8830 = vmatprep.mubr.msk.bf16.mxu0 %vm1054_vm1, %v10043_v2  ;;  %v1519_v2 = vsel %vm1506_vm3, %v1516_v9, %v1518_v38 }
  0x4d   :  { %v1525_v9 = vsel %vm1506_vm3, %v1522_v7, %v1524_v1 }
  0x4e   :  { %8869 = vmatmul.mubr.msk.bf16.vlgmr.msra.gmra.mxu1 %vm1054_vm1, %v1513_v14 }
  0x4f   :  { %8943 = vmatpush3.bf16.msra.mxu1 %v10210_v24  ;;  %8872 = vmatprep.mubr.msk.bf16.mxu1 %vm1054_vm1, %v1515_v12  ;;  %v2054_v24 = vrot.slane %v9882_v20, 1 }
  0x50   :  { %9527 = vmatprep.subr.msk.bf16.mxu1 %vm1109_vm0, %v10213_v63 }
  0x53   :  { %8831 = vmatmul.mubr.msk.bf16.vlgmr.msra.gmra.mxu0 %vm1054_vm1, %v1511_v19  ;;  %v1523_v19 = vsel %vm1506_vm3, %v1520_v62, %v1522_v7 }
  0x54   :  { %8834 = vmatprep.mubr.msk.bf16.mxu0 %vm1054_vm1, %v1513_v14  ;;  %8905 = vmatpush3.bf16.msra.mxu0 %v10226_v3  ;;  %v1526_v14 = vrot.slane %v9993_v60, 1 }
  0x55   :  { %9526 = vmatprep.subr.msk.bf16.mxu0 %vm1109_vm0, %v10196_v39 }
  0x56   :  { %8873 = vmatmul.mubr.msk.bf16.gmra.mxu1 %vm1054_vm1, %v1517_v13  ;;  %v1527_v38 = vsel %vm1506_vm3, %v1524_v1, %v1526_v14 }
  0x57   :  { %8876 = vmatprep.mubr.msk.bf16.mxu1 %vm1054_vm1, %v1519_v2 }
  0x5b   :  { %8835 = vmatmul.mubr.msk.bf16.gmra.mxu0 %vm1054_vm1, %v1515_v12  ;;  %v1528_v12 = vrot.slane %v10011_v6, 1 }
  0x5c   :  { %8838 = vmatprep.mubr.msk.bf16.mxu0 %vm1054_vm1, %v1517_v13  ;;  %v1530_v13 = vrot.slane %v10054_v35, 1 }
  0x5d   :  { %v1529_v62 = vsel %vm1506_vm3, %v1526_v14, %v1528_v12 }
  0x5e   :  { %8877 = vmatmul.mubr.msk.bf16.gmra.mxu1 %vm1054_vm1, %v1521_v51  ;;  %v1531_v7 = vsel %vm1506_vm3, %v1528_v12, %v1530_v13  ;;  %v804_v12 = vld [vmem:[%s14833_s0 + $0x94] sm:$0xf] }
  0x5f   :  { %8880 = vmatprep.mubr.msk.bf16.mxu1 %vm1054_vm1, %v1523_v19 }
  0x63   :  { %8839 = vmatmul.mubr.msk.bf16.gmra.mxu0 %vm1054_vm1, %v1519_v2  ;;  %v1532_v2 = vrot.slane %v10065_v40, 1 }
  0x64   :  { %8842 = vmatprep.mubr.msk.bf16.mxu0 %vm1054_vm1, %v1521_v51  ;;  %v1534_v51 = vrot.slane %v10092_v61, 1 }
  0x65   :  { %v1533_v1 = vsel %vm1506_vm3, %v1530_v13, %v1532_v2 }
  0x66   :  { %8881 = vmatmul.mubr.msk.bf16.gmra.mxu1 %vm1054_vm1, %v1525_v9  ;;  %v1535_v14 = vsel %vm1506_vm3, %v1532_v2, %v1534_v51  ;;  %v1540_v2 = vrot.slane %v10143_v0, 1 }
  0x67   :  { %8884 = vmatprep.mubr.msk.bf16.mxu1 %vm1054_vm1, %v1527_v38 }
  0x6b   :  { %8843 = vmatmul.mubr.msk.bf16.gmra.mxu0 %vm1054_vm1, %v1523_v19  ;;  %v1536_v19 = vrot.slane %v10107_v15, 1 }
  0x6c   :  { %8846 = vmatprep.mubr.msk.bf16.mxu0 %vm1054_vm1, %v1525_v9  ;;  %v1538_v9 = vrot.slane %v10132_v45, 1 }
  0x6d   :  { %v1537_v13 = vsel %vm1506_vm3, %v1534_v51, %v1536_v19  ;;  %v10288_v51 = vld [vmem:[%s14833_s0 + $0x98] sm:$0xf] }
  0x6e   :  { %8885 = vmatmul.mubr.msk.bf16.gmra.mxu1 %vm1054_vm1, %v1529_v62  ;;  %15055 = vst [vmem:[#allocation18_spill] sm:$0xff] %v10288_v51 }
  0x6f   :  { %8888 = vmatprep.mubr.msk.bf16.mxu1 %vm1054_vm1, %v1531_v7 }
  0x73   :  { %8847 = vmatmul.mubr.msk.bf16.gmra.mxu0 %vm1054_vm1, %v1527_v38  ;;  %v10276_v38 = vcombine.low %v10164_v22, %v804_v12  ;;  %v1541_v22 = vsel %vm1506_vm3, %v1538_v9, %v1540_v2  ;;  %v2407_v12 = vrot.slane %v9831_v4, 2  ;;  %v2056_v4 = vor.u32 %v2055_v29, %v2054_v24 }
  0x74   :  { %8850 = vmatprep.mubr.msk.bf16.mxu0 %vm1054_vm1, %v1529_v62  ;;  %v1539_v62 = vsel %vm1506_vm3, %v1536_v19, %v1538_v9  ;;  %v2408_v9 = vrot.slane %v9849_v10, 2  ;;  %v2410_v10 = vrot.slane %v9869_v17, 2  ;;  %v15056_v29 = vor.u32 %v10078_v50, %v10096_v11 }
  0x75   :  { %15054 = vst [vmem:[#allocation17_spill] sm:$0xff] %v10276_v38  ;;  %v1820_v3 = vrot.slane %v10276_v38, 1  ;;  %v2063_v24 = vrot.slane %v9908_v28, 2 }
  0x76   :  { %8889 = vmatmul.mubr.msk.bf16.gmra.mxu1 %vm1054_vm1, %v1533_v1  ;;  %v2057_v17 = vsel %vm2050_vm5, %v15056_v29, %v2056_v4  ;;  %v10346_v29 = vld [vmem:[%s14834_s5] sm:$0x3] }
  0x77   :  { %8892 = vmatprep.mubr.msk.bf16.mxu1 %vm1054_vm1, %v1535_v14 }
  0x7b   :  { %8851 = vmatmul.mubr.msk.bf16.gmra.mxu0 %vm1054_vm1, %v1531_v7  ;;  %v10293_v7 = vcombine.low %v10288_v51, %v10288_v51  ;;  %v2412_v51 = vrot.slane %v9874_v18, 2 }
  0x7c   :  { %8854 = vmatprep.mubr.msk.bf16.mxu0 %vm1054_vm1, %v1533_v1  ;;  %v1821_v1 = vsel %vm1506_vm3, %v1540_v2, %v1820_v3 }
  0x7d   :  { %v1822_v19 = vrot.slane %v10293_v7, 1  ;;  %v10338_v50 = vsel %vm2406_vm4, %v2410_v10, %v2412_v51 }
  0x7e   :  { %8893 = vmatmul.mubr.msk.bf16.gmra.mxu1 %vm1054_vm1, %v1537_v13 }
  0x7f   :  { %8896 = vmatprep.mubr.msk.bf16.mxu1 %vm1054_vm1, %v1539_v62 }
  0x83   :  { %8855 = vmatmul.mubr.msk.bf16.gmra.mxu0 %vm1054_vm1, %v1535_v14  ;;  %v1823_v14 = vsel %vm1506_vm3, %v1820_v3, %v1822_v19  ;;  %v14864_v3 = vshrl.u32 %v10276_v38, 16 }
  0x84   :  { %8858 = vmatprep.mubr.msk.bf16.mxu0 %vm1054_vm1, %v1537_v13  ;;  %v2409_v13 = vsel %vm2406_vm4, %v2407_v12, %v2408_v9  ;;  %v2062_v12 = vrot.slane %v9914_v32, 1 }
  0x85   :  { %v3014_v18 = vrot.slane %v14864_v3, 2  ;;  %v2090_v3 = vrot.slane %v10074_v48, 1 }
  0x86   :  { %8897 = vmatmul.mubr.msk.bf16.gmra.mxu1 %vm1054_vm1, %v1541_v22 }
  0x87   :  { %8900 = vmatprep.mubr.msk.bf16.mxu1 %vm1054_vm1, %v1821_v1  ;;  %v1542_v1 = vrot.slane %v10172_v57, 1  ;;  %v2059_v57 = vrot.slane %v9897_v25, 2 }
  0x89   :  { %v1543_v19 = vsel %vm1506_vm3, %v1540_v2, %v1542_v1  ;;  %v10330_v2 = vsel %vm2406_vm4, %v2408_v9, %v2410_v10  ;;  %v2064_v9 = vor.u32 %v2063_v24, %v2062_v12  ;;  %v2414_v10 = vrot.slane %v9887_v21, 2 }
  0x8a   :  { %v2070_v24 = vrot.slane %v9951_v46, 1  ;;  %v10365_v21 = vsel %vm1109_vm0, %v10196_v39, 0  ;;  %v2418_v39 = vrot.slane %v9938_v41, 2 }
  0x8b   :  { %8859 = vmatmul.mubr.msk.bf16.gmra.mxu0 %vm1054_vm1, %v1539_v62  ;;  %v14863_v62 = vshll.u32 %v10276_v38, 16  ;;  %15059 = vst [vmem:[#allocation21_spill] sm:$0xff] %v10365_v21 }
  0x8c   :  { %8862 = vmatprep.mubr.msk.bf16.mxu0 %vm1054_vm1, %v1541_v22  ;;  %v2058_v22 = vrot.slane %v9905_v27, 1 }
  0x8e   :  { %8901 = vmatmul.mubr.msk.bf16.gmra.mxu1 %vm1054_vm1, %v1823_v14  ;;  %v3015_v14 = vrot.slane %v14863_v62, 3  ;;  %v2060_v1 = vor.u32 %v2059_v57, %v2058_v22  ;;  %v2066_v57 = vrot.slane %v9947_v44, 1  ;;  %v2079_v62 = vrot.slane %v9977_v54, 2 }
  0x8f   :  { %8944 = vmatprep.mubr.msk.bf16.mxu1 %vm1054_vm1, %v2409_v13  ;;  %v10335_v13 = vsel %vm1109_vm0, %v10213_v63, 0 }
  0x90   :  { %15057 = vst [vmem:[#allocation19_spill] sm:$0xff] %v10335_v13  ;;  %v10340_v11 = vor.u32 %v3015_v14, %v3014_v18  ;;  %v2061_v22 = vsel %vm2050_vm5, %v2056_v4, %v2060_v1  ;;  %v2065_v12 = vsel %vm2050_vm5, %v2060_v1, %v2064_v9  ;;  %v2071_v18 = vrot.slane %v9943_v42, 2 }
  0x92   :  { %15058 = vst [vmem:[#allocation20_spill] sm:$0xff] %v10340_v11  ;;  %v2072_v1 = vor.u32 %v2071_v18, %v2070_v24  ;;  %v2422_v18 = vrot.slane %v9972_v53, 2  ;;  %v2087_v53 = vrot.slane %v10016_v8, 2 }
  0x93   :  { %8863 = vmatmul.mubr.msk.bf16.gmra.mxu0 %vm1054_vm1, %v1543_v19  ;;  %v2416_v19 = vrot.slane %v9927_v37, 2  ;;  %v10368_v37 = vsel %vm2406_vm4, %v2412_v51, %v2414_v10  ;;  %v2420_v51 = vrot.slane %v9961_v49, 2 }
  0x94   :  { %8906 = vmatprep.mubr.msk.bf16.mxu0 %vm1054_vm1, %v2057_v17  ;;  %v2067_v17 = vrot.slane %v9919_v34, 2 }
  0x95   :  { %v10372_v4 = vsel %vm2406_vm4, %v2414_v10, %v2416_v19  ;;  %v2074_v10 = vrot.slane %v9981_v56, 1  ;;  %v10389_v24 = vsel %vm2406_vm4, %v2416_v19, %v2418_v39  ;;  %v10393_v41 = vsel %vm2406_vm4, %v2418_v39, %v2420_v51  ;;  %v10404_v19 = vld [vmem:[%s14832_s3 + $0x10] sm:$0x3] }
  0x96   :  { %8945 = vmatmul.mubr.msk.bf16.vlgmr.msra.gmra.mxu1 %vm1054_vm1, %v10330_v2  ;;  %v2068_v14 = vor.u32 %v2067_v17, %v2066_v57  ;;  %v2078_v17 = vrot.slane %v9985_v58, 1  ;;  %v2424_v39 = vrot.slane %v9993_v60, 2 }
  0x97   :  { %9019 = vmatpush3.bf16.msra.mxu1 %v10335_v13  ;;  %8948 = vmatprep.mubr.msk.bf16.mxu1 %vm1054_vm1, %v10338_v50 }
  0x98   :  { %9529 = vmatprep.subr.msk.bf16.mxu1 %vm1109_vm0, %v10346_v29  ;;  %v2073_v57 = vsel %vm2050_vm5, %v2068_v14, %v2072_v1  ;;  %v10420_v60 = vsel %vm2406_vm4, %v2422_v18, %v2424_v39 }
  0x9b   :  { %8907 = vmatmul.mubr.msk.bf16.vlgmr.msra.gmra.mxu0 %vm1054_vm1, %v2061_v22  ;;  %v2069_v22 = vsel %vm2050_vm5, %v2064_v9, %v2068_v14  ;;  %v2080_v9 = vor.u32 %v2079_v62, %v2078_v17  ;;  %v2082_v14 = vrot.slane %v10028_v26, 1  ;;  %v2083_v62 = vrot.slane %v9988_v59, 2 }
  0x9c   :  { %8910 = vmatprep.mubr.msk.bf16.mxu0 %vm1054_vm1, %v2065_v12  ;;  %8981 = vmatpush3.bf16.msra.mxu0 %v10365_v21  ;;  %v2075_v12 = vrot.slane %v9954_v47, 2 }
  0x9d   :  { %9528 = vmatprep.subr.msk.bf16.mxu0 %vm1109_vm0, %v10404_v19  ;;  %v2084_v17 = vor.u32 %v2083_v62, %v2082_v14  ;;  %v2095_v14 = vrot.slane %v10070_v43, 2 }
  0x9e   :  { %8949 = vmatmul.mubr.msk.bf16.gmra.mxu1 %vm1054_vm1, %v10368_v37  ;;  %v2076_v49 = vor.u32 %v2075_v12, %v2074_v10  ;;  %v2086_v10 = vrot.slane %v10035_v31, 1 }
  0x9f   :  { %8952 = vmatprep.mubr.msk.bf16.mxu1 %vm1054_vm1, %v10372_v4 }
  0xa0   :  { %v2081_v12 = vsel %vm2050_vm5, %v2076_v49, %v2080_v9  ;;  %v2088_v21 = vor.u32 %v2087_v53, %v2086_v10 }
  0xa3   :  { %8911 = vmatmul.mubr.msk.bf16.gmra.mxu0 %vm1054_vm1, %v2069_v22  ;;  %v2077_v22 = vsel %vm2050_vm5, %v2072_v1, %v2076_v49  ;;  %v2426_v1 = vrot.slane %v10011_v6, 2  ;;  %v2428_v49 = vrot.slane %v10054_v35, 2  ;;  %v2089_v6 = vsel %vm2050_vm5, %v2084_v17, %v2088_v21 }
  0xa4   :  { %8914 = vmatprep.mubr.msk.bf16.mxu0 %vm1054_vm1, %v2073_v57  ;;  %v10416_v57 = vsel %vm2406_vm4, %v2420_v51, %v2422_v18  ;;  %v2091_v51 = vrot.slane %v10038_v5, 2  ;;  %v2085_v18 = vsel %vm2050_vm5, %v2080_v9, %v2084_v17  ;;  %v2430_v35 = vrot.slane %v10065_v40, 2 }
  0xa5   :  { %v10436_v62 = vsel %vm2406_vm4, %v2424_v39, %v2426_v1  ;;  %v10440_v10 = vsel %vm2406_vm4, %v2426_v1, %v2428_v49  ;;  %v2098_v9 = vrot.slane %v10118_v30, 1  ;;  %v2099_v39 = vrot.slane %v10085_v55, 2 }
  0xa6   :  { %8953 = vmatmul.mubr.msk.bf16.gmra.mxu1 %vm1054_vm1, %v10389_v24  ;;  %15060 = vst [vmem:[#allocation22_spill] sm:$0xff] %v10436_v62  ;;  %15061 = vst [vmem:[#allocation23_spill] sm:$0xff] %v10440_v10  ;;  %v2092_v53 = vor.u32 %v2091_v51, %v2090_v3  ;;  %v2432_v17 = vrot.slane %v10092_v61, 2  ;;  %v2103_v3 = vrot.slane %v10114_v23, 2  ;;  %v10456_v51 = vsel %vm2406_vm4, %v2428_v49, %v2430_v35 }
  0xa7   :  { %8956 = vmatprep.mubr.msk.bf16.mxu1 %vm1054_vm1, %v10393_v41  ;;  %15062 = vst [vmem:[#allocation24_spill] sm:$0xff] %v10456_v51  ;;  %v2434_v61 = vrot.slane %v10107_v15, 2  ;;  %v2436_v49 = vrot.slane %v10132_v45, 2  ;;  %v15066_v15 = vld [vmem:[#allocation10_spill] sm:$0xff] }
  0xa8   :  { %v2093_v1 = vsel %vm2050_vm5, %v2088_v21, %v2092_v53  ;;  %v2111_v13 = vrot.slane %v15066_v15, 2 }
  0xa9   :  { %v10476_v63 = vsel %vm2406_vm4, %v2432_v17, %v2434_v61 }
  0xab   :  { %8915 = vmatmul.mubr.msk.bf16.gmra.mxu0 %vm1054_vm1, %v2077_v22  ;;  %v2094_v22 = vrot.slane %v10082_v52, 1 }
  0xac   :  { %8918 = vmatprep.mubr.msk.bf16.mxu0 %vm1054_vm1, %v2081_v12 }
  0xad   :  { %v2096_v12 = vor.u32 %v2095_v14, %v2094_v22  ;;  %v10460_v22 = vsel %vm2406_vm4, %v2430_v35, %v2432_v17  ;;  %v2100_v14 = vor.u32 %v2099_v39, %v2098_v9  ;;  %v15064_v35 = vld [vmem:[#allocation9_spill] sm:$0xff]  ;;  %v15065_v9 = vld [vmem:[#allocation11_spill] sm:$0xff] }
  0xae   :  { %8957 = vmatmul.mubr.msk.bf16.gmra.mxu1 %vm1054_vm1, %v10416_v57  ;;  %15063 = vst [vmem:[#allocation25_spill] sm:$0xff] %v10460_v22  ;;  %v2110_v39 = vrot.slane %v15065_v9, 1  ;;  %15067 = vst [vmem:[#allocation9_spill] sm:$0xff] %v10476_v63  ;;  %v15069_v17 = vld [vmem:[#allocation13_spill] sm:$0xff] }
  0xaf   :  { %8960 = vmatprep.mubr.msk.bf16.mxu1 %vm1054_vm1, %v10420_v60  ;;  %v2097_v40 = vsel %vm2050_vm5, %v2092_v53, %v2096_v12  ;;  %v2106_v53 = vrot.slane %v10152_v33, 1  ;;  %v2114_v11 = vrot.slane %v15069_v17, 1 }
  0xb3   :  { %8919 = vmatmul.mubr.msk.bf16.gmra.mxu0 %vm1054_vm1, %v2085_v18  ;;  %v2102_v18 = vrot.slane %v10122_v36, 1 }
  0xb4   :  { %8922 = vmatprep.mubr.msk.bf16.mxu0 %vm1054_vm1, %v2089_v6  ;;  %v2101_v6 = vsel %vm2050_vm5, %v2096_v12, %v2100_v14 }
  0xb5   :  { %v2104_v21 = vor.u32 %v2103_v3, %v2102_v18  ;;  %v10480_v18 = vsel %vm2406_vm4, %v2434_v61, %v2436_v49  ;;  %v2112_v3 = vor.u32 %v2111_v13, %v2110_v39  ;;  %v10491_v61 = vrot.slane %v10276_v38, 2 }
  0xb6   :  { %8961 = vmatmul.mubr.msk.bf16.gmra.mxu1 %vm1054_vm1, %v10436_v62  ;;  %15068 = vst [vmem:[#allocation26_spill] sm:$0xff] %v10480_v18  ;;  %v15071_v13 = vshrl.u32 %v10276_v38, 16 }
  0xb7   :  { %8964 = vmatprep.mubr.msk.bf16.mxu1 %vm1054_vm1, %v10440_v10 }
  0xb8   :  { %v2121_v39 = vrot.slane %v15071_v13, 1  ;;  %v2954_v13 = vrot.slane %v9905_v27, 2 }
  0xbb   :  { %8923 = vmatmul.mubr.msk.bf16.gmra.mxu0 %vm1054_vm1, %v2093_v1  ;;  %v2107_v1 = vrot.slane %v15064_v35, 2 }
  0xbc   :  { %8926 = vmatprep.mubr.msk.bf16.mxu0 %vm1054_vm1, %v2097_v40  ;;  %v2105_v40 = vsel %vm2050_vm5, %v2100_v14, %v2104_v21  ;;  %v2438_v14 = vrot.slane %v10143_v0, 2 }
  0xbd   :  { %v2108_v45 = vor.u32 %v2107_v1, %v2106_v53 }
  0xbe   :  { %8965 = vmatmul.mubr.msk.bf16.gmra.mxu1 %vm1054_vm1, %v10456_v51  ;;  %v10500_v0 = vsel %vm2406_vm4, %v2436_v49, %v2438_v14  ;;  %v2131_v49 = vshll.u32 %v10293_v7, 16 }
  0xbf   :  { %8968 = vmatprep.mubr.msk.bf16.mxu1 %vm1054_vm1, %v10460_v22  ;;  %v15070_v22 = vld [vmem:[#allocation12_spill] sm:$0xff]  ;;  %v2109_v53 = vsel %vm2050_vm5, %v2104_v21, %v2108_v45  ;;  %15073 = vst [vmem:[#allocation27_spill] sm:$0xff] %v10500_v0  ;;  %v2951_v21 = vrot.slane %v9882_v20, 2 }
  0xc0   :  { %v2133_v62 = vrot.slane %v2131_v49, 2 }
  0xc3   :  { %8927 = vmatmul.mubr.msk.bf16.gmra.mxu0 %vm1054_vm1, %v2101_v6  ;;  %v2115_v6 = vrot.slane %v15070_v22, 2  ;;  %v10504_v22 = vsel %vm2406_vm4, %v2438_v14, %v10491_v61 }
  0xc4   :  { %8930 = vmatprep.mubr.msk.bf16.mxu0 %vm1054_vm1, %v2105_v40  ;;  %v2113_v40 = vsel %vm2050_vm5, %v2108_v45, %v2112_v3  ;;  %v2952_v45 = vrot.slane %v9864_v16, 3  ;;  %v2442_v16 = vrot.slane %v10293_v7, 2 }
  0xc5   :  { %v2116_v17 = vor.u32 %v2115_v6, %v2114_v11  ;;  %v2128_v11 = vshrl.u32 %v10293_v7, 16 }
  0xc6   :  { %v8794_v12 = vpop.f32.mrf.mxu1  ;;  %8969 = vmatmul.mubr.msk.bf16.gmra.mxu1 %vm1054_vm1, %v10476_v63  ;;  %v2443_v7 = vsel %vm2406_vm4, %v10491_v61, %v2442_v16 }
  0xc7   :  { %8972 = vmatprep.mubr.msk.bf16.mxu1 %vm1054_vm1, %v10480_v18  ;;  %v15072_v18 = vshll.u32 %v10276_v38, 16  ;;  %v2130_v9 = vrot.slane %v2128_v11, 1 }
  0xc8   :  { %v1363_v51 = vpop.f32.mrf.mxu1 }
  0xc9   :  { %v2124_v63 = vrot.slane %v15072_v18, 2  ;;  %v2955_v18 = vrot.slane %v9897_v25, 3 }
  0xca   :  { %v8795_v1 = vpop.f32.mrf.mxu1 }
  0xcb   :  { %v8756_v10 = vpop.f32.mrf.mxu0  ;;  %8931 = vmatmul.mubr.msk.bf16.gmra.mxu0 %vm1054_vm1, %v2109_v53  ;;  %v2125_v20 = vor.u32 %v2124_v63, %v2121_v39 }
  0xcc   :  { %v1366_v15 = vpop.f32.mrf.mxu1  ;;  %v10511_v38 = vadd.f32 %v8794_v12, %v8756_v10  ;;  %8934 = vmatprep.mubr.msk.bf16.mxu0 %vm1054_vm1, %v2113_v40  ;;  %v2117_v10 = vsel %vm2050_vm5, %v2112_v3, %v2116_v17  ;;  %v2953_v12 = vor.u32 %v2952_v45, %v2951_v21  ;;  %v2956_v40 = vor.u32 %v2955_v18, %v2954_v13 }
  0xcd   :  { %v1147_v14 = vpop.f32.mrf.mxu0  ;;  %v2959_v3 = vrot.slane %v9908_v28, 3  ;;  %v2962_v13 = vrot.slane %v9947_v44, 2  ;;  %v2963_v18 = vrot.slane %v9919_v34, 3 }
  0xce   :  { %15074 = vst [vmem:[#allocation28_spill] sm:$0xff] %v10511_v38  ;;  %v8798_v6 = vpop.f32.mrf.mxu1  ;;  %8973 = vmatmul.mubr.msk.bf16.gmra.mxu1 %vm1054_vm1, %v10500_v0  ;;  %v10518_v53 = vadd.f32 %v1363_v51, %v1147_v14  ;;  %v2126_v51 = vsel %vm2050_vm5, %v2116_v17, %v2125_v20  ;;  %v2958_v14 = vrot.slane %v9914_v32, 2 }
  0xcf   :  { %8976 = vmatprep.mubr.msk.bf16.mxu1 %vm1054_vm1, %v10504_v22  ;;  %v8757_v25 = vpop.f32.mrf.mxu0 }
  0xd0   :  { %v1379_v27 = vpop.f32.mrf.mxu1  ;;  %v10524_v38 = vadd.f32 %v8795_v1, %v8757_v25  ;;  %v2957_v1 = vsel %vm2950_vm6, %v2953_v12, %v2956_v40  ;;  %v2960_v32 = vor.u32 %v2959_v3, %v2958_v14  ;;  %v2964_v25 = vor.u32 %v2963_v18, %v2962_v13 }
  0xd1   :  { %v1150_v0 = vpop.f32.mrf.mxu0  ;;  %v2970_v14 = vrot.slane %v9981_v56, 2  ;;  %v2971_v3 = vrot.slane %v9954_v47, 3  ;;  %v14877_v47 = vmov 0.0  }
  0xd2   :  { %v8799_v63 = vpop.f32.mrf.mxu1  ;;  %v10527_v39 = vadd.f32 %v1366_v15, %v1150_v0  ;;  %v2134_v15 = vor.u32 %v2133_v62, %v2130_v9  ;;  %v2961_v62 = vsel %vm2950_vm6, %v2956_v40, %v2960_v32  ;;  %v2966_v9 = vrot.slane %v9951_v46, 2 }
  0xd3   :  { %v8760_v21 = vpop.f32.mrf.mxu0  ;;  %8935 = vmatmul.mubr.msk.bf16.gmra.mxu0 %vm1054_vm1, %v2117_v10 }
  0xd4   :  { %v1382_v45 = vpop.f32.mrf.mxu1  ;;  %v10537_v17 = vadd.f32 %v8798_v6, %v8760_v21  ;;  %8938 = vmatprep.mubr.msk.bf16.mxu0 %vm1054_vm1, %v2126_v51  ;;  %v2135_v34 = vsel %vm2050_vm5, %v2125_v20, %v2134_v15  ;;  %v2965_v20 = vsel %vm2950_vm6, %v2960_v32, %v2964_v25  ;;  %v10574_v15 = vsel %vm1109_vm0, %v10404_v19, 0 }
  0xd5   :  { %v1163_v0 = vpop.f32.mrf.mxu0  ;;  %15076 = vst [vmem:[#allocation30_spill] sm:$0xff] %v10574_v15  ;;  %v2974_v32 = vrot.slane %v9985_v58, 2  ;;  %v2979_v19 = vrot.slane %v9988_v59, 3 }
  0xd6   :  { %v8802_v11 = vpop.f32.mrf.mxu1  ;;  %8977 = vmatmul.mubr.msk.bf16.gmra.mxu1 %vm1054_vm1, %v2443_v7  ;;  %v10541_v28 = vadd.f32 %v1379_v27, %v1163_v0  ;;  %v2967_v27 = vrot.slane %v9943_v42, 3 }
  0xd7   :  { %9020 = vmatprep.mubr.msk.bf16.mxu1 %vm1054_vm1, %v2957_v1  ;;  %v8761_v49 = vpop.f32.mrf.mxu0  ;;  %v2972_v1 = vor.u32 %v2971_v3, %v2970_v14  ;;  %v2982_v3 = vrot.slane %v10035_v31, 2 }
  0xd8   :  { %v1395_v16 = vpop.f32.mrf.mxu1  ;;  %v10544_v44 = vadd.f32 %v8799_v63, %v8761_v49  ;;  %v10555_v63 = vsel %vm1109_vm0, %v10346_v29, 0  ;;  %v2968_v29 = vor.u32 %v2967_v27, %v2966_v9  ;;  %v2975_v49 = vrot.slane %v9977_v54, 3 }
  0xd9   :  { %v1166_v6 = vpop.f32.mrf.mxu0  ;;  %15075 = vst [vmem:[#allocation29_spill] sm:$0xff] %v10555_v63 }
  0xda   :  { %v8803_v10 = vpop.f32.mrf.mxu1  ;;  %v10547_v12 = vadd.f32 %v1382_v45, %v1166_v6  ;;  %v2973_v6 = vsel %vm2950_vm6, %v2968_v29, %v2972_v1 }
  0xdb   :  { %v8764_v51 = vpop.f32.mrf.mxu0  ;;  %8939 = vmatmul.mubr.msk.bf16.gmra.mxu0 %vm1054_vm1, %v2135_v34 }
  0xdc   :  { %v1398_v7 = vpop.f32.mrf.mxu1  ;;  %v10560_v21 = vadd.f32 %v8802_v11, %v8764_v51  ;;  %8982 = vmatprep.mubr.msk.bf16.mxu0 %vm1054_vm1, %v10330_v2  ;;  %v2969_v11 = vsel %vm2950_vm6, %v2964_v25, %v2968_v29  ;;  %v15077_v25 = vld [vmem:[#allocation3_spill] sm:$0xff] }
  0xdd   :  { %v1179_v42 = vpop.f32.mrf.mxu0 }
  0xde   :  { %v8806_v46 = vpop.f32.mrf.mxu1  ;;  %9021 = vmatmul.mubr.msk.bf16.vlgmr.msra.gmra.mxu1 %vm1054_vm1, %v2961_v62  ;;  %v10565_v40 = vadd.f32 %v1395_v16, %v1179_v42  ;;  %v2983_v42 = vrot.slane %v10016_v8, 3 }
  0xdf   :  { %9095 = vmatpush3.bf16.msra.mxu1 %v10555_v63  ;;  %9024 = vmatprep.mubr.msk.bf16.mxu1 %vm1054_vm1, %v2965_v20  ;;  %v8765_v45 = vpop.f32.mrf.mxu0 }
  0xe0   :  { %v1411_v56 = vpop.f32.mrf.mxu1  ;;  %9128 = vmatprep.subr.bf16.mxu1 %v14877_v47  ;;  %v10570_v13 = vadd.f32 %v8803_v10, %v8765_v45  ;;  %v2978_v10 = vrot.slane %v10028_v26, 2  ;;  %v2976_v26 = vor.u32 %v2975_v49, %v2974_v32 }
  0xe1   :  { %v1182_v2 = vpop.f32.mrf.mxu0 }
  0xe2   :  { %v8807_v18 = vpop.f32.mrf.mxu1  ;;  %v10576_v0 = vadd.f32 %v1398_v7, %v1182_v2  ;;  %v2980_v27 = vor.u32 %v2979_v19, %v2978_v10  ;;  %v2977_v14 = vsel %vm2950_vm6, %v2972_v1, %v2976_v26  ;;  %v2987_v2 = vrot.slane %v10038_v5, 3 }
  0xe3   :  { %v8768_v16 = vpop.f32.mrf.mxu0  ;;  %8983 = vmatmul.mubr.msk.bf16.vlgmr.msra.gmra.mxu0 %vm1054_vm1, %v10338_v50  ;;  %v2991_v10 = vrot.slane %v10070_v43, 3 }
  0xe4   :  { %v1414_v34 = vpop.f32.mrf.mxu1  ;;  %v10586_v62 = vadd.f32 %v8806_v46, %v8768_v16  ;;  %8986 = vmatprep.mubr.msk.bf16.mxu0 %vm1054_vm1, %v10368_v37  ;;  %9057 = vmatpush3.bf16.msra.mxu0 %v10574_v15  ;;  %v2981_v45 = vsel %vm2950_vm6, %v2976_v26, %v2980_v27  ;;  %v2995_v26 = vrot.slane %v10085_v55, 3 }
  0xe5   :  { %v1195_v58 = vpop.f32.mrf.mxu0  ;;  %9530 = vmatprep.subr.msk.bf16.mxu0 %vm1109_vm0, %v15077_v25  ;;  %v2994_v25 = vrot.slane %v10118_v30, 2 }
  0xe6   :  { %v8810_v54 = vpop.f32.mrf.mxu1  ;;  %9025 = vmatmul.mubr.msk.bf16.gmra.mxu1 %vm1054_vm1, %v2969_v11  ;;  %v10594_v50 = vadd.f32 %v1411_v56, %v1195_v58  ;;  %v2986_v56 = vrot.slane %v10074_v48, 2 }
  0xe7   :  { %9028 = vmatprep.mubr.msk.bf16.mxu1 %vm1054_vm1, %v2973_v6  ;;  %v8769_v59 = vpop.f32.mrf.mxu0  ;;  %v2990_v6 = vrot.slane %v10082_v52, 2 }
  0xe8   :  { %v1427_v9 = vpop.f32.mrf.mxu1  ;;  %v10597_v51 = vadd.f32 %v8807_v18, %v8769_v59  ;;  %v2988_v49 = vor.u32 %v2987_v2, %v2986_v56  ;;  %v3002_v2 = vrot.slane %v10152_v33, 2  ;;  %v806_v33 = vld [vmem:[%s14833_s0 + $0x9c] sm:$0xf] }
  0xe9   :  { %v1198_v37 = vpop.f32.mrf.mxu0 }
  0xea   :  { %v8811_v7 = vpop.f32.mrf.mxu1  ;;  %v10599_v20 = vadd.f32 %v1414_v34, %v1198_v37 }
  0xeb   :  { %v8772_v46 = vpop.f32.mrf.mxu0  ;;  %8987 = vmatmul.mubr.msk.bf16.gmra.mxu0 %vm1054_vm1, %v10372_v4  ;;  %v2984_v4 = vor.u32 %v2983_v42, %v2982_v3  ;;  %v2998_v42 = vrot.slane %v10122_v36, 2 }
  0xec   :  { %v1430_v29 = vpop.f32.mrf.mxu1  ;;  %v10609_v18 = vadd.f32 %v8810_v54, %v8772_v46  ;;  %8990 = vmatprep.mubr.msk.bf16.mxu0 %vm1054_vm1, %v10389_v24  ;;  %v2999_v46 = vrot.slane %v10114_v23, 3 }
  0xed   :  { %v1211_v1 = vpop.f32.mrf.mxu0  ;;  %v2985_v24 = vsel %vm2950_vm6, %v2980_v27, %v2984_v4  ;;  %v2989_v54 = vsel %vm2950_vm6, %v2984_v4, %v2988_v49  ;;  %v15078_v4 = vld [vmem:[#allocation22_spill] sm:$0xff] }
  0xee   :  { %v8814_v31 = vpop.f32.mrf.mxu1  ;;  %9029 = vmatmul.mubr.msk.bf16.gmra.mxu1 %vm1054_vm1, %v2977_v14  ;;  %v10614_v8 = vadd.f32 %v1427_v9, %v1211_v1  ;;  %v3003_v1 = vrot.slane %v15064_v35, 3 }
  0xef   :  { %9032 = vmatprep.mubr.msk.bf16.mxu1 %vm1054_vm1, %v2981_v45  ;;  %v8773_v11 = vpop.f32.mrf.mxu0 }
  0xf0   :  { %v1443_v32 = vpop.f32.mrf.mxu1  ;;  %v10617_v48 = vadd.f32 %v8811_v7, %v8773_v11  ;;  %v2996_v7 = vor.u32 %v2995_v26, %v2994_v25  ;;  %v15081_v26 = vld [vmem:[#allocation18_spill] sm:$0xff] }
  0xf1   :  { %v1214_v5 = vpop.f32.mrf.mxu0 }
  0xf2   :  { %v8815_v16 = vpop.f32.mrf.mxu1  ;;  %v10619_v34 = vadd.f32 %v1430_v29, %v1214_v5  ;;  %v3004_v5 = vor.u32 %v3003_v1, %v3002_v2 }
  0xf3   :  { %v8776_v19 = vpop.f32.mrf.mxu0  ;;  %8991 = vmatmul.mubr.msk.bf16.gmra.mxu0 %vm1054_vm1, %v10393_v41  ;;  %v2992_v41 = vor.u32 %v2991_v10, %v2990_v6 }
  0xf4   :  { %v1446_v58 = vpop.f32.mrf.mxu1  ;;  %v10629_v59 = vadd.f32 %v8814_v31, %v8776_v19  ;;  %8994 = vmatprep.mubr.msk.bf16.mxu0 %vm1054_vm1, %v10416_v57  ;;  %v15079_v19 = vld [vmem:[#allocation11_spill] sm:$0xff] }
  0xf5   :  { %v1227_v9 = vpop.f32.mrf.mxu0  ;;  %v2993_v57 = vsel %vm2950_vm6, %v2988_v49, %v2992_v41  ;;  %v2997_v56 = vsel %vm2950_vm6, %v2992_v41, %v2996_v7 }
  0xf6   :  { %v8818_v52 = vpop.f32.mrf.mxu1  ;;  %9033 = vmatmul.mubr.msk.bf16.gmra.mxu1 %vm1054_vm1, %v2985_v24  ;;  %v10634_v43 = vadd.f32 %v1443_v32, %v1227_v9  ;;  %v10668_v9 = vcombine.low %v15081_v26, %v806_v33 }
  0xf7   :  { %9036 = vmatprep.mubr.msk.bf16.mxu1 %vm1054_vm1, %v2989_v54  ;;  %v8777_v27 = vpop.f32.mrf.mxu0  ;;  %v15080_v54 = vld [vmem:[#allocation10_spill] sm:$0xff] }
  0xf8   :  { %v1459_v37 = vpop.f32.mrf.mxu1  ;;  %v10637_v30 = vadd.f32 %v8815_v16, %v8777_v27  ;;  %v3007_v25 = vrot.slane %v15080_v54, 3  ;;  %v15082_v27 = vld [vmem:[#allocation23_spill] sm:$0xff] }
  0xf9   :  { %v1230_v55 = vpop.f32.mrf.mxu0 }
  0xfa   :  { %v8819_v14 = vpop.f32.mrf.mxu1  ;;  %v10639_v3 = vadd.f32 %v1446_v58, %v1230_v55  ;;  %v3006_v58 = vrot.slane %v15079_v19, 2  ;;  %v15083_v55 = vld [vmem:[#allocation13_spill] sm:$0xff] }
  0xfb   :  { %v8780_v29 = vpop.f32.mrf.mxu0  ;;  %8995 = vmatmul.mubr.msk.bf16.gmra.mxu0 %vm1054_vm1, %v10420_v60  ;;  %v3000_v60 = vor.u32 %v2999_v46, %v2998_v42 }
  0xfc   :  { %v1462_v45 = vpop.f32.mrf.mxu1  ;;  %v10649_v31 = vadd.f32 %v8818_v52, %v8780_v29  ;;  %8998 = vmatprep.mubr.msk.bf16.mxu0 %vm1054_vm1, %v15078_v4  ;;  %v3008_v2 = vor.u32 %v3007_v25, %v3006_v58  ;;  %v15086_v25 = vld [vmem:[#allocation25_spill] sm:$0xff] }
  0xfd   :  { %v1243_v11 = vpop.f32.mrf.mxu0  ;;  %v3001_v10 = vsel %vm2950_vm6, %v2996_v7, %v3000_v60  ;;  %v15085_v7 = vld [vmem:[#allocation24_spill] sm:$0xff] }
  0xfe   :  { %v8822_v36 = vpop.f32.mrf.mxu1  ;;  %9037 = vmatmul.mubr.msk.bf16.gmra.mxu1 %vm1054_vm1, %v2993_v57  ;;  %v10654_v23 = vadd.f32 %v1459_v37, %v1243_v11  ;;  %v3005_v37 = vsel %vm2950_vm6, %v3000_v60, %v3004_v5  ;;  %v15084_v57 = vld [vmem:[#allocation12_spill] sm:$0xff]  ;;  %v3019_v60 = vshrl.u32 %v10668_v9, 16 }
  0xff   :  { %9040 = vmatprep.mubr.msk.bf16.mxu1 %vm1054_vm1, %v2997_v56  ;;  %v8781_v32 = vpop.f32.mrf.mxu0  ;;  %v3011_v42 = vrot.slane %v15084_v57, 3 }
 0x100   :  { %v1475_v49 = vpop.f32.mrf.mxu1  ;;  %v10660_v35 = vadd.f32 %v8819_v14, %v8781_v32  ;;  %v3010_v14 = vrot.slane %v15083_v55, 2 }
 0x101   :  { %v1246_v16 = vpop.f32.mrf.mxu0 }
 0x102   :  { %v8823_v24 = vpop.f32.mrf.mxu1  ;;  %v10662_v6 = vadd.f32 %v1462_v45, %v1246_v16  ;;  %v3012_v11 = vor.u32 %v3011_v42, %v3010_v14 }
 0x103   :  { %v8784_v52 = vpop.f32.mrf.mxu0  ;;  %8999 = vmatmul.mubr.msk.bf16.gmra.mxu0 %vm1054_vm1, %v15082_v27 }
 0x104   :  { %v1478_v41 = vpop.f32.mrf.mxu1  ;;  %v10675_v46 = vadd.f32 %v8822_v36, %v8784_v52  ;;  %9002 = vmatprep.mubr.msk.bf16.mxu0 %vm1054_vm1, %v15085_v7  ;;  %v3022_v36 = vshll.u32 %v10668_v9, 16  ;;  %v3013_v26 = vsel %vm2950_vm6, %v3008_v2, %v3012_v11 }
 0x105   :  { %v1259_v29 = vpop.f32.mrf.mxu0 }
 0x106   :  { %v8826_v45 = vpop.f32.mrf.mxu1  ;;  %9041 = vmatmul.mubr.msk.bf16.gmra.mxu1 %vm1054_vm1, %v3001_v10  ;;  %v10680_v56 = vadd.f32 %v1475_v49, %v1259_v29  ;;  %v3009_v10 = vsel %vm2950_vm6, %v3004_v5, %v3008_v2  ;;  %v10693_v49 = vld [vmem:[%s14833_s0 + $0xa0] ss:$0 sps:$4 sm:$0xff]   ;;  %v3024_v52 = vrot.slane %v3022_v36, 3  ;;  %v15088_v36 = vld [vmem:[#allocation20_spill] sm:$0xff] }
 0x107   :  { %9044 = vmatprep.mubr.msk.bf16.mxu1 %vm1054_vm1, %v3005_v37  ;;  %v8785_v1 = vpop.f32.mrf.mxu0  ;;  %v3028_v14 = vshrl.u32 %v10693_v49, 16  ;;  %v3031_v57 = vshll.u32 %v10693_v49, 16 }
 0x108   :  { %v1491_v4 = vpop.f32.mrf.mxu1  ;;  %v10685_v32 = vadd.f32 %v8823_v24, %v8785_v1  ;;  %v3021_v24 = vrot.slane %v3019_v60, 2 }
 0x109   :  { %v1262_v33 = vpop.f32.mrf.mxu0 }
 0x10a   :  { %v8827_v16 = vpop.f32.mrf.mxu1  ;;  %v10687_v19 = vadd.f32 %v1478_v41, %v1262_v33  ;;  %v15087_v41 = vld [vmem:[#allocation9_spill] sm:$0xff]  ;;  %v3025_v29 = vor.u32 %v3024_v52, %v3021_v24  ;;  %v3017_v33 = vsel %vm2950_vm6, %v3012_v11, %v15088_v36  ;;  %v15090_v24 = vld [vmem:[#allocation28_spill] sm:$0xff]  ;;  %v15091_v52 = vld [vmem:[#allocation27_spill] sm:$0xff]  ;;  %v2724_v11 = vrot.slane %v10668_v9, 2 }
 0x10b   :  { %v8788_v58 = vpop.f32.mrf.mxu0  ;;  %9003 = vmatmul.mubr.msk.bf16.gmra.mxu0 %vm1054_vm1, %v15086_v25 }
 0x10c   :  { %v1494_v54 = vpop.f32.mrf.mxu1  ;;  %v10698_v27 = vadd.f32 %v8826_v45, %v8788_v58  ;;  %9006 = vmatprep.mubr.msk.bf16.mxu0 %vm1054_vm1, %v15087_v41  ;;  %v3026_v41 = vsel %vm2950_vm6, %v15088_v36, %v3025_v29 }
 0x10d   :  { %v1275_v5 = vpop.f32.mrf.mxu0 }
 0x10e   :  { %v8870_v37 = vpop.f32.mrf.mxu1  ;;  %9045 = vmatmul.mubr.msk.bf16.gmra.mxu1 %vm1054_vm1, %v3009_v10  ;;  %v10703_v55 = vadd.f32 %v1491_v4, %v1275_v5  ;;  %v3030_v4 = vrot.slane %v3028_v14, 2  ;;  %v3033_v10 = vrot.slane %v3031_v57, 3 }
 0x10f   :  { %9048 = vmatprep.mubr.msk.bf16.mxu1 %vm1054_vm1, %v3013_v26  ;;  %v8789_v42 = vpop.f32.mrf.mxu0  ;;  %v15089_v26 = vld [vmem:[#allocation26_spill] sm:$0xff] }
 0x110   :  { %v1871_v7 = vpop.f32.mrf.mxu1  ;;  %v10708_v45 = vadd.f32 %v8827_v16, %v8789_v42  ;;  %v3034_v57 = vor.u32 %v3033_v10, %v3030_v4 }
 0x111   :  { %v1278_v2 = vpop.f32.mrf.mxu0 }
 0x112   :  { %v8871_v1 = vpop.f32.mrf.mxu1  ;;  %v10710_v60 = vadd.f32 %v1494_v54, %v1278_v2 }
 0x113   :  { %v8832_v58 = vpop.f32.mrf.mxu0  ;;  %9007 = vmatmul.mubr.msk.bf16.gmra.mxu0 %vm1054_vm1, %v15089_v26 }
 0x114   :  { %v1874_v25 = vpop.f32.mrf.mxu1  ;;  %v1780_v16 = vadd.f32 %v8832_v58, %v15090_v24  ;;  %9010 = vmatprep.mubr.msk.bf16.mxu0 %vm1054_vm1, %v15091_v52 }
 0x115   :  { %v1635_v54 = vpop.f32.mrf.mxu0 }
 0x116   :  { %v8874_v5 = vpop.f32.mrf.mxu1  ;;  %9049 = vmatmul.mubr.msk.bf16.gmra.mxu1 %vm1054_vm1, %v3017_v33  ;;  %v1778_v14 = vadd.f32 %v1635_v54, %v10518_v53  ;;  %v10725_v42 = vadd.f32 %v8870_v37, %v1780_v16  ;;  %v2725_v33 = vsel %vm2406_vm4, %v10491_v61, %v2724_v11  ;;  %v3035_v53 = vsel %vm2950_vm6, %v3025_v29, %v3034_v57  ;;  %v9643_v37 = vld [vmem:[%s14835_s1] sm:$0xff]  }
 0x117   :  { %9052 = vmatprep.mubr.msk.bf16.mxu1 %vm1054_vm1, %v3026_v41  ;;  %v8833_v2 = vpop.f32.mrf.mxu0  ;;  %v2726_v61 = vrot.slane %v10693_v49, 2 }
 0x118   :  { %v1887_v36 = vpop.f32.mrf.mxu1  ;;  %v1781_v58 = vadd.f32 %v8833_v2, %v10524_v38  ;;  %v10728_v26 = vadd.f32 %v1871_v7, %v1778_v14 }
 0x119   :  { %v1638_v24 = vpop.f32.mrf.mxu0  ;;  %v2727_v2 = vsel %vm2406_vm4, %v2724_v11, %v2726_v61 }
 0x11a   :  { %v8875_v52 = vpop.f32.mrf.mxu1  ;;  %v1779_v47 = vadd.f32 %v1638_v24, %v10527_v39  ;;  %v10737_v4 = vadd.f32 %v8871_v1, %v1781_v58  ;;  %v9700_v1 = vld [vmem:[%s14833_s0 + $0x10] sm:$0xff]  }
 0x11b   :  { %v8836_v10 = vpop.f32.mrf.mxu0  ;;  %9011 = vmatmul.mubr.msk.bf16.gmra.mxu0 %vm1054_vm1, %v10504_v22  ;;  %v3311_v16 = vrot.slane %v9700_v1, 3  ;;  %v9701_v22 = vld [vmem:[%s14833_s0 + $0x18] sm:$0xff]  }
 0x11c   :  { %v1890_v41 = vpop.f32.mrf.mxu1  ;;  %v1784_v38 = vadd.f32 %v8836_v10, %v10537_v17  ;;  %9014 = vmatprep.mubr.msk.bf16.mxu0 %vm1054_vm1, %v2725_v33  ;;  %v10744_v39 = vadd.f32 %v1874_v25, %v1779_v47  ;;  %v3312_v17 = vrot.slane %v9701_v22, 3 }
 0x11d   :  { %v1651_v7 = vpop.f32.mrf.mxu0 }
 0x11e   :  { %v8878_v29 = vpop.f32.mrf.mxu1  ;;  %9053 = vmatmul.mubr.msk.bf16.gmra.mxu1 %vm1054_vm1, %v3035_v53  ;;  %v1782_v54 = vadd.f32 %v1651_v7, %v10541_v28  ;;  %v10755_v47 = vadd.f32 %v8874_v5, %v1784_v38  ;;  %v9644_v53 = vld [vmem:[%s14835_s1 + $0x8] sm:$0xff]   ;;  %v3313_v28 = vsel %vm14964_vm7, %v3311_v16, %v3312_v17 }
 0x11f   :  { %9096 = vmatprep.mubr.msk.bf16.mxu1 %vm1054_vm1, %v9643_v37  ;;  %v8837_v25 = vpop.f32.mrf.mxu0  ;;  %v9645_v5 = vld [vmem:[%s14836_s7 + $0x8] sm:$0xff]  }
 0x120   :  { %15092 = vst [vmem:[#allocation3_spill] sm:$0xff] %v10755_v47  ;;  %v1903_v14 = vpop.f32.mrf.mxu1  ;;  %v1785_v57 = vadd.f32 %v8837_v25, %v10544_v44  ;;  %v10759_v58 = vadd.f32 %v1887_v36, %v1782_v54  ;;  %v9646_v44 = vld [vmem:[%s14835_s1 + $0x10] sm:$0xff]   ;;  %v9654_v54 = vld [vmem:[%s14836_s7] sm:$0xff]  }
 0x121   :  { %v1654_v24 = vpop.f32.mrf.mxu0 }
 0x122   :  { %15093 = vst [vmem:[#allocation22_spill] sm:$0xff] %v10759_v58  ;;  %v8879_v33 = vpop.f32.mrf.mxu1  ;;  %v1783_v37 = vadd.f32 %v1654_v24, %v10547_v12  ;;  %v10772_v11 = vadd.f32 %v8875_v52, %v1785_v57  ;;  %v9702_v12 = vld [vmem:[%s14833_s0 + $0x20] sm:$0xff]   ;;  %v9703_v52 = vld [vmem:[%s14833_s0 + $0x28] sm:$0xff]  }
 0x123   :  { %v8840_v36 = vpop.f32.mrf.mxu0  ;;  %9015 = vmatmul.mubr.msk.bf16.gmra.mxu0 %vm1054_vm1, %v2727_v2  ;;  %v3314_v61 = vrot.slane %v9702_v12, 3  ;;  %v3316_v22 = vrot.slane %v9703_v52, 3  ;;  %v15097_v2 = vmov 0.0  }
 0x124   :  { %15094 = vst [vmem:[#allocation11_spill] sm:$0xff] %v10772_v11  ;;  %v1906_v10 = vpop.f32.mrf.mxu1  ;;  %v1788_v38 = vadd.f32 %v8840_v36, %v10560_v21  ;;  %9058 = vmatprep.mubr.msk.bf16.mxu0 %vm1054_vm1, %v3313_v28  ;;  %v10780_v7 = vadd.f32 %v1890_v41, %v1783_v37  ;;  %v9648_v36 = vld [vmem:[%s14835_s1 + $0x20] sm:$0xff]  }
 0x125   :  { %v1667_v1 = vpop.f32.mrf.mxu0 }
 0x126   :  { %15095 = vst [vmem:[#allocation10_spill] sm:$0xff] %v10780_v7  ;;  %v8882_v16 = vpop.f32.mrf.mxu1  ;;  %9097 = vmatmul.mubr.msk.bf16.vlgmr.msra.gmra.mxu1 %vm1054_vm1, %v9644_v53  ;;  %v1786_v21 = vadd.f32 %v1667_v1, %v10565_v40  ;;  %v10791_v41 = vadd.f32 %v8878_v29, %v1788_v38  ;;  %v3315_v53 = vsel %vm14964_vm7, %v3312_v17, %v3314_v61  ;;  %v9704_v38 = vld [vmem:[%s14832_s3] sm:$0xf] }
 0x127   :  { %9129 = vmatpush3.bf16.msra.mxu1 %v9645_v5  ;;  %9100 = vmatprep.mubr.msk.bf16.mxu1 %vm1054_vm1, %v9646_v44  ;;  %v8841_v25 = vpop.f32.mrf.mxu0  ;;  %v9647_v5 = vld [vmem:[%s14835_s1 + $0x18] sm:$0xff]   ;;  %v3317_v44 = vsel %vm14964_vm7, %v3314_v61, %v3316_v22 }
 0x128   :  { %15096 = vst [vmem:[#allocation18_spill] sm:$0xff] %v10791_v41  ;;  %v1919_v57 = vpop.f32.mrf.mxu1  ;;  %9130 = vmatprep.subr.bf16.mxu1 %v15097_v2  ;;  %v1789_v24 = vadd.f32 %v8841_v25, %v10570_v13  ;;  %v10796_v28 = vadd.f32 %v1903_v14, %v1786_v21  ;;  %v15100_v61 = vld [vmem:[#allocation5_spill] sm:$0xff]  ;;  %v9707_v25 = vld [vmem:[%s14832_s3 + $0x4] sm:$0xf] }
 0x129   :  { %v1670_v40 = vpop.f32.mrf.mxu0 }
 0x12a   :  { %15098 = vst [vmem:[#allocation23_spill] sm:$0xff] %v10796_v28  ;;  %v8883_v37 = vpop.f32.mrf.mxu1  ;;  %v1787_v29 = vadd.f32 %v1670_v40, %v10576_v0  ;;  %v10806_v13 = vadd.f32 %v8879_v33, %v1789_v24  ;;  %v9705_v0 = vld [vmem:[%s14833_s0 + $0x30] sm:$0xff]  }
 0x12b   :  { %9131 = vmatpush3.bf16.msra.mxu1 %v9654_v54  ;;  %v8844_v17 = vpop.f32.mrf.mxu0  ;;  %9059 = vmatmul.mubr.msk.bf16.vlgmr.msra.gmra.mxu0 %vm1054_vm1, %v3315_v53  ;;  %v3318_v33 = vrot.slane %v9705_v0, 3  ;;  %v9706_v54 = vld [vmem:[%s14833_s0 + $0x38] sm:$0xff]   ;;  %v9649_v0 = vld [vmem:[%s14835_s1 + $0x28] sm:$0xff]  }
 0x12c   :  { %15099 = vst [vmem:[#allocation13_spill] sm:$0xff] %v10806_v13  ;;  %v1922_v14 = vpop.f32.mrf.mxu1  ;;  %9531 = vmatprep.subr.msk.bf16.mxu1 %vm1109_vm0, %v9704_v38  ;;  %v1792_v12 = vadd.f32 %v8844_v17, %v10586_v62  ;;  %9062 = vmatprep.mubr.msk.bf16.mxu0 %vm1054_vm1, %v3317_v44  ;;  %v10819_v1 = vadd.f32 %v1906_v10, %v1787_v29  ;;  %v3320_v62 = vrot.slane %v9706_v54, 3  ;;  %v9653_v13 = vld [vmem:[%s14835_s1 + $0x48] sm:$0xff]  }
 0x12d   :  { %9137 = vmatpush3.bf16.msra.mxu0 %v15100_v61  ;;  %v1683_v52 = vpop.f32.mrf.mxu0  ;;  %v3319_v44 = vsel %vm14964_vm7, %v3316_v22, %v3318_v33 }
 0x12e   :  { %15101 = vst [vmem:[#allocation12_spill] sm:$0xff] %v10819_v1  ;;  %v8886_v21 = vpop.f32.mrf.mxu1  ;;  %9101 = vmatmul.mubr.msk.bf16.gmra.mxu1 %vm1054_vm1, %v9647_v5  ;;  %9532 = vmatprep.subr.msk.bf16.mxu0 %vm1109_vm0, %v9707_v25  ;;  %v1790_v24 = vadd.f32 %v1683_v52, %v10594_v50  ;;  %v10831_v10 = vadd.f32 %v8882_v16, %v1792_v12  ;;  %v9650_v16 = vld [vmem:[%s14835_s1 + $0x30] sm:$0xff]  }
 0x12f   :  { %9104 = vmatprep.mubr.msk.bf16.mxu1 %vm1054_vm1, %v9648_v36  ;;  %v8845_v53 = vpop.f32.mrf.mxu0  ;;  %v3321_v50 = vsel %vm14964_vm7, %v3318_v33, %v3320_v62  ;;  %v9708_v33 = vld [vmem:[%s14833_s0 + $0x40] sm:$0xff]  }
 0x130   :  { %15102 = vst [vmem:[#allocation24_spill] sm:$0xff] %v10831_v10  ;;  %v1935_v40 = vpop.f32.mrf.mxu1  ;;  %v1793_v5 = vadd.f32 %v8845_v53, %v10597_v51  ;;  %v10835_v29 = vadd.f32 %v1919_v57, %v1790_v24  ;;  %v3322_v61 = vrot.slane %v9708_v33, 3  ;;  %v9713_v33 = vld [vmem:[%s14833_s0 + $0x68] sm:$0xff]  }
 0x131   :  { %v1686_v17 = vpop.f32.mrf.mxu0 }
 0x132   :  { %15103 = vst [vmem:[#allocation25_spill] sm:$0xff] %v10835_v29  ;;  %v8887_v38 = vpop.f32.mrf.mxu1  ;;  %v1791_v36 = vadd.f32 %v1686_v17, %v10599_v20  ;;  %v10845_v12 = vadd.f32 %v8883_v37, %v1793_v5  ;;  %v9709_v37 = vld [vmem:[%s14833_s0 + $0x48] sm:$0xff]  }
 0x133   :  { %v8848_v51 = vpop.f32.mrf.mxu0  ;;  %9063 = vmatmul.mubr.msk.bf16.gmra.mxu0 %vm1054_vm1, %v3319_v44  ;;  %v3324_v25 = vrot.slane %v9709_v37, 3  ;;  %v10872_v44 = vld [vmem:[%s14833_s0 + $0xac] sm:$0xff]  }
 0x134   :  { %15104 = vst [vmem:[#allocation9_spill] sm:$0xff] %v10845_v12  ;;  %v1938_v22 = vpop.f32.mrf.mxu1  ;;  %v1796_v57 = vadd.f32 %v8848_v51, %v10609_v18  ;;  %9066 = vmatprep.mubr.msk.bf16.mxu0 %vm1054_vm1, %v3321_v50  ;;  %v10853_v20 = vadd.f32 %v1922_v14, %v1791_v36  ;;  %v9710_v18 = vld [vmem:[%s14833_s0 + $0x50] sm:$0xff]   ;;  %v9711_v14 = vld [vmem:[%s14833_s0 + $0x58] sm:$0xff]   ;;  %v3323_v51 = vsel %vm14964_vm7, %v3320_v62, %v3322_v61 }
 0x135   :  { %v1699_v52 = vpop.f32.mrf.mxu0  ;;  %v3326_v24 = vrot.slane %v9710_v18, 3  ;;  %v3328_v5 = vrot.slane %v9711_v14, 3  ;;  %v9651_v18 = vld [vmem:[%s14835_s1 + $0x38] sm:$0xff]   ;;  %v3325_v14 = vsel %vm14964_vm7, %v3322_v61, %v3324_v25  ;;  %v9714_v62 = vld [vmem:[%s14833_s0 + $0x70] sm:$0xff]  }
 0x136   :  { %15105 = vst [vmem:[#allocation20_spill] sm:$0xff] %v10853_v20  ;;  %v10855_v54 = vpop.f32.mrf.mxu1  ;;  %9105 = vmatmul.mubr.msk.bf16.gmra.mxu1 %vm1054_vm1, %v9649_v0  ;;  %v1794_v53 = vadd.f32 %v1699_v52, %v10614_v8  ;;  %v10874_v17 = vadd.f32 %v8886_v21, %v1796_v57  ;;  %v9712_v8 = vld [vmem:[%s14833_s0 + $0x60] sm:$0xff]   ;;  %v3332_v52 = vrot.slane %v9713_v33, 3 }
 0x137   :  { %9108 = vmatprep.mubr.msk.bf16.mxu1 %vm1054_vm1, %v9650_v16  ;;  %v8849_v0 = vpop.f32.mrf.mxu0  ;;  %v3330_v36 = vrot.slane %v9712_v8, 3  ;;  %v10906_v8 = vld [vmem:[%s14833_s0 + $0xb4] sm:$0xff]   ;;  %v10913_v33 = vsel %vm14964_vm7, %v3326_v24, %v3328_v5 }
 0x138   :  { %15106 = vst [vmem:[#allocation26_spill] sm:$0xff] %v10874_v17  ;;  %v10876_v50 = vpop.f32.mrf.mxu1  ;;  %v1797_v16 = vadd.f32 %v8849_v0, %v10617_v48  ;;  %v10886_v37 = vadd.f32 %v1935_v40, %v1794_v53  ;;  %v10895_v48 = vsel %vm14964_vm7, %v3324_v25, %v3326_v24  ;;  %v3334_v0 = vrot.slane %v9714_v62, 3  ;;  %v9715_v40 = vld [vmem:[%s14833_s0 + $0x78] sm:$0xff]   ;;  %v9652_v25 = vld [vmem:[%s14835_s1 + $0x40] sm:$0xff]   ;;  %v9717_v17 = vld [vmem:[%s14833_s0 + $0x88] sm:$0xff]  }
 0x139   :  { %v1702_v21 = vpop.f32.mrf.mxu0  ;;  %v3336_v53 = vrot.slane %v9715_v40, 3  ;;  %v4467_v62 = vshll.u32 %v10872_v44, 16  ;;  %v10919_v40 = vld [vmem:[%s14833_s0 + $0xbc] sm:$0xff]   ;;  %v3340_v20 = vrot.slane %v9717_v17, 3  ;;  %v15119_v28 = vshll.u32 %v10906_v8, 16 }
 0x13a   :  { %15107 = vst [vmem:[#allocation28_spill] sm:$0xff] %v10886_v37  ;;  %v10888_v57 = vpop.f32.mrf.mxu1  ;;  %v1795_v61 = vadd.f32 %v1702_v21, %v10619_v34  ;;  %v10921_v15 = vadd.f32 %v8887_v38, %v1797_v16  ;;  %v10927_v34 = vsel %vm14964_vm7, %v3328_v5, %v3330_v36  ;;  %v9716_v24 = vld [vmem:[%s14833_s0 + $0x80] sm:$0xff]   ;;  %v15109_v38 = vld [vmem:[#allocation17_spill] sm:$0xff]  ;;  %v15134_v47 = vshrl.u32 %v10906_v8, 16 }
 0x13b   :  { %v8852_v63 = vpop.f32.mrf.mxu0  ;;  %9067 = vmatmul.mubr.msk.bf16.gmra.mxu0 %vm1054_vm1, %v3323_v51  ;;  %v3338_v21 = vrot.slane %v9716_v24, 3  ;;  %v3342_v16 = vrot.slane %v15109_v38, 3  ;;  %v10944_v51 = vsel %vm14964_vm7, %v3330_v36, %v3332_v52  ;;  %v10951_v38 = vsel %vm14964_vm7, %v3332_v52, %v3334_v0  ;;  %v10961_v36 = vld [vmem:[%s14833_s0 + $0xd4] sm:$0xff]  }
 0x13c   :  { %15108 = vst [vmem:[#allocation27_spill] sm:$0xff] %v10921_v15  ;;  %v10923_v37 = vpop.f32.mrf.mxu1  ;;  %v10939_v15 = vld [vmem:[%s14833_s0 + $0xc4] sm:$0xff]   ;;  %v1800_v5 = vadd.f32 %v8852_v63, %v10629_v59  ;;  %9070 = vmatprep.mubr.msk.bf16.mxu0 %vm1054_vm1, %v3325_v14  ;;  %v10947_v12 = vadd.f32 %v1938_v22, %v1795_v61  ;;  %v10954_v10 = vsel %vm14964_vm7, %v3334_v0, %v3336_v53  ;;  %v4465_v63 = vshrl.u32 %v10872_v44, 16 }
 0x13d   :  { %v1715_v29 = vpop.f32.mrf.mxu0  ;;  %v10966_v22 = vld [vmem:[%s14833_s0 + $0xe4] sm:$0xff]   ;;  %v10971_v14 = vshll.u32 %v10919_v40, 16  ;;  %v10977_v24 = vsel %vm14964_vm7, %v3336_v53, %v3338_v21  ;;  %v10983_v1 = vsel %vm14964_vm7, %v3340_v20, %v3342_v16  ;;  %v4474_v41 = vrot.slane %v15119_v28, 1  ;;  %v11031_v28 = vld [vmem:[%s14833_s0 + $0xec] sm:$0xff]  }
 0x13e   :  { %15110 = vst [vmem:[#allocation5_spill] sm:$0xff] %v10947_v12  ;;  %v8894_v17 = vpop.f32.mrf.mxu1  ;;  %9109 = vmatmul.mubr.msk.bf16.gmra.mxu1 %vm1054_vm1, %v9651_v18  ;;  %v1798_v52 = vadd.f32 %v1715_v29, %v10634_v43  ;;  %v4469_v18 = vrot.slane %v4467_v62, 1  ;;  %v10974_v0 = vadd.f32 %v10855_v54, %v1800_v5  ;;  %v10980_v12 = vsel %vm14964_vm7, %v3338_v21, %v3340_v20  ;;  %v10991_v29 = vld [vmem:[%s14833_s0 + $0xcc] sm:$0xff]   ;;  %v10996_v54 = vld [vmem:[%s14833_s0 + $0xdc] sm:$0xff]  }
 0x13f   :  { %9112 = vmatprep.mubr.msk.bf16.mxu1 %vm1054_vm1, %v9652_v25  ;;  %15111 = vst [vmem:[#allocation17_spill] sm:$0xff] %v10971_v14  ;;  %v8853_v61 = vpop.f32.mrf.mxu0  ;;  %15113 = vst [vmem:[#allocation32_spill] sm:$0xff] %v10983_v1  ;;  %v10986_v43 = vshll.u32 %v10939_v15, 16  ;;  %v15116_v25 = vrot.slane %v10668_v9, 3  ;;  %v3346_v62 = vrot.slane %v10693_v49, 3 }
 0x140   :  { %15112 = vst [vmem:[#allocation31_spill] sm:$0xff] %v10974_v0  ;;  %v1967_v59 = vpop.f32.mrf.mxu1  ;;  %15115 = vst [vmem:[#allocation34_spill] sm:$0xff] %v10996_v54  ;;  %v1801_v53 = vadd.f32 %v8853_v61, %v10637_v30  ;;  %v11006_v21 = vadd.f32 %v10876_v50, %v1798_v52  ;;  %v11015_v61 = vshll.u32 %v10961_v36, 16  ;;  %v9655_v50 = vld [vmem:[%s14835_s1 + $0x50] sm:$0xff]   ;;  %v4470_v52 = vor.u32 %v4469_v18, %v4465_v63 }
 0x141   :  { %15114 = vst [vmem:[#allocation33_spill] sm:$0xff] %v10986_v43  ;;  %v11002_v20 = vsel %vm14964_vm7, %v3342_v16, %v15116_v25  ;;  %v1718_v5 = vpop.f32.mrf.mxu0  ;;  %v11018_v16 = vshll.u32 %v10966_v22, 16  ;;  %v4482_v25 = vrot.slane %v10971_v14, 1  ;;  %v4490_v63 = vrot.slane %v10986_v43, 1 }
 0x142   :  { %15117 = vst [vmem:[#allocation35_spill] sm:$0xff] %v11002_v20  ;;  %15118 = vst [vmem:[#allocation36_spill] sm:$0xff] %v11006_v21  ;;  %v8895_v0 = vpop.f32.mrf.mxu1  ;;  %v1799_v49 = vadd.f32 %v1718_v5, %v10639_v3  ;;  %v11026_v21 = vadd.f32 %v10888_v57, %v1801_v53  ;;  %v11036_v3 = vshrl.u32 %v10919_v40, 16  ;;  %v11040_v18 = vshll.u32 %v10991_v29, 16 }
 0x143   :  { %15120 = vst [vmem:[#allocation37_spill] sm:$0xff] %v11015_v61  ;;  %15121 = vst [vmem:[#allocation38_spill] sm:$0xff] %v11018_v16  ;;  %v8856_v30 = vpop.f32.mrf.mxu0  ;;  %9071 = vmatmul.mubr.msk.bf16.gmra.mxu0 %vm1054_vm1, %v10895_v48  ;;  %v11043_v57 = vshll.u32 %v10996_v54, 16  ;;  %v11049_v5 = vshrl.u32 %v10939_v15, 16  ;;  %v11052_v48 = vshrl.u32 %v10991_v29, 16  ;;  %v4506_v58 = vrot.slane %v11015_v61, 1 }
 0x144   :  { %15122 = vst [vmem:[#allocation39_spill] sm:$0xff] %v11026_v21  ;;  %v1970_v7 = vpop.f32.mrf.mxu1  ;;  %15123 = vst [vmem:[#allocation40_spill] sm:$0xff] %v11036_v3  ;;  %v1804_v53 = vadd.f32 %v8856_v30, %v10649_v31  ;;  %9074 = vmatprep.mubr.msk.bf16.mxu0 %vm1054_vm1, %v10913_v33  ;;  %v11055_v14 = vadd.f32 %v10923_v37, %v1799_v49  ;;  %v11060_v31 = vshrl.u32 %v10961_v36, 16  ;;  %v11063_v33 = vshrl.u32 %v10996_v54, 16 }
 0x145   :  { %15124 = vst [vmem:[#allocation41_spill] sm:$0xff] %v11040_v18  ;;  %15125 = vst [vmem:[#allocation42_spill] sm:$0xff] %v11043_v57  ;;  %v1731_v21 = vpop.f32.mrf.mxu0  ;;  %v4522_v30 = vrot.slane %v11018_v16, 1  ;;  %v11069_v37 = vshrl.u32 %v10966_v22, 16  ;;  %v4478_v54 = vor.u32 %v15134_v47, %v4474_v41  ;;  %v4486_v1 = vor.u32 %v11036_v3, %v4482_v25 }
 0x146   :  { %15126 = vst [vmem:[#allocation43_spill] sm:$0xff] %v11049_v5  ;;  %15127 = vst [vmem:[#allocation44_spill] sm:$0xff] %v11052_v48  ;;  %v8898_v11 = vpop.f32.mrf.mxu1  ;;  %9113 = vmatmul.mubr.msk.bf16.gmra.mxu1 %vm1054_vm1, %v9653_v13  ;;  %v1802_v20 = vadd.f32 %v1731_v21, %v10654_v23  ;;  %v11071_v49 = vadd.f32 %v8894_v17, %v1804_v53  ;;  %v11074_v13 = vshll.u32 %v11031_v28, 16  ;;  %v4498_v16 = vrot.slane %v11040_v18, 1  ;;  %v11084_v21 = vld [vmem:[%s14833_s0 + $0xf4] sm:$0xff]  }
 0x147   :  { %15128 = vst [vmem:[#allocation45_spill] sm:$0xff] %v11055_v14  ;;  %15129 = vst [vmem:[#allocation46_spill] sm:$0xff] %v11060_v31  ;;  %9116 = vmatprep.mubr.msk.bf16.mxu1 %vm1054_vm1, %v9655_v50  ;;  %v8857_v61 = vpop.f32.mrf.mxu0  ;;  %v4514_v23 = vrot.slane %v11043_v57, 1  ;;  %v15135_v50 = vrot.slane %v10668_v9, 3  ;;  %v4494_v47 = vor.u32 %v11049_v5, %v4490_v63  ;;  %v11098_v57 = vld [vmem:[%s14833_s0 + $0x104] sm:$0xff]   ;;  %v11104_v9 = vsel %vm901_vm2, %v4470_v52, %v4474_v41 }
 0x148   :  { %15130 = vst [vmem:[#allocation47_spill] sm:$0xff] %v11063_v33  ;;  %15131 = vst [vmem:[#allocation48_spill] sm:$0xff] %v11069_v37  ;;  %v1983_v14 = vpop.f32.mrf.mxu1  ;;  %v1805_v17 = vadd.f32 %v8857_v61, %v10660_v35  ;;  %v9656_v35 = vld [vmem:[%s14835_s1 + $0x58] sm:$0xff]   ;;  %v4510_v61 = vor.u32 %v11060_v31, %v4506_v58  ;;  %v9657_v5 = vld [vmem:[%s14835_s1 + $0x60] sm:$0xff]   ;;  %v4526_v41 = vor.u32 %v11069_v37, %v4522_v30  ;;  %v4530_v52 = vrot.slane %v11074_v13, 1 }
 0x149   :  { %15132 = vst [vmem:[#allocation49_spill] sm:$0xff] %v11071_v49  ;;  %15133 = vst [vmem:[#allocation50_spill] sm:$0xff] %v11074_v13  ;;  %v11090_v53 = vsel %vm14964_vm7, %v15135_v50, %v3346_v62  ;;  %v11093_v49 = vadd.f32 %v1967_v59, %v1802_v20  ;;  %v1734_v18 = vpop.f32.mrf.mxu0  ;;  %v4502_v62 = vor.u32 %v11052_v48, %v4498_v16  ;;  %v11112_v20 = vld [vmem:[%s14833_s0 + $0x114] sm:$0xff]  }
 0x14a   :  { %v8899_v3 = vpop.f32.mrf.mxu1  ;;  %v4518_v59 = vor.u32 %v11063_v33, %v4514_v23  ;;  %v1803_v50 = vadd.f32 %v1734_v18, %v10662_v6  ;;  %v11120_v48 = vadd.f32 %v8895_v0, %v1805_v17  ;;  %v11125_v33 = vld [vmem:[%s14833_s0 + $0xfc] sm:$0xff]   ;;  %v11130_v6 = vsel %vm901_vm2, %v4478_v54, %v4482_v25  ;;  %v11142_v17 = vld [vmem:[%s14833_s0 + $0x10c] sm:$0xff]  }
 0x14b   :  { %15136 = vst [vmem:[#allocation51_spill] sm:$0xff] %v11093_v49  ;;  %v8860_v31 = vpop.f32.mrf.mxu0  ;;  %9075 = vmatmul.mubr.msk.bf16.gmra.mxu0 %vm1054_vm1, %v10927_v34  ;;  %15138 = vst [vmem:[#allocation53_spill] sm:$0xff] %v11130_v6  ;;  %v11133_v18 = vsel %vm901_vm2, %v4486_v1, %v4490_v63  ;;  %v11137_v0 = vshll.u32 %v11084_v21, 16  ;;  %v11148_v34 = vsel %vm901_vm2, %v4494_v47, %v4498_v16  ;;  %v11153_v54 = vshll.u32 %v11098_v57, 16 }
 0x14c   :  { %15137 = vst [vmem:[#allocation52_spill] sm:$0xff] %v11120_v48  ;;  %v1986_v49 = vpop.f32.mrf.mxu1  ;;  %15139 = vst [vmem:[#allocation54_spill] sm:$0xff] %v11133_v18  ;;  %v1808_v37 = vadd.f32 %v8860_v31, %v10675_v46  ;;  %9078 = vmatprep.mubr.msk.bf16.mxu0 %vm1054_vm1, %v10944_v51  ;;  %v11150_v1 = vadd.f32 %v1970_v7, %v1803_v50  ;;  %v11157_v13 = vsel %vm901_vm2, %v4502_v62, %v4506_v58 }
 0x14d   :  { %15140 = vst [vmem:[#allocation55_spill] sm:$0xff] %v11137_v0  ;;  %15141 = vst [vmem:[#allocation56_spill] sm:$0xff] %v11148_v34  ;;  %v1747_v25 = vpop.f32.mrf.mxu0  ;;  %v11160_v46 = vsel %vm901_vm2, %v4510_v61, %v4514_v23  ;;  %v11163_v51 = vsel %vm901_vm2, %v4518_v59, %v4522_v30  ;;  %v11166_v16 = vshll.u32 %v11112_v20, 16  ;;  %v11171_v31 = vsel %vm901_vm2, %v4526_v41, %v4530_v52  ;;  %v11181_v30 = vld [vmem:[%s14833_s0 + $0x11c] sm:$0xff]  }
 0x14e   :  { %15142 = vst [vmem:[#allocation57_spill] sm:$0xff] %v11150_v1  ;;  %15143 = vst [vmem:[#allocation58_spill] sm:$0xff] %v11153_v54  ;;  %v8902_v63 = vpop.f32.mrf.mxu1  ;;  %9117 = vmatmul.mubr.msk.bf16.gmra.mxu1 %vm1054_vm1, %v9656_v35  ;;  %v1806_v7 = vadd.f32 %v1747_v25, %v10680_v56  ;;  %v11173_v47 = vadd.f32 %v8898_v11, %v1808_v37  ;;  %v11176_v58 = vshll.u32 %v11125_v33, 16  ;;  %v11184_v62 = vshrl.u32 %v11031_v28, 16  ;;  %v11196_v37 = vld [vmem:[%s14833_s0 + $0x124] sm:$0xff]   ;;  %v11208_v25 = vld [vmem:[%s14833_s0 + $0x134] sm:$0xff]  }
 0x14f   :  { %15144 = vst [vmem:[#allocation59_spill] sm:$0xff] %v11157_v13  ;;  %15145 = vst [vmem:[#allocation60_spill] sm:$0xff] %v11160_v46  ;;  %9120 = vmatprep.mubr.msk.bf16.mxu1 %vm1054_vm1, %v9657_v5  ;;  %v8861_v23 = vpop.f32.mrf.mxu0  ;;  %v4538_v56 = vrot.slane %v11137_v0, 1  ;;  %v11188_v5 = vshrl.u32 %v11084_v21, 16  ;;  %v11191_v11 = vshll.u32 %v11142_v17, 16  ;;  %v11202_v50 = vshrl.u32 %v11125_v33, 16 }
 0x150   :  { %15146 = vst [vmem:[#allocation61_spill] sm:$0xff] %v11163_v51  ;;  %15147 = vst [vmem:[#allocation62_spill] sm:$0xff] %v11166_v16  ;;  %v1999_v35 = vpop.f32.mrf.mxu1  ;;  %v1809_v61 = vadd.f32 %v8861_v23, %v10685_v32  ;;  %v11199_v59 = vadd.f32 %v1983_v14, %v1806_v7  ;;  %v4554_v41 = vrot.slane %v11153_v54, 1  ;;  %v11214_v32 = vshrl.u32 %v11098_v57, 16 }
 0x151   :  { %15148 = vst [vmem:[#allocation63_spill] sm:$0xff] %v11171_v31  ;;  %15149 = vst [vmem:[#allocation64_spill] sm:$0xff] %v11173_v47  ;;  %v1750_v0 = vpop.f32.mrf.mxu0  ;;  %v9658_v47 = vld [vmem:[%s14835_s1 + $0x68] sm:$0xff]   ;;  %v11217_v14 = vshrl.u32 %v11142_v17, 16  ;;  %v4570_v7 = vrot.slane %v11166_v16, 1  ;;  %v11221_v23 = vshrl.u32 %v11112_v20, 16 }
 0x152   :  { %15150 = vst [vmem:[#allocation65_spill] sm:$0xff] %v11176_v58  ;;  %15151 = vst [vmem:[#allocation66_spill] sm:$0xff] %v11184_v62  ;;  %v8903_v43 = vpop.f32.mrf.mxu1  ;;  %v1807_v54 = vadd.f32 %v1750_v0, %v10687_v19  ;;  %v4546_v1 = vrot.slane %v11176_v58, 1  ;;  %v11228_v48 = vadd.f32 %v8899_v3, %v1809_v61  ;;  %v11231_v31 = vshll.u32 %v11181_v30, 16  ;;  %v11236_v16 = vld [vmem:[%s14833_s0 + $0x12c] sm:$0xff]  }
 0x153   :  { %15152 = vst [vmem:[#allocation67_spill] sm:$0xff] %v11188_v5  ;;  %15153 = vst [vmem:[#allocation68_spill] sm:$0xff] %v11191_v11  ;;  %v11241_v19 = vld [vmem:[%s14833_s0 + $0x13c] sm:$0xf]  ;;  %v8864_v0 = vpop.f32.mrf.mxu0  ;;  %9079 = vmatmul.mubr.msk.bf16.gmra.mxu0 %vm1054_vm1, %v10951_v38  ;;  %v4534_v3 = vor.u32 %v11184_v62, %v4530_v52  ;;  %v4542_v61 = vor.u32 %v11188_v5, %v4538_v56  ;;  %v4562_v58 = vrot.slane %v11191_v11, 1  ;;  %v11258_v38 = vshll.u32 %v11208_v25, 16 }
 0x154   :  { %15154 = vst [vmem:[#allocation69_spill] sm:$0xff] %v11199_v59  ;;  %15155 = vst [vmem:[#allocation70_spill] sm:$0xff] %v11202_v50  ;;  %v9659_v59 = vld [vmem:[%s14835_s1 + $0x70] sm:$0xff]   ;;  %v2002_v51 = vpop.f32.mrf.mxu1  ;;  %v1812_v46 = vadd.f32 %v8864_v0, %v10698_v27  ;;  %9082 = vmatprep.mubr.msk.bf16.mxu0 %vm1054_vm1, %v10954_v10  ;;  %v11254_v13 = vadd.f32 %v1986_v49, %v1807_v54  ;;  %v4550_v34 = vor.u32 %v11202_v50, %v4546_v1 }
 0x155   :  { %15156 = vst [vmem:[#allocation71_spill] sm:$0xff] %v11214_v32  ;;  %15157 = vst [vmem:[#allocation72_spill] sm:$0xff] %v11217_v14  ;;  %v1763_v52 = vpop.f32.mrf.mxu0  ;;  %v4558_v11 = vor.u32 %v11214_v32, %v4554_v41  ;;  %v4566_v5 = vor.u32 %v11217_v14, %v4562_v58  ;;  %v4574_v27 = vor.u32 %v11221_v23, %v4570_v7  ;;  %v4578_v0 = vrot.slane %v11231_v31, 1 }
 0x156   :  { %15158 = vst [vmem:[#allocation73_spill] sm:$0xff] %v11221_v23  ;;  %15159 = vst [vmem:[#allocation74_spill] sm:$0xff] %v11228_v48  ;;  %v11249_v48 = vshll.u32 %v11196_v37, 16  ;;  %v8946_v62 = vpop.f32.mrf.mxu1  ;;  %9121 = vmatmul.mubr.msk.bf16.gmra.mxu1 %vm1054_vm1, %v9658_v47  ;;  %v11266_v10 = vcombine.low %v11241_v19, %v11241_v19  ;;  %v1810_v49 = vadd.f32 %v1763_v52, %v10703_v55  ;;  %v11274_v47 = vshll.u32 %v11236_v16, 16 }
 0x157   :  { %15160 = vst [vmem:[#allocation75_spill] sm:$0xff] %v11231_v31  ;;  %15162 = vst [vmem:[#allocation77_spill] sm:$0xff] %v11254_v13  ;;  %9124 = vmatprep.mubr.msk.bf16.mxu1 %vm1054_vm1, %v9659_v59  ;;  %v11270_v54 = vadd.f32 %v8902_v63, %v1812_v46  ;;  %v8865_v32 = vpop.f32.mrf.mxu0  ;;  %v11277_v14 = vshrl.u32 %v11181_v30, 16  ;;  %v11281_v13 = vshrl.u32 %v11196_v37, 16  ;;  %v11284_v55 = vshrl.u32 %v11236_v16, 16 }
 0x158   :  { %15161 = vst [vmem:[#allocation76_spill] sm:$0xff] %v11249_v48  ;;  %15163 = vst [vmem:[#allocation78_spill] sm:$0xff] %v11258_v38  ;;  %v2539_v50 = vpop.f32.mrf.mxu1  ;;  %v4586_v23 = vrot.slane %v11249_v48, 1  ;;  %v1813_v63 = vadd.f32 %v8865_v32, %v10708_v45  ;;  %v11287_v46 = vadd.f32 %v1999_v35, %v1810_v49  ;;  %v4602_v59 = vrot.slane %v11258_v38, 1  ;;  %v9660_v48 = vld [vmem:[%s14835_s1 + $0x78] sm:$0xff]  }
 0x159   :  { %15164 = vst [vmem:[#allocation79_spill] sm:$0xff] %v11270_v54  ;;  %15165 = vst [vmem:[#allocation80_spill] sm:$0xff] %v11274_v47  ;;  %v11291_v52 = vshrl.u32 %v11208_v25, 16  ;;  %v1766_v31 = vpop.f32.mrf.mxu0  ;;  %v11297_v18 = vsel %vm901_vm2, %v4534_v3, %v4538_v56  ;;  %v11300_v6 = vsel %vm901_vm2, %v4542_v61, %v4546_v1  ;;  %v11303_v45 = vsel %vm901_vm2, %v4550_v34, %v4554_v41 }
 0x15a   :  { %15166 = vst [vmem:[#allocation81_spill] sm:$0xff] %v11277_v14  ;;  %15167 = vst [vmem:[#allocation82_spill] sm:$0xff] %v11281_v13  ;;  %v8947_v54 = vpop.f32.mrf.mxu1  ;;  %v4608_v35 = vshll.u32 %v11266_v10, 16  ;;  %v1811_v32 = vadd.f32 %v1766_v31, %v10710_v60  ;;  %v11308_v49 = vsel %vm901_vm2, %v4558_v11, %v4562_v58  ;;  %v11310_v38 = vadd.f32 %v8903_v43, %v1813_v63 }
 0x15b   :  { %15168 = vst [vmem:[#allocation83_spill] sm:$0xff] %v11284_v55  ;;  %15169 = vst [vmem:[#allocation84_spill] sm:$0xff] %v11287_v46  ;;  %v4594_v46 = vrot.slane %v11274_v47, 1  ;;  %v8908_v56 = vpop.f32.mrf.mxu0  ;;  %9083 = vmatmul.mubr.msk.bf16.gmra.mxu0 %vm1054_vm1, %v10977_v24  ;;  %v11316_v34 = vsel %vm901_vm2, %v4566_v5, %v4570_v7  ;;  %v11319_v1 = vsel %vm901_vm2, %v4574_v27, %v4578_v0  ;;  %v5057_v61 = vrot.slane %v10906_v8, 1 }
 0x15c   :  { %15170 = vst [vmem:[#allocation85_spill] sm:$0xff] %v11291_v52  ;;  %v2542_v3 = vpop.f32.mrf.mxu1  ;;  %v4582_v60 = vor.u32 %v11277_v14, %v4578_v0  ;;  %v4590_v31 = vor.u32 %v11281_v13, %v4586_v23  ;;  %v2372_v43 = vadd.f32 %v8908_v56, %v10725_v42  ;;  %9086 = vmatprep.mubr.msk.bf16.mxu0 %vm1054_vm1, %v10980_v12  ;;  %v4610_v7 = vrot.slane %v4608_v35, 1 }
 0x15d   :  { %v11326_v58 = vadd.f32 %v2002_v51, %v1811_v32  ;;  %v4598_v11 = vor.u32 %v11284_v55, %v4594_v46  ;;  %v4606_v24 = vor.u32 %v11291_v52, %v4602_v59  ;;  %v2227_v5 = vpop.f32.mrf.mxu0  ;;  %v5059_v27 = vrot.slane %v10919_v40, 1  ;;  %v8115_v51 = vld [vmem:[%s14833_s0 + $0x140] sm:$0xf] }
 0x15e   :  { %v8950_v41 = vpop.f32.mrf.mxu1  ;;  %9125 = vmatmul.mubr.msk.bf16.gmra.mxu1 %vm1054_vm1, %v9660_v48  ;;  %v33_v0 = vlaneseq  ;;  %v2370_v42 = vadd.f32 %v2227_v5, %v10728_v26  ;;  %v11336_v12 = vadd.f32 %v8946_v62, %v2372_v43  ;;  %v5061_v48 = vrot.slane %v10939_v15, 1 }
 0x15f   :  { %9132 = vmatprep.mubr.msk.bf16.mxu1 %vm14963_vm9, %v15097_v2  ;;  %v5056_v63 = vrot.slane %v10872_v44, 1  ;;  %v8909_v35 = vpop.f32.mrf.mxu0  ;;  %v11344_v56 = vsel %vm901_vm2, %v4582_v60, %v4586_v23  ;;  %v5063_v26 = vrot.slane %v10991_v29, 1  ;;  %v5065_v5 = vrot.slane %v10961_v36, 1 }
 0x160   :  { %15171 = vst [vmem:[#allocation86_spill] sm:$0xff] %v11336_v12  ;;  %v2555_v32 = vpop.f32.mrf.mxu1  ;;  %15172 = vst [vmem:[#allocation87_spill] sm:$0xff] %v11344_v56  ;;  %v11348_v52 = vshrl.u32 %v33_v0, 7  ;;  %v2373_v62 = vadd.f32 %v8909_v35, %v10737_v4  ;;  %v11351_v43 = vadd.f32 %v2539_v50, %v2370_v42  ;;  %v11354_v47 = vsel %vm901_vm2, %v4590_v31, %v4594_v46  ;;  %v4244_v46 = vld [vmem:[%s14837_s2] sm:$0xf]  ;;  %v15187_v35 = vld [vmem:[#allocation35_spill] sm:$0xff] }
 0x161   :  { %15175 = vst [vmem:[#allocation90_spill] sm:$0xff] %v11354_v47  ;;  %v11357_v55 = vsel %vm901_vm2, %v4598_v11, %v4602_v59  ;;  %v2230_v13 = vpop.f32.mrf.mxu0  ;;  %v11360_v23 = vsel %vm901_vm2, %v4606_v24, %v4610_v7  ;;  %v11363_v60 = vcombine.low %v11241_v19, %v8115_v51  ;;  %v11366_v0 = vsel %vm1506_vm3, %v5057_v61, %v5059_v27  ;;  %v15183_v7 = vld [vmem:[#allocation32_spill] sm:$0xff]  ;;  %v15186_v51 = vld [vmem:[#allocation3_spill] sm:$0xff] }
 0x162   :  { %15173 = vst [vmem:[#allocation88_spill] sm:$0xff] %v11348_v52  ;;  %15174 = vst [vmem:[#allocation89_spill] sm:$0xff] %v11351_v43  ;;  %v8951_v14 = vpop.f32.mrf.mxu1  ;;  %v36_v4 = vadd.s32 16, %v11348_v52  ;;  %v2371_v50 = vadd.f32 %v2230_v13, %v10744_v39  ;;  %v11373_v59 = vadd.f32 %v8947_v54, %v2373_v62  ;;  %v11376_v31 = vsel %vm1506_vm3, %v5059_v27, %v5061_v48 }
 0x163   :  { %15176 = vst [vmem:[#allocation91_spill] sm:$0xff] %v11357_v55  ;;  %15177 = vst [vmem:[#allocation92_spill] sm:$0xff] %v11360_v23  ;;  %v11379_v11 = vsel %vm1506_vm3, %v5056_v63, %v5057_v61  ;;  %v8912_v19 = vpop.f32.mrf.mxu0  ;;  %9087 = vmatmul.mubr.msk.bf16.gmra.mxu0 %vm1054_vm1, %v15183_v7  ;;  %v11384_v42 = vsel %vm1506_vm3, %v5061_v48, %v5063_v26  ;;  %v11387_v39 = vsel %vm1506_vm3, %v5063_v26, %v5065_v5  ;;  %v15189_v63 = vld [vmem:[#allocation34_spill] sm:$0xff] }
 0x164   :  { %15178 = vst [vmem:[#allocation93_spill] sm:$0xff] %v11363_v60  ;;  %15179 = vst [vmem:[#allocation94_spill] sm:$0xff] %v11366_v0  ;;  %v2558_v24 = vpop.f32.mrf.mxu1  ;;  %v11389_v13 = vmul.u32.u64.low 3817748708, %v36_v4  ;;  %v11390_v54 = vmul.u32.u64.high 3817748708, %v36_v4, %v11389_v13  ;;  %v2376_v27 = vadd.f32 %v8912_v19, %v15186_v51  ;;  %9090 = vmatprep.mubr.msk.bf16.mxu0 %vm1054_vm1, %v15187_v35  ;;  %v11395_v61 = vadd.f32 %v2542_v3, %v2371_v50  ;;  %v15190_v51 = vld [vmem:[#allocation22_spill] sm:$0xff]  ;;  %v15193_v0 = vld [vmem:[#allocation4_spill] sm:$0xff] }
 0x165   :  { %15180 = vst [vmem:[#allocation95_spill] sm:$0xff] %v11373_v59  ;;  %15181 = vst [vmem:[#allocation96_spill] sm:$0xff] %v11376_v31  ;;  %v5067_v62 = vrot.slane %v15189_v63, 1  ;;  %v5069_v7 = vrot.slane %v10966_v22, 1  ;;  %v2243_v31 = vpop.f32.mrf.mxu0  ;;  %v5071_v26 = vrot.slane %v11031_v28, 1  ;;  %v11406_v19 = vadd.s32 24, %v11348_v52 }
 0x166   :  { %15182 = vst [vmem:[#allocation97_spill] sm:$0xff] %v11379_v11  ;;  %15184 = vst [vmem:[#allocation32_spill] sm:$0xff] %v11384_v42  ;;  %v8954_v48 = vpop.f32.mrf.mxu1  ;;  %9133 = vmatmul.mubr.msk.bf16.vlgmr.msra.gmra.mxu1 %vm3732_vm8, %v4244_v46  ;;  %v2374_v3 = vadd.f32 %v2243_v31, %v15190_v51  ;;  %v15191_v50 = vld [vmem:[#allocation2_spill] sm:$0xff]  ;;  %v11412_v35 = vadd.f32 %v8950_v41, %v2376_v27  ;;  %v5073_v46 = vrot.slane %v11084_v21, 1  ;;  %v5075_v42 = vrot.slane %v11125_v33, 1 }
 0x167   :  { %15185 = vst [vmem:[#allocation98_spill] sm:$0xff] %v11387_v39  ;;  %15188 = vst [vmem:[#allocation3_spill] sm:$0xff] %v11395_v61  ;;  %v11402_v39 = vmul.u32.u64.low 3817748708, %v11348_v52  ;;  %v11403_v13 = vmul.u32.u64.high 3817748708, %v11348_v52, %v11402_v39  ;;  %9175 = vmatpush3.bf16.msra.mxu1 %v15191_v50  ;;  %9176 = vmatprep.mubr.msk.bf16.mxu1 %vm1054_vm1, %v10872_v44  ;;  %v8913_v11 = vpop.f32.mrf.mxu0  ;;  %v11420_v31 = vmul.u32.u64.low 3817748708, %v11406_v19  ;;  %v11421_v51 = vmul.u32.u64.high 3817748708, %v11406_v19, %v11420_v31 }
 0x168   :  { %15192 = vst [vmem:[#allocation35_spill] sm:$0xff] %v11412_v35  ;;  %v2571_v23 = vpop.f32.mrf.mxu1  ;;  %9533 = vmatprep.subr.msk.bf16.mxu1 %vm1109_vm0, %v15193_v0  ;;  %v98_v39 = vshrl.u32 %v11390_v54, 4  ;;  %v11424_v50 = vadd.s32 8, %v11348_v52  ;;  %v15194_v44 = vld [vmem:[#allocation11_spill] sm:$0xff]  ;;  %v11427_v27 = vadd.f32 %v2555_v32, %v2374_v3  ;;  %v5077_v55 = vrot.slane %v11098_v57, 1  ;;  %v15195_v31 = vld [vmem:[#allocation10_spill] sm:$0xff] }
 0x169   :  { %v2377_v41 = vadd.f32 %v8913_v11, %v15194_v44  ;;  %v5079_v35 = vrot.slane %v11142_v17, 1  ;;  %v2246_v47 = vpop.f32.mrf.mxu0  ;;  %v76_v54 = vshrl.u32 %v11403_v13, 4  ;;  %v11440_v32 = vsel %vm1506_vm3, %v5065_v5, %v5067_v62 }
 0x16a   :  { %v8955_v61 = vpop.f32.mrf.mxu1  ;;  %v99_v0 = vmul.u32 18, %v98_v39  ;;  %v11433_v59 = vmul.u32.u64.low 3817748708, %v11424_v50  ;;  %v11434_v43 = vmul.u32.u64.high 3817748708, %v11424_v50, %v11433_v59  ;;  %v2375_v56 = vadd.f32 %v2246_v47, %v15195_v31  ;;  %15196 = vst [vmem:[#allocation34_spill] sm:$0xff] %v11440_v32 }
 0x16b   :  { %v11437_v12 = vadd.f32 %v8951_v14, %v2377_v41  ;;  %v8916_v3 = vpop.f32.mrf.mxu0  ;;  %9091 = vmatmul.mubr.msk.bf16.gmra.mxu0 %vm1054_vm1, %v11090_v53  ;;  %v11446_v13 = vsel %vm1506_vm3, %v5067_v62, %v5069_v7  ;;  %v77_v59 = vmul.u32 18, %v76_v54  ;;  %v109_v47 = vshrl.u32 %v11421_v51, 4  ;;  %v15198_v14 = vld [vmem:[#allocation18_spill] sm:$0xff] }
 0x16c   :  { %v2574_v44 = vpop.f32.mrf.mxu1  ;;  %15197 = vst [vmem:[#allocation22_spill] sm:$0xff] %v11446_v13  ;;  %v11448_v39 = vsub.s32 %v36_v4, %v99_v0  ;;  %v2380_v41 = vadd.f32 %v8916_v3, %v15198_v14  ;;  %9138 = vmatprep.mubr.msk.bf16.mxu0 %vm1054_vm1, %v11104_v9  ;;  %v11454_v5 = vadd.f32 %v2558_v24, %v2375_v56  ;;  %v15204_v24 = vld [vmem:[#allocation23_spill] sm:$0xff]  ;;  %v15209_v14 = vld [vmem:[#allocation8_spill] sm:$0xff] }
 0x16d   :  { %v11457_v31 = vsel %vm1506_vm3, %v5069_v7, %v5071_v26  ;;  %v11460_v53 = vsel %vm1506_vm3, %v5071_v26, %v5073_v46  ;;  %v2259_v62 = vpop.f32.mrf.mxu0  ;;  %v11465_v4 = vsel %vm1506_vm3, %v5073_v46, %v5075_v42  ;;  %v11468_v51 = vsel %vm1506_vm3, %v5075_v42, %v5077_v55  ;;  %v15205_v26 = vld [vmem:[#allocation6_spill] sm:$0xff] }
 0x16e   :  { %15199 = vst [vmem:[#allocation2_spill] sm:$0xff] %v11457_v31  ;;  %15200 = vst [vmem:[#allocation4_spill] sm:$0xff] %v11460_v53  ;;  %v8958_v11 = vpop.f32.mrf.mxu1  ;;  %9177 = vmatmul.mubr.msk.bf16.vlgmr.msra.gmra.mxu1 %vm1054_vm1, %v10906_v8  ;;  %v11471_v9 = vsel %vm1506_vm3, %v5077_v55, %v5079_v35  ;;  %v11474_v56 = vsub.s32 %v11348_v52, %v77_v59  ;;  %v2378_v7 = vadd.f32 %v2259_v62, %v15204_v24  ;;  %v15210_v59 = vld [vmem:[#allocation13_spill] sm:$0xff]  ;;  %v15220_v53 = vld [vmem:[#allocation54_spill] sm:$0xff] }
 0x16f   :  { %15201 = vst [vmem:[#allocation11_spill] sm:$0xff] %v11465_v4  ;;  %15202 = vst [vmem:[#allocation10_spill] sm:$0xff] %v11468_v51  ;;  %9251 = vmatpush3.bf16.msra.mxu1 %v15205_v26  ;;  %9180 = vmatprep.mubr.msk.bf16.mxu1 %vm1054_vm1, %v10919_v40  ;;  %v11480_v0 = vadd.f32 %v8954_v48, %v2380_v41  ;;  %v15207_v46 = vrot.slane %v11112_v20, 1  ;;  %v110_v54 = vmul.u32 18, %v109_v47  ;;  %v8917_v55 = vpop.f32.mrf.mxu0  ;;  %vm468_vm10 = vcmp.ne.s32.totalorder %v11448_v39, 0  ;;  %v15216_v4 = vld [vmem:[#allocation53_spill] sm:$0xff] }
 0x170   :  { %15203 = vst [vmem:[#allocation18_spill] sm:$0xff] %v11471_v9  ;;  %v2587_v3 = vpop.f32.mrf.mxu1  ;;  %9535 = vmatprep.subr.msk.bf16.mxu1 %vm1109_vm0, %v15209_v14  ;;  %vm504_vm11 = vcmp.lt.s32.totalorder %v11448_v39, 0  ;;  %vm466_vm12 = vcmp.ne.s32.totalorder %v11474_v56, 0  ;;  %v11493_v48 = vadd.s32 48, %v11348_v52  ;;  %v2381_v41 = vadd.f32 %v8917_v55, %v15210_v59  ;;  %v15212_v9 = vld [vmem:[#allocation12_spill] sm:$0xff] }
 0x171   :  { %15206 = vst [vmem:[#allocation23_spill] sm:$0xff] %v11480_v0  ;;  %v11485_v42 = vsel %vm1506_vm3, %v5079_v35, %v15207_v46  ;;  %v11496_v62 = vadd.f32 %v2571_v23, %v2378_v7  ;;  %vm502_vm13 = vcmp.lt.s32.totalorder %v11474_v56, 0  ;;  %v11500_v35 = vsub.s32 %v11406_v19, %v110_v54  ;;  %v2262_v47 = vpop.f32.mrf.mxu0  ;;  %vm11513_vm14 = vmand %vm504_vm11, %vm468_vm10 }
 0x172   :  { %15208 = vst [vmem:[#allocation6_spill] sm:$0xff] %v11485_v42  ;;  %v8959_v24 = vpop.f32.mrf.mxu1  ;;  %v5083_v26 = vrot.slane %v11181_v30, 1  ;;  %v5085_v46 = vrot.slane %v11196_v37, 1  ;;  %v576_v14 = vadd.s32 18, %v11448_v39  ;;  %v87_v42 = vshrl.u32 %v11434_v43, 4  ;;  %vm11525_vm15 = vmand %vm502_vm13, %vm466_vm12 }
 0x173   :  { %15211 = vst [vmem:[#allocation8_spill] sm:$0xff] %v11496_v62  ;;  %v2379_v51 = vadd.f32 %v2262_v47, %v15212_v9  ;;  %v11507_v55 = vadd.f32 %v8955_v61, %v2381_v41  ;;  %v5087_v19 = vrot.slane %v11236_v16, 1  ;;  %v574_v7 = vadd.s32 18, %v11474_v56  ;;  %v8920_v54 = vpop.f32.mrf.mxu0  ;;  %9139 = vmatmul.mubr.msk.bf16.vlgmr.msra.gmra.mxu0 %vm1054_vm1, %v15216_v4  ;;  %v15219_v41 = vld [vmem:[#allocation24_spill] sm:$0xff]  ;;  %v15221_v4 = vld [vmem:[#allocation7_spill] sm:$0xff] }
 0x174   :  { %v2590_v59 = vpop.f32.mrf.mxu1  ;;  %v11530_v61 = vrot.slane %v11208_v25, 1  ;;  %vm469_vm2 = vcmp.ne.s32.totalorder %v11500_v35, 0  ;;  %vm505_vm10 = vcmp.lt.s32.totalorder %v11500_v35, 0  ;;  %v88_v9 = vmul.u32 18, %v87_v42  ;;  %9142 = vmatprep.mubr.msk.bf16.mxu0 %vm1054_vm1, %v15220_v53  ;;  %9213 = vmatpush3.bf16.msra.mxu0 %v15221_v4 }
 0x175   :  { %15213 = vst [vmem:[#allocation13_spill] sm:$0xff] %v11507_v55  ;;  %v2384_v47 = vadd.f32 %v8920_v54, %v15219_v41  ;;  %v11538_v31 = vadd.f32 %v2574_v44, %v2379_v51  ;;  %v11541_v13 = vmul.u32.u64.low 3817748708, %v11493_v48  ;;  %v11542_v32 = vmul.u32.u64.high 3817748708, %v11493_v48, %v11541_v13  ;;  %v2275_v25 = vpop.f32.mrf.mxu0  ;;  %vm11584_vm11 = vmand %vm505_vm10, %vm469_vm2 }
 0x176   :  { %v8962_v55 = vpop.f32.mrf.mxu1  ;;  %9181 = vmatmul.mubr.msk.bf16.gmra.mxu1 %vm1054_vm1, %v10939_v15  ;;  %v15223_v42 = vrot.slane %v11112_v20, 1  ;;  %v11552_v53 = vsel %vm1506_vm3, %v5083_v26, %v5085_v46  ;;  %v612_v44 = vsel %vm11513_vm14, %v576_v14, %v11448_v39  ;;  %v11558_v51 = vadd.s32 32, %v11348_v52  ;;  %v9718_v13 = vld [vmem:[%s14832_s3 + $0x8] sm:$0xf]  ;;  %v15226_v15 = vld [vmem:[#allocation25_spill] sm:$0xff] }
 0x177   :  { %15222 = vst [vmem:[#allocation12_spill] sm:$0xff] %v11538_v31  ;;  %15225 = vst [vmem:[#allocation24_spill] sm:$0xff] %v11552_v53  ;;  %9534 = vmatprep.subr.msk.bf16.mxu0 %vm1109_vm0, %v9718_v13  ;;  %v2382_v41 = vadd.f32 %v2275_v25, %v15226_v15  ;;  %9184 = vmatprep.mubr.msk.bf16.mxu1 %vm1054_vm1, %v10991_v29  ;;  %v610_v39 = vsel %vm11525_vm15, %v574_v7, %v11474_v56  ;;  %v577_v14 = vadd.s32 18, %v11500_v35  ;;  %v8921_v23 = vpop.f32.mrf.mxu0  ;;  %v15240_v53 = vld [vmem:[#allocation56_spill] sm:$0xff] }
 0x178   :  { %v11549_v54 = vsel %vm1506_vm3, %v15223_v42, %v5083_v26  ;;  %v11567_v26 = vadd.f32 %v8958_v11, %v2384_v47  ;;  %v2603_v4 = vpop.f32.mrf.mxu1  ;;  %v11574_v42 = vsel %vm1506_vm3, %v5085_v46, %v5087_v19  ;;  %v11578_v13 = vsel %vm1506_vm3, %v5087_v19, %v11530_v61  ;;  %v15232_v46 = vld [vmem:[#allocation9_spill] sm:$0xff] }
 0x179   :  { %15224 = vst [vmem:[#allocation53_spill] sm:$0xff] %v11549_v54  ;;  %15228 = vst [vmem:[#allocation7_spill] sm:$0xff] %v11574_v42  ;;  %v11589_v11 = vsub.s32 %v11424_v50, %v88_v9  ;;  %v11592_v56 = vadd.s32 56, %v11348_v52  ;;  %v2385_v7 = vadd.f32 %v8921_v23, %v15232_v46  ;;  %v11595_v43 = vadd.f32 %v2587_v3, %v2382_v41  ;;  %v2278_v25 = vpop.f32.mrf.mxu0  ;;  %v15238_v3 = vld [vmem:[#allocation20_spill] sm:$0xff] }
 0x17a   :  { %15227 = vst [vmem:[#allocation54_spill] sm:$0xff] %v11567_v26  ;;  %15229 = vst [vmem:[#allocation25_spill] sm:$0xff] %v11578_v13  ;;  %vm11597_vm12 = vcmp.lt.s32.totalorder %v612_v44, 16  ;;  %v142_v47 = vshrl.u32 %v11542_v32, 4  ;;  %v8963_v15 = vpop.f32.mrf.mxu1  ;;  %vm11602_vm13 = vcmp.lt.s32.totalorder %v610_v39, 16  ;;  %v11611_v23 = vadd.s32 40, %v11348_v52 }
 0x17b   :  { %15233 = vst [vmem:[#allocation9_spill] sm:$0xff] %v11595_v43  ;;  %v11607_v50 = vmul.u32.u64.low 3817748708, %v11558_v51  ;;  %v11608_v9 = vmul.u32.u64.high 3817748708, %v11558_v51, %v11607_v50  ;;  %v2383_v44 = vadd.f32 %v2278_v25, %v15238_v3  ;;  %v11614_v41 = vadd.f32 %v8959_v24, %v2385_v7  ;;  %v8924_v39 = vpop.f32.mrf.mxu0  ;;  %9143 = vmatmul.mubr.msk.bf16.gmra.mxu0 %vm1054_vm1, %v15240_v53  ;;  %v15241_v24 = vld [vmem:[#allocation26_spill] sm:$0xff]  ;;  %v15242_v25 = vld [vmem:[#allocation59_spill] sm:$0xff] }
 0x17c   :  { %v613_v32 = vsel %vm11584_vm11, %v577_v14, %v11500_v35  ;;  %v143_v46 = vmul.u32 18, %v142_v47  ;;  %v2606_v42 = vpop.f32.mrf.mxu1  ;;  %vm467_vm14 = vcmp.ne.s32.totalorder %v11589_v11, 0  ;;  %vm503_vm15 = vcmp.lt.s32.totalorder %v11589_v11, 0  ;;  %9146 = vmatprep.mubr.msk.bf16.mxu0 %vm1054_vm1, %v15242_v25 }
 0x17d   :  { %15239 = vst [vmem:[#allocation20_spill] sm:$0xff] %v11614_v41  ;;  %v11624_v50 = vmul.u32.u64.low 3817748708, %v11592_v56  ;;  %v11625_v54 = vmul.u32.u64.high 3817748708, %v11592_v56, %v11624_v50  ;;  %v2388_v7 = vadd.f32 %v8924_v39, %v15241_v24  ;;  %v11630_v35 = vadd.f32 %v2590_v59, %v2383_v44  ;;  %v2291_v29 = vpop.f32.mrf.mxu0  ;;  %v15244_v59 = vld [vmem:[#allocation28_spill] sm:$0xff]  ;;  %vm11663_vm10 = vmand %vm503_vm15, %vm467_vm14 }
 0x17e   :  { %v11633_v14 = vsub.s32 %v11493_v48, %v143_v46  ;;  %v11636_v53 = vadd.s32 80, %v11348_v52  ;;  %v8966_v47 = vpop.f32.mrf.mxu1  ;;  %9185 = vmatmul.mubr.msk.bf16.gmra.mxu1 %vm1054_vm1, %v10961_v36  ;;  %v120_v39 = vshrl.u32 %v11608_v9, 4  ;;  %v2386_v44 = vadd.f32 %v2291_v29, %v15244_v59  ;;  %v8116_v9 = vld [vmem:[%s14833_s0 + $0x144] sm:$0xf] }
 0x17f   :  { %15243 = vst [vmem:[#allocation56_spill] sm:$0xff] %v11630_v35  ;;  %v11643_v50 = vmul.u32.u64.low 3817748708, %v11611_v23  ;;  %v11644_v24 = vmul.u32.u64.high 3817748708, %v11611_v23, %v11643_v50  ;;  %9188 = vmatprep.mubr.msk.bf16.mxu1 %vm1054_vm1, %v15189_v63  ;;  %v11649_v48 = vadd.f32 %v8962_v55, %v2388_v7  ;;  %vm11651_vm2 = vcmp.lt.s32.totalorder %v613_v32, 16  ;;  %v8925_v25 = vpop.f32.mrf.mxu0  ;;  %v15250_v7 = vld [vmem:[#allocation27_spill] sm:$0xff] }
 0x180   :  { %v575_v36 = vadd.s32 18, %v11589_v11  ;;  %v2619_v3 = vpop.f32.mrf.mxu1  ;;  %vm472_vm11 = vcmp.ne.s32.totalorder %v11633_v14, 0  ;;  %vm508_vm9 = vcmp.lt.s32.totalorder %v11633_v14, 0  ;;  %v121_v55 = vmul.u32 18, %v120_v39  ;;  %v15252_v39 = vld [vmem:[#allocation5_spill] sm:$0xff] }
 0x181   :  { %15245 = vst [vmem:[#allocation26_spill] sm:$0xff] %v11649_v48  ;;  %v153_v32 = vshrl.u32 %v11625_v54, 4  ;;  %v2389_v29 = vadd.f32 %v8925_v25, %v15250_v7  ;;  %v11671_v50 = vadd.f32 %v2603_v4, %v2386_v44  ;;  %v2294_v35 = vpop.f32.mrf.mxu0  ;;  %v580_v43 = vadd.s32 18, %v11633_v14  ;;  %vm11691_vm14 = vmand %vm508_vm9, %vm472_vm11 }
 0x182   :  { %v11674_v59 = vmul.u32.u64.low 3817748708, %v11636_v53  ;;  %v11675_v48 = vmul.u32.u64.high 3817748708, %v11636_v53, %v11674_v59  ;;  %v8967_v41 = vpop.f32.mrf.mxu1  ;;  %v11678_v26 = vcombine.low %v8116_v9, %v8116_v9  ;;  %v131_v62 = vshrl.u32 %v11644_v24, 4 }
 0x183   :  { %v154_v31 = vmul.u32 18, %v153_v32  ;;  %v2387_v0 = vadd.f32 %v2294_v35, %v15252_v39  ;;  %v11682_v54 = vadd.f32 %v8963_v15, %v2389_v29  ;;  %v611_v4 = vsel %vm11663_vm10, %v575_v36, %v11589_v11  ;;  %v8928_v24 = vpop.f32.mrf.mxu0  ;;  %v15255_v35 = vld [vmem:[#allocation60_spill] sm:$0xff]  ;;  %v15262_v32 = vld [vmem:[#allocation61_spill] sm:$0xff] }
 0x184   :  { %15251 = vst [vmem:[#allocation59_spill] sm:$0xff] %v11678_v26  ;;  %v11696_v9 = vsub.s32 %v11558_v51, %v121_v55  ;;  %v2622_v25 = vpop.f32.mrf.mxu1  ;;  %9147 = vmatmul.mubr.msk.bf16.gmra.mxu0 %vm1054_vm1, %v15255_v35  ;;  %v11703_v11 = vsel %vm11597_vm12, 1.0, %v15097_v2  ;;  %v11708_v15 = vsel %vm11602_vm13, 1.0, %v15097_v2  ;;  %v11713_v51 = vsel %vm11651_vm2, 1.0, %v15097_v2  ;;  %v15261_v55 = vld [vmem:[#allocation31_spill] sm:$0xff] }
 0x185   :  { %15256 = vst [vmem:[#allocation28_spill] sm:$0xff] %v11703_v11  ;;  %15257 = vst [vmem:[#allocation27_spill] sm:$0xff] %v11708_v15  ;;  %v15259_v36 = vrot.slane %v11363_v60, 1  ;;  %v2392_v19 = vadd.f32 %v8928_v24, %v15261_v55  ;;  %9150 = vmatprep.mubr.msk.bf16.mxu0 %vm1054_vm1, %v15262_v32  ;;  %v11724_v7 = vadd.f32 %v2606_v42, %v2387_v0  ;;  %v132_v29 = vmul.u32 18, %v131_v62  ;;  %v2307_v46 = vpop.f32.mrf.mxu0  ;;  %v15270_v32 = vld [vmem:[#allocation45_spill] sm:$0xff]  ;;  %v15308_v11 = vld [vmem:[#allocation43_spill] sm:$0xff] }
 0x186   :  { %15258 = vst [vmem:[#allocation5_spill] sm:$0xff] %v11713_v51  ;;  %v11727_v13 = vsub.s32 %v11592_v56, %v154_v31  ;;  %v8970_v59 = vpop.f32.mrf.mxu1  ;;  %9189 = vmatmul.mubr.msk.bf16.gmra.mxu1 %vm1054_vm1, %v10966_v22  ;;  %vm11731_vm9 = vcmp.lt.s32.totalorder %v611_v4, 16  ;;  %v616_v24 = vsel %vm11691_vm14, %v580_v43, %v11633_v14  ;;  %v5368_v0 = vrot.slane %v11678_v26, 1  ;;  %v15265_v31 = vld [vmem:[#allocation36_spill] sm:$0xff]  ;;  %v15287_v26 = vld [vmem:[#allocation57_spill] sm:$0xff] }
 0x187   :  { %v11719_v63 = vsel %vm1506_vm3, %v11530_v61, %v15259_v36  ;;  %v186_v42 = vshrl.u32 %v11675_v48, 4  ;;  %v2390_v56 = vadd.f32 %v2307_v46, %v15265_v31  ;;  %9192 = vmatprep.mubr.msk.bf16.mxu1 %vm1054_vm1, %v11031_v28  ;;  %v11743_v62 = vadd.f32 %v8966_v47, %v2392_v19  ;;  %v8929_v22 = vpop.f32.mrf.mxu0  ;;  %v15266_v48 = vld [vmem:[#allocation39_spill] sm:$0xff] }
 0x188   :  { %15260 = vst [vmem:[#allocation60_spill] sm:$0xff] %v11719_v63  ;;  %vm470_vm12 = vcmp.ne.s32.totalorder %v11696_v9, 0  ;;  %vm506_vm13 = vcmp.lt.s32.totalorder %v11696_v9, 0  ;;  %v2635_v4 = vpop.f32.mrf.mxu1  ;;  %v578_v44 = vadd.s32 18, %v11696_v9  ;;  %vm473_vm15 = vcmp.ne.s32.totalorder %v11727_v13, 0 }
 0x189   :  { %v11750_v43 = vsub.s32 %v11611_v23, %v132_v29  ;;  %v11753_v14 = vadd.s32 64, %v11348_v52  ;;  %v2393_v28 = vadd.f32 %v8929_v22, %v15266_v48  ;;  %v11756_v47 = vadd.f32 %v2619_v3, %v2390_v56  ;;  %v2310_v36 = vpop.f32.mrf.mxu0  ;;  %vm11766_vm10 = vmand %vm506_vm13, %vm470_vm12  ;;  %v15275_v48 = vld [vmem:[#allocation63_spill] sm:$0xff] }
 0x18a   :  { %vm509_vm2 = vcmp.lt.s32.totalorder %v11727_v13, 0  ;;  %v187_v35 = vmul.u32 18, %v186_v42  ;;  %v8971_v55 = vpop.f32.mrf.mxu1  ;;  %v11762_v19 = vsel %vm11731_vm9, 1.0, %v15097_v2  ;;  %v5091_v3 = vrot.slane %v11266_v10, 1 }
 0x18b   :  { %15267 = vst [vmem:[#allocation31_spill] sm:$0xff] %v11762_v19  ;;  %vm471_vm11 = vcmp.ne.s32.totalorder %v11750_v43, 0  ;;  %vm507_vm14 = vcmp.lt.s32.totalorder %v11750_v43, 0  ;;  %v2391_v29 = vadd.f32 %v2310_v36, %v15270_v32  ;;  %v11774_v46 = vadd.f32 %v8967_v41, %v2393_v28  ;;  %v8932_v56 = vpop.f32.mrf.mxu0  ;;  %vm11791_vm9 = vmand %vm509_vm2, %vm473_vm15  ;;  %v15278_v36 = vld [vmem:[#allocation49_spill] sm:$0xff] }
 0x18c   :  { %vm11776_vm7 = vcmp.lt.s32.totalorder %v616_v24, 16  ;;  %v15273_v42 = vrot.slane %v11363_v60, 1  ;;  %v2638_v22 = vpop.f32.mrf.mxu1  ;;  %9151 = vmatmul.mubr.msk.bf16.gmra.mxu0 %vm1054_vm1, %v15275_v48  ;;  %v581_v41 = vadd.s32 18, %v11727_v13  ;;  %v579_v24 = vadd.s32 18, %v11750_v43  ;;  %vm11813_vm12 = vmand %vm507_vm14, %vm471_vm11 }
 0x18d   :  { %v2396_v32 = vadd.f32 %v8932_v56, %v15278_v36  ;;  %9154 = vmatprep.mubr.msk.bf16.mxu0 %vm1054_vm1, %v11297_v18  ;;  %v614_v48 = vsel %vm11766_vm10, %v578_v44, %v11696_v9  ;;  %v2323_v56 = vpop.f32.mrf.mxu0  ;;  %v11825_v18 = vsel %vm11776_vm7, 1.0, %v15097_v2  ;;  %v11829_v9 = vsel %vm1506_vm3, %v11530_v61, %v5091_v3  ;;  %v15295_v61 = vld [vmem:[#allocation64_spill] sm:$0xff] }
 0x18e   :  { %v11783_v31 = vsel %vm1506_vm3, %v15273_v42, %v5368_v0  ;;  %v11798_v0 = vmul.u32.u64.low 3817748708, %v11753_v14  ;;  %v11799_v28 = vmul.u32.u64.high 3817748708, %v11753_v14, %v11798_v0  ;;  %v11804_v42 = vadd.f32 %v2622_v25, %v2391_v29  ;;  %v8974_v36 = vpop.f32.mrf.mxu1  ;;  %9193 = vmatmul.mubr.msk.bf16.gmra.mxu1 %vm1054_vm1, %v11084_v21  ;;  %15281 = vst [vmem:[#allocation36_spill] sm:$0xff] %v11825_v18  ;;  %15282 = vst [vmem:[#allocation39_spill] sm:$0xff] %v11829_v9 }
 0x18f   :  { %15274 = vst [vmem:[#allocation61_spill] sm:$0xff] %v11783_v31  ;;  %v11818_v0 = vsub.s32 %v11636_v53, %v187_v35  ;;  %v5941_v25 = vrot.slane %v10906_v8, 2  ;;  %v15283_v53 = vld [vmem:[#allocation51_spill] sm:$0xff]  ;;  %9196 = vmatprep.mubr.msk.bf16.mxu1 %vm1054_vm1, %v11125_v33  ;;  %v11836_v23 = vadd.f32 %v8970_v59, %v2396_v32  ;;  %v45_v21 = vadd.s32 88, %v11348_v52  ;;  %v8933_v39 = vpop.f32.mrf.mxu0  ;;  %v15286_v32 = vld [vmem:[#allocation52_spill] sm:$0xff] }
 0x190   :  { %v2394_v35 = vadd.f32 %v2323_v56, %v15283_v53  ;;  %v11840_v29 = vadd.s32 72, %v11348_v52  ;;  %v2651_v60 = vpop.f32.mrf.mxu1  ;;  %vm11842_vm3 = vcmp.lt.s32.totalorder %v614_v48, 16  ;;  %v617_v3 = vsel %vm11791_vm9, %v581_v41, %v11727_v13 }
 0x191   :  { %v615_v33 = vsel %vm11813_vm12, %v579_v24, %v11750_v43  ;;  %v164_v59 = vshrl.u32 %v11799_v28, 4  ;;  %v2397_v56 = vadd.f32 %v8933_v39, %v15286_v32  ;;  %vm476_vm7 = vcmp.ne.s32.totalorder %v11818_v0, 0  ;;  %v2326_v48 = vpop.f32.mrf.mxu0 }
 0x192   :  { %v11854_v53 = vadd.f32 %v2635_v4, %v2394_v35  ;;  %vm512_vm13 = vcmp.lt.s32.totalorder %v11818_v0, 0  ;;  %v8975_v44 = vpop.f32.mrf.mxu1  ;;  %v11859_v9 = vadd.s32 18, %v11818_v0  ;;  %v2395_v43 = vadd.f32 %v2326_v48, %v15287_v26 }
 0x193   :  { %v165_v13 = vmul.u32 18, %v164_v59  ;;  %v11861_v10 = vmul.u32.u64.low 3817748708, %v45_v21  ;;  %v11862_v41 = vmul.u32.u64.high 3817748708, %v45_v21, %v11861_v10  ;;  %v11865_v24 = vadd.f32 %v8971_v55, %v2397_v56  ;;  %v8936_v35 = vpop.f32.mrf.mxu0  ;;  %vm11884_vm2 = vmand %vm512_vm13, %vm476_vm7 }
 0x194   :  { %v11868_v4 = vmul.u32.u64.low 3817748708, %v11840_v29  ;;  %v11869_v28 = vmul.u32.u64.high 3817748708, %v11840_v29, %v11868_v4  ;;  %v2654_v39 = vpop.f32.mrf.mxu1  ;;  %9155 = vmatmul.mubr.msk.bf16.gmra.mxu0 %vm1054_vm1, %v11300_v6  ;;  %v11876_v59 = vsel %vm11842_vm3, 1.0, %v15097_v2  ;;  %vm11878_vm15 = vcmp.lt.s32.totalorder %v617_v3, 16 }
 0x195   :  { %15288 = vst [vmem:[#allocation45_spill] sm:$0xff] %v11876_v59  ;;  %v15293_v56 = vrot.slane %v10919_v40, 2  ;;  %v11894_v6 = vsub.s32 %v11753_v14, %v165_v13  ;;  %v2400_v10 = vadd.f32 %v8936_v35, %v15295_v61  ;;  %9158 = vmatprep.mubr.msk.bf16.mxu0 %vm1054_vm1, %v11303_v45  ;;  %v11899_v3 = vadd.f32 %v2638_v22, %v2395_v43  ;;  %v2339_v59 = vpop.f32.mrf.mxu0  ;;  %v11915_v45 = vld [vmem:[%s14833_s0 + $0xc4] sm:$0xff]  }
 0x196   :  { %vm11901_vm10 = vcmp.lt.s32.totalorder %v615_v33, 16  ;;  %v11906_v4 = vadd.s32 112, %v11348_v52  ;;  %9197 = vmatmul.mubr.msk.bf16.gmra.mxu1 %vm1054_vm1, %v11098_v57  ;;  %v197_v22 = vshrl.u32 %v11862_v41, 4  ;;  %v15298_v33 = vld [vmem:[#allocation69_spill] sm:$0xff]  ;;  %v620_v57 = vsel %vm11884_vm2, %v11859_v9, %v11818_v0 }
 0x197   :  { %v11891_v48 = vsel %vm2406_vm4, %v5941_v25, %v15293_v56  ;;  %v8978_v25 = vpop.f32.mrf.mxu1  ;;  %vm474_vm11 = vcmp.ne.s32.totalorder %v11894_v6, 0  ;;  %vm510_vm14 = vcmp.lt.s32.totalorder %v11894_v6, 0  ;;  %v2398_v13 = vadd.f32 %v2339_v59, %v15298_v33  ;;  %9200 = vmatprep.mubr.msk.bf16.mxu1 %vm1054_vm1, %v11142_v17  ;;  %v8937_v56 = vpop.f32.mrf.mxu0  ;;  %v15299_v33 = vld [vmem:[#allocation74_spill] sm:$0xff] }
 0x198   :  { %15294 = vst [vmem:[#allocation63_spill] sm:$0xff] %v11891_v48  ;;  %v11922_v43 = vadd.f32 %v8974_v36, %v2400_v10  ;;  %v175_v35 = vshrl.u32 %v11869_v28, 4  ;;  %v582_v14 = vadd.s32 18, %v11894_v6  ;;  %v198_v18 = vmul.u32 18, %v197_v22  ;;  %vm11941_vm9 = vmand %vm510_vm14, %vm474_vm11  ;;  %v15307_v48 = vld [vmem:[#allocation77_spill] sm:$0xff] }
 0x199   :  { %v2667_v61 = vpop.f32.mrf.mxu1  ;;  %v11931_v41 = vmul.u32.u64.low 3817748708, %v11906_v4  ;;  %v11932_v59 = vmul.u32.u64.high 3817748708, %v11906_v4, %v11931_v41  ;;  %v2401_v17 = vadd.f32 %v8937_v56, %v15299_v33  ;;  %v11935_v36 = vadd.f32 %v2651_v60, %v2398_v13  ;;  %v2342_v10 = vpop.f32.mrf.mxu0  ;;  %v15305_v13 = vld [vmem:[#allocation40_spill] sm:$0xff]  ;;  %v15306_v33 = vld [vmem:[#allocation17_spill] sm:$0xff] }
 0x19a   :  { %v176_v9 = vmul.u32 18, %v175_v35  ;;  %v15303_v28 = vshrl.u32 %v10906_v8, 16  ;;  %v11947_v19 = vsub.s32 %v45_v21, %v198_v18  ;;  %v15304_v56 = vshll.u32 %v10906_v8, 16 }
 0x19b   :  { %15300 = vst [vmem:[#allocation49_spill] sm:$0xff] %v11935_v36  ;;  %v8979_v22 = vpop.f32.mrf.mxu1  ;;  %v5592_v41 = vrot.slane %v15305_v13, 1  ;;  %v5593_v51 = vrot.slane %v15306_v33, 2  ;;  %v2399_v31 = vadd.f32 %v2342_v10, %v15307_v48  ;;  %v11954_v15 = vadd.f32 %v8975_v44, %v2401_v17  ;;  %v8940_v63 = vpop.f32.mrf.mxu0  ;;  %v15309_v44 = vld [vmem:[#allocation79_spill] sm:$0xff] }
 0x19c   :  { %v5589_v55 = vrot.slane %v15303_v28, 1  ;;  %v5590_v60 = vrot.slane %v15304_v56, 2  ;;  %v11957_v35 = vsub.s32 %v11840_v29, %v176_v9  ;;  %v5596_v28 = vrot.slane %v15308_v11, 1  ;;  %9159 = vmatmul.mubr.msk.bf16.gmra.mxu0 %vm1054_vm1, %v11308_v49  ;;  %v15334_v13 = vld [vmem:[#allocation3_spill] sm:$0xff] }
 0x19d   :  { %v2670_v36 = vpop.f32.mrf.mxu1  ;;  %v618_v8 = vsel %vm11941_vm9, %v582_v14, %v11894_v6  ;;  %vm477_vm12 = vcmp.ne.s32.totalorder %v11947_v19, 0  ;;  %vm513_vm3 = vcmp.lt.s32.totalorder %v11947_v19, 0  ;;  %v230_v18 = vshrl.u32 %v11932_v59, 4  ;;  %9162 = vmatprep.mubr.msk.bf16.mxu0 %vm1054_vm1, %v11316_v34  ;;  %v2355_v49 = vpop.f32.mrf.mxu0  ;;  %v15314_v14 = vld [vmem:[#allocation84_spill] sm:$0xff] }
 0x19e   :  { %v2404_v21 = vadd.f32 %v8940_v63, %v15309_v44  ;;  %v11971_v29 = vadd.f32 %v2654_v39, %v2399_v31  ;;  %vm475_vm7 = vcmp.ne.s32.totalorder %v11957_v35, 0  ;;  %vm511_vm13 = vcmp.lt.s32.totalorder %v11957_v35, 0  ;;  %9201 = vmatmul.mubr.msk.bf16.gmra.mxu1 %vm1054_vm1, %v11112_v20  ;;  %vm11987_vm2 = vmand %vm513_vm3, %vm477_vm12 }
 0x19f   :  { %v9022_v48 = vpop.f32.mrf.mxu1  ;;  %v11980_v6 = vsel %vm11878_vm15, 1.0, %v15097_v2  ;;  %v11985_v34 = vsel %vm11901_vm10, 1.0, %v15097_v2  ;;  %v585_v31 = vadd.s32 18, %v11947_v19  ;;  %v583_v39 = vadd.s32 18, %v11957_v35  ;;  %9204 = vmatprep.mubr.msk.bf16.mxu1 %vm1054_vm1, %v11181_v30  ;;  %vm12000_vm10 = vmand %vm511_vm13, %vm475_vm7  ;;  %v8941_v59 = vpop.f32.mrf.mxu0 }
 0x1a0   :  { %15310 = vst [vmem:[#allocation51_spill] sm:$0xff] %v11980_v6  ;;  %15311 = vst [vmem:[#allocation52_spill] sm:$0xff] %v11985_v34  ;;  %v2402_v20 = vadd.f32 %v2355_v49, %v15314_v14  ;;  %v11996_v32 = vadd.f32 %v8978_v25, %v2404_v21  ;;  %vm656_vm15 = vcmp.lt.s32.totalorder %v620_v57, 16  ;;  %vm654_vm11 = vcmp.lt.s32.totalorder %v618_v8, 16  ;;  %v15320_v21 = vld [vmem:[#allocation33_spill] sm:$0xff]  ;;  %v15344_v34 = vld [vmem:[#allocation91_spill] sm:$0xff] }
 0x1a1   :  { %v3131_v17 = vpop.f32.mrf.mxu1  ;;  %v5591_v0 = vor.u32 %v5590_v60, %v5589_v55  ;;  %v5594_v9 = vor.u32 %v5593_v51, %v5592_v41  ;;  %v231_v10 = vmul.u32 18, %v230_v18  ;;  %v12005_v56 = vadd.s32 96, %v11348_v52  ;;  %v2358_v51 = vpop.f32.mrf.mxu0 }
 0x1a2   :  { %v2405_v30 = vadd.f32 %v8941_v59, %v11310_v38  ;;  %v12008_v25 = vadd.f32 %v2667_v61, %v2402_v20  ;;  %v15317_v57 = vrot.slane %v11915_v45, 2  ;;  %v15318_v8 = vrot.slane %v10919_v40, 2 }
 0x1a3   :  { %v15321_v49 = vrot.slane %v15320_v21, 2  ;;  %v9023_v55 = vpop.f32.mrf.mxu1  ;;  %v12022_v60 = vsel %vm656_vm15, 1.0, %v15097_v2  ;;  %v12025_v38 = vsel %vm654_vm11, 1.0, %v15097_v2  ;;  %v621_v61 = vsel %vm11987_vm2, %v585_v31, %v11947_v19  ;;  %v8984_v59 = vpop.f32.mrf.mxu0 }
 0x1a4   :  { %v12015_v44 = vsel %vm2406_vm4, %v15318_v8, %v15317_v57  ;;  %15322 = vst [vmem:[#allocation64_spill] sm:$0xff] %v12022_v60  ;;  %15323 = vst [vmem:[#allocation69_spill] sm:$0xff] %v12025_v38  ;;  %v619_v40 = vsel %vm12000_vm10, %v583_v39, %v11957_v35  ;;  %v2403_v41 = vadd.f32 %v2358_v51, %v11326_v58  ;;  %9163 = vmatmul.mubr.msk.bf16.gmra.mxu0 %vm1054_vm1, %v11319_v1  ;;  %v15326_v39 = vld [vmem:[#allocation87_spill] sm:$0xff]  ;;  %v15332_v51 = vld [vmem:[#allocation89_spill] sm:$0xff] }
 0x1a5   :  { %15319 = vst [vmem:[#allocation57_spill] sm:$0xff] %v12015_v44  ;;  %v12019_v14 = vor.u32 %v15321_v49, %v5596_v28  ;;  %v12034_v28 = vadd.f32 %v8979_v22, %v2405_v30  ;;  %v12037_v18 = vmul.u32.u64.low 3817748708, %v12005_v56  ;;  %v12038_v20 = vmul.u32.u64.high 3817748708, %v12005_v56, %v12037_v18  ;;  %v3134_v57 = vpop.f32.mrf.mxu1  ;;  %v15325_v22 = vld [vmem:[#allocation86_spill] sm:$0xff]  ;;  %9166 = vmatprep.mubr.msk.bf16.mxu0 %vm1054_vm1, %v15326_v39 }
 0x1a6   :  { %v12043_v63 = vsel %vm2050_vm5, %v5591_v0, %v5594_v9  ;;  %v12046_v19 = vsub.s32 %v11906_v4, %v231_v10  ;;  %v12049_v35 = vadd.s32 120, %v11348_v52  ;;  %v12052_v58 = vadd.s32 104, %v11348_v52  ;;  %v12066_v4 = vld [vmem:[%s14833_s0 + $0xcc] sm:$0xff]   ;;  %v2771_v10 = vpop.f32.mrf.mxu0  ;;  %9205 = vmatmul.mubr.msk.bf16.gmra.mxu1 %vm1054_vm1, %v11196_v37 }
 0x1a7   :  { %15324 = vst [vmem:[#allocation74_spill] sm:$0xff] %v12043_v63  ;;  %v2916_v31 = vadd.f32 %v8984_v59, %v15325_v22  ;;  %v12057_v26 = vadd.f32 %v2670_v36, %v2403_v41  ;;  %v12061_v1 = vsel %vm2050_vm5, %v5594_v9, %v12019_v14  ;;  %v9026_v30 = vpop.f32.mrf.mxu1  ;;  %vm12071_vm14 = vcmp.lt.s32.totalorder %v621_v61, 16  ;;  %9208 = vmatprep.mubr.msk.bf16.mxu1 %vm1054_vm1, %v11236_v16  ;;  %v12096_v22 = vld [vmem:[%s14833_s0 + $0xd4] sm:$0xff]  }
 0x1a8   :  { %15327 = vst [vmem:[#allocation77_spill] sm:$0xff] %v12061_v1  ;;  %vm12075_vm9 = vcmp.lt.s32.totalorder %v619_v40, 16  ;;  %v12080_v9 = vmul.u32.u64.low 3817748708, %v12049_v35  ;;  %v12081_v49 = vmul.u32.u64.high 3817748708, %v12049_v35, %v12080_v9  ;;  %v2914_v41 = vadd.f32 %v2771_v10, %v15332_v51  ;;  %v8985_v40 = vpop.f32.mrf.mxu0  ;;  %v15338_v1 = vld [vmem:[#allocation90_spill] sm:$0xff] }
 0x1a9   :  { %v12086_v18 = vadd.f32 %v9022_v48, %v2916_v31  ;;  %v208_v37 = vshrl.u32 %v12038_v20, 4  ;;  %v12090_v61 = vadd.s32 144, %v11348_v52  ;;  %v3147_v59 = vpop.f32.mrf.mxu1  ;;  %vm480_vm12 = vcmp.ne.s32.totalorder %v12046_v19, 0  ;;  %v15333_v31 = vld [vmem:[#allocation95_spill] sm:$0xff] }
 0x1aa   :  { %v12100_v16 = vmul.u32.u64.low 3817748708, %v12052_v58  ;;  %v12101_v48 = vmul.u32.u64.high 3817748708, %v12052_v58, %v12100_v16  ;;  %v2917_v20 = vadd.f32 %v8985_v40, %v15333_v31  ;;  %v12104_v10 = vadd.f32 %v3131_v17, %v2914_v41  ;;  %v2774_v51 = vpop.f32.mrf.mxu0  ;;  %v15336_v40 = vld [vmem:[#allocation44_spill] sm:$0xff]  ;;  %v15337_v41 = vld [vmem:[#allocation41_spill] sm:$0xff] }
 0x1ab   :  { %vm516_vm3 = vcmp.lt.s32.totalorder %v12046_v19, 0  ;;  %v209_v9 = vmul.u32 18, %v208_v37  ;;  %v9027_v0 = vpop.f32.mrf.mxu1  ;;  %v588_v21 = vadd.s32 18, %v12046_v19  ;;  %v241_v11 = vshrl.u32 %v12081_v49, 4 }
 0x1ac   :  { %v12110_v33 = vmul.u32.u64.low 3817748708, %v12090_v61  ;;  %v12111_v39 = vmul.u32.u64.high 3817748708, %v12090_v61, %v12110_v33  ;;  %v2915_v60 = vadd.f32 %v2774_v51, %v15334_v13  ;;  %v12114_v16 = vadd.f32 %v9023_v55, %v2917_v20  ;;  %v8988_v38 = vpop.f32.mrf.mxu0  ;;  %9167 = vmatmul.mubr.msk.bf16.gmra.mxu0 %vm1054_vm1, %v15338_v1  ;;  %vm12124_vm7 = vmand %vm516_vm3, %vm480_vm12  ;;  %v15341_v55 = vld [vmem:[#allocation46_spill] sm:$0xff]  ;;  %v15342_v51 = vld [vmem:[#allocation37_spill] sm:$0xff] }
 0x1ad   :  { %v5600_v17 = vrot.slane %v15336_v40, 1  ;;  %v5601_v31 = vrot.slane %v15337_v41, 2  ;;  %v3150_v37 = vpop.f32.mrf.mxu1  ;;  %v242_v13 = vmul.u32 18, %v241_v11  ;;  %v219_v33 = vshrl.u32 %v12101_v48, 4  ;;  %v15343_v40 = vld [vmem:[#allocation35_spill] sm:$0xff]  ;;  %9170 = vmatprep.mubr.msk.bf16.mxu0 %vm1054_vm1, %v15344_v34 }
 0x1ae   :  { %15335 = vst [vmem:[#allocation79_spill] sm:$0xff] %v12114_v16  ;;  %v5604_v20 = vrot.slane %v15341_v55, 1  ;;  %v5605_v41 = vrot.slane %v15342_v51, 2  ;;  %v2920_v6 = vadd.f32 %v8988_v38, %v15343_v40  ;;  %v12134_v1 = vadd.f32 %v3134_v57, %v2915_v60  ;;  %v2787_v48 = vpop.f32.mrf.mxu0  ;;  %v9722_v38 = vld [vmem:[%s14833_s0 + $0x134] sm:$0xff]   ;;  %v15350_v57 = vld [vmem:[#allocation94_spill] sm:$0xff] }
 0x1af   :  { %v15345_v44 = vrot.slane %v12066_v4, 2  ;;  %v15346_v63 = vrot.slane %v11915_v45, 2  ;;  %v12144_v11 = vsub.s32 %v12005_v56, %v209_v9  ;;  %v9030_v55 = vpop.f32.mrf.mxu1  ;;  %9209 = vmatmul.mubr.msk.bf16.gmra.mxu1 %vm1054_vm1, %v9722_v38  ;;  %v12153_v34 = vsel %vm12071_vm14, 1.0, %v15097_v2 }
 0x1b0   :  { %15348 = vst [vmem:[#allocation86_spill] sm:$0xff] %v12153_v34  ;;  %v12158_v45 = vsel %vm12075_vm9, 1.0, %v15097_v2  ;;  %v220_v56 = vmul.u32 18, %v219_v33  ;;  %v2918_v60 = vadd.f32 %v2787_v48, %v11427_v27  ;;  %9252 = vmatprep.mubr.msk.bf16.mxu1 %vm1054_vm1, %v15350_v57  ;;  %v624_v8 = vsel %vm12124_vm7, %v588_v21, %v12046_v19  ;;  %v8989_v40 = vpop.f32.mrf.mxu0  ;;  %v15411_v34 = vld [vmem:[#allocation26_spill] sm:$0xff] }
 0x1b1   :  { %v12141_v16 = vsel %vm2406_vm4, %v15346_v63, %v15345_v44  ;;  %15349 = vst [vmem:[#allocation87_spill] sm:$0xff] %v12158_v45  ;;  %v274_v44 = vshrl.u32 %v12111_v39, 4  ;;  %v12164_v63 = vadd.f32 %v9026_v30, %v2920_v6  ;;  %v5602_v9 = vor.u32 %v5601_v31, %v5600_v17  ;;  %v3163_v38 = vpop.f32.mrf.mxu1 }
 0x1b2   :  { %15347 = vst [vmem:[#allocation84_spill] sm:$0xff] %v12141_v16  ;;  %v15351_v36 = vrot.slane %v12096_v22, 2  ;;  %v15352_v33 = vrot.slane %v12066_v4, 2  ;;  %v12177_v27 = vsub.s32 %v12049_v35, %v242_v13  ;;  %v12179_v48 = vor.u32 %v5605_v41, %v5604_v20  ;;  %v2790_v4 = vpop.f32.mrf.mxu0 }
 0x1b3   :  { %v12182_v6 = vadd.s32 128, %v11348_v52  ;;  %v2921_v21 = vadd.f32 %v8989_v40, %v11437_v12  ;;  %v12185_v19 = vadd.f32 %v3147_v59, %v2918_v60  ;;  %vm478_vm13 = vcmp.ne.s32.totalorder %v12144_v11, 0  ;;  %v9031_v30 = vpop.f32.mrf.mxu1  ;;  %v12199_v12 = vld [vmem:[%s14833_s0 + $0xdc] sm:$0xff]   ;;  %v15365_v59 = vld [vmem:[#allocation96_spill] sm:$0xff] }
 0x1b4   :  { %v12174_v39 = vsel %vm2406_vm4, %v15352_v33, %v15351_v36  ;;  %vm514_vm2 = vcmp.lt.s32.totalorder %v12144_v11, 0  ;;  %vm12189_vm15 = vcmp.lt.s32.totalorder %v624_v8, 16  ;;  %v12194_v35 = vsub.s32 %v12052_v58, %v220_v56  ;;  %v8992_v58 = vpop.f32.mrf.mxu0  ;;  %v15363_v40 = vld [vmem:[#allocation97_spill] sm:$0xff] }
 0x1b5   :  { %15353 = vst [vmem:[#allocation89_spill] sm:$0xff] %v12174_v39  ;;  %v275_v41 = vmul.u32 18, %v274_v44  ;;  %v2919_v31 = vadd.f32 %v2790_v4, %v11454_v5  ;;  %v12203_v49 = vadd.f32 %v9027_v0, %v2921_v21  ;;  %v586_v13 = vadd.s32 18, %v12144_v11  ;;  %v3166_v56 = vpop.f32.mrf.mxu1  ;;  %v15358_v44 = vld [vmem:[#allocation92_spill] sm:$0xff]  ;;  %vm12216_vm11 = vmand %vm514_vm2, %vm478_vm13  ;;  %v15362_v0 = vld [vmem:[#allocation23_spill] sm:$0xff] }
 0x1b6   :  { %v12208_v20 = vsel %vm2050_vm5, %v12019_v14, %v5602_v9  ;;  %9171 = vmatmul.mubr.msk.bf16.gmra.mxu0 %vm1054_vm1, %v15358_v44  ;;  %vm481_vm10 = vcmp.ne.s32.totalorder %v12177_v27, 0  ;;  %vm517_vm14 = vcmp.lt.s32.totalorder %v12177_v27, 0  ;;  %v12227_v14 = vsel %vm2050_vm5, %v5602_v9, %v12179_v48  ;;  %v2803_v4 = vpop.f32.mrf.mxu0 }
 0x1b7   :  { %15356 = vst [vmem:[#allocation95_spill] sm:$0xff] %v12203_v49  ;;  %15357 = vst [vmem:[#allocation3_spill] sm:$0xff] %v12208_v20  ;;  %v12223_v5 = vsub.s32 %v12090_v61, %v275_v41  ;;  %v2924_v8 = vadd.f32 %v8992_v58, %v15362_v0  ;;  %9214 = vmatprep.mubr.msk.bf16.mxu0 %vm1054_vm1, %v15363_v40  ;;  %v12232_v36 = vadd.f32 %v3150_v37, %v2919_v31  ;;  %v9034_v44 = vpop.f32.mrf.mxu1  ;;  %v15369_v31 = vld [vmem:[#allocation8_spill] sm:$0xff]  ;;  %v15370_v0 = vld [vmem:[#allocation14_spill] sm:$0xff] }
 0x1b8   :  { %15361 = vst [vmem:[#allocation90_spill] sm:$0xff] %v12227_v14  ;;  %v12235_v33 = vmul.u32.u64.low 3817748708, %v12182_v6  ;;  %v12236_v21 = vmul.u32.u64.high 3817748708, %v12182_v6, %v12235_v33  ;;  %9253 = vmatmul.mubr.msk.bf16.vlgmr.msra.gmra.mxu1 %vm1054_vm1, %v15365_v59  ;;  %v589_v61 = vadd.s32 18, %v12177_v27  ;;  %vm479_vm9 = vcmp.ne.s32.totalorder %v12194_v35, 0  ;;  %v15371_v40 = vld [vmem:[#allocation32_spill] sm:$0xff]  ;;  %vm12268_vm3 = vmand %vm517_vm14, %vm481_vm10 }
 0x1b9   :  { %15364 = vst [vmem:[#allocation35_spill] sm:$0xff] %v12232_v36  ;;  %vm515_vm12 = vcmp.lt.s32.totalorder %v12194_v35, 0  ;;  %v15366_v9 = vrot.slane %v12199_v12, 2  ;;  %v15367_v37 = vrot.slane %v12096_v22, 2  ;;  %v2922_v58 = vadd.f32 %v2803_v4, %v15369_v31  ;;  %9327 = vmatpush3.bf16.msra.mxu1 %v15370_v0  ;;  %9256 = vmatprep.mubr.msk.bf16.mxu1 %vm1054_vm1, %v15371_v40  ;;  %v15400_v36 = vld [vmem:[#allocation20_spill] sm:$0xff] }
 0x1ba   :  { %v12254_v33 = vadd.f32 %v9030_v55, %v2924_v8  ;;  %v12259_v51 = vsel %vm12189_vm15, 1.0, %v15097_v2  ;;  %v622_v22 = vsel %vm12216_vm11, %v586_v13, %v12144_v11  ;;  %v3179_v55 = vpop.f32.mrf.mxu1  ;;  %v15376_v8 = vld [vmem:[#allocation15_spill] sm:$0xff]  ;;  %v587_v17 = vadd.s32 18, %v12194_v35  ;;  %v15377_v13 = vld [vmem:[#allocation13_spill] sm:$0xff]  ;;  %vm12289_vm13 = vmand %vm515_vm12, %vm479_vm9 }
 0x1bb   :  { %v12248_v41 = vsel %vm2406_vm4, %v15367_v37, %v15366_v9  ;;  %15373 = vst [vmem:[#allocation92_spill] sm:$0xff] %v12259_v51  ;;  %v8993_v9 = vpop.f32.mrf.mxu0  ;;  %9537 = vmatprep.subr.msk.bf16.mxu1 %vm1109_vm0, %v15376_v8  ;;  %vm484_vm7 = vcmp.ne.s32.totalorder %v12223_v5, 0  ;;  %v12277_v60 = vadd.s32 152, %v11348_v52  ;;  %v12280_v11 = vadd.s32 136, %v11348_v52 }
 0x1bc   :  { %15368 = vst [vmem:[#allocation91_spill] sm:$0xff] %v12248_v41  ;;  %15372 = vst [vmem:[#allocation94_spill] sm:$0xff] %v12254_v33  ;;  %v2925_v37 = vadd.f32 %v8993_v9, %v15377_v13  ;;  %v12283_v31 = vadd.f32 %v3163_v38, %v2922_v58  ;;  %vm520_vm2 = vcmp.lt.s32.totalorder %v12223_v5, 0  ;;  %v252_v8 = vshrl.u32 %v12236_v21, 4  ;;  %v9035_v14 = vpop.f32.mrf.mxu1  ;;  %v15383_v13 = vld [vmem:[#allocation12_spill] sm:$0xff]  ;;  %v15398_v33 = vld [vmem:[#allocation47_spill] sm:$0xff] }
 0x1bd   :  { %v2806_v51 = vpop.f32.mrf.mxu0  ;;  %vm12295_vm15 = vcmp.lt.s32.totalorder %v622_v22, 16  ;;  %v625_v38 = vsel %vm12268_vm3, %v589_v61, %v12177_v27  ;;  %v12303_v58 = vmul.u32.u64.low 3817748708, %v12277_v60  ;;  %v12304_v9 = vmul.u32.u64.high 3817748708, %v12277_v60, %v12303_v58  ;;  %vm12319_vm11 = vmand %vm520_vm2, %vm484_vm7 }
 0x1be   :  { %15378 = vst [vmem:[#allocation23_spill] sm:$0xff] %v12283_v31  ;;  %v2923_v45 = vadd.f32 %v2806_v51, %v15383_v13  ;;  %v12307_v41 = vadd.f32 %v9031_v30, %v2925_v37  ;;  %v592_v21 = vadd.s32 18, %v12223_v5  ;;  %v253_v39 = vmul.u32 18, %v252_v8  ;;  %v3182_v22 = vpop.f32.mrf.mxu1  ;;  %9215 = vmatmul.mubr.msk.bf16.vlgmr.msra.gmra.mxu0 %vm1054_vm1, %v15350_v57  ;;  %v15387_v57 = vld [vmem:[#allocation54_spill] sm:$0xff] }
 0x1bf   :  { %v8996_v20 = vpop.f32.mrf.mxu0  ;;  %v623_v27 = vsel %vm12289_vm13, %v587_v17, %v12194_v35  ;;  %v12324_v30 = vmul.u32.u64.low 3817748708, %v12280_v11  ;;  %v12325_v61 = vmul.u32.u64.high 3817748708, %v12280_v11, %v12324_v30  ;;  %v12328_v4 = vadd.s32 176, %v11348_v52  ;;  %9218 = vmatprep.mubr.msk.bf16.mxu0 %vm1054_vm1, %v15365_v59  ;;  %v15388_v35 = vld [vmem:[#allocation16_spill] sm:$0xff]  ;;  %v12342_v8 = vld [vmem:[%s14833_s0 + $0xe4] sm:$0xff]  }
 0x1c0   :  { %15384 = vst [vmem:[#allocation97_spill] sm:$0xff] %v12307_v41  ;;  %v2928_v37 = vadd.f32 %v8996_v20, %v15387_v57  ;;  %9289 = vmatpush3.bf16.msra.mxu0 %v15388_v35  ;;  %v12334_v17 = vadd.f32 %v3166_v56, %v2923_v45  ;;  %v12337_v0 = vsub.s32 %v12182_v6, %v253_v39  ;;  %v9038_v30 = vpop.f32.mrf.mxu1  ;;  %v15390_v20 = vld [vmem:[#allocation98_spill] sm:$0xff]  ;;  %vm12347_vm10 = vcmp.lt.s32.totalorder %v625_v38, 16  ;;  %v9725_v56 = vld [vmem:[%s14832_s3 + $0xc] sm:$0xf]  ;;  %v15393_v57 = vld [vmem:[#allocation9_spill] sm:$0xff] }
 0x1c1   :  { %v2819_v13 = vpop.f32.mrf.mxu0  ;;  %9257 = vmatmul.mubr.msk.bf16.gmra.mxu1 %vm1054_vm1, %v15390_v20  ;;  %v285_v45 = vshrl.u32 %v12304_v9, 4  ;;  %v12353_v39 = vmul.u32.u64.low 3817748708, %v12328_v4  ;;  %v12354_v6 = vmul.u32.u64.high 3817748708, %v12328_v4, %v12353_v39  ;;  %9536 = vmatprep.subr.msk.bf16.mxu0 %vm1109_vm0, %v9725_v56  ;;  %v15394_v58 = vld [vmem:[#allocation34_spill] sm:$0xff]  ;;  %vm12365_vm14 = vcmp.lt.s32.totalorder %v623_v27, 16 }
 0x1c2   :  { %15389 = vst [vmem:[#allocation96_spill] sm:$0xff] %v12334_v17  ;;  %v2926_v35 = vadd.f32 %v2819_v13, %v15393_v57  ;;  %9260 = vmatprep.mubr.msk.bf16.mxu1 %vm1054_vm1, %v15394_v58  ;;  %v12363_v38 = vadd.f32 %v9034_v44, %v2928_v37  ;;  %v628_v9 = vsel %vm12319_vm11, %v592_v21, %v12223_v5  ;;  %v3195_v41 = vpop.f32.mrf.mxu1  ;;  %v263_v56 = vshrl.u32 %v12325_v61, 4  ;;  %v15399_v57 = vld [vmem:[#allocation42_spill] sm:$0xff]  ;;  %v15404_v61 = vld [vmem:[#allocation48_spill] sm:$0xff] }
 0x1c3   :  { %v8997_v39 = vpop.f32.mrf.mxu0  ;;  %v286_v31 = vmul.u32 18, %v285_v45  ;;  %v5608_v13 = vrot.slane %v15398_v33, 1  ;;  %v5609_v16 = vrot.slane %v15399_v57, 2  ;;  %vm482_vm9 = vcmp.ne.s32.totalorder %v12337_v0, 0  ;;  %v15405_v33 = vld [vmem:[#allocation38_spill] sm:$0xff] }
 0x1c4   :  { %15395 = vst [vmem:[#allocation8_spill] sm:$0xff] %v12363_v38  ;;  %v2929_v44 = vadd.f32 %v8997_v39, %v15400_v36  ;;  %v12376_v37 = vadd.f32 %v3179_v55, %v2926_v35  ;;  %vm518_vm12 = vcmp.lt.s32.totalorder %v12337_v0, 0  ;;  %v9039_v51 = vpop.f32.mrf.mxu1  ;;  %vm12380_vm3 = vcmp.lt.s32.totalorder %v628_v9, 16  ;;  %v15406_v38 = vld [vmem:[#allocation56_spill] sm:$0xff] }
 0x1c5   :  { %v2822_v27 = vpop.f32.mrf.mxu0  ;;  %v318_v21 = vshrl.u32 %v12354_v6, 4  ;;  %v5612_v45 = vrot.slane %v15404_v61, 1  ;;  %v5613_v57 = vrot.slane %v15405_v33, 2  ;;  %v590_v35 = vadd.s32 18, %v12337_v0  ;;  %vm12407_vm7 = vmand %vm518_vm12, %vm482_vm9 }
 0x1c6   :  { %15401 = vst [vmem:[#allocation14_spill] sm:$0xff] %v12376_v37  ;;  %v2927_v36 = vadd.f32 %v2822_v27, %v15406_v38  ;;  %v12388_v55 = vadd.f32 %v9035_v14, %v2929_v44  ;;  %v264_v39 = vmul.u32 18, %v263_v56  ;;  %v3198_v49 = vpop.f32.mrf.mxu1  ;;  %9219 = vmatmul.mubr.msk.bf16.gmra.mxu0 %vm1054_vm1, %v15371_v40  ;;  %v12396_v6 = vsel %vm12295_vm15, 1.0, %v15097_v2 }
 0x1c7   :  { %v9000_v37 = vpop.f32.mrf.mxu0  ;;  %15407 = vst [vmem:[#allocation32_spill] sm:$0xff] %v12396_v6  ;;  %v12401_v9 = vsel %vm12347_vm10, 1.0, %v15097_v2  ;;  %v12412_v40 = vsub.s32 %v12277_v60, %v286_v31  ;;  %v5610_v38 = vor.u32 %v5609_v16, %v5608_v13  ;;  %9222 = vmatprep.mubr.msk.bf16.mxu0 %vm1054_vm1, %v15390_v20  ;;  %v15412_v44 = vrot.slane %v12342_v8, 2  ;;  %v15415_v60 = vld [vmem:[#allocation22_spill] sm:$0xff] }
 0x1c8   :  { %15408 = vst [vmem:[#allocation15_spill] sm:$0xff] %v12401_v9  ;;  %v2932_v56 = vadd.f32 %v9000_v37, %v15411_v34  ;;  %v12417_v59 = vadd.f32 %v3182_v22, %v2927_v36  ;;  %v15413_v27 = vrot.slane %v12199_v12, 2  ;;  %v319_v61 = vmul.u32 18, %v318_v21  ;;  %v9042_v6 = vpop.f32.mrf.mxu1  ;;  %v15418_v13 = vld [vmem:[#allocation2_spill] sm:$0xff] }
 0x1c9   :  { %v2835_v9 = vpop.f32.mrf.mxu0  ;;  %9261 = vmatmul.mubr.msk.bf16.gmra.mxu1 %vm1054_vm1, %v15415_v60  ;;  %v12431_v16 = vsel %vm12365_vm14, 1.0, %v15097_v2  ;;  %v12436_v31 = vsel %vm12380_vm3, 1.0, %v15097_v2  ;;  %v12438_v12 = vor.u32 %v5613_v57, %v5612_v45  ;;  %v54_v22 = vadd.s32 160, %v11348_v52 }
 0x1ca   :  { %v12424_v33 = vsel %vm2406_vm4, %v15413_v27, %v15412_v44  ;;  %15416 = vst [vmem:[#allocation12_spill] sm:$0xff] %v12431_v16  ;;  %15417 = vst [vmem:[#allocation54_spill] sm:$0xff] %v12436_v31  ;;  %v2930_v20 = vadd.f32 %v2835_v9, %v11671_v50  ;;  %9264 = vmatprep.mubr.msk.bf16.mxu1 %vm1054_vm1, %v15418_v13  ;;  %v12444_v37 = vadd.f32 %v9038_v30, %v2932_v56  ;;  %v3211_v36 = vpop.f32.mrf.mxu1 }
 0x1cb   :  { %15414 = vst [vmem:[#allocation13_spill] sm:$0xff] %v12424_v33  ;;  %v626_v17 = vsel %vm12407_vm7, %v590_v35, %v12337_v0  ;;  %v12450_v21 = vsub.s32 %v12280_v11, %v264_v39  ;;  %v9001_v5 = vpop.f32.mrf.mxu0  ;;  %vm485_vm13 = vcmp.ne.s32.totalorder %v12412_v40, 0  ;;  %vm521_vm2 = vcmp.lt.s32.totalorder %v12412_v40, 0 }
 0x1cc   :  { %v12456_v50 = vsel %vm2050_vm5, %v12179_v48, %v5610_v38  ;;  %v12459_v30 = vsub.s32 %v12328_v4, %v319_v61  ;;  %v2933_v57 = vadd.f32 %v9001_v5, %v11682_v54  ;;  %v12462_v45 = vadd.f32 %v3195_v41, %v2930_v20  ;;  %v12467_v39 = vpop.f32.mrf.mxu1  ;;  %v12481_v54 = vld [vmem:[%s14833_s0 + $0xec] sm:$0xff]   ;;  %vm12495_vm14 = vmand %vm521_vm2, %vm485_vm13 }
 0x1cd   :  { %v12464_v0 = vmul.u32.u64.low 3817748708, %v54_v22  ;;  %v12465_v11 = vmul.u32.u64.high 3817748708, %v54_v22, %v12464_v0  ;;  %v2838_v35 = vpop.f32.mrf.mxu0  ;;  %vm12469_vm15 = vcmp.lt.s32.totalorder %v626_v17, 16  ;;  %v593_v48 = vadd.s32 18, %v12412_v40 }
 0x1ce   :  { %v12476_v4 = vsel %vm2050_vm5, %v5610_v38, %v12438_v12  ;;  %v2931_v61 = vadd.f32 %v2838_v35, %v11724_v7  ;;  %v12485_v14 = vadd.f32 %v9039_v51, %v2933_v57  ;;  %vm483_vm11 = vcmp.ne.s32.totalorder %v12450_v21, 0  ;;  %v3214_v56 = vpop.f32.mrf.mxu1  ;;  %9223 = vmatmul.mubr.msk.bf16.gmra.mxu0 %vm1054_vm1, %v15394_v58  ;;  %v15425_v57 = vld [vmem:[#allocation4_spill] sm:$0xff] }
 0x1cf   :  { %vm519_vm10 = vcmp.lt.s32.totalorder %v12450_v21, 0  ;;  %v9004_v34 = vpop.f32.mrf.mxu0  ;;  %vm488_vm9 = vcmp.ne.s32.totalorder %v12459_v30, 0  ;;  %vm524_vm12 = vcmp.lt.s32.totalorder %v12459_v30, 0  ;;  %v57_v7 = vadd.s32 184, %v11348_v52  ;;  %9226 = vmatprep.mubr.msk.bf16.mxu0 %vm1054_vm1, %v15415_v60 }
 0x1d0   :  { %15421 = vst [vmem:[#allocation16_spill] sm:$0xff] %v12485_v14  ;;  %v12503_v51 = vadd.s32 168, %v11348_v52  ;;  %v2936_v44 = vadd.f32 %v9004_v34, %v11743_v62  ;;  %v591_v58 = vadd.s32 18, %v12450_v21  ;;  %v12509_v27 = vadd.f32 %v3198_v49, %v2931_v61  ;;  %v9046_v5 = vpop.f32.mrf.mxu1  ;;  %vm12523_vm3 = vmand %vm519_vm10, %vm483_vm11  ;;  %v15429_v61 = vld [vmem:[#allocation11_spill] sm:$0xff]  ;;  %v15442_v34 = vld [vmem:[#allocation10_spill] sm:$0xff] }
 0x1d1   :  { %v296_v20 = vshrl.u32 %v12465_v11, 4  ;;  %v2851_v17 = vpop.f32.mrf.mxu0  ;;  %9265 = vmatmul.mubr.msk.bf16.gmra.mxu1 %vm1054_vm1, %v15425_v57  ;;  %v12517_v0 = vsel %vm12469_vm15, 1.0, %v15097_v2  ;;  %v596_v49 = vadd.s32 18, %v12459_v30  ;;  %v629_v9 = vsel %vm12495_vm14, %v593_v48, %v12412_v40  ;;  %vm12541_vm7 = vmand %vm524_vm12, %vm488_vm9 }
 0x1d2   :  { %15424 = vst [vmem:[#allocation98_spill] sm:$0xff] %v12509_v27  ;;  %15426 = vst [vmem:[#allocation9_spill] sm:$0xff] %v12517_v0  ;;  %v12528_v60 = vmul.u32.u64.low 3817748708, %v57_v7  ;;  %v12529_v11 = vmul.u32.u64.high 3817748708, %v57_v7, %v12528_v60  ;;  %v2934_v35 = vadd.f32 %v2851_v17, %v11756_v47  ;;  %9268 = vmatprep.mubr.msk.bf16.mxu1 %vm1054_vm1, %v15429_v61  ;;  %v12545_v41 = vadd.f32 %v9042_v6, %v2936_v44  ;;  %v12547_v47 = vpop.f32.mrf.mxu1 }
 0x1d3   :  { %v297_v60 = vmul.u32 18, %v296_v20  ;;  %v9005_v31 = vpop.f32.mrf.mxu0  ;;  %v15433_v17 = vrot.slane %v12481_v54, 2  ;;  %v15434_v0 = vrot.slane %v12342_v8, 2  ;;  %v60_v27 = vadd.s32 208, %v11348_v52 }
 0x1d4   :  { %15432 = vst [vmem:[#allocation34_spill] sm:$0xff] %v12545_v41  ;;  %v12557_v48 = vmul.u32.u64.low 3817748708, %v12503_v51  ;;  %v12558_v38 = vmul.u32.u64.high 3817748708, %v12503_v51, %v12557_v48  ;;  %v2937_v6 = vadd.f32 %v9005_v31, %v11774_v46  ;;  %v627_v44 = vsel %vm12523_vm3, %v591_v58, %v12450_v21  ;;  %v12569_v14 = vpop.f32.mrf.mxu1 }
 0x1d5   :  { %v12554_v40 = vsel %vm2406_vm4, %v15434_v0, %v15433_v17  ;;  %v12565_v20 = vsub.s32 %v54_v22, %v297_v60  ;;  %v12567_v41 = vadd.f32 %v3211_v36, %v2934_v35  ;;  %v2854_v8 = vpop.f32.mrf.mxu0  ;;  %v632_v0 = vsel %vm12541_vm7, %v596_v49, %v12459_v30  ;;  %v12587_v22 = vld [vmem:[%s14833_s0 + $0xf4] sm:$0xff]  }
 0x1d6   :  { %15435 = vst [vmem:[#allocation20_spill] sm:$0xff] %v12554_v40  ;;  %v329_v17 = vshrl.u32 %v12529_v11, 4  ;;  %v12575_v48 = vmul.u32.u64.low 3817748708, %v60_v27  ;;  %v12576_v16 = vmul.u32.u64.high 3817748708, %v60_v27, %v12575_v48  ;;  %v2935_v46 = vadd.f32 %v2854_v8, %v11804_v42  ;;  %v12590_v30 = vpop.f32.mrf.mxu1  ;;  %9227 = vmatmul.mubr.msk.bf16.gmra.mxu0 %vm1054_vm1, %v15418_v13  ;;  %v15446_v8 = vld [vmem:[#allocation66_spill] sm:$0xff] }
 0x1d7   :  { %vm12579_vm13 = vcmp.lt.s32.totalorder %v629_v9, 16  ;;  %vm486_vm2 = vcmp.ne.s32.totalorder %v12565_v20, 0  ;;  %v9008_v36 = vpop.f32.mrf.mxu0  ;;  %vm522_vm15 = vcmp.lt.s32.totalorder %v12565_v20, 0  ;;  %v12596_v58 = vadd.f32 %v12467_v39, %v2937_v6  ;;  %9230 = vmatprep.mubr.msk.bf16.mxu0 %vm1054_vm1, %v15425_v57 }
 0x1d8   :  { %v330_v42 = vmul.u32 18, %v329_v17  ;;  %v307_v62 = vshrl.u32 %v12558_v38, 4  ;;  %v2940_v49 = vadd.f32 %v9008_v36, %v11836_v23  ;;  %vm12602_vm11 = vcmp.lt.s32.totalorder %v627_v44, 16  ;;  %v12612_v39 = vpop.f32.mrf.mxu1  ;;  %v15443_v44 = vld [vmem:[#allocation18_spill] sm:$0xff]  ;;  %vm12627_vm14 = vmand %vm522_vm15, %vm486_vm2 }
 0x1d9   :  { %vm12606_vm10 = vcmp.lt.s32.totalorder %v632_v0, 16  ;;  %v12610_v13 = vadd.f32 %v3214_v56, %v2935_v46  ;;  %v2867_v9 = vpop.f32.mrf.mxu0  ;;  %9269 = vmatmul.mubr.msk.bf16.gmra.mxu1 %vm1054_vm1, %v15442_v34  ;;  %v594_v23 = vadd.s32 18, %v12565_v20  ;;  %v362_v38 = vshrl.u32 %v12576_v16, 4 }
 0x1da   :  { %v12617_v60 = vsub.s32 %v57_v7, %v330_v42  ;;  %v308_v57 = vmul.u32 18, %v307_v62  ;;  %v2938_v6 = vadd.f32 %v2867_v9, %v11854_v53  ;;  %9272 = vmatprep.mubr.msk.bf16.mxu1 %vm1054_vm1, %v15443_v44  ;;  %v5616_v0 = vrot.slane %v15446_v8, 1  ;;  %v15447_v7 = vld [vmem:[#allocation50_spill] sm:$0xff]  ;;  %v12635_v46 = vpop.f32.mrf.mxu1  ;;  %v15449_v53 = vld [vmem:[#allocation67_spill] sm:$0xff] }
 0x1db   :  { %v5617_v17 = vrot.slane %v15447_v7, 2  ;;  %v12633_v48 = vadd.f32 %v9046_v5, %v2940_v49  ;;  %v9009_v16 = vpop.f32.mrf.mxu0  ;;  %15448 = vst [vmem:[#allocation56_spill] sm:$0xff] %v12635_v46  ;;  %v5620_v36 = vrot.slane %v15449_v53, 1  ;;  %v15450_v42 = vld [vmem:[#allocation55_spill] sm:$0xff]  ;;  %v363_v8 = vmul.u32 18, %v362_v38 }
 0x1dc   :  { %vm489_vm9 = vcmp.ne.s32.totalorder %v12617_v60, 0  ;;  %vm525_vm12 = vcmp.lt.s32.totalorder %v12617_v60, 0  ;;  %v5621_v62 = vrot.slane %v15450_v42, 2  ;;  %v2941_v9 = vadd.f32 %v9009_v16, %v11865_v24  ;;  %v12648_v7 = vpop.f32.mrf.mxu1 }
 0x1dd   :  { %v12643_v21 = vsub.s32 %v12503_v51, %v308_v57  ;;  %v12646_v5 = vadd.s32 192, %v11348_v52  ;;  %v2870_v49 = vpop.f32.mrf.mxu0  ;;  %15451 = vst [vmem:[#allocation26_spill] sm:$0xff] %v12648_v7  ;;  %v12653_v46 = vsel %vm12579_vm13, 1.0, %v15097_v2  ;;  %v630_v42 = vsel %vm12627_vm14, %v594_v23, %v12565_v20  ;;  %vm12681_vm3 = vmand %vm525_vm12, %vm489_vm9 }
 0x1de   :  { %15452 = vst [vmem:[#allocation22_spill] sm:$0xff] %v12653_v46  ;;  %v15453_v24 = vrot.slane %v12587_v22, 2  ;;  %v15454_v51 = vrot.slane %v12481_v54, 2  ;;  %v597_v38 = vadd.s32 18, %v12617_v60  ;;  %v2939_v16 = vadd.f32 %v2870_v49, %v11899_v3  ;;  %v12687_v56 = vpop.f32.mrf.mxu1  ;;  %9231 = vmatmul.mubr.msk.bf16.gmra.mxu0 %vm1054_vm1, %v15429_v61 }
 0x1df   :  { %v12670_v31 = vsel %vm12602_vm11, 1.0, %v15097_v2  ;;  %v12675_v20 = vsel %vm12606_vm10, 1.0, %v15097_v2  ;;  %v12685_v23 = vsub.s32 %v60_v27, %v363_v8  ;;  %v9012_v3 = vpop.f32.mrf.mxu0  ;;  %15460 = vst [vmem:[#allocation10_spill] sm:$0xff] %v12687_v56  ;;  %v5618_v11 = vor.u32 %v5617_v17, %v5616_v0  ;;  %9234 = vmatprep.mubr.msk.bf16.mxu0 %vm1054_vm1, %v15442_v34  ;;  %v15464_v0 = vld [vmem:[#allocation6_spill] sm:$0xff]  ;;  %v15465_v17 = vld [vmem:[#allocation49_spill] sm:$0xff] }
 0x1e0   :  { %v12663_v57 = vsel %vm2406_vm4, %v15454_v51, %v15453_v24  ;;  %15456 = vst [vmem:[#allocation4_spill] sm:$0xff] %v12670_v31  ;;  %15457 = vst [vmem:[#allocation11_spill] sm:$0xff] %v12675_v20  ;;  %v12691_v35 = vor.u32 %v5621_v62, %v5620_v36  ;;  %v12694_v49 = vmul.u32.u64.low 3817748708, %v12646_v5  ;;  %v12695_v24 = vmul.u32.u64.high 3817748708, %v12646_v5, %v12694_v49  ;;  %v12706_v8 = vpop.f32.mrf.mxu1  ;;  %v9728_v27 = vld [vmem:[%s14833_s0 + $0xfc] sm:$0xff]  }
 0x1e1   :  { %15455 = vst [vmem:[#allocation2_spill] sm:$0xff] %v12663_v57  ;;  %v2944_v51 = vadd.f32 %v9012_v3, %v11922_v43  ;;  %vm12700_vm7 = vcmp.lt.s32.totalorder %v630_v42, 16  ;;  %vm487_vm13 = vcmp.ne.s32.totalorder %v12643_v21, 0  ;;  %vm523_vm2 = vcmp.lt.s32.totalorder %v12643_v21, 0  ;;  %v2883_v61 = vpop.f32.mrf.mxu0  ;;  %15463 = vst [vmem:[#allocation18_spill] sm:$0xff] %v12706_v8  ;;  %9273 = vmatmul.mubr.msk.bf16.gmra.mxu1 %vm1054_vm1, %v15464_v0  ;;  %v15467_v42 = vld [vmem:[#allocation53_spill] sm:$0xff] }
 0x1e2   :  { %v633_v43 = vsel %vm12681_vm3, %v597_v38, %v12617_v60  ;;  %vm492_vm15 = vcmp.ne.s32.totalorder %v12685_v23, 0  ;;  %vm528_vm11 = vcmp.lt.s32.totalorder %v12685_v23, 0  ;;  %v12716_v34 = vadd.f32 %v12547_v47, %v2938_v6  ;;  %9276 = vmatprep.mubr.msk.bf16.mxu1 %vm1054_vm1, %v15467_v42  ;;  %v12732_v54 = vpop.f32.mrf.mxu1  ;;  %vm12738_vm10 = vmand %vm523_vm2, %vm487_vm13 }
 0x1e3   :  { %v12719_v36 = vadd.f32 %v2883_v61, %v15465_v17  ;;  %v12724_v62 = vadd.s32 216, %v11348_v52  ;;  %v12727_v3 = vadd.f32 %v12569_v14, %v2941_v9  ;;  %v12730_v60 = vadd.s32 200, %v11348_v52  ;;  %v9013_v38 = vpop.f32.mrf.mxu0  ;;  %15468 = vst [vmem:[#allocation49_spill] sm:$0xff] %v12732_v54  ;;  %vm12759_vm14 = vmand %vm528_vm11, %vm492_vm15 }
 0x1e4   :  { %v595_v6 = vadd.s32 18, %v12643_v21  ;;  %v600_v49 = vadd.s32 18, %v12685_v23  ;;  %v340_v14 = vshrl.u32 %v12695_v24, 4  ;;  %v12746_v9 = vadd.f32 %v12590_v30, %v2939_v16  ;;  %v12767_v16 = vpop.f32.mrf.mxu1 }
 0x1e5   :  { %15466 = vst [vmem:[#allocation6_spill] sm:$0xff] %v12719_v36  ;;  %v12749_v61 = vadd.f32 %v9013_v38, %v11954_v15  ;;  %v12753_v17 = vsel %vm2050_vm5, %v12438_v12, %v5618_v11  ;;  %v12764_v24 = vmul.u32.u64.low 3817748708, %v12724_v62  ;;  %v12765_v54 = vmul.u32.u64.high 3817748708, %v12724_v62, %v12764_v24  ;;  %v2886_v30 = vpop.f32.mrf.mxu0  ;;  %15475 = vst [vmem:[#allocation100_spill] sm:$0xff] %v12767_v16 }
 0x1e6   :  { %15471 = vst [vmem:[#allocation53_spill] sm:$0xff] %v12746_v9  ;;  %v12772_v15 = vsel %vm12700_vm7, 1.0, %v15097_v2  ;;  %v341_v12 = vmul.u32 18, %v340_v14  ;;  %v12775_v38 = vmul.u32.u64.low 3817748708, %v12730_v60  ;;  %v12776_v8 = vmul.u32.u64.high 3817748708, %v12730_v60, %v12775_v38  ;;  %9235 = vmatmul.mubr.msk.bf16.gmra.mxu0 %vm1054_vm1, %v15443_v44 }
 0x1e7   :  { %15472 = vst [vmem:[#allocation99_spill] sm:$0xff] %v12749_v61  ;;  %15476 = vst [vmem:[#allocation101_spill] sm:$0xff] %v12772_v15  ;;  %v12779_v56 = vadd.f32 %v2886_v30, %v11971_v29  ;;  %vm12781_vm9 = vcmp.lt.s32.totalorder %v633_v43, 16  ;;  %v12787_v24 = vsel %vm2050_vm5, %v5618_v11, %v12691_v35  ;;  %v5958_v14 = vrot.slane %v9728_v27, 2  ;;  %v9016_v16 = vpop.f32.mrf.mxu0  ;;  %v12792_v61 = vpop.f32.mrf.mxu1  ;;  %v12799_v29 = vld [vmem:[%s14838_s6] ss:$0 sm:$0xff]  ;;  %9238 = vmatprep.mubr.msk.bf16.mxu0 %vm1054_vm1, %v15464_v0 }
 0x1e8   :  { %15480 = vst [vmem:[#allocation103_spill] sm:$0xff] %v12792_v61  ;;  %v631_v11 = vsel %vm12738_vm10, %v595_v6, %v12643_v21  ;;  %v636_v43 = vsel %vm12759_vm14, %v600_v49, %v12685_v23  ;;  %v342_v30 = vsub.s32 %v12646_v5, %v341_v12  ;;  %v12809_v38 = vadd.f32 %v12612_v39, %v2944_v51  ;;  %v15483_v61 = vld [vmem:[#allocation70_spill] sm:$0xff]  ;;  %v15484_v21 = vld [vmem:[#allocation65_spill] sm:$0xff]  ;;  %v15485_v23 = vld [vmem:[#allocation24_spill] sm:$0xff] }
 0x1e9   :  { %15477 = vst [vmem:[#allocation102_spill] sm:$0xff] %v12779_v56  ;;  %v12812_v44 = vadd.f32 %v9016_v16, %v11996_v32  ;;  %v373_v27 = vshrl.u32 %v12765_v54, 4  ;;  %v5624_v47 = vrot.slane %v15483_v61, 1  ;;  %v5625_v6 = vrot.slane %v15484_v21, 2  ;;  %v2899_v56 = vpop.f32.mrf.mxu0  ;;  %v9098_v53 = vpop.f32.mrf.mxu1  ;;  %9277 = vmatmul.mubr.msk.bf16.gmra.mxu1 %vm1054_vm1, %v15485_v23  ;;  %v12824_v32 = vld [vmem:[%s14833_s0 + $0x104] sm:$0xff]   ;;  %v15509_v49 = vld [vmem:[#allocation25_spill] sm:$0xff] }
 0x1ea   :  { %15481 = vst [vmem:[#allocation104_spill] sm:$0xff] %v12809_v38  ;;  %vm490_vm12 = vcmp.ne.s32.totalorder %v342_v30, 0  ;;  %vm526_vm3 = vcmp.lt.s32.totalorder %v342_v30, 0  ;;  %v598_v39 = vadd.s32 18, %v342_v30  ;;  %15486 = vst [vmem:[#allocation24_spill] sm:$0xff] %v12824_v32  ;;  %v12828_v51 = vadd.f32 %v2899_v56, %v12008_v25  ;;  %v15488_v54 = vld [vmem:[#allocation7_spill] sm:$0xff] }
 0x1eb   :  { %15482 = vst [vmem:[#allocation105_spill] sm:$0xff] %v12812_v44  ;;  %v4023_v0 = vadd.f32 %v9098_v53, %v12799_v29  ;;  %9280 = vmatprep.mubr.msk.bf16.mxu1 %vm1054_vm1, %v15488_v54  ;;  %vm12833_vm7 = vcmp.lt.s32.totalorder %v631_v11, 16  ;;  %vm12837_vm13 = vmand %vm526_vm3, %vm490_vm12  ;;  %v374_v12 = vmul.u32 18, %v373_v27  ;;  %v9017_v21 = vpop.f32.mrf.mxu0  ;;  %v4014_v61 = vpop.f32.mrf.mxu1  ;;  %v12844_v25 = vsel %vm12781_vm9, 1.0, %v15097_v2 }
 0x1ec   :  { %15487 = vst [vmem:[#allocation106_spill] sm:$0xff] %v12828_v51  ;;  %15493 = vst [vmem:[#allocation7_spill] sm:$0xff] %v12844_v25  ;;  %vm672_vm2 = vcmp.lt.s32.totalorder %v636_v43, 16  ;;  %v15494_v56 = vrot.slane %v12587_v22, 2  ;;  %v634_v53 = vsel %vm12837_vm13, %v598_v39, %v342_v30  ;;  %v12854_v5 = vadd.f32 %v9017_v21, %v12034_v28  ;;  %v12890_v39 = vld [vmem:[%s14839_s4] ss:$0 sm:$0xff] }
 0x1ed   :  { %v4015_v27 = vadd.f32 %v12799_v29, %v4014_v61  ;;  %v351_v51 = vshrl.u32 %v12776_v8, 4  ;;  %v12858_v44 = vor.u32 %v5625_v6, %v5624_v47  ;;  %v4143_v7 = vmax.f32 %v4023_v0, 0.0  ;;  %v2902_v36 = vpop.f32.mrf.mxu0  ;;  %v9099_v43 = vpop.f32.mrf.mxu1 }
 0x1ee   :  { %v12849_v11 = vsel %vm2406_vm4, %v15494_v56, %v5958_v14  ;;  %15496 = vst [vmem:[#allocation108_spill] sm:$0xff] %v12854_v5  ;;  %v12863_v22 = vsel %vm12833_vm7, 1.0, %v15097_v2  ;;  %v15499_v16 = vrot.slane %v12824_v32, 2  ;;  %v12871_v28 = vadd.s32 240, %v11348_v52  ;;  %9239 = vmatmul.mubr.msk.bf16.gmra.mxu0 %vm1054_vm1, %v15467_v42  ;;  %v15545_v56 = vld [vmem:[#allocation8_spill] sm:$0xff] }
 0x1ef   :  { %15495 = vst [vmem:[#allocation107_spill] sm:$0xff] %v12849_v11  ;;  %15497 = vst [vmem:[#allocation109_spill] sm:$0xff] %v12858_v44  ;;  %v12874_v8 = vadd.f32 %v2902_v36, %v12057_v26  ;;  %v12877_v61 = vsel %vm672_vm2, 1.0, %v15097_v2  ;;  %vm12879_vm15 = vcmp.lt.s32.totalorder %v634_v53, 16  ;;  %v12884_v21 = vsub.s32 %v12724_v62, %v374_v12  ;;  %v9060_v26 = vpop.f32.mrf.mxu0  ;;  %v4017_v36 = vpop.f32.mrf.mxu1  ;;  %9242 = vmatprep.mubr.msk.bf16.mxu0 %vm1054_vm1, %v15485_v23 }
 0x1f0   :  { %15498 = vst [vmem:[#allocation110_spill] sm:$0xff] %v12863_v22  ;;  %v12868_v30 = vsel %vm2406_vm4, %v5958_v14, %v15499_v16  ;;  %15501 = vst [vmem:[#allocation112_spill] sm:$0xff] %v12871_v28  ;;  %v4141_v6 = vmax.f32 %v4015_v27, 0.0  ;;  %v4026_v14 = vadd.f32 %v9099_v43, %v12799_v29  ;;  %v3584_v62 = vadd.f32 %v9060_v26, %v12086_v18 }
 0x1f1   :  { %15500 = vst [vmem:[#allocation111_spill] sm:$0xff] %v12868_v30  ;;  %15502 = vst [vmem:[#allocation113_spill] sm:$0xff] %v12874_v8  ;;  %v4018_v12 = vadd.f32 %v12799_v29, %v4017_v36  ;;  %v352_v27 = vmul.u32 18, %v351_v51  ;;  %v12903_v43 = vsel %vm2050_vm5, %v12691_v35, %v12858_v44  ;;  %v4176_v16 = vsel %vm3732_vm8, %v4143_v7, 0.0  ;;  %v3439_v42 = vpop.f32.mrf.mxu0  ;;  %v9102_v8 = vpop.f32.mrf.mxu1  ;;  %9281 = vmatmul.mubr.msk.bf16.gmra.mxu1 %vm1054_vm1, %v15509_v49  ;;  %v15511_v36 = vld [vmem:[#allocation60_spill] sm:$0xff] }
 0x1f2   :  { %15503 = vst [vmem:[#allocation114_spill] sm:$0xff] %v12877_v61  ;;  %15506 = vst [vmem:[#allocation115_spill] sm:$0xff] %v12884_v21  ;;  %v12911_v18 = vsel %vm12879_vm15, 1.0, %v15097_v2  ;;  %v12914_v23 = vmul.u32.u64.low 3817748708, %v12871_v28  ;;  %v12915_v51 = vmul.u32.u64.high 3817748708, %v12871_v28, %v12914_v23  ;;  %v3626_v35 = vadd.f32 %v12890_v39, %v3584_v62  ;;  %9284 = vmatprep.mubr.msk.bf16.mxu1 %vm1054_vm1, %v15511_v36 }
 0x1f3   :  { %15510 = vst [vmem:[#allocation25_spill] sm:$0xff] %v12911_v18  ;;  %v4142_v26 = vmax.f32 %v4018_v12, 0.0  ;;  %v3582_v7 = vadd.f32 %v3439_v42, %v12104_v10  ;;  %vm493_vm11 = vcmp.ne.s32.totalorder %v12884_v21, 0  ;;  %v4173_v53 = vsel %vm3732_vm8, %v4141_v6, 0.0  ;;  %v9061_v52 = vpop.f32.mrf.mxu0  ;;  %v4030_v32 = vpop.f32.mrf.mxu1  ;;  %v15512_v10 = vld [vmem:[#allocation79_spill] sm:$0xff] }
 0x1f4   :  { %v4144_v47 = vmax.f32 %v4026_v14, 0.0  ;;  %v4039_v5 = vadd.f32 %v9102_v8, %v12799_v29  ;;  %vm529_vm10 = vcmp.lt.s32.totalorder %v12884_v21, 0  ;;  %v3662_v23 = vmax.f32 %v3626_v35, 0.0  ;;  %v15514_v8 = vld [vmem:[#allocation28_spill] sm:$0xff] }
 0x1f5   :  { %v4174_v62 = vsel %vm3732_vm8, %v4142_v26, 0.0  ;;  %v3624_v12 = vadd.f32 %v12890_v39, %v3582_v7  ;;  %v3585_v42 = vadd.f32 %v9061_v52, %v15512_v10  ;;  %v4031_v61 = vadd.f32 %v12799_v29, %v4030_v32  ;;  %v3442_v2 = vpop.f32.mrf.mxu0  ;;  %v9103_v6 = vpop.f32.mrf.mxu1  ;;  %vm12940_vm14 = vmand %vm529_vm10, %vm493_vm11 }
 0x1f6   :  { %v4175_v44 = vadd.f32 %v4174_v62, %v4173_v53  ;;  %v4147_v36 = vmax.f32 %v4039_v5, 0.0  ;;  %v12931_v14 = vadd.s32 18, %v12884_v21  ;;  %v3698_v38 = vmul.f32 %v15514_v8, %v3662_v23  ;;  %9243 = vmatmul.mubr.msk.bf16.gmra.mxu0 %vm1054_vm1, %v15488_v54  ;;  %v15519_v8 = vld [vmem:[#allocation61_spill] sm:$0xff]  ;;  %v15523_v21 = vld [vmem:[#allocation95_spill] sm:$0xff] }
 0x1f7   :  { %v3660_v28 = vmax.f32 %v3624_v12, 0.0  ;;  %v3627_v35 = vadd.f32 %v12890_v39, %v3585_v42  ;;  %v3583_v26 = vadd.f32 %v3442_v2, %v12134_v1  ;;  %v15515_v52 = vmov 0  ;;  %v9064_v7 = vpop.f32.mrf.mxu0  ;;  %v4033_v62 = vpop.f32.mrf.mxu1  ;;  %v15518_v1 = vld [vmem:[#allocation27_spill] sm:$0xff]  ;;  %9246 = vmatprep.mubr.msk.bf16.mxu0 %vm1054_vm1, %v15509_v49 }
 0x1f8   :  { %15513 = vst [vmem:[#allocation60_spill] sm:$0xff] %v12931_v14  ;;  %v15516_v52 = vsel %vm12940_vm14, 4294967295, %v15515_v52  ;;  %v4177_v32 = vadd.f32 %v4176_v16, %v4175_v44  ;;  %v4145_v5 = vmax.f32 %v4031_v61, 0.0  ;;  %v4042_v53 = vadd.f32 %v9103_v6, %v12799_v29  ;;  %v15527_v14 = vld [vmem:[#allocation74_spill] sm:$0xff] }
 0x1f9   :  { %15517 = vst [vmem:[#allocation79_spill] sm:$0xff] %v15516_v52  ;;  %v12948_v23 = vsub.s32 %v12730_v60, %v352_v27  ;;  %v4178_v2 = vsel %vm3732_vm8, %v4144_v47, 0.0  ;;  %v3696_v12 = vmul.f32 %v15518_v1, %v3660_v28  ;;  %v3663_v10 = vmax.f32 %v3627_v35, 0.0  ;;  %v3455_v6 = vpop.f32.mrf.mxu0  ;;  %v9106_v54 = vpop.f32.mrf.mxu1  ;;  %9285 = vmatmul.mubr.msk.bf16.gmra.mxu1 %vm1054_vm1, %v15519_v8  ;;  %v15521_v60 = vld [vmem:[#allocation5_spill] sm:$0xff]  ;;  %v15522_v1 = vld [vmem:[#allocation31_spill] sm:$0xff] }
 0x1fa   :  { %v3625_v42 = vadd.f32 %v12890_v39, %v3583_v26  ;;  %v4184_v44 = vsel %vm3732_vm8, %v4147_v36, 0.0  ;;  %v4179_v61 = vadd.f32 %v4178_v2, %v4177_v32  ;;  %v3588_v16 = vadd.f32 %v9064_v7, %v12164_v63  ;;  %v15520_v36 = vld [vmem:[#allocation63_spill] sm:$0xff] }
 0x1fb   :  { %v3736_v28 = vsel %vm3732_vm8, %v3698_v38, 0.0  ;;  %v4180_v27 = vsel %vm3732_vm8, %v4145_v5, 0.0  ;;  %v4034_v47 = vadd.f32 %v12799_v29, %v4033_v62  ;;  %9328 = vmatprep.mubr.msk.bf16.mxu1 %vm1054_vm1, %v15520_v36  ;;  %v4148_v35 = vmax.f32 %v4042_v53, 0.0  ;;  %v9065_v32 = vpop.f32.mrf.mxu0  ;;  %v4046_v7 = vpop.f32.mrf.mxu1 }
 0x1fc   :  { %v3661_v49 = vmax.f32 %v3625_v42, 0.0  ;;  %v4181_v63 = vadd.f32 %v4180_v27, %v4179_v61  ;;  %v3630_v26 = vadd.f32 %v12890_v39, %v3588_v16  ;;  %v3586_v8 = vadd.f32 %v3455_v6, %v12185_v19 }
 0x1fd   :  { %v3733_v2 = vsel %vm3732_vm8, %v3696_v12, 0.0  ;;  %v3699_v38 = vmul.f32 %v15521_v60, %v3663_v10  ;;  %v4146_v42 = vmax.f32 %v4034_v47, 0.0  ;;  %v3589_v36 = vadd.f32 %v9065_v32, %v15523_v21  ;;  %v3458_v61 = vpop.f32.mrf.mxu0  ;;  %v9107_v16 = vpop.f32.mrf.mxu1  ;;  %v15524_v10 = vld [vmem:[#allocation35_spill] sm:$0xff]  ;;  %v15525_v47 = vld [vmem:[#allocation36_spill] sm:$0xff] }
 0x1fe   :  { %v3697_v5 = vmul.f32 %v15522_v1, %v3661_v49  ;;  %v3666_v9 = vmax.f32 %v3630_v26, 0.0  ;;  %v3628_v62 = vadd.f32 %v12890_v39, %v3586_v8  ;;  %v4047_v53 = vadd.f32 %v12799_v29, %v4046_v7  ;;  %v15526_v32 = vld [vmem:[#allocation39_spill] sm:$0xff] }
 0x1ff   :  { %v4182_v6 = vsel %vm3732_vm8, %v4146_v42, 0.0  ;;  %v12979_v12 = vadd.f32 %v9106_v54, %v12799_v29  ;;  %v3587_v27 = vadd.f32 %v3458_v61, %v15524_v10  ;;  %v9068_v60 = vpop.f32.mrf.mxu0  ;;  %v4049_v21 = vpop.f32.mrf.mxu1  ;;  %9247 = vmatmul.mubr.msk.bf16.gmra.mxu0 %vm1054_vm1, %v15526_v32  ;;  %v4186_v7 = vsel %vm3732_vm8, %v4148_v35, 0.0  ;;  %v15529_v10 = vld [vmem:[#allocation57_spill] sm:$0xff]  ;;  %v15530_v32 = vld [vmem:[#allocation19_spill] sm:$0xff] }
 0x200   :  { %v3734_v19 = vsel %vm3732_vm8, %v3697_v5, 0.0  ;;  %v3702_v26 = vmul.f32 %v15525_v47, %v3666_v9  ;;  %v4183_v1 = vadd.f32 %v4182_v6, %v4181_v63  ;;  %v3664_v8 = vmax.f32 %v3628_v62, 0.0  ;;  %9290 = vmatprep.mubr.msk.bf16.mxu0 %vm1054_vm1, %v15527_v14  ;;  %v15528_v62 = vld [vmem:[#allocation45_spill] sm:$0xff]  ;;  %v15531_v14 = vld [vmem:[#allocation84_spill] sm:$0xff] }
 0x201   :  { %v3735_v49 = vadd.f32 %v3734_v19, %v3733_v2  ;;  %v3631_v5 = vadd.f32 %v12890_v39, %v3589_v36  ;;  %v4149_v42 = vmax.f32 %v4047_v53, 0.0  ;;  %v3629_v54 = vadd.f32 %v12890_v39, %v3587_v27  ;;  %v3471_v19 = vpop.f32.mrf.mxu0  ;;  %v9110_v6 = vpop.f32.mrf.mxu1  ;;  %9329 = vmatmul.mubr.msk.bf16.vlgmr.msra.gmra.mxu1 %vm1054_vm1, %v15529_v10 }
 0x202   :  { %v3738_v2 = vsel %vm3732_vm8, %v3699_v38, 0.0  ;;  %v4185_v63 = vadd.f32 %v4184_v44, %v4183_v1  ;;  %v3700_v61 = vmul.f32 %v15528_v62, %v3664_v8  ;;  %v4151_v35 = vmax.f32 %v12979_v12, 0.0  ;;  %9403 = vmatpush3.bf16.msra.mxu1 %v15530_v32  ;;  %9332 = vmatprep.mubr.msk.bf16.mxu1 %vm1054_vm1, %v15531_v14  ;;  %v15532_v38 = vld [vmem:[#allocation94_spill] sm:$0xff]  ;;  %v15535_v14 = vld [vmem:[#allocation51_spill] sm:$0xff] }
 0x203   :  { %v3737_v9 = vadd.f32 %v3736_v28, %v3735_v49  ;;  %v3667_v36 = vmax.f32 %v3631_v5, 0.0  ;;  %v3665_v53 = vmax.f32 %v3629_v54, 0.0  ;;  %v4058_v27 = vadd.f32 %v9107_v16, %v12799_v29  ;;  %v9069_v8 = vpop.f32.mrf.mxu0  ;;  %v4062_v62 = vpop.f32.mrf.mxu1  ;;  %v9730_v12 = vld [vmem:[%s14834_s5] sm:$0x3]  ;;  %v15533_v54 = vld [vmem:[#allocation52_spill] sm:$0xff] }
 0x204   :  { %v3744_v1 = vsel %vm3732_vm8, %v3702_v26, 0.0  ;;  %v4187_v28 = vadd.f32 %v4186_v7, %v4185_v63  ;;  %v3592_v49 = vadd.f32 %v9068_v60, %v15532_v38  ;;  %9539 = vmatprep.subr.msk.bf16.mxu1 %vm1109_vm0, %v9730_v12  ;;  %v3740_v16 = vsel %vm3732_vm8, %v3700_v61, 0.0 }
 0x205   :  { %v3739_v44 = vadd.f32 %v3738_v2, %v3737_v9  ;;  %v4188_v5 = vsel %vm3732_vm8, %v4149_v42, 0.0  ;;  %v3701_v32 = vmul.f32 %v15533_v54, %v3665_v53  ;;  %v4050_v26 = vadd.f32 %v12799_v29, %v4049_v21  ;;  %v15534_v9 = vld [vmem:[#allocation23_spill] sm:$0xff]  ;;  %v3474_v38 = vpop.f32.mrf.mxu0  ;;  %v9111_v47 = vpop.f32.mrf.mxu1 }
 0x206   :  { %v4189_v7 = vadd.f32 %v4188_v5, %v4187_v28  ;;  %v3634_v60 = vadd.f32 %v12890_v39, %v3592_v49  ;;  %v3590_v63 = vadd.f32 %v3471_v19, %v15534_v9  ;;  %v3703_v10 = vmul.f32 %v15535_v14, %v3667_v36  ;;  %v15537_v49 = vld [vmem:[#allocation97_spill] sm:$0xff] }
 0x207   :  { %v3741_v2 = vadd.f32 %v3740_v16, %v3739_v44  ;;  %v3742_v12 = vsel %vm3732_vm8, %v3701_v32, 0.0  ;;  %v4152_v52 = vmax.f32 %v4058_v27, 0.0  ;;  %v4150_v61 = vmax.f32 %v4050_v26, 0.0  ;;  %v9072_v44 = vpop.f32.mrf.mxu0  ;;  %v4065_v28 = vpop.f32.mrf.mxu1  ;;  %v15536_v16 = vld [vmem:[#allocation77_spill] sm:$0xff]  ;;  %v15538_v32 = vld [vmem:[#allocation96_spill] sm:$0xff]  ;;  %v15539_v26 = vld [vmem:[#allocation3_spill] sm:$0xff] }
 0x208   :  { %v3670_v42 = vmax.f32 %v3634_v60, 0.0  ;;  %v3632_v53 = vadd.f32 %v12890_v39, %v3590_v63  ;;  %v4071_v21 = vadd.f32 %v9110_v6, %v12799_v29  ;;  %9291 = vmatmul.mubr.msk.bf16.vlgmr.msra.gmra.mxu0 %vm1054_vm1, %v15536_v16  ;;  %v3593_v5 = vadd.f32 %v9069_v8, %v15537_v49  ;;  %v15541_v14 = vld [vmem:[#allocation89_spill] sm:$0xff] }
 0x209   :  { %v3743_v18 = vadd.f32 %v3742_v12, %v3741_v2  ;;  %v4190_v19 = vsel %vm3732_vm8, %v4150_v61, 0.0  ;;  %v4063_v36 = vadd.f32 %v12799_v29, %v4062_v62  ;;  %v3591_v27 = vadd.f32 %v3474_v38, %v15538_v32  ;;  %9294 = vmatprep.mubr.msk.bf16.mxu0 %vm1054_vm1, %v15539_v26  ;;  %v15540_v2 = vld [vmem:[#allocation21_spill] sm:$0xff]  ;;  %v3487_v12 = vpop.f32.mrf.mxu0  ;;  %v9114_v16 = vpop.f32.mrf.mxu1  ;;  %9333 = vmatmul.mubr.msk.bf16.gmra.mxu1 %vm1054_vm1, %v15541_v14  ;;  %v9731_v62 = vld [vmem:[%s14832_s3 + $0x10] sm:$0x3] }
 0x20a   :  { %9365 = vmatpush3.bf16.msra.mxu0 %v15540_v2  ;;  %v4192_v6 = vsel %vm3732_vm8, %v4151_v35, 0.0  ;;  %v4191_v9 = vadd.f32 %v4190_v19, %v4189_v7  ;;  %v3668_v63 = vmax.f32 %v3632_v53, 0.0  ;;  %v3746_v8 = vsel %vm3732_vm8, %v3703_v10, 0.0  ;;  %v15542_v35 = vld [vmem:[#allocation91_spill] sm:$0xff]  ;;  %v15543_v53 = vld [vmem:[#allocation69_spill] sm:$0xff]  ;;  %v15544_v2 = vld [vmem:[#allocation64_spill] sm:$0xff] }
 0x20b   :  { %v3745_v60 = vadd.f32 %v3744_v1, %v3743_v18  ;;  %9538 = vmatprep.subr.msk.bf16.mxu0 %vm1109_vm0, %v9731_v62  ;;  %v3635_v38 = vadd.f32 %v12890_v39, %v3593_v5  ;;  %v4153_v61 = vmax.f32 %v4063_v36, 0.0  ;;  %v3633_v18 = vadd.f32 %v12890_v39, %v3591_v27  ;;  %9336 = vmatprep.mubr.msk.bf16.mxu1 %vm1054_vm1, %v15542_v35  ;;  %v9073_v32 = vpop.f32.mrf.mxu0  ;;  %v4078_v26 = vpop.f32.mrf.mxu1 }
 0x20c   :  { %v4194_v1 = vsel %vm3732_vm8, %v4152_v52, 0.0  ;;  %v4193_v7 = vadd.f32 %v4192_v6, %v4191_v9  ;;  %v3704_v19 = vmul.f32 %v15543_v53, %v3668_v63  ;;  %v3706_v62 = vmul.f32 %v15544_v2, %v3670_v42  ;;  %v15547_v42 = vld [vmem:[#allocation86_spill] sm:$0xff] }
 0x20d   :  { %v3747_v49 = vadd.f32 %v3746_v8, %v3745_v60  ;;  %v4155_v54 = vmax.f32 %v4071_v21, 0.0  ;;  %v3671_v10 = vmax.f32 %v3635_v38, 0.0  ;;  %v3669_v14 = vmax.f32 %v3633_v18, 0.0  ;;  %v3490_v0 = vpop.f32.mrf.mxu0  ;;  %v9115_v52 = vpop.f32.mrf.mxu1  ;;  %v15546_v60 = vld [vmem:[#allocation87_spill] sm:$0xff]  ;;  %v15548_v18 = vld [vmem:[#allocation14_spill] sm:$0xff] }
 0x20e   :  { %v3748_v5 = vsel %vm3732_vm8, %v3704_v19, 0.0  ;;  %v4195_v36 = vadd.f32 %v4194_v1, %v4193_v7  ;;  %v4074_v27 = vadd.f32 %v9111_v47, %v12799_v29  ;;  %v3596_v35 = vadd.f32 %v9072_v44, %v15545_v56  ;;  %v15549_v7 = vld [vmem:[#allocation90_spill] sm:$0xff] }
 0x20f   :  { %v3749_v6 = vadd.f32 %v3748_v5, %v3747_v49  ;;  %v4196_v9 = vsel %vm3732_vm8, %v4153_v61, 0.0  ;;  %v3705_v63 = vmul.f32 %v15546_v60, %v3669_v14  ;;  %v4066_v8 = vadd.f32 %v12799_v29, %v4065_v28  ;;  %v9076_v19 = vpop.f32.mrf.mxu0  ;;  %v4081_v1 = vpop.f32.mrf.mxu1 }
 0x210   :  { %v3707_v21 = vmul.f32 %v15547_v42, %v3671_v10  ;;  %v4197_v38 = vadd.f32 %v4196_v9, %v4195_v36  ;;  %v3594_v2 = vadd.f32 %v3487_v12, %v15548_v18  ;;  %9295 = vmatmul.mubr.msk.bf16.gmra.mxu0 %vm1054_vm1, %v15549_v7  ;;  %v13050_v56 = vadd.s32 18, %v12948_v23 }
 0x211   :  { %v3752_v47 = vsel %vm3732_vm8, %v3706_v62, 0.0  ;;  %v3750_v44 = vsel %vm3732_vm8, %v3705_v63, 0.0  ;;  %v4156_v14 = vmax.f32 %v4074_v27, 0.0  ;;  %v4154_v61 = vmax.f32 %v4066_v8, 0.0  ;;  %9298 = vmatprep.mubr.msk.bf16.mxu0 %vm1054_vm1, %v12456_v50  ;;  %v3503_v5 = vpop.f32.mrf.mxu0  ;;  %v9118_v36 = vpop.f32.mrf.mxu1  ;;  %9337 = vmatmul.mubr.msk.bf16.gmra.mxu1 %vm1054_vm1, %v12424_v33  ;;  %v15638_v33 = vld [vmem:[#allocation75_spill] sm:$0xff] }
 0x212   :  { %v4200_v28 = vsel %vm3732_vm8, %v4155_v54, 0.0  ;;  %v3751_v12 = vadd.f32 %v3750_v44, %v3749_v6  ;;  %v3638_v49 = vadd.f32 %v12890_v39, %v3596_v35  ;;  %v3636_v10 = vadd.f32 %v12890_v39, %v3594_v2  ;;  %9340 = vmatprep.mubr.msk.bf16.mxu1 %vm1054_vm1, %v12554_v40 }
 0x213   :  { %v4198_v62 = vsel %vm3732_vm8, %v4154_v61, 0.0  ;;  %v4087_v27 = vadd.f32 %v9114_v16, %v12799_v29  ;;  %v3597_v9 = vadd.f32 %v9073_v32, %v12388_v55  ;;  %v4079_v50 = vadd.f32 %v12799_v29, %v4078_v26  ;;  %v9077_v63 = vpop.f32.mrf.mxu0  ;;  %v4094_v8 = vpop.f32.mrf.mxu1  ;;  %v15550_v26 = vld [vmem:[#allocation32_spill] sm:$0xff] }
 0x214   :  { %v3754_v54 = vsel %vm3732_vm8, %v3707_v21, 0.0  ;;  %v3753_v35 = vadd.f32 %v3752_v47, %v3751_v12  ;;  %v4199_v2 = vadd.f32 %v4198_v62, %v4197_v38  ;;  %v3672_v6 = vmax.f32 %v3636_v10, 0.0 }
 0x215   :  { %v4202_v18 = vsel %vm3732_vm8, %v4156_v14, 0.0  ;;  %v3639_v7 = vadd.f32 %v12890_v39, %v3597_v9  ;;  %v4157_v44 = vmax.f32 %v4079_v50, 0.0  ;;  %v3595_v16 = vadd.f32 %v3490_v0, %v12417_v59  ;;  %v3506_v60 = vpop.f32.mrf.mxu0  ;;  %v13072_v53 = vpop.f32.mrf.mxu1 }
 0x216   :  { %v3674_v55 = vmax.f32 %v3638_v49, 0.0  ;;  %v4201_v32 = vadd.f32 %v4200_v28, %v4199_v2  ;;  %v3708_v61 = vmul.f32 %v15550_v26, %v3672_v6  ;;  %v3755_v42 = vadd.f32 %v3754_v54, %v3753_v35  ;;  %v15552_v6 = vld [vmem:[#allocation15_spill] sm:$0xff] }
 0x217   :  { %v4159_v21 = vmax.f32 %v4087_v27, 0.0  ;;  %v3675_v38 = vmax.f32 %v3639_v7, 0.0  ;;  %v3637_v47 = vadd.f32 %v12890_v39, %v3595_v16  ;;  %v4090_v12 = vadd.f32 %v9115_v52, %v12799_v29  ;;  %v9080_v0 = vpop.f32.mrf.mxu0  ;;  %v13079_v28 = vpop.f32.mrf.mxu1  ;;  %v15554_v16 = vld [vmem:[#allocation16_spill] sm:$0xff] }
 0x218   :  { %v3756_v14 = vsel %vm3732_vm8, %v3708_v61, 0.0  ;;  %v4203_v10 = vadd.f32 %v4202_v18, %v4201_v32  ;;  %v3600_v62 = vadd.f32 %v9076_v19, %v12444_v37  ;;  %v4082_v59 = vadd.f32 %v12799_v29, %v4081_v1  ;;  %9299 = vmatmul.mubr.msk.bf16.gmra.mxu0 %vm1054_vm1, %v12476_v4  ;;  %v15551_v4 = vld [vmem:[#allocation92_spill] sm:$0xff] }
 0x219   :  { %v3757_v49 = vadd.f32 %v3756_v14, %v3755_v42  ;;  %v4204_v27 = vsel %vm3732_vm8, %v4157_v44, 0.0  ;;  %v3673_v9 = vmax.f32 %v3637_v47, 0.0  ;;  %9302 = vmatprep.mubr.msk.bf16.mxu0 %vm1054_vm1, %v12753_v17  ;;  %v3598_v1 = vadd.f32 %v3503_v5, %v12462_v45  ;;  %v3519_v54 = vpop.f32.mrf.mxu0  ;;  %v13089_v35 = vpop.f32.mrf.mxu1  ;;  %9341 = vmatmul.mubr.msk.bf16.gmra.mxu1 %vm1054_vm1, %v12663_v57  ;;  %v15553_v18 = vld [vmem:[#allocation12_spill] sm:$0xff] }
 0x21a   :  { %v4205_v50 = vadd.f32 %v4204_v27, %v4203_v10  ;;  %v3642_v37 = vadd.f32 %v12890_v39, %v3600_v62  ;;  %v4158_v19 = vmax.f32 %v4082_v59, 0.0  ;;  %v3710_v42 = vmul.f32 %v15551_v4, %v3674_v55  ;;  %9344 = vmatprep.mubr.msk.bf16.mxu1 %vm1054_vm1, %v12849_v11 }
 0x21b   :  { %v4208_v2 = vsel %vm3732_vm8, %v4159_v21, 0.0  ;;  %v3711_v17 = vmul.f32 %v15552_v6, %v3675_v38  ;;  %v3709_v7 = vmul.f32 %v15553_v18, %v3673_v9  ;;  %v4160_v44 = vmax.f32 %v4090_v12, 0.0  ;;  %v9081_v61 = vpop.f32.mrf.mxu0  ;;  %v4110_v47 = vpop.f32.mrf.mxu1  ;;  %v15600_v18 = vld [vmem:[#allocation10_spill] sm:$0xff] }
 0x21c   :  { %v4206_v45 = vsel %vm3732_vm8, %v4158_v19, 0.0  ;;  %v3640_v5 = vadd.f32 %v12890_v39, %v3598_v1  ;;  %v3601_v32 = vadd.f32 %v9077_v63, %v15554_v16  ;;  %v4103_v21 = vadd.f32 %v9118_v36, %v12799_v29  ;;  %v15555_v16 = vld [vmem:[#allocation98_spill] sm:$0xff] }
 0x21d   :  { %v3758_v55 = vsel %vm3732_vm8, %v3709_v7, 0.0  ;;  %v4207_v14 = vadd.f32 %v4206_v45, %v4205_v50  ;;  %v4095_v38 = vadd.f32 %v12799_v29, %v4094_v8  ;;  %v3678_v62 = vmax.f32 %v3642_v37, 0.0  ;;  %v3522_v27 = vpop.f32.mrf.mxu0  ;;  %v13106_v9 = vpop.f32.mrf.mxu1  ;;  %v15556_v8 = vld [vmem:[#allocation9_spill] sm:$0xff] }
 0x21e   :  { %v3759_v10 = vadd.f32 %v3758_v55, %v3757_v49  ;;  %v3676_v59 = vmax.f32 %v3640_v5, 0.0  ;;  %v3643_v12 = vadd.f32 %v12890_v39, %v3601_v32  ;;  %v3760_v19 = vsel %vm3732_vm8, %v3710_v42, 0.0 }
 0x21f   :  { %v4209_v63 = vadd.f32 %v4208_v2, %v4207_v14  ;;  %v4161_v1 = vmax.f32 %v4095_v38, 0.0  ;;  %v3599_v52 = vadd.f32 %v3506_v60, %v15555_v16  ;;  %v3762_v50 = vsel %vm3732_vm8, %v3711_v17, 0.0  ;;  %v13113_v37 = vpop.f32.mrf.mxu0  ;;  %v13115_v45 = vpop.f32.mrf.mxu1  ;;  %v15558_v14 = vld [vmem:[#allocation34_spill] sm:$0xff] }
 0x220   :  { %v3761_v7 = vadd.f32 %v3760_v19, %v3759_v10  ;;  %v4210_v36 = vsel %vm3732_vm8, %v4160_v44, 0.0  ;;  %v3712_v49 = vmul.f32 %v15556_v8, %v3676_v59  ;;  %9303 = vmatmul.mubr.msk.bf16.gmra.mxu0 %vm1054_vm1, %v12787_v24  ;;  %vm491_vm0 = vcmp.ne.s32.totalorder %v12948_v23, 0  ;;  %v15557_v44 = vld [vmem:[#allocation54_spill] sm:$0xff] }
 0x221   :  { %vm527_vm9 = vcmp.lt.s32.totalorder %v12948_v23, 0  ;;  %v4163_v42 = vmax.f32 %v4103_v21, 0.0  ;;  %v3679_v60 = vmax.f32 %v3643_v12, 0.0  ;;  %v4211_v2 = vadd.f32 %v4210_v36, %v4209_v63  ;;  %9306 = vmatprep.mubr.msk.bf16.mxu0 %vm1054_vm1, %v12903_v43  ;;  %v3535_v38 = vpop.f32.mrf.mxu0  ;;  %v13128_v10 = vpop.f32.mrf.mxu1  ;;  %9345 = vmatmul.mubr.msk.bf16.gmra.mxu1 %vm1054_vm1, %v12868_v30 }
 0x222   :  { %v3641_v17 = vadd.f32 %v12890_v39, %v3599_v52  ;;  %v3714_v5 = vmul.f32 %v15557_v44, %v3678_v62  ;;  %v3763_v32 = vadd.f32 %v3762_v50, %v3761_v7  ;;  %v4106_v55 = vadd.f32 %v13072_v53, %v12799_v29  ;;  %vm13176_vm12 = vmand %vm527_vm9, %vm491_vm0 }
 0x223   :  { %v3604_v24 = vadd.f32 %v9080_v0, %v15558_v14  ;;  %v3764_v21 = vsel %vm3732_vm8, %v3712_v49, 0.0  ;;  %v4212_v52 = vsel %vm3732_vm8, %v4161_v1, 0.0  ;;  %v4098_v43 = vadd.f32 %v12799_v29, %v13079_v28  ;;  %v13138_v19 = vpop.f32.mrf.mxu0  ;;  %v13140_v63 = vpop.f32.mrf.mxu1 }
 0x224   :  { %v3677_v59 = vmax.f32 %v3641_v17, 0.0  ;;  %v3765_v62 = vadd.f32 %v3764_v21, %v3763_v32  ;;  %v4213_v12 = vadd.f32 %v4212_v52, %v4211_v2  ;;  %v3602_v0 = vadd.f32 %v3519_v54, %v12567_v41 }
 0x225   :  { %v3646_v53 = vadd.f32 %v12890_v39, %v3604_v24  ;;  %v4216_v16 = vsel %vm3732_vm8, %v4163_v42, 0.0  ;;  %v3715_v50 = vmul.f32 %v12653_v46, %v3679_v60  ;;  %v4162_v7 = vmax.f32 %v4098_v43, 0.0  ;;  %v13148_v17 = vpop.f32.mrf.mxu0  ;;  %v13150_v41 = vpop.f32.mrf.mxu1 }
 0x226   :  { %v3713_v1 = vmul.f32 %v12670_v31, %v3677_v59  ;;  %v4164_v36 = vmax.f32 %v4106_v55, 0.0  ;;  %v3644_v28 = vadd.f32 %v12890_v39, %v3602_v0  ;;  %v3605_v49 = vadd.f32 %v9081_v61, %v12596_v58 }
 0x227   :  { %v4111_v2 = vadd.f32 %v12799_v29, %v4110_v47  ;;  %v3682_v32 = vmax.f32 %v3646_v53, 0.0  ;;  %v4214_v42 = vsel %vm3732_vm8, %v4162_v7, 0.0  ;;  %v3603_v60 = vadd.f32 %v3522_v27, %v12610_v13  ;;  %v13156_v52 = vpop.f32.mrf.mxu0  ;;  %v13158_v58 = vpop.f32.mrf.mxu1 }
 0x228   :  { %v3766_v54 = vsel %vm3732_vm8, %v3713_v1, 0.0  ;;  %v3768_v14 = vsel %vm3732_vm8, %v3714_v5, 0.0  ;;  %v4215_v24 = vadd.f32 %v4214_v42, %v4213_v12  ;;  %v3680_v21 = vmax.f32 %v3644_v28, 0.0 }
 0x229   :  { %v3767_v55 = vadd.f32 %v3766_v54, %v3765_v62  ;;  %v3770_v61 = vsel %vm3732_vm8, %v3715_v50, 0.0  ;;  %v3647_v47 = vadd.f32 %v12890_v39, %v3605_v49  ;;  %v4165_v59 = vmax.f32 %v4111_v2, 0.0  ;;  %v13165_v5 = vpop.f32.mrf.mxu0  ;;  %v13167_v62 = vpop.f32.mrf.mxu1 }
 0x22a   :  { %v3645_v43 = vadd.f32 %v12890_v39, %v3603_v60  ;;  %v4218_v0 = vsel %vm3732_vm8, %v4164_v36, 0.0  ;;  %v4217_v13 = vadd.f32 %v4216_v16, %v4215_v24  ;;  %v3716_v27 = vmul.f32 %v12772_v15, %v3680_v21 }
 0x22b   :  { %v3769_v53 = vadd.f32 %v3768_v14, %v3767_v55  ;;  %v3718_v12 = vmul.f32 %v12675_v20, %v3682_v32  ;;  %v4119_v50 = vadd.f32 %v13089_v35, %v12799_v29  ;;  %v3683_v1 = vmax.f32 %v3647_v47, 0.0  ;;  %v13183_v54 = vpop.f32.mrf.mxu0  ;;  %v9134_v35 = vpop.f32.mrf.mxu1 }
 0x22c   :  { %v3681_v7 = vmax.f32 %v3645_v43, 0.0  ;;  %v4219_v28 = vadd.f32 %v4218_v0, %v4217_v13  ;;  %v4220_v49 = vsel %vm3732_vm8, %v4165_v59, 0.0  ;;  %v3608_v2 = vadd.f32 %v13113_v37, %v12633_v48 }
 0x22d   :  { %v3771_v16 = vadd.f32 %v3770_v61, %v3769_v53  ;;  %v3772_v32 = vsel %vm3732_vm8, %v3716_v27, 0.0  ;;  %v4122_v60 = vadd.f32 %v13106_v9, %v12799_v29  ;;  %v4114_v14 = vadd.f32 %v12799_v29, %v13115_v45  ;;  %v13196_v37 = vpop.f32.mrf.mxu0  ;;  %v4303_v61 = vpop.f32.mrf.mxu1 }
 0x22e   :  { %v3717_v42 = vmul.f32 %v12863_v22, %v3681_v7  ;;  %v4221_v24 = vadd.f32 %v4220_v49, %v4219_v28  ;;  %v3606_v21 = vadd.f32 %v3535_v38, %v12716_v34  ;;  %v635_v48 = vsel %vm13176_vm12, %v13050_v56, %v12948_v23 }
 0x22f   :  { %v3773_v55 = vadd.f32 %v3772_v32, %v3771_v16  ;;  %v4167_v47 = vmax.f32 %v4119_v50, 0.0  ;;  %v3719_v59 = vmul.f32 %v12844_v25, %v3683_v1  ;;  %v4166_v43 = vmax.f32 %v4114_v14, 0.0  ;;  %v13204_v13 = vpop.f32.mrf.mxu0  ;;  %v9135_v23 = vpop.f32.mrf.mxu1 }
 0x230   :  { %v3774_v9 = vsel %vm3732_vm8, %v3717_v42, 0.0  ;;  %v3776_v45 = vsel %vm3732_vm8, %v3718_v12, 0.0  ;;  %v3648_v0 = vadd.f32 %v12890_v39, %v3606_v21  ;;  %v15561_v34 = vshrl.u32 %v12915_v51, 4  ;;  %v15564_v42 = vld [vmem:[#allocation58_spill] sm:$0xff] }
 0x231   :  { %v3775_v53 = vadd.f32 %v3774_v9, %v3773_v55  ;;  %v4168_v56 = vmax.f32 %v4122_v60, 0.0  ;;  %v3650_v27 = vadd.f32 %v12890_v39, %v3608_v2  ;;  %v4222_v50 = vsel %vm3732_vm8, %v4166_v43, 0.0  ;;  %v13212_v28 = vpop.f32.mrf.mxu0  ;;  %v13214_v51 = vpop.f32.mrf.mxu1  ;;  %v15562_v2 = vld [vmem:[#allocation71_spill] sm:$0xff]  ;;  %v15566_v55 = vld [vmem:[#allocation25_spill] sm:$0xff] }
 0x232   :  { %v407_v38 = vmul.u32 18, %v15561_v34  ;;  %v3609_v1 = vadd.f32 %v13138_v19, %v12727_v3  ;;  %v4223_v36 = vadd.f32 %v4222_v50, %v4221_v24  ;;  %v3684_v12 = vmax.f32 %v3648_v0, 0.0  ;;  %v13227_v3 = vld [vmem:[%s14833_s0 + $0x10c] sm:$0xff]   ;;  %v15571_v34 = vld [vmem:[#allocation53_spill] sm:$0xff] }
 0x233   :  { %v3777_v7 = vadd.f32 %v3776_v45, %v3775_v53  ;;  %v4127_v16 = vadd.f32 %v12799_v29, %v13140_v63  ;;  %v4224_v49 = vsel %vm3732_vm8, %v4167_v47, 0.0  ;;  %v3778_v35 = vsel %vm3732_vm8, %v3719_v59, 0.0  ;;  %v13232_v47 = vpop.f32.mrf.mxu0  ;;  %v13234_v59 = vpop.f32.mrf.mxu1  ;;  %v15568_v45 = vld [vmem:[#allocation60_spill] sm:$0xff]  ;;  %v15569_v53 = vld [vmem:[#allocation115_spill] sm:$0xff] }
 0x234   :  { %v15563_v32 = vrot.slane %v15562_v2, 1  ;;  %v15565_v60 = vrot.slane %v15564_v42, 2  ;;  %v15002_v19 = vrot.slane %v13227_v3, 2  ;;  %v4225_v63 = vadd.f32 %v4224_v49, %v4223_v36  ;;  %v15572_v36 = vld [vmem:[#allocation112_spill] sm:$0xff] }
 0x235   :  { %v3720_v24 = vmul.f32 %v15566_v55, %v3684_v12  ;;  %v3779_v21 = vadd.f32 %v3778_v35, %v3777_v7  ;;  %v3651_v61 = vadd.f32 %v12890_v39, %v3609_v1  ;;  %v3686_v9 = vmax.f32 %v3650_v27, 0.0  ;;  %v13248_v49 = vpop.f32.mrf.mxu0  ;;  %v13250_v27 = vpop.f32.mrf.mxu1 }
 0x236   :  { %v13222_v14 = vor.u32 %v15565_v60, %v15563_v32  ;;  %v15570_v0 = vsel %vm12940_vm14, %v15568_v45, %v15569_v53  ;;  %vm671_vm7 = vcmp.lt.s32.totalorder %v635_v48, 16  ;;  %v3607_v23 = vadd.f32 %v13148_v17, %v15571_v34  ;;  %v15573_v48 = vld [vmem:[#allocation104_spill] sm:$0xff] }
 0x237   :  { %vm673_vm3 = vcmp.lt.s32.totalorder %v15570_v0, 16  ;;  %v4226_v50 = vsel %vm3732_vm8, %v4168_v56, 0.0  ;;  %v3780_v7 = vsel %vm3732_vm8, %v3720_v24, 0.0  ;;  %v4169_v1 = vmax.f32 %v4127_v16, 0.0  ;;  %v13263_v45 = vpop.f32.mrf.mxu0  ;;  %v13265_v53 = vpop.f32.mrf.mxu1 }
 0x238   :  { %v13246_v12 = vsub.s32 %v15572_v36, %v407_v38  ;;  %v3781_v35 = vadd.f32 %v3780_v7, %v3779_v21  ;;  %v4227_v32 = vadd.f32 %v4226_v50, %v4225_v63  ;;  %v3649_v60 = vadd.f32 %v12890_v39, %v3607_v23  ;;  %15577 = vst [vmem:[#allocation95_spill] sm:$0xff] %v13265_v53  ;;  %v15578_v63 = vld [vmem:[#allocation114_spill] sm:$0xff]  ;;  %v15580_v23 = vld [vmem:[#allocation24_spill] sm:$0xff] }
 0x239   :  { %v3612_v43 = vadd.f32 %v13156_v52, %v15573_v48  ;;  %v4135_v17 = vadd.f32 %v13128_v10, %v12799_v29  ;;  %v15574_v56 = vmov 0.0   ;;  %v3687_v16 = vmax.f32 %v3651_v61, 0.0  ;;  %v15579_v61 = vld [vmem:[#allocation109_spill] sm:$0xff]  ;;  %v13283_v7 = vpop.f32.mrf.mxu0  ;;  %v13285_v36 = vpop.f32.mrf.mxu1  ;;  %v15583_v48 = vld [vmem:[#allocation88_spill] sm:$0xff] }
 0x23a   :  { %v13258_v24 = vsel %vm673_vm3, 1.0, %v15574_v56  ;;  %v13261_v38 = vsel %vm671_vm7, 1.0, %v15574_v56  ;;  %v3722_v21 = vmul.f32 %v15578_v63, %v3686_v9  ;;  %v3685_v0 = vmax.f32 %v3649_v60, 0.0 }
 0x23b   :  { %15575 = vst [vmem:[#allocation61_spill] sm:$0xff] %v13258_v24  ;;  %15576 = vst [vmem:[#allocation63_spill] sm:$0xff] %v13261_v38  ;;  %vm496_vm13 = vcmp.ne.s32.totalorder %v13246_v12, 0  ;;  %vm532_vm2 = vcmp.lt.s32.totalorder %v13246_v12, 0  ;;  %v4228_v10 = vsel %vm3732_vm8, %v4169_v1, 0.0  ;;  %v4130_v52 = vadd.f32 %v12799_v29, %v13158_v58  ;;  %v13306_v55 = vpop.f32.mrf.mxu1 }
 0x23c   :  { %v5631_v34 = vsel %vm2050_vm5, %v15579_v61, %v13222_v14  ;;  %v15581_v50 = vrot.slane %v15580_v23, 2  ;;  %v4229_v60 = vadd.f32 %v4228_v10, %v4227_v32  ;;  %v3721_v1 = vmul.f32 %v13261_v38, %v3685_v0  ;;  %vm13298_vm15 = vmand %vm532_vm2, %vm496_vm13  ;;  %v15586_v10 = vld [vmem:[#allocation6_spill] sm:$0xff]  ;;  %v13304_v38 = vpop.f32.mrf.mxu0 }
 0x23d   :  { %v604_v58 = vadd.s32 18, %v13246_v12  ;;  %9307 = vmatmul.mubr.msk.bf16.gmra.mxu0 %vm1054_vm1, %v5631_v34  ;;  %v62_v61 = vadd.s32 224, %v15583_v48  ;;  %v4171_v23 = vmax.f32 %v4135_v17, 0.0  ;;  %v4170_v0 = vmax.f32 %v4130_v52, 0.0  ;;  %v13317_v15 = vpop.f32.mrf.mxu1 }
 0x23e   :  { %v13281_v9 = vsel %vm2406_vm4, %v15581_v50, %v15002_v19  ;;  %v3723_v50 = vmul.f32 %v13258_v24, %v3687_v16  ;;  %v15587_v19 = vld [vmem:[#allocation56_spill] sm:$0xff]  ;;  %v3782_v17 = vsel %vm3732_vm8, %v3721_v1, 0.0  ;;  %v3784_v24 = vsel %vm3732_vm8, %v3722_v21, 0.0  ;;  %v13315_v52 = vpop.f32.mrf.mxu0 }
 0x23f   :  { %15582 = vst [vmem:[#allocation35_spill] sm:$0xff] %v13281_v9  ;;  %9348 = vmatprep.mubr.msk.bf16.mxu1 %vm1054_vm1, %v13281_v9  ;;  %v3302_v34 = vadd.f32 %v15587_v19, %v15586_v10  ;;  %v13309_v63 = vmul.u32.u64.low 3817748708, %v62_v61  ;;  %v13310_v16 = vmul.u32.u64.high 3817748708, %v62_v61, %v13309_v63  ;;  %v3783_v25 = vadd.f32 %v3782_v17, %v3781_v35  ;;  %15588 = vst [vmem:[#allocation39_spill] sm:$0xff] %v13315_v52  ;;  %v15590_v17 = vld [vmem:[#allocation26_spill] sm:$0xff] }
 0x240   :  { %v4230_v22 = vsel %vm3732_vm8, %v4170_v0, 0.0  ;;  %v640_v19 = vsel %vm13298_vm15, %v604_v58, %v13246_v12  ;;  %v13325_v63 = vld [vmem:[%s14833_s0 + $0x114] sm:$0xff]   ;;  %v65_v21 = vadd.s32 248, %v15583_v48  ;;  %v3786_v1 = vsel %vm3732_vm8, %v3723_v50, 0.0  ;;  %v13333_v32 = vpop.f32.mrf.mxu0 }
 0x241   :  { %v3610_v20 = vadd.f32 %v13165_v5, %v3302_v34  ;;  %v4231_v10 = vadd.f32 %v4230_v22, %v4229_v60  ;;  %v15010_v35 = vrot.slane %v13325_v63, 2  ;;  %v4232_v5 = vsel %vm3732_vm8, %v4171_v23, 0.0  ;;  %v15589_v34 = vld [vmem:[#allocation99_spill] sm:$0xff]  ;;  %v13335_v22 = vpop.f32.mrf.mxu1  ;;  %v8074_v23 = vld [vmem:[%s14840_s8] ss:$0 sm:$0xff] }
 0x242   :  { %v3785_v0 = vadd.f32 %v3784_v24, %v3783_v25  ;;  %v3305_v31 = vadd.f32 %v15590_v17, %v15589_v34  ;;  %15591 = vst [vmem:[#allocation74_spill] sm:$0xff] %v13335_v22  ;;  %v13338_v12 = vadd.f32 %v12890_v39, %v3612_v43  ;;  %v384_v58 = vshrl.u32 %v13310_v16, 4  ;;  %v13365_v34 = vpop.f32.mrf.mxu0 }
 0x243   :  { %v13340_v60 = vadd.f32 %v4232_v5, %v4231_v10  ;;  %v15592_v25 = vrot.slane %v13227_v3, 2  ;;  %vm13353_vm11 = vcmp.lt.s32.totalorder %v640_v19, 16  ;;  %v3652_v43 = vadd.f32 %v12890_v39, %v3610_v20  ;;  %v13363_v5 = vpop.f32.mrf.mxu1 }
 0x244   :  { %v13358_v10 = vadd.f32 %v3786_v1, %v3785_v0  ;;  %v3613_v16 = vadd.f32 %v13183_v54, %v3305_v31  ;;  %v385_v3 = vmul.u32 18, %v384_v58  ;;  %v63_v19 = vadd.s32 232, %v15583_v48  ;;  %v15596_v0 = vld [vmem:[#allocation72_spill] sm:$0xff]  ;;  %v13379_v31 = vpop.f32.mrf.mxu0 }
 0x245   :  { %v13351_v24 = vsel %vm2406_vm4, %v15592_v25, %v15010_v35  ;;  %v13367_v17 = vmul.u32.u64.low 3817748708, %v65_v21  ;;  %v13368_v25 = vmul.u32.u64.high 3817748708, %v65_v21, %v13367_v17  ;;  %v13373_v20 = vadd.f32 %v13150_v41, %v12799_v29  ;;  %v13381_v54 = vpop.f32.mrf.mxu1  ;;  %v15603_v41 = vld [vmem:[#allocation18_spill] sm:$0xff] }
 0x246   :  { %15593 = vst [vmem:[#allocation19_spill] sm:$0xff] %v13351_v24  ;;  %9349 = vmatmul.mubr.msk.bf16.gmra.mxu1 %vm1054_vm1, %v13351_v24  ;;  %v13376_v1 = vadd.f32 %v8074_v23, %v13167_v62  ;;  %v5632_v35 = vrot.slane %v15596_v0, 1  ;;  %v386_v46 = vsub.s32 %v62_v61, %v385_v3  ;;  %v15597_v17 = vld [vmem:[#allocation68_spill] sm:$0xff]  ;;  %v13390_v29 = vsel %vm13353_vm11, 1.0, %v15574_v56  ;;  %v15599_v23 = vld [vmem:[#allocation102_spill] sm:$0xff]  ;;  %v13397_v26 = vpop.f32.mrf.mxu0 }
 0x247   :  { %v13383_v58 = vmul.u32.u64.low 3817748708, %v63_v19  ;;  %v13384_v44 = vmul.u32.u64.high 3817748708, %v63_v19, %v13383_v58  ;;  %v5633_v8 = vrot.slane %v15597_v17, 2  ;;  %15598 = vst [vmem:[#allocation94_spill] sm:$0xff] %v13390_v29  ;;  %v3688_v62 = vmax.f32 %v3652_v43, 0.0  ;;  %v13395_v4 = vpop.f32.mrf.mxu1  ;;  %15601 = vst [vmem:[#allocation23_spill] sm:$0xff] %v13397_v26 }
 0x248   :  { %v3303_v6 = vadd.f32 %v15600_v18, %v15599_v23  ;;  %vm494_vm10 = vcmp.ne.s32.totalorder %v386_v46, 0  ;;  %vm530_vm14 = vcmp.lt.s32.totalorder %v386_v46, 0  ;;  %v602_v61 = vadd.s32 18, %v386_v46  ;;  %v15602_v43 = vld [vmem:[#allocation105_spill] sm:$0xff]  ;;  %v13406_v18 = vpop.f32.mrf.mxu0  ;;  %v15636_v17 = vld [vmem:[#allocation103_spill] sm:$0xff] }
 0x249   :  { %v417_v3 = vshrl.u32 %v13368_v25, 4  ;;  %vm566_vm0 = vmand %vm530_vm14, %vm494_vm10  ;;  %v5634_v58 = vor.u32 %v5633_v8, %v5632_v35  ;;  %v13402_v22 = vadd.s32 272, %v15583_v48  ;;  %v3308_v53 = vadd.f32 %v15603_v41, %v15602_v43  ;;  %v13408_v23 = vpop.f32.mrf.mxu1 }
 0x24a   :  { %v3611_v50 = vadd.f32 %v13196_v37, %v3303_v6  ;;  %15604 = vst [vmem:[#allocation77_spill] sm:$0xff] %v13408_v23  ;;  %v638_v26 = vsel %vm566_vm0, %v602_v61, %v386_v46  ;;  %v395_v25 = vshrl.u32 %v13384_v44, 4  ;;  %v15605_v37 = vld [vmem:[#allocation73_spill] sm:$0xff]  ;;  %v13418_v41 = vpop.f32.mrf.mxu0  ;;  %v13530_v40 = vadd.s32 264, %v15583_v48 }
 0x24b   :  { %v418_v24 = vmul.u32 18, %v417_v3  ;;  %vm674_vm9 = vcmp.lt.s32.totalorder %v638_v26, 16  ;;  %v5635_v6 = vsel %vm2050_vm5, %v13222_v14, %v5634_v58  ;;  %v13415_v8 = vadd.f32 %v13204_v13, %v3308_v53  ;;  %v13420_v43 = vpop.f32.mrf.mxu1  ;;  %v15607_v26 = vld [vmem:[#allocation62_spill] sm:$0xff] }
 0x24c   :  { %v5636_v35 = vrot.slane %v15605_v37, 1  ;;  %v13423_v46 = vsel %vm674_vm9, 1.0, %v15574_v56  ;;  %v396_v3 = vmul.u32 18, %v395_v25  ;;  %9310 = vmatprep.mubr.msk.bf16.mxu0 %vm1054_vm1, %v5635_v6  ;;  %v5637_v44 = vrot.slane %v15607_v26, 2  ;;  %v13433_v23 = vpop.f32.mrf.mxu0  ;;  %v15626_v26 = vld [vmem:[#allocation44_spill] sm:$0xff] }
 0x24d   :  { %15606 = vst [vmem:[#allocation97_spill] sm:$0xff] %v13423_v46  ;;  %v419_v61 = vsub.s32 %v65_v21, %v418_v24  ;;  %v3724_v14 = vmul.f32 %v13423_v46, %v3688_v62  ;;  %v3653_v13 = vadd.f32 %v12890_v39, %v3611_v50  ;;  %v13435_v9 = vpop.f32.mrf.mxu1  ;;  %v3655_v62 = vadd.f32 %v12890_v39, %v3613_v16 }
 0x24e   :  { %v13430_v53 = vmul.u32.u64.low 3817748708, %v13402_v22  ;;  %v13431_v52 = vmul.u32.u64.high 3817748708, %v13402_v22, %v13430_v53  ;;  %v397_v24 = vsub.s32 %v63_v19, %v396_v3  ;;  %v13443_v50 = vor.u32 %v5637_v44, %v5636_v35  ;;  %v13448_v30 = vpop.f32.mrf.mxu0 }
 0x24f   :  { %vm497_vm12 = vcmp.ne.s32.totalorder %v419_v61, 0  ;;  %vm533_vm3 = vcmp.lt.s32.totalorder %v419_v61, 0  ;;  %v605_v21 = vadd.s32 18, %v419_v61  ;;  %v3788_v25 = vsel %vm3732_vm8, %v3724_v14, 0.0  ;;  %v9734_v53 = vld [vmem:[%s14833_s0 + $0x11c] sm:$0xff]   ;;  %15610 = vst [vmem:[#allocation96_spill] sm:$0xff] %v13448_v30  ;;  %v13450_v11 = vpop.f32.mrf.mxu1 }
 0x250   :  { %vm13438_vm7 = vmand %vm533_vm3, %vm497_vm12  ;;  %v5966_v46 = vrot.slane %v9734_v53, 2  ;;  %v3789_v19 = vadd.f32 %v3788_v25, %v13358_v10  ;;  %vm495_vm13 = vcmp.ne.s32.totalorder %v397_v24, 0  ;;  %vm531_vm2 = vcmp.lt.s32.totalorder %v397_v24, 0  ;;  %v13462_v53 = vpop.f32.mrf.mxu0  ;;  %v15619_v25 = vld [vmem:[#allocation49_spill] sm:$0xff] }
 0x251   :  { %v641_v3 = vsel %vm13438_vm7, %v605_v21, %v419_v61  ;;  %vm13455_vm15 = vmand %vm531_vm2, %vm495_vm13  ;;  %v603_v16 = vadd.s32 18, %v397_v24  ;;  %v3689_v35 = vmax.f32 %v3653_v13, 0.0  ;;  %v450_v44 = vshrl.u32 %v13431_v52, 4  ;;  %v13464_v30 = vpop.f32.mrf.mxu1  ;;  %v15618_v13 = vld [vmem:[#allocation106_spill] sm:$0xff] }
 0x252   :  { %v5639_v14 = vsel %vm2050_vm5, %v5634_v58, %v13443_v50  ;;  %15613 = vst [vmem:[#allocation3_spill] sm:$0xff] %v13464_v30  ;;  %vm13466_vm11 = vcmp.lt.s32.totalorder %v641_v3, 16  ;;  %v15616_v61 = vrot.slane %v13325_v63, 2  ;;  %v66_v52 = vadd.s32 256, %v15583_v48  ;;  %v13486_v63 = vld [vmem:[%s14833_s0 + $0x124] sm:$0xff]  }
 0x253   :  { %9311 = vmatmul.mubr.msk.bf16.gmra.mxu0 %vm1054_vm1, %v5639_v14  ;;  %v3306_v58 = vadd.f32 %v15619_v25, %v15618_v13  ;;  %v3691_v6 = vmax.f32 %v3655_v62, 0.0  ;;  %v639_v30 = vsel %vm13455_vm15, %v603_v16, %v397_v24  ;;  %v451_v3 = vmul.u32 18, %v450_v44  ;;  %v13491_v57 = vpop.f32.mrf.mxu1 }
 0x254   :  { %v13474_v21 = vsel %vm2406_vm4, %v15616_v61, %v5966_v46  ;;  %v15019_v14 = vrot.slane %v13486_v63, 2  ;;  %v13489_v61 = vpop.f32.mrf.mxu0  ;;  %vm675_vm10 = vcmp.lt.s32.totalorder %v639_v30, 16  ;;  %v13500_v39 = vsel %vm13466_vm11, 1.0, %v15574_v56 }
 0x255   :  { %15617 = vst [vmem:[#allocation21_spill] sm:$0xff] %v13474_v21  ;;  %9352 = vmatprep.mubr.msk.bf16.mxu1 %vm1054_vm1, %v13474_v21  ;;  %v13493_v62 = vmul.u32.u64.low 3817748708, %v66_v52  ;;  %v13494_v13 = vmul.u32.u64.high 3817748708, %v66_v52, %v13493_v62  ;;  %v3614_v24 = vadd.f32 %v13212_v28, %v3306_v58  ;;  %15620 = vst [vmem:[#allocation8_spill] sm:$0xff] %v13500_v39  ;;  %v13503_v16 = vsel %vm675_vm10, 1.0, %v15574_v56 }
 0x256   :  { %15621 = vst [vmem:[#allocation14_spill] sm:$0xff] %v13503_v16  ;;  %v13506_v44 = vsub.s32 %v13402_v22, %v451_v3  ;;  %v13511_v30 = vsel %vm2406_vm4, %v5966_v46, %v15019_v14  ;;  %v13513_v25 = vpop.f32.mrf.mxu0  ;;  %v13515_v62 = vpop.f32.mrf.mxu1  ;;  %v15623_v28 = vmax.f32 %v13338_v12, 0.0  ;;  %v3725_v58 = vmul.f32 %v13503_v16, %v3689_v35  ;;  %v15624_v22 = vld [vmem:[#allocation108_spill] sm:$0xff] }
 0x257   :  { %15622 = vst [vmem:[#allocation90_spill] sm:$0xff] %v13511_v30  ;;  %9353 = vmatmul.mubr.msk.bf16.gmra.mxu1 %vm1054_vm1, %v13511_v30  ;;  %v15625_v3 = vld [vmem:[#allocation100_spill] sm:$0xff]  ;;  %v15627_v46 = vmax.f32 %v13376_v1, 0.0  ;;  %v3727_v35 = vmul.f32 %v13500_v39, %v3691_v6  ;;  %v15635_v30 = vld [vmem:[#allocation113_spill] sm:$0xff]  ;;  %v5641_v42 = vrot.slane %v15638_v33, 2  ;;  %v13598_v33 = vadd.f32 %v13214_v51, %v13263_v45 }
 0x258   :  { %v3726_v10 = vmul.f32 %v13390_v29, %v15623_v28  ;;  %v3309_v21 = vadd.f32 %v15625_v3, %v15624_v22  ;;  %v13532_v12 = vpop.f32.mrf.mxu0  ;;  %v13534_v28 = vpop.f32.mrf.mxu1  ;;  %v3790_v16 = vsel %vm3732_vm8, %v3725_v58, 0.0  ;;  %v428_v29 = vshrl.u32 %v13494_v13, 4 }
 0x259   :  { %v4307_v14 = vsel %vm3732_vm8, %v15627_v46, 0.0  ;;  %15628 = vst [vmem:[#allocation16_spill] sm:$0xff] %v13532_v12  ;;  %15629 = vst [vmem:[#allocation98_spill] sm:$0xff] %v13534_v28  ;;  %v3791_v3 = vadd.f32 %v3790_v16, %v3789_v19  ;;  %vm500_vm14 = vcmp.ne.s32.totalorder %v13506_v44, 0  ;;  %vm536_vm0 = vcmp.lt.s32.totalorder %v13506_v44, 0 }
 0x25a   :  { %v13540_v22 = vadd.f32 %v13232_v47, %v3309_v21  ;;  %v13545_v46 = vpop.f32.mrf.mxu0  ;;  %v13547_v37 = vpop.f32.mrf.mxu1  ;;  %v3792_v6 = vsel %vm3732_vm8, %v3726_v10, 0.0  ;;  %v4308_v39 = vrot.slane %v4307_v14, 4  ;;  %v429_v58 = vmul.u32 18, %v428_v29  ;;  %v13553_v47 = vld [vmem:[%s14839_s4] ss:$0 sm:$0xff]  ;;  %vm13568_vm9 = vmand %vm536_vm0, %vm500_vm14 }
 0x25b   :  { %15631 = vst [vmem:[#allocation79_spill] sm:$0xff] %v13547_v37  ;;  %v3656_v21 = vadd.f32 %v13553_v47, %v3614_v24  ;;  %v3793_v19 = vadd.f32 %v3792_v6, %v3791_v3  ;;  %v608_v13 = vadd.s32 18, %v13506_v44  ;;  %v3794_v29 = vsel %vm3732_vm8, %v3727_v35, 0.0 }
 0x25c   :  { %15630 = vst [vmem:[#allocation34_spill] sm:$0xff] %v13540_v22  ;;  %v13558_v16 = vmul.u32.u64.low 3817748708, %v13530_v40  ;;  %v13559_v1 = vmul.u32.u64.high 3817748708, %v13530_v40, %v13558_v16  ;;  %v13561_v12 = vpop.f32.mrf.mxu0  ;;  %v13563_v37 = vpop.f32.mrf.mxu1  ;;  %v13574_v24 = vadd.f32 %v13553_v47, %v13415_v8  ;;  %v430_v3 = vsub.s32 %v66_v52, %v429_v58  ;;  %v15637_v22 = vld [vmem:[#allocation81_spill] sm:$0xff] }
 0x25d   :  { %15632 = vst [vmem:[#allocation60_spill] sm:$0xff] %v13563_v37  ;;  %v13577_v6 = vadd.s32 280, %v15583_v48  ;;  %v3795_v16 = vadd.f32 %v3794_v29, %v3793_v19  ;;  %v3307_v0 = vadd.f32 %v15636_v17, %v15635_v30  ;;  %v5640_v35 = vrot.slane %v15637_v22, 1 }
 0x25e   :  { %v13583_v2 = vpop.f32.mrf.mxu0  ;;  %v13585_v37 = vpop.f32.mrf.mxu1  ;;  %vm498_vm12 = vcmp.ne.s32.totalorder %v430_v3, 0  ;;  %vm534_vm3 = vcmp.lt.s32.totalorder %v430_v3, 0  ;;  %v606_v8 = vadd.s32 18, %v430_v3  ;;  %v3692_v28 = vmax.f32 %v3656_v21, 0.0  ;;  %v15641_v21 = vld [vmem:[#allocation82_spill] sm:$0xff] }
 0x25f   :  { %15639 = vst [vmem:[#allocation115_spill] sm:$0xff] %v13585_v37  ;;  %v644_v48 = vsel %vm13568_vm9, %v608_v13, %v13506_v44  ;;  %vm570_vm7 = vmand %vm534_vm3, %vm498_vm12  ;;  %v439_v52 = vshrl.u32 %v13559_v1, 4  ;;  %v3615_v17 = vadd.f32 %v13248_v49, %v3307_v0  ;;  %v5642_v30 = vor.u32 %v5641_v42, %v5640_v35  ;;  %v15642_v37 = vld [vmem:[#allocation76_spill] sm:$0xff] }
 0x260   :  { %v13592_v58 = vpop.f32.mrf.mxu0  ;;  %v13594_v19 = vpop.f32.mrf.mxu1  ;;  %v642_v29 = vsel %vm570_vm7, %v606_v8, %v430_v3  ;;  %v5644_v22 = vrot.slane %v15641_v21, 1  ;;  %v5645_v10 = vrot.slane %v15642_v37, 2  ;;  %v9737_v3 = vld [vmem:[%s14833_s0 + $0x12c] sm:$0xff]   ;;  %v13618_v8 = vadd.f32 %v4308_v39, %v4307_v14  ;;  %v15661_v21 = vld [vmem:[#allocation93_spill] sm:$0xff] }
 0x261   :  { %15640 = vst [vmem:[#allocation53_spill] sm:$0xff] %v13592_v58  ;;  %vm678_vm13 = vcmp.lt.s32.totalorder %v642_v29, 16  ;;  %v13603_v44 = vmul.u32.u64.low 3817748708, %v13577_v6  ;;  %v13604_v1 = vmul.u32.u64.high 3817748708, %v13577_v6, %v13603_v44  ;;  %v440_v49 = vmul.u32 18, %v439_v52  ;;  %v15659_v58 = vld [vmem:[#allocation85_spill] sm:$0xff] }
 0x262   :  { %v13606_v42 = vpop.f32.mrf.mxu0  ;;  %v13608_v0 = vpop.f32.mrf.mxu1  ;;  %v13611_v13 = vsel %vm678_vm13, 1.0, %v15574_v56  ;;  %v5643_v51 = vsel %vm2050_vm5, %v13443_v50, %v5642_v30  ;;  %v5646_v45 = vor.u32 %v5645_v10, %v5644_v22  ;;  %v5970_v35 = vrot.slane %v9737_v3, 2 }
 0x263   :  { %15643 = vst [vmem:[#allocation112_spill] sm:$0xff] %v13608_v0  ;;  %15644 = vst [vmem:[#allocation104_spill] sm:$0xff] %v13611_v13  ;;  %vm13620_vm2 = vcmp.lt.s32.totalorder %v644_v48, 16  ;;  %v3728_v29 = vmul.f32 %v13611_v13, %v3692_v28  ;;  %v3657_v44 = vadd.f32 %v13553_v47, %v3615_v17  ;;  %9314 = vmatprep.mubr.msk.bf16.mxu0 %vm1054_vm1, %v5643_v51  ;;  %v15647_v14 = vrot.slane %v13486_v63, 2 }
 0x264   :  { %v13627_v0 = vpop.f32.mrf.mxu0  ;;  %v13629_v50 = vpop.f32.mrf.mxu1  ;;  %v441_v22 = vsub.s32 %v13530_v40, %v440_v49  ;;  %v5647_v10 = vsel %vm2050_vm5, %v5642_v30, %v5646_v45  ;;  %v13640_v28 = vadd.f32 %v13234_v59, %v13283_v7  ;;  %v15649_v48 = vmax.f32 %v13373_v20, 0.0  ;;  %v9738_v40 = vld [vmem:[%s14833_s0 + $0x134] sm:$0xff]  }
 0x265   :  { %v13636_v39 = vsel %vm2406_vm4, %v15647_v14, %v5970_v35  ;;  %v3796_v51 = vsel %vm3732_vm8, %v3728_v29, 0.0  ;;  %9315 = vmatmul.mubr.msk.bf16.gmra.mxu0 %vm1054_vm1, %v5647_v10  ;;  %v5972_v63 = vrot.slane %v9738_v40, 2  ;;  %v13654_v59 = vadd.f32 %v13250_v27, %v13304_v38 }
 0x266   :  { %15648 = vst [vmem:[#allocation109_spill] sm:$0xff] %v13636_v39  ;;  %v4234_v17 = vsel %vm3732_vm8, %v15649_v48, 0.0  ;;  %9356 = vmatprep.mubr.msk.bf16.mxu1 %vm1054_vm1, %v13636_v39  ;;  %v13656_v7 = vpop.f32.mrf.mxu0  ;;  %v13658_v20 = vpop.f32.mrf.mxu1  ;;  %v3694_v30 = vmax.f32 %v13574_v24, 0.0  ;;  %v3797_v49 = vadd.f32 %v3796_v51, %v3795_v16  ;;  %vm499_vm15 = vcmp.ne.s32.totalorder %v441_v22, 0  ;;  %v15656_v48 = vld [vmem:[#allocation83_spill] sm:$0xff]  ;;  %v15657_v51 = vld [vmem:[#allocation80_spill] sm:$0xff] }
 0x267   :  { %15650 = vst [vmem:[#allocation24_spill] sm:$0xff] %v13654_v59  ;;  %vm535_vm11 = vcmp.lt.s32.totalorder %v441_v22, 0  ;;  %v4310_v3 = vrot.slane %v13618_v8, 2  ;;  %v13665_v29 = vsel %vm13620_vm2, 1.0, %v15574_v56  ;;  %v607_v27 = vadd.s32 18, %v441_v22 }
 0x268   :  { %15651 = vst [vmem:[#allocation88_spill] sm:$0xff] %v13665_v29  ;;  %vm13667_vm10 = vmand %vm535_vm11, %vm499_vm15  ;;  %v13672_v38 = vsel %vm2406_vm4, %v5970_v35, %v5972_v63  ;;  %v13674_v14 = vpop.f32.mrf.mxu0  ;;  %v13676_v24 = vpop.f32.mrf.mxu1  ;;  %v3693_v16 = vmax.f32 %v3657_v44, 0.0  ;;  %v5648_v52 = vrot.slane %v15656_v48, 1  ;;  %v5649_v40 = vrot.slane %v15657_v51, 2 }
 0x269   :  { %15654 = vst [vmem:[#allocation6_spill] sm:$0xff] %v13672_v38  ;;  %15655 = vst [vmem:[#allocation56_spill] sm:$0xff] %v13674_v14  ;;  %9357 = vmatmul.mubr.msk.bf16.gmra.mxu1 %vm1054_vm1, %v13672_v38  ;;  %v13684_v13 = vadd.f32 %v13285_v36, %v13333_v32  ;;  %v643_v35 = vsel %vm13667_vm10, %v607_v27, %v441_v22  ;;  %v5652_v39 = vrot.slane %v15659_v58, 1  ;;  %v15660_v14 = vld [vmem:[#allocation78_spill] sm:$0xff]  ;;  %v13691_v44 = vrot.slane %v15661_v21, 2  ;;  %v15664_v36 = vld [vmem:[#allocation59_spill] sm:$0xff] }
 0x26a   :  { %v5653_v37 = vrot.slane %v15660_v14, 2  ;;  %v13693_v59 = vpop.f32.mrf.mxu0  ;;  %v13695_v38 = vpop.f32.mrf.mxu1  ;;  %v3730_v51 = vmul.f32 %v13665_v29, %v3694_v30  ;;  %vm679_vm14 = vcmp.lt.s32.totalorder %v643_v35, 16  ;;  %v5650_v48 = vor.u32 %v5649_v40, %v5648_v52 }
 0x26b   :  { %15658 = vst [vmem:[#allocation99_spill] sm:$0xff] %v13684_v13  ;;  %15662 = vst [vmem:[#allocation26_spill] sm:$0xff] %v13691_v44  ;;  %v5976_v32 = vrot.slane %v15664_v36, 2  ;;  %v13700_v10 = vsel %vm679_vm14, 1.0, %v15574_v56  ;;  %v13704_v27 = vsel %vm2406_vm4, %v5972_v63, %v13691_v44  ;;  %v4235_v14 = vadd.f32 %v4234_v17, %v13340_v60 }
 0x26c   :  { %15663 = vst [vmem:[#allocation102_spill] sm:$0xff] %v13695_v38  ;;  %15665 = vst [vmem:[#allocation10_spill] sm:$0xff] %v13700_v10  ;;  %v5654_v22 = vor.u32 %v5653_v37, %v5652_v39  ;;  %v13707_v58 = vpop.f32.mrf.mxu0  ;;  %v13709_v13 = vpop.f32.mrf.mxu1  ;;  %v461_v30 = vshrl.u32 %v13604_v1, 4  ;;  %v3729_v52 = vmul.f32 %v13700_v10, %v3693_v16  ;;  %v5651_v40 = vsel %vm2050_vm5, %v5646_v45, %v5650_v48  ;;  %v15670_v38 = vld [vmem:[#allocation17_spill] sm:$0xff] }
 0x26d   :  { %15666 = vst [vmem:[#allocation105_spill] sm:$0xff] %v13704_v27  ;;  %9360 = vmatprep.mubr.msk.bf16.mxu1 %vm1054_vm1, %v13704_v27  ;;  %v13718_v37 = vadd.f32 %v13306_v55, %v13365_v34  ;;  %9318 = vmatprep.mubr.msk.bf16.mxu0 %vm1054_vm1, %v5651_v40  ;;  %v5977_v39 = vsel %vm2406_vm4, %v13691_v44, %v5976_v32  ;;  %v4236_v17 = vrot.slane %v4235_v14, 4  ;;  %v15030_v34 = vshrl.u32 %v15661_v21, 16  ;;  %v15671_v27 = vld [vmem:[#allocation43_spill] sm:$0xff] }
 0x26e   :  { %v5655_v60 = vsel %vm2050_vm5, %v5650_v48, %v5654_v22  ;;  %v13726_v1 = vadd.f32 %v13317_v15, %v13379_v31  ;;  %v13728_v45 = vpop.f32.mrf.mxu0  ;;  %v13730_v63 = vpop.f32.mrf.mxu1  ;;  %v4311_v16 = vadd.f32 %v4310_v3, %v13618_v8  ;;  %v3798_v55 = vsel %vm3732_vm8, %v3729_v52, 0.0  ;;  %v15668_v52 = vld [vmem:[#allocation40_spill] sm:$0xff] }
 0x26f   :  { %9319 = vmatmul.mubr.msk.bf16.gmra.mxu0 %vm1054_vm1, %v5655_v60  ;;  %v15032_v48 = vshll.u32 %v15661_v21, 16  ;;  %v3800_v35 = vsel %vm3732_vm8, %v3730_v51, 0.0  ;;  %v3799_v32 = vadd.f32 %v3798_v55, %v3797_v49  ;;  %v4237_v40 = vadd.f32 %v4236_v17, %v4235_v14 }
 0x270   :  { %v13740_v15 = vadd.f32 %v13363_v5, %v13406_v18  ;;  %v13742_v31 = vpop.f32.mrf.mxu0  ;;  %v13744_v10 = vpop.f32.mrf.mxu1  ;;  %v5659_v8 = vrot.slane %v15030_v34, 1  ;;  %v5666_v51 = vshrl.u32 %v15664_v36, 16  ;;  %v5669_v49 = vshll.u32 %v15664_v36, 16  ;;  %v15672_v36 = vld [vmem:[#allocation33_spill] sm:$0xff] }
 0x271   :  { %15667 = vst [vmem:[#allocation18_spill] sm:$0xff] %v13742_v31  ;;  %9361 = vmatmul.mubr.msk.bf16.gmra.mxu1 %vm1054_vm1, %v5977_v39  ;;  %v5662_v3 = vrot.slane %v15032_v48, 2  ;;  %v13753_v14 = vmul.u32 18, %v461_v30  ;;  %v13755_v5 = vadd.f32 %v3800_v35, %v3799_v32  ;;  %v4238_v18 = vrot.slane %v4237_v40, 2 }
 0x272   :  { %v6474_v60 = vrot.slane %v15668_v52, 2  ;;  %v13758_v17 = vpop.f32.mrf.mxu0  ;;  %v13760_v39 = vpop.f32.mrf.mxu1  ;;  %v5668_v34 = vrot.slane %v5666_v51, 1  ;;  %v5671_v29 = vrot.slane %v5669_v49, 2  ;;  %v6475_v48 = vrot.slane %v15670_v38, 3  ;;  %v15673_v51 = vld [vmem:[#allocation41_spill] sm:$0xff] }
 0x273   :  { %15669 = vst [vmem:[#allocation106_spill] sm:$0xff] %v13760_v39  ;;  %v5663_v55 = vor.u32 %v5662_v3, %v5659_v8  ;;  %v4239_v31 = vadd.f32 %v4238_v18, %v4237_v40  ;;  %v6477_v44 = vrot.slane %v15671_v27, 2  ;;  %v6478_v30 = vrot.slane %v15672_v36, 3 }
 0x274   :  { %v13767_v35 = vadd.f32 %v13381_v54, %v13418_v41  ;;  %v13769_v32 = vpop.f32.mrf.mxu0  ;;  %v13771_v52 = vpop.f32.mrf.mxu1  ;;  %v5672_v8 = vor.u32 %v5671_v29, %v5668_v34  ;;  %v6476_v3 = vor.u32 %v6475_v48, %v6474_v60  ;;  %v6482_v49 = vrot.slane %v15673_v51, 3  ;;  %v15675_v48 = vld [vmem:[#allocation46_spill] sm:$0xff] }
 0x275   :  { %v5664_v39 = vsel %vm2050_vm5, %v5654_v22, %v5663_v55  ;;  %v4240_v38 = vrot.slane %v4239_v31, 1  ;;  %v4312_v40 = vrot.slane %v4311_v16, 1  ;;  %v6479_v27 = vor.u32 %v6478_v30, %v6477_v44 }
 0x276   :  { %9322 = vmatprep.mubr.msk.bf16.mxu0 %vm1054_vm1, %v5664_v39  ;;  %v13778_v18 = vadd.f32 %v13395_v4, %v13433_v23  ;;  %v13780_v54 = vpop.f32.mrf.mxu0  ;;  %v13782_v41 = vpop.f32.mrf.mxu1  ;;  %v5673_v36 = vsel %vm2050_vm5, %v5663_v55, %v5672_v8  ;;  %v15674_v29 = vrot.slane %v15626_v26, 2  ;;  %v13789_v34 = vadd.f32 %v13420_v43, %v13462_v53  ;;  %v15676_v23 = vld [vmem:[#allocation37_spill] sm:$0xff] }
 0x277   :  { %v6485_v60 = vrot.slane %v15675_v48, 2  ;;  %v4241_v44 = vadd.f32 %v4240_v38, %v4239_v31  ;;  %9323 = vmatmul.mubr.msk.bf16.gmra.mxu0 %vm1054_vm1, %v5673_v36  ;;  %v6480_v4 = vsel %vm2950_vm6, %v6476_v3, %v6479_v27  ;;  %v6486_v39 = vrot.slane %v15676_v23, 3  ;;  %v15678_v53 = vld [vmem:[#allocation57_spill] sm:$0xff]  ;;  %v15679_v31 = vld [vmem:[#allocation47_spill] sm:$0xff]  ;;  %v15680_v3 = vld [vmem:[#allocation42_spill] sm:$0xff] }
 0x278   :  { %v6483_v22 = vor.u32 %v6482_v49, %v15674_v29  ;;  %v13797_v30 = vadd.f32 %v13435_v9, %v13489_v61  ;;  %v13799_v55 = vpop.f32.mrf.mxu0  ;;  %v13801_v26 = vpop.f32.mrf.mxu1  ;;  %9404 = vmatprep.mubr.msk.bf16.mxu1 %vm1054_vm1, %v6480_v4  ;;  %9366 = vmatprep.mubr.msk.bf16.mxu0 %vm1054_vm1, %v15678_v53  ;;  %v6489_v8 = vrot.slane %v15679_v31, 2  ;;  %v6490_v51 = vrot.slane %v15680_v3, 3  ;;  %v15681_v48 = vld [vmem:[#allocation29_spill] sm:$0xff]  ;;  %v15682_v23 = vld [vmem:[#allocation48_spill] sm:$0xff]  ;;  %v15683_v31 = vld [vmem:[#allocation38_spill] sm:$0xff] }
 0x279   :  { %15677 = vst [vmem:[#allocation49_spill] sm:$0xff] %v13799_v55  ;;  %v13811_v49 = vadd.f32 %v13450_v11, %v13513_v25  ;;  %v4243_v9 = vmul.f32 0.00390625, %v4241_v44  ;;  %v4313_v61 = vadd.f32 %v4312_v40, %v4311_v16  ;;  %v6487_v38 = vor.u32 %v6486_v39, %v6485_v60 }
 0x27a   :  { %v6484_v43 = vsel %vm2950_vm6, %v6479_v27, %v6483_v22  ;;  %v13816_v36 = vadd.f32 %v13491_v57, %v13545_v46  ;;  %v9172_v27 = vpop.f32.mrf.mxu0  ;;  %v13818_v29 = vpop.f32.mrf.mxu1  ;;  %v6491_v4 = vor.u32 %v6490_v51, %v6489_v8  ;;  %v6493_v53 = vrot.slane %v15682_v23, 2  ;;  %v15684_v46 = vld [vmem:[#allocation98_spill] sm:$0xff] }
 0x27b   :  { %9405 = vmatmul.mubr.msk.bf16.vlgmr.msra.gmra.mxu1 %vm1054_vm1, %v6484_v43  ;;  %v6494_v11 = vrot.slane %v15683_v31, 3  ;;  %v13825_v25 = vadd.f32 %v13515_v62, %v13561_v12  ;;  %4317 = vrot.lane.b32.xlu1 %v4243_v9, %s9763_s19  ;;  %v6488_v57 = vsel %vm2950_vm6, %v6483_v22, %v6487_v38  ;;  %v13831_v16 = vadd.f32 %v15684_v46, %v13583_v2  ;;  %v15685_v62 = vld [vmem:[#allocation60_spill] sm:$0xff]  ;;  %v15686_v43 = vld [vmem:[#allocation115_spill] sm:$0xff]  ;;  %v15687_v9 = vld [vmem:[#allocation66_spill] sm:$0xff] }
 0x27c   :  { %9479 = vmatpush3.bf16.msra.mxu1 %v15681_v48  ;;  %v4828_v40 = vpop.f32.mrf.mxu0  ;;  %v13833_v60 = vpop.f32.mrf.mxu1  ;;  %9408 = vmatprep.mubr.msk.bf16.mxu1 %vm1054_vm1, %v6488_v57  ;;  %v13839_v12 = vadd.f32 %v15685_v62, %v13606_v42  ;;  %v463_v39 = vsub.s32 %v13577_v6, %v13753_v14  ;;  %v4315_v22 = vmul.f32 0.125, %v4313_v61  ;;  %v13845_v2 = vadd.f32 %v15686_v43, %v13627_v0  ;;  %v15688_v23 = vld [vmem:[#allocation50_spill] sm:$0xff]  ;;  %v15689_v6 = vld [vmem:[#allocation84_spill] sm:$0xff]  ;;  %v15690_v14 = vld [vmem:[#allocation67_spill] sm:$0xff] }
 0x27d   :  { %9512 = vmatprep.subr.bf16.mxu1 %v15574_v56  ;;  %v6495_v44 = vor.u32 %v6494_v11, %v6493_v53  ;;  %v6492_v51 = vsel %vm2950_vm6, %v6487_v38, %v6491_v4  ;;  %v6497_v48 = vrot.slane %v15687_v9, 2  ;;  %v6498_v53 = vrot.slane %v15688_v23, 3  ;;  %v15691_v31 = vld [vmem:[#allocation55_spill] sm:$0xff]  ;;  %v15692_v46 = vld [vmem:[#allocation89_spill] sm:$0xff] }
 0x27e   :  { %v9173_v8 = vpop.f32.mrf.mxu0  ;;  %v13847_v3 = vpop.f32.mrf.mxu1  ;;  %v13854_v42 = vadd.f32 %v13594_v19, %v13656_v7  ;;  %v6501_v61 = vrot.slane %v15690_v14, 2  ;;  %v6502_v38 = vrot.slane %v15691_v31, 3  ;;  %v13870_v19 = vadd.f32 %v13629_v50, %v13693_v59 }
 0x27f   :  { %4321 = vrot.lane.b32.xlu1 %v4315_v22, %s9764_s20  ;;  %9367 = vmatmul.mubr.msk.bf16.vlgmr.msra.gmra.mxu0 %vm1054_vm1, %v15689_v6  ;;  %v6496_v0 = vsel %vm2950_vm6, %v6491_v4, %v6495_v44  ;;  %v13874_v7 = vadd.f32 %v13658_v20, %v13707_v58  ;;  %v15693_v4 = vld [vmem:[#allocation30_spill] sm:$0xff]  ;;  %v13880_v62 = vadd.f32 %v13676_v24, %v13728_v45  ;;  %vm501_vm5 = vcmp.ne.s32.totalorder %v463_v39, 0  ;;  %v15698_v6 = vld [vmem:[#allocation65_spill] sm:$0xff] }
 0x280   :  { %v13862_v11 = vpop.f32.mrf.mxu0  ;;  %v13864_v57 = vpop.f32.mrf.mxu1  ;;  %9370 = vmatprep.mubr.msk.bf16.mxu0 %vm1054_vm1, %v15692_v46  ;;  %9441 = vmatpush3.bf16.msra.mxu0 %v15693_v4  ;;  %vm537_vm0 = vcmp.lt.s32.totalorder %v463_v39, 0  ;;  %v6499_v50 = vor.u32 %v6498_v53, %v6497_v48  ;;  %v13887_v58 = vadd.f32 %v13709_v13, %v13758_v17  ;;  %v6503_v59 = vor.u32 %v6502_v38, %v6501_v61  ;;  %v15700_v61 = vld [vmem:[#allocation71_spill] sm:$0xff] }
 0x281   :  { %v13891_v20 = vadd.f32 %v13730_v63, %v13769_v32  ;;  %v609_v45 = vadd.s32 18, %v463_v39  ;;  %v13897_v9 = vadd.f32 %v13744_v10, %v13780_v54  ;;  %vm13899_vm9 = vmand %vm537_vm0, %vm501_vm5  ;;  %v13904_v13 = vadd.f32 %v13771_v52, %v9172_v27  ;;  %v15697_v32 = vld [vmem:[#allocation70_spill] sm:$0xff]  ;;  %v15699_v10 = vld [vmem:[#allocation91_spill] sm:$0xff] }
 0x282   :  { %v9216_v22 = vpop.f32.mrf.mxu0  ;;  %v13882_v43 = vpop.f32.mrf.mxu1  ;;  %v6500_v63 = vsel %vm2950_vm6, %v6495_v44, %v6499_v50  ;;  %v6505_v53 = vrot.slane %v15697_v32, 2  ;;  %v13912_v14 = vadd.f32 %v13782_v41, %v4828_v40  ;;  %v6504_v54 = vsel %vm2950_vm6, %v6499_v50, %v6503_v59  ;;  %v15701_v27 = vld [vmem:[#allocation58_spill] sm:$0xff]  ;;  %v15702_v40 = vld [vmem:[#allocation13_spill] sm:$0xff] }
 0x283   :  { %9409 = vmatmul.mubr.msk.bf16.gmra.mxu1 %vm1054_vm1, %v6492_v51  ;;  %15694 = vst [vmem:[#allocation108_spill] sm:$0xff] %v13882_v43  ;;  %v6509_v52 = vrot.slane %v15700_v61, 2  ;;  %v6510_v31 = vrot.slane %v15701_v27, 3  ;;  %v13920_v38 = vadd.f32 %v13801_v26, %v9173_v8  ;;  %v645_v41 = vsel %vm13899_vm9, %v609_v45, %v463_v39  ;;  %v15703_v50 = vld [vmem:[#allocation34_spill] sm:$0xff]  ;;  %v15705_v45 = vld [vmem:[#allocation24_spill] sm:$0xff]  ;;  %v15717_v43 = vld [vmem:[#allocation75_spill] sm:$0xff] }
 0x284   :  { %9412 = vmatprep.mubr.msk.bf16.mxu1 %vm1054_vm1, %v6496_v0  ;;  %v5181_v51 = vpop.f32.mrf.mxu0  ;;  %v13893_v24 = vpop.f32.mrf.mxu1  ;;  %v6506_v0 = vrot.slane %v15698_v6, 3  ;;  %v13931_v4 = vadd.f32 %v9216_v22, %v13598_v33  ;;  %v3659_v32 = vadd.f32 %v13553_v47, %v15703_v50  ;;  %vm681_vm12 = vcmp.lt.s32.totalorder %v645_v41, 16  ;;  %v15706_v33 = vld [vmem:[#allocation99_spill] sm:$0xff]  ;;  %v15710_v41 = vld [vmem:[#allocation20_spill] sm:$0xff] }
 0x285   :  { %v13937_v26 = vadd.f32 %v5181_v51, %v13640_v28  ;;  %vm15729_vm3 = vcmask 1044480  }
 0x286   :  { %v9217_v17 = vpop.f32.mrf.mxu0  ;;  %v13906_v48 = vpop.f32.mrf.mxu1  ;;  %v6507_v39 = vor.u32 %v6506_v0, %v6505_v53  ;;  %v3695_v28 = vmax.f32 %v3659_v32, 0.0  ;;  %v15708_v53 = vld [vmem:[#allocation72_spill] sm:$0xff]  ;;  %v15712_v32 = vld [vmem:[#allocation62_spill] sm:$0xff]  ;;  %vm15742_vm7 = vmmov %vm15729_vm3 }
 0x287   :  { %9371 = vmatmul.mubr.msk.bf16.gmra.mxu0 %vm1054_vm1, %v15699_v10  ;;  %v5327_v23 = vadd.f32 %v9217_v17, %v15705_v45  ;;  %v6511_v10 = vor.u32 %v6510_v31, %v6509_v52  ;;  %v6513_v0 = vrot.slane %v15708_v53, 2  ;;  %v15709_v52 = vld [vmem:[#allocation68_spill] sm:$0xff]  ;;  %vm15745_vm13 = vmmov %vm15729_vm3 }
 0x288   :  { %v13922_v44 = vpop.f32.mrf.mxu0  ;;  %v13924_v46 = vpop.f32.mrf.mxu1  ;;  %9374 = vmatprep.mubr.msk.bf16.mxu0 %vm1054_vm1, %v15702_v40  ;;  %v6508_v17 = vsel %vm2950_vm6, %v6503_v59, %v6507_v39  ;;  %v6514_v31 = vrot.slane %v15709_v52, 3  ;;  %v15714_v59 = vld [vmem:[#allocation2_spill] sm:$0xff]  ;;  %vm15747_vm2 = vmmov %vm15729_vm3 }
 0x289   :  { %v6512_v40 = vsel %vm2950_vm6, %v6507_v39, %v6511_v10  ;;  %vm15752_vm15 = vmmov %vm15747_vm2 }
 0x28a   :  { %v9220_v8 = vpop.f32.mrf.mxu0  ;;  %v13939_v6 = vpop.f32.mrf.mxu1  ;;  %v6515_v39 = vor.u32 %v6514_v31, %v6513_v0  ;;  %v15720_v31 = vld [vmem:[#allocation82_spill] sm:$0xff]  ;;  %vm15754_vm11 = vmmov %vm15747_vm2 }
 0x28b   :  { %9413 = vmatmul.mubr.msk.bf16.gmra.mxu1 %vm1054_vm1, %v6500_v63  ;;  %15704 = vst [vmem:[#allocation100_spill] sm:$0xff] %v13939_v6  ;;  %v13944_v22 = vadd.f32 %v9220_v8, %v15706_v33  ;;  %v6518_v8 = vrot.slane %v15712_v32, 3  ;;  %vm15758_vm10 = vmmov %vm15747_vm2 }
 0x28c   :  { %9416 = vmatprep.mubr.msk.bf16.mxu1 %vm1054_vm1, %v6504_v54  ;;  %v5197_v61 = vpop.f32.mrf.mxu0  ;;  %v13946_v47 = vpop.f32.mrf.mxu1  ;;  %v13954_v54 = vsel %vm681_vm12, 1.0, %v15574_v56  ;;  %vm15759_vm14 = vmmov %vm15747_vm2 }
 0x28d   :  { %v13949_v63 = vadd.f32 %v5197_v61, %v13718_v37  ;;  %15707 = vst [vmem:[#allocation44_spill] sm:$0xff] %v13954_v54  ;;  %v15711_v37 = vld [vmem:[#allocation73_spill] sm:$0xff]  ;;  %v3731_v53 = vmul.f32 %v13954_v54, %v3695_v28  ;;  %vm15763_vm5 = vmmov %vm15747_vm2 }
 0x28e   :  { %v9221_v51 = vpop.f32.mrf.mxu0  ;;  %v13951_v27 = vpop.f32.mrf.mxu1  ;;  %v6517_v50 = vrot.slane %v15711_v37, 2  ;;  %vm15764_vm0 = vmmov %vm15747_vm2 }
 0x28f   :  { %9375 = vmatmul.mubr.msk.bf16.gmra.mxu0 %vm1054_vm1, %v15710_v41  ;;  %v5331_v45 = vadd.f32 %v9221_v51, %v13726_v1  ;;  %v3802_v6 = vsel %vm3732_vm8, %v3731_v53, 0.0  ;;  %vm15765_vm9 = vmmov %vm15764_vm0 }
 0x290   :  { %v13965_v33 = vpop.f32.mrf.mxu0  ;;  %v13967_v61 = vpop.f32.mrf.mxu1  ;;  %9378 = vmatprep.mubr.msk.bf16.mxu0 %vm1054_vm1, %v15714_v59  ;;  %v6519_v1 = vor.u32 %v6518_v8, %v6517_v50  ;;  %v15716_v59 = vld [vmem:[#allocation81_spill] sm:$0xff]  ;;  %v13984_v0 = vadd.f32 %v3802_v6, %v13755_v5  ;;  %v6525_v50 = vrot.slane %v15720_v31, 2  ;;  %v15721_v8 = vld [vmem:[#allocation76_spill] sm:$0xff]  ;;  %v8117_v6 = vld [vmem:[%s14833_s0 + $0x148] sm:$0xf] }
 0x291   :  { %15713 = vst [vmem:[#allocation113_spill] sm:$0xff] %v13965_v33  ;;  %v6521_v33 = vrot.slane %v15716_v59, 2  ;;  %v6526_v53 = vrot.slane %v15721_v8, 3  ;;  %v14005_v59 = vadd.f32 %v13833_v60, %v13931_v4  ;;  %v9739_v60 = vld [vmem:[%s14833_s0 + $0x144] sm:$0xf]  ;;  %vm15766_vm12 = vmmov %vm15764_vm0 }
 0x292   :  { %v9224_v52 = vpop.f32.mrf.mxu0  ;;  %v13973_v41 = vpop.f32.mrf.mxu1  ;;  %15718 = vst [vmem:[#allocation93_spill] sm:$0xff] %v13984_v0  ;;  %v14020_v4 = vcombine.low %v9739_v60, %v8117_v6 }
 0x293   :  { %9417 = vmatmul.mubr.msk.bf16.gmra.mxu1 %vm1054_vm1, %v6508_v17  ;;  %15715 = vst [vmem:[#allocation103_spill] sm:$0xff] %v13973_v41  ;;  %v5334_v37 = vadd.f32 %v9224_v52, %v13740_v15  ;;  %v6516_v17 = vsel %vm2950_vm6, %v6511_v10, %v6515_v39  ;;  %v6522_v41 = vrot.slane %v15717_v43, 3  ;;  %v15719_v15 = vld [vmem:[#allocation107_spill] sm:$0xff] }
 0x294   :  { %9420 = vmatprep.mubr.msk.bf16.mxu1 %vm1054_vm1, %v6512_v40  ;;  %v5213_v51 = vpop.f32.mrf.mxu0  ;;  %v9266_v32 = vpop.f32.mrf.mxu1  ;;  %v15722_v10 = vld [vmem:[#allocation111_spill] sm:$0xff] }
 0x295   :  { %v5332_v55 = vadd.f32 %v5213_v51, %v13767_v35  ;;  %v6520_v35 = vsel %vm2950_vm6, %v6515_v39, %v6519_v1  ;;  %v6523_v43 = vor.u32 %v6522_v41, %v6521_v33  ;;  %v15723_v33 = vld [vmem:[#allocation83_spill] sm:$0xff]  ;;  %v14049_v60 = vadd.f32 %v13946_v47, %v5334_v37 }
 0x296   :  { %v9225_v28 = vpop.f32.mrf.mxu0  ;;  %v5458_v54 = vpop.f32.mrf.mxu1  ;;  %v6529_v41 = vrot.slane %v15723_v33, 2 }
 0x297   :  { %v5335_v40 = vadd.f32 %v9225_v28, %v13778_v18  ;;  %9379 = vmatmul.mubr.msk.bf16.gmra.mxu0 %vm1054_vm1, %v15719_v15  ;;  %v6527_v28 = vor.u32 %v6526_v53, %v6525_v50 }
 0x298   :  { %v13991_v52 = vpop.f32.mrf.mxu0  ;;  %v9267_v51 = vpop.f32.mrf.mxu1  ;;  %9382 = vmatprep.mubr.msk.bf16.mxu0 %vm1054_vm1, %v15722_v10  ;;  %v15724_v10 = vld [vmem:[#allocation80_spill] sm:$0xff] }
 0x29a   :  { %v9228_v18 = vpop.f32.mrf.mxu0  ;;  %v13996_v5 = vpop.f32.mrf.mxu1 }
 0x29b   :  { %9421 = vmatmul.mubr.msk.bf16.gmra.mxu1 %vm1054_vm1, %v6516_v17  ;;  %v5338_v39 = vadd.f32 %v9228_v18, %v13789_v34  ;;  %v14009_v17 = vadd.f32 %v13847_v3, %v13937_v26  ;;  %v6530_v34 = vrot.slane %v15724_v10, 3  ;;  %v14024_v3 = vadd.f32 %v13893_v24, %v13944_v22  ;;  %v15725_v26 = vld [vmem:[#allocation85_spill] sm:$0xff]  ;;  %v14035_v18 = vld [vmem:[%s14833_s0 + $0x14c] ss:$0 sps:$4 sm:$0xff]   ;;  %v15727_v22 = vld [vmem:[#allocation78_spill] sm:$0xff] }
 0x29c   :  { %9424 = vmatprep.mubr.msk.bf16.mxu1 %vm1054_vm1, %v6520_v35  ;;  %v5229_v15 = vpop.f32.mrf.mxu0  ;;  %v9270_v31 = vpop.f32.mrf.mxu1  ;;  %v14012_v35 = vadd.f32 %v13864_v57, %v5327_v23  ;;  %v14028_v57 = vadd.f32 %v13906_v48, %v13949_v63  ;;  %v6533_v23 = vrot.slane %v15725_v26, 2  ;;  %v15726_v24 = vld [vmem:[#allocation35_spill] sm:$0xff]  ;;  %v6528_v48 = vsel %vm2950_vm6, %v6523_v43, %v6527_v28 }
 0x29d   :  { %v5336_v8 = vadd.f32 %v5229_v15, %v13797_v30  ;;  %v6524_v30 = vsel %vm2950_vm6, %v6519_v1, %v6523_v43  ;;  %v14039_v15 = vadd.f32 %v13924_v46, %v5331_v45  ;;  %v6534_v63 = vrot.slane %v15727_v22, 3  ;;  %v15728_v26 = vld [vmem:[#allocation19_spill] sm:$0xff] }
 0x29e   :  { %v9229_v50 = vpop.f32.mrf.mxu0  ;;  %v5474_v53 = vpop.f32.mrf.mxu1  ;;  %v15036_v10 = vrot.slane %v14020_v4, 3  ;;  %v14055_v46 = vadd.f32 %v13951_v27, %v5332_v55  ;;  %v6531_v47 = vor.u32 %v6530_v34, %v6529_v41  ;;  %v6542_v22 = vshrl.u32 %v14020_v4, 16 }
 0x29f   :  { %v5339_v6 = vadd.f32 %v9229_v50, %v13811_v49  ;;  %9383 = vmatmul.mubr.msk.bf16.gmra.mxu0 %vm1054_vm1, %v15726_v24  ;;  %v6861_v49 = vrot.slane %v14035_v18, 3  ;;  %v14061_v50 = vadd.f32 %v13967_v61, %v5335_v40  ;;  %v14063_v24 = vadd.f32 %v9266_v32, %v5338_v39 }
 0x2a0   :  { %v14045_v1 = vpop.f32.mrf.mxu0  ;;  %v9271_v33 = vpop.f32.mrf.mxu1  ;;  %9386 = vmatprep.mubr.msk.bf16.mxu0 %vm1054_vm1, %v15728_v26  ;;  %v14072_v27 = vadd.f32 %v5458_v54, %v5336_v8  ;;  %v6545_v61 = vshll.u32 %v14020_v4, 16  ;;  %v15731_v26 = vshll.u32 %v15661_v21, 16 }
 0x2a1   :  { %v14070_v55 = vsel %vm15729_vm3, %v15036_v10, %v6861_v49  ;;  %v14076_v39 = vadd.f32 %v9267_v51, %v5339_v6  ;;  %v15732_v51 = vld [vmem:[#allocation21_spill] sm:$0xff] }
 0x2a2   :  { %v9232_v45 = vpop.f32.mrf.mxu0  ;;  %v14058_v43 = vpop.f32.mrf.mxu1  ;;  %v6538_v54 = vrot.slane %v15731_v26, 3  ;;  %v6547_v6 = vrot.slane %v6545_v61, 3 }
 0x2a3   :  { %9425 = vmatmul.mubr.msk.bf16.gmra.mxu1 %vm1054_vm1, %v6524_v30  ;;  %v5342_v37 = vadd.f32 %v9232_v45, %v13816_v36  ;;  %v6535_v30 = vor.u32 %v6534_v63, %v6533_v23  ;;  %v15730_v36 = vshrl.u32 %v15661_v21, 16  ;;  %v6532_v63 = vsel %vm2950_vm6, %v6527_v28, %v6531_v47 }
 0x2a4   :  { %9428 = vmatprep.mubr.msk.bf16.mxu1 %vm1054_vm1, %v6528_v48  ;;  %v5245_v40 = vpop.f32.mrf.mxu0  ;;  %v9274_v32 = vpop.f32.mrf.mxu1 }
 0x2a5   :  { %v5340_v41 = vadd.f32 %v5245_v40, %v13825_v25  ;;  %v14079_v34 = vadd.f32 %v9270_v31, %v5342_v37  ;;  %v6537_v48 = vrot.slane %v15730_v36, 2  ;;  %v6536_v25 = vsel %vm2950_vm6, %v6531_v47, %v6535_v30  ;;  %v15733_v36 = vld [vmem:[#allocation90_spill] sm:$0xff] }
 0x2a6   :  { %v9233_v8 = vpop.f32.mrf.mxu0  ;;  %v5490_v23 = vpop.f32.mrf.mxu1  ;;  %v6544_v31 = vrot.slane %v6542_v22, 2  ;;  %v6551_v47 = vshrl.u32 %v14035_v18, 16  ;;  %v6554_v22 = vshll.u32 %v14035_v18, 16 }
 0x2a7   :  { %v5343_v49 = vadd.f32 %v9233_v8, %v13831_v16  ;;  %v14087_v45 = vadd.f32 %v5474_v53, %v5340_v41  ;;  %9387 = vmatmul.mubr.msk.bf16.gmra.mxu0 %vm1054_vm1, %v15732_v51  ;;  %v6539_v16 = vor.u32 %v6538_v54, %v6537_v48 }
 0x2a8   :  { %v14092_v37 = vpop.f32.mrf.mxu0  ;;  %v9275_v40 = vpop.f32.mrf.mxu1  ;;  %9390 = vmatprep.mubr.msk.bf16.mxu0 %vm1054_vm1, %v15733_v36  ;;  %v6548_v41 = vor.u32 %v6547_v6, %v6544_v31  ;;  %v6553_v36 = vrot.slane %v6551_v47, 2  ;;  %v6556_v10 = vrot.slane %v6554_v22, 3  ;;  %v6251_v6 = vrot.slane %v14020_v4, 2 }
 0x2a9   :  { %v14096_v26 = vadd.f32 %v9271_v33, %v5343_v49  ;;  %v6540_v48 = vsel %vm2950_vm6, %v6535_v30, %v6539_v16 }
 0x2aa   :  { %v9236_v28 = vpop.f32.mrf.mxu0  ;;  %v14099_v53 = vpop.f32.mrf.mxu1 }
 0x2ab   :  { %9429 = vmatmul.mubr.msk.bf16.gmra.mxu1 %vm1054_vm1, %v6532_v63  ;;  %15734 = vst [vmem:[#allocation59_spill] sm:$0xff] %v14099_v53  ;;  %v5346_v61 = vadd.f32 %v9236_v28, %v13839_v12  ;;  %v15735_v53 = vld [vmem:[#allocation109_spill] sm:$0xff]  ;;  %v6549_v12 = vsel %vm2950_vm6, %v6539_v16, %v6548_v41  ;;  %v6557_v28 = vor.u32 %v6556_v10, %v6553_v36 }
 0x2ac   :  { %9432 = vmatprep.mubr.msk.bf16.mxu1 %vm1054_vm1, %v6536_v25  ;;  %v5261_v8 = vpop.f32.mrf.mxu0  ;;  %v9278_v51 = vpop.f32.mrf.mxu1  ;;  %v15738_v36 = vld [vmem:[#allocation105_spill] sm:$0xff] }
 0x2ad   :  { %v5344_v33 = vadd.f32 %v5261_v8, %v13845_v2  ;;  %v14106_v49 = vadd.f32 %v9274_v32, %v5346_v61  ;;  %v15736_v32 = vld [vmem:[#allocation6_spill] sm:$0xff] }
 0x2ae   :  { %v9237_v54 = vpop.f32.mrf.mxu0  ;;  %v5506_v63 = vpop.f32.mrf.mxu1 }
 0x2af   :  { %v5347_v25 = vadd.f32 %v9237_v54, %v13854_v42  ;;  %v14110_v0 = vadd.f32 %v5490_v23, %v5344_v33  ;;  %9391 = vmatmul.mubr.msk.bf16.gmra.mxu0 %vm1054_vm1, %v15735_v53  ;;  %v6558_v54 = vsel %vm2950_vm6, %v6548_v41, %v6557_v28  ;;  %vm15739_vm6 = vmmov %vm15729_vm3 }
 0x2b0   :  { %v14115_v31 = vpop.f32.mrf.mxu0  ;;  %v9279_v2 = vpop.f32.mrf.mxu1  ;;  %9394 = vmatprep.mubr.msk.bf16.mxu0 %vm1054_vm1, %v15736_v32 }
 0x2b1   :  { %v14119_v30 = vadd.f32 %v9275_v40, %v5347_v25  ;;  %v15737_v40 = vld [vmem:[#allocation26_spill] sm:$0xff] }
 0x2b2   :  { %v9240_v42 = vpop.f32.mrf.mxu0  ;;  %v14123_v23 = vpop.f32.mrf.mxu1  ;;  %v6252_v8 = vsel %vm2406_vm4, %v15737_v40, %v6251_v6  ;;  %v9684_v25 = vld [vmem:[%s14835_s1 + $0x80] sm:$0xff]  }
 0x2b3   :  { %9433 = vmatmul.mubr.msk.bf16.gmra.mxu1 %vm1054_vm1, %v6540_v48  ;;  %v5350_v16 = vadd.f32 %v9240_v42, %v13870_v19 }
 0x2b4   :  { %9436 = vmatprep.mubr.msk.bf16.mxu1 %vm1054_vm1, %v6549_v12  ;;  %v5277_v53 = vpop.f32.mrf.mxu0  ;;  %v9282_v47 = vpop.f32.mrf.mxu1  ;;  %v6253_v12 = vrot.slane %v14035_v18, 2 }
 0x2b5   :  { %v5348_v22 = vadd.f32 %v5277_v53, %v13874_v7  ;;  %v14128_v61 = vadd.f32 %v9278_v51, %v5350_v16 }
 0x2b6   :  { %v5522_v33 = vpop.f32.mrf.mxu1  ;;  %v9241_v48 = vpop.f32.mrf.mxu0 }
 0x2b7   :  { %v5351_v10 = vadd.f32 %v9241_v48, %v13880_v62  ;;  %v14137_v19 = vadd.f32 %v5506_v63, %v5348_v22  ;;  %9395 = vmatmul.mubr.msk.bf16.gmra.mxu0 %vm1054_vm1, %v15738_v36  ;;  %v9740_v62 = vld [vmem:[%s14833_s0 + $0xbc] sm:$0xff]   ;;  %v9741_v63 = vld [vmem:[%s14833_s0 + $0xc4] sm:$0xff]   ;;  %v6254_v22 = vsel %vm2406_vm4, %v6251_v6, %v6253_v12  ;;  %vm15740_vm4 = vmmov %vm15729_vm3 }
 0x2b8   :  { %v14141_v7 = vpop.f32.mrf.mxu0  ;;  %v9283_v51 = vpop.f32.mrf.mxu1  ;;  %9398 = vmatprep.mubr.msk.bf16.mxu0 %vm1054_vm1, %v6252_v8  ;;  %v6826_v41 = vrot.slane %v9740_v62, 3  ;;  %v6827_v42 = vrot.slane %v9741_v63, 3  ;;  %v9685_v48 = vld [vmem:[%s14835_s1 + $0x88] sm:$0xff]   ;;  %vm15767_vm3 = vmmov %vm15764_vm0 }
 0x2b9   :  { %v14145_v32 = vadd.f32 %v9279_v2, %v5351_v10 }
 0x2ba   :  { %v14154_v28 = vpop.f32.mrf.mxu1  ;;  %v9244_v16 = vpop.f32.mrf.mxu0 }
 0x2bb   :  { %9437 = vmatmul.mubr.msk.bf16.gmra.mxu1 %vm1054_vm1, %v6558_v54  ;;  %v5354_v18 = vadd.f32 %v9244_v16, %v13887_v58  ;;  %v6828_v54 = vsel %vm15739_vm6, %v6826_v41, %v6827_v42  ;;  %v9686_v58 = vld [vmem:[%s14835_s1 + $0x90] sm:$0xff]   ;;  %vm15768_vm6 = vmmov %vm15764_vm0 }
 0x2bc   :  { %9480 = vmatprep.mubr.msk.bf16.mxu1 %vm1054_vm1, %v9684_v25  ;;  %v5293_v2 = vpop.f32.mrf.mxu0  ;;  %v9286_v53 = vpop.f32.mrf.mxu1 }
 0x2bd   :  { %v5352_v40 = vadd.f32 %v5293_v2, %v13891_v20  ;;  %v14160_v8 = vadd.f32 %v9282_v47, %v5354_v18  ;;  %v9742_v47 = vld [vmem:[%s14833_s0 + $0xcc] sm:$0xff]  }
 0x2be   :  { %v9245_v10 = vpop.f32.mrf.mxu0  ;;  %v5538_v36 = vpop.f32.mrf.mxu1  ;;  %v6829_v12 = vrot.slane %v9742_v47, 3  ;;  %v9744_v18 = vld [vmem:[%s14836_s7 + $0x8] sm:$0xff]  }
 0x2bf   :  { %v5355_v25 = vadd.f32 %v9245_v10, %v13897_v9  ;;  %v14170_v62 = vadd.f32 %v5522_v33, %v5352_v40  ;;  %9399 = vmatmul.mubr.msk.bf16.gmra.mxu0 %vm1054_vm1, %v6254_v22  ;;  %v9743_v9 = vld [vmem:[%s14833_s0 + $0xd4] sm:$0xff]  }
 0x2c0   :  { %v14173_v20 = vpop.f32.mrf.mxu0  ;;  %v9287_v6 = vpop.f32.mrf.mxu1  ;;  %9442 = vmatprep.mubr.msk.bf16.mxu0 %vm1054_vm1, %v6828_v54  ;;  %v6831_v33 = vrot.slane %v9743_v9, 3  ;;  %v6830_v40 = vsel %vm15740_vm4, %v6827_v42, %v6829_v12  ;;  %v9687_v10 = vld [vmem:[%s14835_s1 + $0x98] sm:$0xff]   ;;  %v9688_v9 = vld [vmem:[%s14835_s1 + $0xa0] sm:$0xff]   ;;  %vm15769_vm4 = vmmov 0  }
 0x2c1   :  { %v14179_v41 = vadd.f32 %v9283_v51, %v5355_v25 }
 0x2c2   :  { %v9248_v63 = vpop.f32.mrf.mxu0  ;;  %v5541_v16 = vpop.f32.mrf.mxu1 }
 0x2c3   :  { %9481 = vmatmul.mubr.msk.bf16.vlgmr.msra.gmra.mxu1 %vm1054_vm1, %v9685_v48  ;;  %v5358_v2 = vadd.f32 %v9248_v63, %v13904_v13  ;;  %v5045_v13 = vadd.f32 %v13818_v29, %v13862_v11  ;;  %v9746_v11 = vld [vmem:[%s14833_s0 + $0xdc] sm:$0xff]  }
 0x2c4   :  { %9484 = vmatprep.mubr.msk.bf16.mxu1 %vm1054_vm1, %v9686_v58  ;;  %9513 = vmatpush3.bf16.msra.mxu1 %v9744_v18  ;;  %v5309_v51 = vpop.f32.mrf.mxu0  ;;  %v9330_v22 = vpop.f32.mrf.mxu1  ;;  %v6832_v58 = vsel %vm15742_vm7, %v6829_v12, %v6831_v33  ;;  %v15743_v18 = vld [vmem:[#allocation39_spill] sm:$0xff]  ;;  %vm15772_vm7 = vmmov %vm15764_vm0 }
 0x2c5   :  { %9514 = vmatprep.subr.bf16.mxu1 %v15574_v56  ;;  %v5356_v48 = vadd.f32 %v5309_v51, %v13912_v14  ;;  %v14193_v54 = vadd.f32 %v9286_v53, %v5358_v2  ;;  %v9745_v14 = vld [vmem:[%s14836_s7] sm:$0xff]   ;;  %v15744_v2 = vld [vmem:[#allocation95_spill] sm:$0xff]  ;;  %v6833_v51 = vrot.slane %v9746_v11, 3 }
 0x2c6   :  { %v9249_v25 = vpop.f32.mrf.mxu0  ;;  %v6066_v47 = vpop.f32.mrf.mxu1  ;;  %v4917_v29 = vadd.f32 %v15744_v2, %v15743_v18  ;;  %v9689_v2 = vld [vmem:[%s14835_s1 + $0xa8] sm:$0xff]  }
 0x2c7   :  { %15741 = vst [vmem:[#allocation40_spill] sm:$0xff] %v14193_v54  ;;  %v5359_v42 = vadd.f32 %v9249_v25, %v13920_v38  ;;  %v14208_v53 = vadd.f32 %v5538_v36, %v5356_v48  ;;  %9443 = vmatmul.mubr.msk.bf16.vlgmr.msra.gmra.mxu0 %vm1054_vm1, %v6830_v40  ;;  %v9747_v38 = vld [vmem:[%s14833_s0 + $0xe4] sm:$0xff]  }
 0x2c8   :  { %9515 = vmatpush3.bf16.msra.mxu1 %v9745_v14  ;;  %v5312_v12 = vpop.f32.mrf.mxu0  ;;  %v9331_v63 = vpop.f32.mrf.mxu1  ;;  %9446 = vmatprep.mubr.msk.bf16.mxu0 %vm1054_vm1, %v6832_v58  ;;  %v6835_v36 = vrot.slane %v9747_v38, 3  ;;  %v5325_v25 = vadd.f32 %v13922_v44, %v4917_v29  ;;  %v15749_v38 = vld [vmem:[#allocation23_spill] sm:$0xff] }
 0x2c9   :  { %v5357_v54 = vadd.f32 %v5312_v12, %v5045_v13  ;;  %v14217_v14 = vadd.f32 %v9287_v6, %v5359_v42  ;;  %v6834_v42 = vsel %vm15745_vm13, %v6831_v33, %v6833_v51  ;;  %vm15774_vm13 = vmmov %vm15764_vm0 }
 0x2ca   :  { %v9292_v40 = vpop.f32.mrf.mxu0  ;;  %v6069_v48 = vpop.f32.mrf.mxu1  ;;  %v6836_v44 = vsel %vm15747_vm2, %v6833_v51, %v6835_v36  ;;  %v9748_v51 = vld [vmem:[%s14833_s0 + $0xec] sm:$0xff]   ;;  %vm4327_vm2 = vcmask 785408  }
 0x2cb   :  { %9485 = vmatmul.mubr.msk.bf16.gmra.mxu1 %vm1054_vm1, %v9687_v10  ;;  %v5907_v58 = vadd.f32 %v9292_v40, %v14005_v59  ;;  %v14226_v18 = vadd.f32 %v5541_v16, %v5357_v54  ;;  %v9690_v59 = vld [vmem:[%s14835_s1 + $0xb0] sm:$0xff]   ;;  %v15750_v40 = vld [vmem:[#allocation74_spill] sm:$0xff] }
 0x2cc   :  { %9488 = vmatprep.mubr.msk.bf16.mxu1 %vm1054_vm1, %v9688_v9  ;;  %v5762_v13 = vpop.f32.mrf.mxu0  ;;  %v9334_v6 = vpop.f32.mrf.mxu1  ;;  %v15748_v54 = vld [vmem:[#allocation108_spill] sm:$0xff] }
 0x2cd   :  { %v5905_v10 = vadd.f32 %v5762_v13, %v14009_v17  ;;  %v14230_v12 = vadd.f32 %v9330_v22, %v5907_v58  ;;  %v5554_v33 = vadd.f32 %v15748_v54, %v5325_v25  ;;  %v4933_v58 = vadd.f32 %v15750_v40, %v15749_v38  ;;  %v9691_v40 = vld [vmem:[%s14835_s1 + $0xb8] sm:$0xff]  }
 0x2ce   :  { %v9293_v29 = vpop.f32.mrf.mxu0  ;;  %v6082_v9 = vpop.f32.mrf.mxu1  ;;  %v6837_v13 = vrot.slane %v9748_v51, 3 }
 0x2cf   :  { %15746 = vst [vmem:[#allocation17_spill] sm:$0xff] %v14230_v12  ;;  %v5908_v16 = vadd.f32 %v9293_v29, %v14012_v35  ;;  %v14241_v11 = vadd.f32 %v6066_v47, %v5905_v10  ;;  %9447 = vmatmul.mubr.msk.bf16.gmra.mxu0 %vm1054_vm1, %v6834_v42  ;;  %v9749_v47 = vld [vmem:[%s14833_s0 + $0xf4] sm:$0xff]  }
 0x2d0   :  { %v5765_v17 = vpop.f32.mrf.mxu0  ;;  %v9335_v22 = vpop.f32.mrf.mxu1  ;;  %9450 = vmatprep.mubr.msk.bf16.mxu0 %vm1054_vm1, %v6836_v44  ;;  %v6839_v25 = vrot.slane %v9749_v47, 3  ;;  %v15751_v29 = vld [vmem:[#allocation113_spill] sm:$0xff] }
 0x2d1   :  { %v5906_v12 = vadd.f32 %v5765_v17, %v5554_v33  ;;  %v14250_v35 = vadd.f32 %v9331_v63, %v5908_v16  ;;  %v5329_v54 = vadd.f32 %v15751_v29, %v4933_v58  ;;  %v6838_v16 = vsel %vm15752_vm15, %v6835_v36, %v6837_v13  ;;  %v15757_v29 = vld [vmem:[#allocation77_spill] sm:$0xff] }
 0x2d2   :  { %v9296_v42 = vpop.f32.mrf.mxu0  ;;  %v6085_v10 = vpop.f32.mrf.mxu1  ;;  %v6840_v58 = vsel %vm15754_vm11, %v6837_v13, %v6839_v25  ;;  %v9750_v13 = vld [vmem:[%s14833_s0 + $0xfc] sm:$0xff]   ;;  %vm7808_vm15 = vcmask 1040384  }
 0x2d3   :  { %9489 = vmatmul.mubr.msk.bf16.gmra.mxu1 %vm1054_vm1, %v9689_v2  ;;  %v5911_v44 = vadd.f32 %v9296_v42, %v14024_v3  ;;  %v14259_v38 = vadd.f32 %v6069_v48, %v5906_v12  ;;  %v9692_v3 = vld [vmem:[%s14835_s1 + $0xc0] sm:$0xff]   ;;  %v15755_v12 = vld [vmem:[#allocation100_spill] sm:$0xff] }
 0x2d4   :  { %9492 = vmatprep.mubr.msk.bf16.mxu1 %vm1054_vm1, %v9690_v59  ;;  %v5778_v33 = vpop.f32.mrf.mxu0  ;;  %v9338_v63 = vpop.f32.mrf.mxu1  ;;  %v5558_v36 = vadd.f32 %v15755_v12, %v5329_v54  ;;  %v15756_v42 = vld [vmem:[#allocation96_spill] sm:$0xff] }
 0x2d5   :  { %v5909_v2 = vadd.f32 %v5778_v33, %v14028_v57  ;;  %v14263_v17 = vadd.f32 %v9334_v6, %v5911_v44  ;;  %v4949_v44 = vadd.f32 %v15757_v29, %v15756_v42  ;;  %v6841_v33 = vrot.slane %v9750_v13, 3 }
 0x2d6   :  { %v9297_v51 = vpop.f32.mrf.mxu0  ;;  %v6098_v59 = vpop.f32.mrf.mxu1 }
 0x2d7   :  { %15753 = vst [vmem:[#allocation43_spill] sm:$0xff] %v14263_v17  ;;  %v5912_v48 = vadd.f32 %v9297_v51, %v14039_v15  ;;  %v14274_v47 = vadd.f32 %v6082_v9, %v5909_v2  ;;  %9451 = vmatmul.mubr.msk.bf16.gmra.mxu0 %vm1054_vm1, %v6838_v16  ;;  %v9751_v9 = vld [vmem:[%s14833_s0 + $0x104] sm:$0xff]   ;;  %v5333_v51 = vadd.f32 %v13991_v52, %v4949_v44 }
 0x2d8   :  { %v5781_v57 = vpop.f32.mrf.mxu0  ;;  %v9339_v6 = vpop.f32.mrf.mxu1  ;;  %9454 = vmatprep.mubr.msk.bf16.mxu0 %vm1054_vm1, %v6840_v58  ;;  %v6843_v54 = vrot.slane %v9751_v9, 3  ;;  %v15762_v44 = vld [vmem:[#allocation3_spill] sm:$0xff] }
 0x2d9   :  { %v5910_v17 = vadd.f32 %v5781_v57, %v5558_v36  ;;  %v14283_v15 = vadd.f32 %v9335_v22, %v5912_v48  ;;  %v6842_v22 = vsel %vm15758_vm10, %v6839_v25, %v6841_v33  ;;  %v9693_v57 = vld [vmem:[%s14835_s1 + $0xc8] sm:$0xff]  }
 0x2da   :  { %v9300_v16 = vpop.f32.mrf.mxu0  ;;  %v6101_v2 = vpop.f32.mrf.mxu1  ;;  %v6844_v42 = vsel %vm15759_vm14, %v6841_v33, %v6843_v54  ;;  %v9752_v33 = vld [vmem:[%s14833_s0 + $0x10c] sm:$0xff]  }
 0x2db   :  { %9493 = vmatmul.mubr.msk.bf16.gmra.mxu1 %vm1054_vm1, %v9691_v40  ;;  %v5915_v58 = vadd.f32 %v9300_v16, %v14049_v60  ;;  %v14292_v12 = vadd.f32 %v6085_v10, %v5910_v17  ;;  %v9694_v60 = vld [vmem:[%s14835_s1 + $0xd0] sm:$0xff]   ;;  %v15760_v17 = vld [vmem:[#allocation103_spill] sm:$0xff]  ;;  %v6845_v9 = vrot.slane %v9752_v33, 3 }
 0x2dc   :  { %9496 = vmatprep.mubr.msk.bf16.mxu1 %vm1054_vm1, %v9692_v3  ;;  %v5794_v36 = vpop.f32.mrf.mxu0  ;;  %v9342_v52 = vpop.f32.mrf.mxu1  ;;  %v5562_v25 = vadd.f32 %v15760_v17, %v5333_v51  ;;  %v9695_v17 = vld [vmem:[%s14835_s1 + $0xd8] sm:$0xff]  }
 0x2dd   :  { %v5913_v40 = vadd.f32 %v5794_v36, %v14055_v46  ;;  %v14296_v48 = vadd.f32 %v9338_v63, %v5915_v58  ;;  %v15761_v63 = vld [vmem:[#allocation16_spill] sm:$0xff] }
 0x2de   :  { %v9301_v29 = vpop.f32.mrf.mxu0  ;;  %v4965_v13 = vadd.f32 %v15762_v44, %v15761_v63  ;;  %v6114_v51 = vpop.f32.mrf.mxu1 }
 0x2df   :  { %v5916_v10 = vadd.f32 %v9301_v29, %v14061_v50  ;;  %v14307_v3 = vadd.f32 %v6098_v59, %v5913_v40  ;;  %9455 = vmatmul.mubr.msk.bf16.gmra.mxu0 %vm1054_vm1, %v6842_v22  ;;  %v9753_v50 = vld [vmem:[%s14833_s0 + $0x114] sm:$0xff]  }
 0x2e0   :  { %v5797_v46 = vpop.f32.mrf.mxu0  ;;  %9458 = vmatprep.mubr.msk.bf16.mxu0 %vm1054_vm1, %v6844_v42  ;;  %v6847_v59 = vrot.slane %v9753_v50, 3  ;;  %v5337_v22 = vadd.f32 %v14045_v1, %v4965_v13  ;;  %v9343_v1 = vpop.f32.mrf.mxu1  ;;  %v9697_v50 = vld [vmem:[%s14835_s1 + $0xe8] sm:$0xff]  }
 0x2e1   :  { %v5914_v16 = vadd.f32 %v5797_v46, %v5562_v25  ;;  %v14316_v58 = vadd.f32 %v9339_v6, %v5916_v10  ;;  %v6846_v6 = vsel %vm15763_vm5, %v6843_v54, %v6845_v9 }
 0x2e2   :  { %v9304_v36 = vpop.f32.mrf.mxu0  ;;  %v6848_v25 = vsel %vm15764_vm0, %v6845_v9, %v6847_v59  ;;  %v5566_v54 = vadd.f32 %v13996_v5, %v5337_v22  ;;  %v9755_v5 = vld [vmem:[%s14833_s0 + $0x124] sm:$0xff]   ;;  %v6117_v33 = vpop.f32.mrf.mxu1  ;;  %v9756_v22 = vld [vmem:[%s14833_s0 + $0x12c] sm:$0xff]  }
 0x2e3   :  { %9497 = vmatmul.mubr.msk.bf16.gmra.mxu1 %vm1054_vm1, %v9693_v57  ;;  %v5919_v40 = vadd.f32 %v9304_v36, %v14063_v24  ;;  %v14325_v42 = vadd.f32 %v6101_v2, %v5914_v16  ;;  %v9696_v24 = vld [vmem:[%s14835_s1 + $0xe0] sm:$0xff]   ;;  %v9698_v36 = vld [vmem:[%s14835_s1 + $0xf0] sm:$0xff]  }
 0x2e4   :  { %9500 = vmatprep.mubr.msk.bf16.mxu1 %vm1054_vm1, %v9694_v60  ;;  %v5810_v29 = vpop.f32.mrf.mxu0 }
 0x2e5   :  { %v5917_v57 = vadd.f32 %v5810_v29, %v14072_v27  ;;  %v14329_v10 = vadd.f32 %v9342_v52, %v5919_v40  ;;  %v9754_v52 = vld [vmem:[%s14833_s0 + $0x11c] sm:$0xff]   ;;  %v6853_v40 = vrot.slane %v9756_v22, 3 }
 0x2e6   :  { %v9305_v46 = vpop.f32.mrf.mxu0  ;;  %v6849_v63 = vrot.slane %v9754_v52, 3 }
 0x2e7   :  { %v5920_v2 = vadd.f32 %v9305_v46, %v14076_v39  ;;  %v14340_v60 = vadd.f32 %v6114_v51, %v5917_v57  ;;  %9459 = vmatmul.mubr.msk.bf16.gmra.mxu0 %vm1054_vm1, %v6846_v6  ;;  %v6851_v39 = vrot.slane %v9755_v5, 3  ;;  %v9699_v57 = vld [vmem:[%s14835_s1 + $0xf8] sm:$0xff]  }
 0x2e8   :  { %v5813_v27 = vpop.f32.mrf.mxu0  ;;  %9462 = vmatprep.mubr.msk.bf16.mxu0 %vm1054_vm1, %v6848_v25  ;;  %v6850_v16 = vsel %vm15765_vm9, %v6847_v59, %v6849_v63  ;;  %v9757_v59 = vld [vmem:[%s14833_s0 + $0x134] sm:$0xff]   ;;  %v6857_v25 = vrot.slane %v15661_v21, 3 }
 0x2e9   :  { %v5918_v44 = vadd.f32 %v5813_v27, %v5566_v54  ;;  %v14347_v13 = vadd.f32 %v9343_v1, %v5920_v2  ;;  %v6852_v51 = vsel %vm15766_vm12, %v6849_v63, %v6851_v39  ;;  %v6855_v29 = vrot.slane %v9757_v59, 3  ;;  %v9346_v1 = vpop.f32.mrf.mxu1  ;;  %v15770_v46 = vld [vmem:[#allocation53_spill] sm:$0xff] }
 0x2ea   :  { %v6854_v6 = vsel %vm15767_vm3, %v6851_v39, %v6853_v40  ;;  %v8368_v39 = vld [vmem:[%s14837_s2 + $0x4] sm:$0xf] }
 0x2eb   :  { %9501 = vmatmul.mubr.msk.bf16.gmra.mxu1 %vm1054_vm1, %v9695_v17  ;;  %v14354_v9 = vadd.f32 %v6117_v33, %v5918_v44  ;;  %v6856_v17 = vsel %vm15768_vm6, %v6853_v40, %v6855_v29  ;;  %v6858_v54 = vsel %vm15772_vm7, %v6855_v29, %v6857_v25  ;;  %v6130_v27 = vpop.f32.mrf.mxu1  ;;  %v15773_v44 = vrot.slane %v14020_v4, 3 }
 0x2ec   :  { %9504 = vmatprep.mubr.msk.bf16.mxu1 %vm1054_vm1, %v9696_v24  ;;  %v15771_v24 = vld [vmem:[#allocation79_spill] sm:$0xff] }
 0x2ed   :  { %v4981_v2 = vadd.f32 %v15771_v24, %v15770_v46  ;;  %v6860_v5 = vsel %vm15774_vm13, %v6857_v25, %v15773_v44  ;;  %v15776_v25 = vld [vmem:[#allocation112_spill] sm:$0xff] }
 0x2ef   :  { %9463 = vmatmul.mubr.msk.bf16.gmra.mxu0 %vm1054_vm1, %v6850_v16  ;;  %v5341_v63 = vadd.f32 %v14092_v37, %v4981_v2  ;;  %v9347_v37 = vpop.f32.mrf.mxu1 }
 0x2f0   :  { %9466 = vmatprep.mubr.msk.bf16.mxu0 %vm1054_vm1, %v6852_v51 }
 0x2f1   :  { %v6133_v59 = vpop.f32.mrf.mxu1 }
 0x2f3   :  { %9505 = vmatmul.mubr.msk.bf16.gmra.mxu1 %vm1054_vm1, %v9697_v50 }
 0x2f4   :  { %9508 = vmatprep.mubr.msk.bf16.mxu1 %vm1054_vm1, %v9698_v36 }
 0x2f7   :  { %9467 = vmatmul.mubr.msk.bf16.gmra.mxu0 %vm1054_vm1, %v6854_v6 }
 0x2f8   :  { %9470 = vmatprep.mubr.msk.bf16.mxu0 %vm1054_vm1, %v6856_v17  ;;  %v15775_v17 = vld [vmem:[#allocation56_spill] sm:$0xff] }
 0x2fb   :  { %9509 = vmatmul.mubr.msk.bf16.gmra.mxu1 %vm1054_vm1, %v9699_v57 }
 0x2fc   :  { %9516 = vmatprep.mubr.msk.bf16.mxu1 %vm15769_vm4, %v15574_v56 }
 0x2fd   :  { %v9308_v52 = vpop.f32.mrf.mxu0 }
 0x2fe   :  { %v5923_v21 = vadd.f32 %v9308_v52, %v14079_v34  ;;  %v5570_v34 = vadd.f32 %v14058_v43, %v5341_v63  ;;  %v15777_v63 = vld [vmem:[#allocation59_spill] sm:$0xff] }
 0x2ff   :  { %v5826_v56 = vpop.f32.mrf.mxu0  ;;  %9471 = vmatmul.mubr.msk.bf16.gmra.mxu0 %vm1054_vm1, %v6858_v54 }
 0x300   :  { %v5921_v33 = vadd.f32 %v5826_v56, %v14087_v45  ;;  %v14398_v16 = vadd.f32 %v9346_v1, %v5923_v21  ;;  %9474 = vmatprep.mubr.msk.bf16.mxu0 %vm1054_vm1, %v6860_v5 }
 0x301   :  { %v9309_v50 = vpop.f32.mrf.mxu0 }
 0x302   :  { %v5924_v4 = vadd.f32 %v9309_v50, %v14096_v26  ;;  %v14404_v51 = vadd.f32 %v6130_v27, %v5921_v33  ;;  %v4997_v26 = vadd.f32 %v15776_v25, %v15775_v17  ;;  %v15778_v50 = vld [vmem:[#allocation18_spill] sm:$0xff] }
 0x303   :  { %9517 = vmatmul.mubr.msk.bf16.vlgmr.msra.gmra.mxu1 %vm3732_vm8, %v8368_v39  ;;  %v5829_v36 = vpop.f32.mrf.mxu0 }
 0x304   :  { %v5922_v22 = vadd.f32 %v5829_v36, %v5570_v34  ;;  %v14406_v40 = vadd.f32 %v9347_v37, %v5924_v4  ;;  %v5345_v43 = vadd.f32 %v14115_v31, %v4997_v26 }
 0x306   :  { %v14408_v45 = vadd.f32 %v6133_v59, %v5922_v22  ;;  %v9350_v29 = vpop.f32.mrf.mxu1  ;;  %v5574_v44 = vadd.f32 %v15777_v63, %v5345_v43 }
 0x307   :  { %9475 = vmatmul.mubr.msk.bf16.gmra.mxu0 %vm1054_vm1, %v14070_v55  ;;  %vm4325_vm1 = vcmask 523264  }
 0x308   :  { %v6146_v6 = vpop.f32.mrf.mxu1 }
 0x30a   :  { %v9351_v57 = vpop.f32.mrf.mxu1 }
 0x30c   :  { %v6149_v24 = vpop.f32.mrf.mxu1 }
 0x313   :  { %v9312_v1 = vpop.f32.mrf.mxu0 }
 0x314   :  { %v5927_v46 = vadd.f32 %v9312_v1, %v14106_v49 }
 0x315   :  { %v5842_v2 = vpop.f32.mrf.mxu0 }
 0x316   :  { %v5925_v54 = vadd.f32 %v5842_v2, %v14110_v0  ;;  %v14417_v27 = vadd.f32 %v9350_v29, %v5927_v46  ;;  %v15779_v0 = vld [vmem:[#allocation102_spill] sm:$0xff] }
 0x317   :  { %v9313_v52 = vpop.f32.mrf.mxu0  ;;  %v9354_v21 = vpop.f32.mrf.mxu1  ;;  %v5013_v4 = vadd.f32 %v15779_v0, %v15778_v50 }
 0x318   :  { %v5928_v55 = vadd.f32 %v9313_v52, %v14119_v30  ;;  %v14421_v5 = vadd.f32 %v6146_v6, %v5925_v54  ;;  %v15781_v54 = vld [vmem:[#allocation106_spill] sm:$0xff] }
 0x319   :  { %v5845_v39 = vpop.f32.mrf.mxu0  ;;  %v6162_v49 = vpop.f32.mrf.mxu1  ;;  %v5349_v30 = vadd.f32 %v14141_v7, %v5013_v4 }
 0x31a   :  { %v5926_v56 = vadd.f32 %v5845_v39, %v5574_v44  ;;  %v14423_v33 = vadd.f32 %v9351_v57, %v5928_v55 }
 0x31b   :  { %v9355_v37 = vpop.f32.mrf.mxu1  ;;  %v5578_v1 = vadd.f32 %v14123_v23, %v5349_v30 }
 0x31c   :  { %v14425_v31 = vadd.f32 %v6149_v24, %v5926_v56 }
 0x31d   :  { %v6165_v34 = vpop.f32.mrf.mxu1 }
 0x325   :  { %v9316_v36 = vpop.f32.mrf.mxu0 }
 0x326   :  { %v5931_v22 = vadd.f32 %v9316_v36, %v14128_v61  ;;  %v15780_v61 = vld [vmem:[#allocation49_spill] sm:$0xff] }
 0x327   :  { %v5858_v59 = vpop.f32.mrf.mxu0  ;;  %v5029_v52 = vadd.f32 %v15781_v54, %v15780_v61 }
 0x328   :  { %v5929_v29 = vadd.f32 %v5858_v59, %v14137_v19  ;;  %v14432_v17 = vadd.f32 %v9354_v21, %v5931_v22 }
 0x329   :  { %v9358_v6 = vpop.f32.mrf.mxu1  ;;  %v9317_v57 = vpop.f32.mrf.mxu0  ;;  %v5353_v44 = vadd.f32 %v14173_v20, %v5029_v52 }
 0x32a   :  { %v5932_v25 = vadd.f32 %v9317_v57, %v14145_v32  ;;  %v14436_v43 = vadd.f32 %v6162_v49, %v5929_v29 }
 0x32b   :  { %v6178_v26 = vpop.f32.mrf.mxu1  ;;  %v5861_v46 = vpop.f32.mrf.mxu0  ;;  %v5582_v0 = vadd.f32 %v14154_v28, %v5353_v44 }
 0x32c   :  { %v5930_v24 = vadd.f32 %v5861_v46, %v5578_v1  ;;  %v14438_v7 = vadd.f32 %v9355_v37, %v5932_v25 }
 0x32d   :  { %v9359_v2 = vpop.f32.mrf.mxu1 }
 0x32e   :  { %v14442_v63 = vadd.f32 %v6165_v34, %v5930_v24 }
 0x32f   :  { %v9320_v19 = vpop.f32.mrf.mxu0  ;;  %v6181_v55 = vpop.f32.mrf.mxu1 }
 0x330   :  { %v5935_v32 = vadd.f32 %v9320_v19, %v14160_v8 }
 0x331   :  { %v5874_v21 = vpop.f32.mrf.mxu0  ;;  %v9362_v23 = vpop.f32.mrf.mxu1 }
 0x332   :  { %v5933_v39 = vadd.f32 %v5874_v21, %v14170_v62  ;;  %v14447_v56 = vadd.f32 %v9358_v6, %v5935_v32  ;;  %v15782_v62 = vld [vmem:[#allocation40_spill] sm:$0xff] }
 0x333   :  { %v9321_v49 = vpop.f32.mrf.mxu0  ;;  %v6194_v37 = vpop.f32.mrf.mxu1 }
 0x334   :  { %v5936_v50 = vadd.f32 %v9321_v49, %v14179_v41  ;;  %v14451_v4 = vadd.f32 %v6178_v26, %v5933_v39 }
 0x335   :  { %v5877_v34 = vpop.f32.mrf.mxu0  ;;  %v9363_v36 = vpop.f32.mrf.mxu1 }
 0x336   :  { %v5934_v30 = vadd.f32 %v5877_v34, %v5582_v0  ;;  %v14453_v20 = vadd.f32 %v9359_v2, %v5936_v50 }
 0x337   :  { %v6197_v8 = vpop.f32.mrf.mxu1  ;;  %v9324_v22 = vpop.f32.mrf.mxu0 }
 0x338   :  { %v14455_v59 = vadd.f32 %v6181_v55, %v5934_v30  ;;  %v5939_v29 = vadd.f32 %v9324_v22, %v15782_v62  ;;  %v15783_v55 = vld [vmem:[#allocation17_spill] sm:$0xff]  ;;  %v15784_v22 = vld [vmem:[#allocation43_spill] sm:$0xff] }
 0x339   :  { %v5890_v6 = vpop.f32.mrf.mxu0 }
 0x33a   :  { %v5937_v25 = vadd.f32 %v5890_v6, %v14208_v53  ;;  %v14459_v41 = vadd.f32 %v9362_v23, %v5939_v29 }
 0x33b   :  { %v9406_v57 = vpop.f32.mrf.mxu1  ;;  %v9325_v28 = vpop.f32.mrf.mxu0 }
 0x33c   :  { %v5940_v1 = vadd.f32 %v9325_v28, %v14217_v14  ;;  %v14462_v46 = vadd.f32 %v6194_v37, %v5937_v25 }
 0x33d   :  { %v6647_v26 = vpop.f32.mrf.mxu1  ;;  %v5893_v24 = vpop.f32.mrf.mxu0 }
 0x33e   :  { %v5938_v61 = vadd.f32 %v5893_v24, %v14226_v18  ;;  %v14465_v54 = vadd.f32 %v9363_v36, %v5940_v1 }
 0x33f   :  { %v9407_v2 = vpop.f32.mrf.mxu1  ;;  %v9368_v52 = vpop.f32.mrf.mxu0 }
 0x340   :  { %v6440_v44 = vadd.f32 %v9368_v52, %v15783_v55  ;;  %v14468_v32 = vadd.f32 %v6197_v8, %v5938_v61 }
 0x341   :  { %v6650_v19 = vpop.f32.mrf.mxu1  ;;  %v6295_v53 = vpop.f32.mrf.mxu0 }
 0x342   :  { %v6438_v23 = vadd.f32 %v6295_v53, %v14241_v11  ;;  %v14471_v39 = vadd.f32 %v9406_v57, %v6440_v44 }
 0x343   :  { %v9410_v21 = vpop.f32.mrf.mxu1  ;;  %v9369_v14 = vpop.f32.mrf.mxu0 }
 0x344   :  { %v6441_v37 = vadd.f32 %v9369_v14, %v14250_v35  ;;  %v14474_v50 = vadd.f32 %v6647_v26, %v6438_v23 }
 0x345   :  { %v6663_v49 = vpop.f32.mrf.mxu1  ;;  %v6298_v18 = vpop.f32.mrf.mxu0 }
 0x346   :  { %v6439_v34 = vadd.f32 %v6298_v18, %v14259_v38  ;;  %v14477_v36 = vadd.f32 %v9407_v2, %v6441_v37 }
 0x347   :  { %v9411_v0 = vpop.f32.mrf.mxu1  ;;  %v9372_v30 = vpop.f32.mrf.mxu0 }
 0x348   :  { %v6444_v62 = vadd.f32 %v9372_v30, %v15784_v22  ;;  %v14480_v29 = vadd.f32 %v6650_v19, %v6439_v34 }
 0x349   :  { %v6666_v8 = vpop.f32.mrf.mxu1  ;;  %v6311_v11 = vpop.f32.mrf.mxu0 }
 0x34a   :  { %v6442_v57 = vadd.f32 %v6311_v11, %v14274_v47  ;;  %v14483_v25 = vadd.f32 %v9410_v21, %v6444_v62 }
 0x34b   :  { %v9414_v6 = vpop.f32.mrf.mxu1  ;;  %v9373_v35 = vpop.f32.mrf.mxu0 }
 0x34c   :  { %v6445_v26 = vadd.f32 %v9373_v35, %v14283_v15  ;;  %v14486_v1 = vadd.f32 %v6663_v49, %v6442_v57 }
 0x34d   :  { %v6679_v28 = vpop.f32.mrf.mxu1  ;;  %v6314_v38 = vpop.f32.mrf.mxu0 }
 0x34e   :  { %v6443_v2 = vadd.f32 %v6314_v38, %v14292_v12  ;;  %v14489_v61 = vadd.f32 %v9411_v0, %v6445_v26 }
 0x34f   :  { %v9415_v24 = vpop.f32.mrf.mxu1  ;;  %v9376_v52 = vpop.f32.mrf.mxu0 }
 0x350   :  { %v6448_v55 = vadd.f32 %v9376_v52, %v14296_v48  ;;  %v14492_v44 = vadd.f32 %v6666_v8, %v6443_v2 }
 0x351   :  { %v6682_v19 = vpop.f32.mrf.mxu1  ;;  %v6327_v47 = vpop.f32.mrf.mxu0 }
 0x352   :  { %v6446_v21 = vadd.f32 %v6327_v47, %v14307_v3  ;;  %v14495_v23 = vadd.f32 %v9414_v6, %v6448_v55 }
 0x353   :  { %v9418_v53 = vpop.f32.mrf.mxu1  ;;  %v9377_v15 = vpop.f32.mrf.mxu0 }
 0x354   :  { %v6449_v49 = vadd.f32 %v9377_v15, %v14316_v58  ;;  %v14498_v37 = vadd.f32 %v6679_v28, %v6446_v21 }
 0x355   :  { %v6695_v14 = vpop.f32.mrf.mxu1  ;;  %v6330_v12 = vpop.f32.mrf.mxu0 }
 0x356   :  { %v6447_v0 = vadd.f32 %v6330_v12, %v14325_v42  ;;  %v14501_v34 = vadd.f32 %v9415_v24, %v6449_v49 }
 0x357   :  { %v9419_v18 = vpop.f32.mrf.mxu1  ;;  %v9380_v48 = vpop.f32.mrf.mxu0 }
 0x358   :  { %v6452_v8 = vadd.f32 %v9380_v48, %v14329_v10  ;;  %v14504_v22 = vadd.f32 %v6682_v19, %v6447_v0 }
 0x359   :  { %v6698_v30 = vpop.f32.mrf.mxu1  ;;  %v6343_v3 = vpop.f32.mrf.mxu0 }
 0x35a   :  { %v6450_v11 = vadd.f32 %v6343_v3, %v14340_v60  ;;  %v14507_v6 = vadd.f32 %v9418_v53, %v6452_v8 }
 0x35b   :  { %v9422_v62 = vpop.f32.mrf.mxu1  ;;  %v9381_v58 = vpop.f32.mrf.mxu0 }
 0x35c   :  { %v6453_v35 = vadd.f32 %v9381_v58, %v14347_v13  ;;  %v14510_v28 = vadd.f32 %v6695_v14, %v6450_v11 }
 0x35d   :  { %v6711_v57 = vpop.f32.mrf.mxu1  ;;  %v6346_v42 = vpop.f32.mrf.mxu0 }
 0x35e   :  { %v6451_v38 = vadd.f32 %v6346_v42, %v14354_v9  ;;  %v14513_v24 = vadd.f32 %v9419_v18, %v6453_v35 }
 0x35f   :  { %v9423_v26 = vpop.f32.mrf.mxu1  ;;  %v9384_v10 = vpop.f32.mrf.mxu0 }
 0x360   :  { %v6456_v52 = vadd.f32 %v9384_v10, %v14398_v16  ;;  %v14516_v19 = vadd.f32 %v6698_v30, %v6451_v38 }
 0x361   :  { %v6714_v2 = vpop.f32.mrf.mxu1  ;;  %v6359_v60 = vpop.f32.mrf.mxu0 }
 0x362   :  { %v6454_v47 = vadd.f32 %v6359_v60, %v14404_v51  ;;  %v14519_v53 = vadd.f32 %v9422_v62, %v6456_v52 }
 0x363   :  { %v9426_v55 = vpop.f32.mrf.mxu1  ;;  %v9385_v13 = vpop.f32.mrf.mxu0 }
 0x364   :  { %v6457_v15 = vadd.f32 %v9385_v13, %v14406_v40  ;;  %v14522_v14 = vadd.f32 %v6711_v57, %v6454_v47 }
 0x365   :  { %v6727_v21 = vpop.f32.mrf.mxu1  ;;  %v6362_v9 = vpop.f32.mrf.mxu0 }
 0x366   :  { %v6455_v12 = vadd.f32 %v6362_v9, %v14408_v45  ;;  %v14525_v18 = vadd.f32 %v9423_v26, %v6457_v15 }
 0x367   :  { %v9427_v49 = vpop.f32.mrf.mxu1  ;;  %v9388_v16 = vpop.f32.mrf.mxu0 }
 0x368   :  { %v6460_v48 = vadd.f32 %v9388_v16, %v14417_v27  ;;  %v14528_v30 = vadd.f32 %v6714_v2, %v6455_v12 }
 0x369   :  { %v6730_v0 = vpop.f32.mrf.mxu1  ;;  %v6375_v51 = vpop.f32.mrf.mxu0 }
 0x36a   :  { %v6458_v3 = vadd.f32 %v6375_v51, %v14421_v5  ;;  %v14531_v62 = vadd.f32 %v9426_v55, %v6460_v48 }
 0x36b   :  { %v9430_v8 = vpop.f32.mrf.mxu1  ;;  %v9389_v40 = vpop.f32.mrf.mxu0 }
 0x36c   :  { %v6461_v58 = vadd.f32 %v9389_v40, %v14423_v33  ;;  %v14534_v57 = vadd.f32 %v6727_v21, %v6458_v3 }
 0x36d   :  { %v6743_v11 = vpop.f32.mrf.mxu1  ;;  %v6378_v45 = vpop.f32.mrf.mxu0 }
 0x36e   :  { %v6459_v42 = vadd.f32 %v6378_v45, %v14425_v31  ;;  %v14537_v26 = vadd.f32 %v9427_v49, %v6461_v58 }
 0x36f   :  { %v9431_v35 = vpop.f32.mrf.mxu1  ;;  %v9392_v27 = vpop.f32.mrf.mxu0 }
 0x370   :  { %v6464_v10 = vadd.f32 %v9392_v27, %v14432_v17  ;;  %v14540_v2 = vadd.f32 %v6730_v0, %v6459_v42 }
 0x371   :  { %v6746_v38 = vpop.f32.mrf.mxu1  ;;  %v6391_v5 = vpop.f32.mrf.mxu0 }
 0x372   :  { %v6462_v60 = vadd.f32 %v6391_v5, %v14436_v43  ;;  %v14543_v55 = vadd.f32 %v9430_v8, %v6464_v10 }
 0x373   :  { %v9434_v52 = vpop.f32.mrf.mxu1  ;;  %v9393_v33 = vpop.f32.mrf.mxu0 }
 0x374   :  { %v6465_v13 = vadd.f32 %v9393_v33, %v14438_v7  ;;  %v14546_v21 = vadd.f32 %v6743_v11, %v6462_v60 }
 0x375   :  { %v6759_v47 = vpop.f32.mrf.mxu1  ;;  %v6394_v31 = vpop.f32.mrf.mxu0 }
 0x376   :  { %v6463_v9 = vadd.f32 %v6394_v31, %v14442_v63  ;;  %v14549_v49 = vadd.f32 %v9431_v35, %v6465_v13 }
 0x377   :  { %v9435_v15 = vpop.f32.mrf.mxu1  ;;  %v9396_v17 = vpop.f32.mrf.mxu0 }
 0x378   :  { %v6468_v16 = vadd.f32 %v9396_v17, %v14447_v56  ;;  %v14552_v0 = vadd.f32 %v6746_v38, %v6463_v9 }
 0x379   :  { %v6762_v12 = vpop.f32.mrf.mxu1  ;;  %v6407_v43 = vpop.f32.mrf.mxu0 }
 0x37a   :  { %v6466_v51 = vadd.f32 %v6407_v43, %v14451_v4  ;;  %v14555_v8 = vadd.f32 %v9434_v52, %v6468_v16 }
 0x37b   :  { %v9438_v48 = vpop.f32.mrf.mxu1  ;;  %v9397_v7 = vpop.f32.mrf.mxu0 }
 0x37c   :  { %v6469_v40 = vadd.f32 %v9397_v7, %v14453_v20  ;;  %v14558_v11 = vadd.f32 %v6759_v47, %v6466_v51 }
 0x37d   :  { %v6775_v3 = vpop.f32.mrf.mxu1  ;;  %v6410_v63 = vpop.f32.mrf.mxu0 }
 0x37e   :  { %v6467_v45 = vadd.f32 %v6410_v63, %v14455_v59  ;;  %v14561_v35 = vadd.f32 %v9435_v15, %v6469_v40  ;;  %v14573_v59 = vld [vmem:[%s14838_s6] ss:$0 sm:$0xff] }
 0x37f   :  { %v9439_v58 = vpop.f32.mrf.mxu1  ;;  %v9400_v56 = vpop.f32.mrf.mxu0 }
 0x380   :  { %v6472_v27 = vadd.f32 %v9400_v56, %v14459_v41  ;;  %v14564_v38 = vadd.f32 %v6762_v12, %v6467_v45 }
 0x381   :  { %v6778_v42 = vpop.f32.mrf.mxu1  ;;  %v6423_v4 = vpop.f32.mrf.mxu0 }
 0x382   :  { %v6470_v5 = vadd.f32 %v6423_v4, %v14462_v46  ;;  %v14567_v52 = vadd.f32 %v9438_v48, %v6472_v27 }
 0x383   :  { %v9482_v10 = vpop.f32.mrf.mxu1  ;;  %v9401_v20 = vpop.f32.mrf.mxu0 }
 0x384   :  { %v6473_v33 = vadd.f32 %v9401_v20, %v14465_v54  ;;  %v14576_v41 = vadd.f32 %v6775_v3, %v6470_v5  ;;  %v7520_v13 = vadd.f32 %v14573_v59, %v9482_v10 }
 0x385   :  { %v7511_v60 = vpop.f32.mrf.mxu1  ;;  %v6426_v31 = vpop.f32.mrf.mxu0 }
 0x386   :  { %v7512_v47 = vadd.f32 %v14573_v59, %v7511_v60  ;;  %v6471_v46 = vadd.f32 %v6426_v31, %v14468_v32  ;;  %v14581_v16 = vadd.f32 %v9439_v58, %v6473_v33  ;;  %v7640_v51 = vmax.f32 %v7520_v13, 0.0  ;;  %v14590_v32 = vld [vmem:[%s14839_s4] ss:$0 sm:$0xff] }
 0x387   :  { %v9483_v15 = vpop.f32.mrf.mxu1  ;;  %v9444_v12 = vpop.f32.mrf.mxu0 }
 0x388   :  { %v7638_v9 = vmax.f32 %v7512_v47, 0.0  ;;  %v7523_v17 = vadd.f32 %v14573_v59, %v9483_v15  ;;  %v7096_v43 = vadd.f32 %v9444_v12, %v14471_v39  ;;  %v14585_v40 = vadd.f32 %v6778_v42, %v6471_v46  ;;  %v15785_v46 = vld [vmem:[#allocation28_spill] sm:$0xff] }
 0x389   :  { %v7514_v54 = vpop.f32.mrf.mxu1  ;;  %v6951_v7 = vpop.f32.mrf.mxu0  ;;  %v7673_v33 = vsel %vm3732_vm8, %v7640_v51, 0.0 }
 0x38a   :  { %v7515_v48 = vadd.f32 %v14573_v59, %v7514_v54  ;;  %v7132_v63 = vadd.f32 %v14590_v32, %v7096_v43  ;;  %v7094_v58 = vadd.f32 %v6951_v7, %v14474_v50  ;;  %v7670_v56 = vsel %vm3732_vm8, %v7638_v9, 0.0 }
 0x38b   :  { %v9486_v3 = vpop.f32.mrf.mxu1  ;;  %v7641_v39 = vmax.f32 %v7523_v17, 0.0  ;;  %v9445_v4 = vpop.f32.mrf.mxu0 }
 0x38c   :  { %v7639_v45 = vmax.f32 %v7515_v48, 0.0  ;;  %v7536_v27 = vadd.f32 %v14573_v59, %v9486_v3  ;;  %v7168_v5 = vmax.f32 %v7132_v63, 0.0  ;;  %v7130_v20 = vadd.f32 %v14590_v32, %v7094_v58  ;;  %v15786_v63 = vld [vmem:[#allocation27_spill] sm:$0xff] }
 0x38d   :  { %v7527_v10 = vpop.f32.mrf.mxu1  ;;  %v7097_v60 = vadd.f32 %v9445_v4, %v14477_v36  ;;  %v6954_v31 = vpop.f32.mrf.mxu0  ;;  %v7675_v51 = vsel %vm3732_vm8, %v7641_v39, 0.0 }
 0x38e   :  { %v7671_v42 = vsel %vm3732_vm8, %v7639_v45, 0.0  ;;  %v7644_v13 = vmax.f32 %v7536_v27, 0.0  ;;  %v7528_v50 = vadd.f32 %v14573_v59, %v7527_v10  ;;  %v7204_v9 = vmul.f32 %v15785_v46, %v7168_v5 }
 0x38f   :  { %v7672_v47 = vadd.f32 %v7671_v42, %v7670_v56  ;;  %v9487_v15 = vpop.f32.mrf.mxu1  ;;  %v7166_v17 = vmax.f32 %v7130_v20, 0.0  ;;  %v7133_v12 = vadd.f32 %v14590_v32, %v7097_v60  ;;  %v7095_v54 = vadd.f32 %v6954_v31, %v14480_v29  ;;  %v9448_v36 = vpop.f32.mrf.mxu0 }
 0x390   :  { %v7642_v48 = vmax.f32 %v7528_v50, 0.0  ;;  %v7539_v7 = vadd.f32 %v14573_v59, %v9487_v15  ;;  %v7681_v27 = vsel %vm3732_vm8, %v7644_v13, 0.0  ;;  %v7100_v10 = vadd.f32 %v9448_v36, %v14483_v25  ;;  %v15787_v25 = vld [vmem:[#allocation5_spill] sm:$0xff] }
 0x391   :  { %v7674_v43 = vadd.f32 %v7673_v33, %v7672_v47  ;;  %v7530_v3 = vpop.f32.mrf.mxu1  ;;  %v7202_v45 = vmul.f32 %v15786_v63, %v7166_v17  ;;  %v7169_v58 = vmax.f32 %v7133_v12, 0.0  ;;  %v7131_v56 = vadd.f32 %v14590_v32, %v7095_v54  ;;  %v6967_v5 = vpop.f32.mrf.mxu0  ;;  %v15788_v12 = vld [vmem:[#allocation31_spill] sm:$0xff] }
 0x392   :  { %v7241_v42 = vsel %vm3732_vm8, %v7204_v9, 0.0  ;;  %v7677_v20 = vsel %vm3732_vm8, %v7642_v48, 0.0  ;;  %v7531_v33 = vadd.f32 %v14573_v59, %v7530_v3  ;;  %v7645_v47 = vmax.f32 %v7539_v7, 0.0 }
 0x393   :  { %v7676_v4 = vadd.f32 %v7675_v51, %v7674_v43  ;;  %v9490_v29 = vpop.f32.mrf.mxu1  ;;  %v7167_v60 = vmax.f32 %v7131_v56, 0.0  ;;  %v7136_v50 = vadd.f32 %v14590_v32, %v7100_v10  ;;  %v7098_v31 = vadd.f32 %v6967_v5, %v14486_v1  ;;  %v9449_v15 = vpop.f32.mrf.mxu0 }
 0x394   :  { %v7238_v46 = vsel %vm3732_vm8, %v7202_v45, 0.0  ;;  %v7205_v17 = vmul.f32 %v15787_v25, %v7169_v58  ;;  %v7643_v9 = vmax.f32 %v7531_v33, 0.0  ;;  %v7101_v36 = vadd.f32 %v9449_v15, %v14489_v61 }
 0x395   :  { %v7678_v39 = vadd.f32 %v7677_v20, %v7676_v4  ;;  %v7543_v13 = vpop.f32.mrf.mxu1  ;;  %v7203_v54 = vmul.f32 %v15788_v12, %v7167_v60  ;;  %v7172_v43 = vmax.f32 %v7136_v50, 0.0  ;;  %v7134_v48 = vadd.f32 %v14590_v32, %v7098_v31  ;;  %v6970_v3 = vpop.f32.mrf.mxu0  ;;  %v15789_v4 = vld [vmem:[#allocation36_spill] sm:$0xff]  ;;  %v15790_v12 = vld [vmem:[#allocation45_spill] sm:$0xff] }
 0x396   :  { %v7544_v7 = vadd.f32 %v14573_v59, %v7543_v13  ;;  %v7679_v63 = vsel %vm3732_vm8, %v7643_v9, 0.0  ;;  %v7552_v45 = vadd.f32 %v14573_v59, %v9490_v29  ;;  %v7099_v58 = vadd.f32 %v6970_v3, %v14492_v44 }
 0x397   :  { %v9491_v51 = vpop.f32.mrf.mxu1  ;;  %v7239_v1 = vsel %vm3732_vm8, %v7203_v54, 0.0  ;;  %v7208_v10 = vmul.f32 %v15789_v4, %v7172_v43  ;;  %v7680_v5 = vadd.f32 %v7679_v63, %v7678_v39  ;;  %v7170_v20 = vmax.f32 %v7134_v48, 0.0  ;;  %v9452_v60 = vpop.f32.mrf.mxu0 }
 0x398   :  { %v7240_v56 = vadd.f32 %v7239_v1, %v7238_v46  ;;  %v7683_v61 = vsel %vm3732_vm8, %v7645_v47, 0.0  ;;  %v7137_v50 = vadd.f32 %v14590_v32, %v7101_v36  ;;  %v7646_v31 = vmax.f32 %v7544_v7, 0.0 }
 0x399   :  { %v7546_v33 = vpop.f32.mrf.mxu1  ;;  %v7135_v15 = vadd.f32 %v14590_v32, %v7099_v58  ;;  %v7243_v13 = vsel %vm3732_vm8, %v7205_v17, 0.0  ;;  %v7682_v29 = vadd.f32 %v7681_v27, %v7680_v5  ;;  %v7206_v44 = vmul.f32 %v15790_v12, %v7170_v20  ;;  %v6983_v46 = vpop.f32.mrf.mxu0  ;;  %v15791_v17 = vld [vmem:[#allocation52_spill] sm:$0xff] }
 0x39a   :  { %v7242_v25 = vadd.f32 %v7241_v42, %v7240_v56  ;;  %v7648_v9 = vmax.f32 %v7552_v45, 0.0  ;;  %v7173_v39 = vmax.f32 %v7137_v50, 0.0  ;;  %v7555_v48 = vadd.f32 %v14573_v59, %v9491_v51 }
 0x39b   :  { %v9494_v54 = vpop.f32.mrf.mxu1  ;;  %v7171_v43 = vmax.f32 %v7135_v15, 0.0  ;;  %v7249_v47 = vsel %vm3732_vm8, %v7208_v10, 0.0  ;;  %v7684_v36 = vadd.f32 %v7683_v61, %v7682_v29  ;;  %v7104_v7 = vadd.f32 %v9452_v60, %v14495_v23  ;;  %v9453_v1 = vpop.f32.mrf.mxu0  ;;  %v15792_v61 = vld [vmem:[#allocation51_spill] sm:$0xff] }
 0x39c   :  { %v7244_v3 = vadd.f32 %v7243_v13, %v7242_v25  ;;  %v7245_v42 = vsel %vm3732_vm8, %v7206_v44, 0.0  ;;  %v7685_v27 = vsel %vm3732_vm8, %v7646_v31, 0.0  ;;  %v7547_v45 = vadd.f32 %v14573_v59, %v7546_v33 }
 0x39d   :  { %v7559_v63 = vpop.f32.mrf.mxu1  ;;  %v7207_v58 = vmul.f32 %v15791_v17, %v7171_v43  ;;  %v7686_v4 = vadd.f32 %v7685_v27, %v7684_v36  ;;  %v7140_v51 = vadd.f32 %v14590_v32, %v7104_v7  ;;  %v7102_v10 = vadd.f32 %v6983_v46, %v14498_v37  ;;  %v6986_v5 = vpop.f32.mrf.mxu0 }
 0x39e   :  { %v7246_v56 = vadd.f32 %v7245_v42, %v7244_v3  ;;  %v7209_v23 = vmul.f32 %v15792_v61, %v7173_v39  ;;  %v7649_v50 = vmax.f32 %v7555_v48, 0.0  ;;  %v7647_v15 = vmax.f32 %v7547_v45, 0.0 }
 0x39f   :  { %v9495_v20 = vpop.f32.mrf.mxu1  ;;  %v7247_v60 = vsel %vm3732_vm8, %v7207_v58, 0.0  ;;  %v7176_v31 = vmax.f32 %v7140_v51, 0.0  ;;  %v7138_v25 = vadd.f32 %v14590_v32, %v7102_v10  ;;  %v7568_v33 = vadd.f32 %v14573_v59, %v9494_v54  ;;  %v9456_v29 = vpop.f32.mrf.mxu0 }
 0x3a0   :  { %v7248_v13 = vadd.f32 %v7247_v60, %v7246_v56  ;;  %v7687_v44 = vsel %vm3732_vm8, %v7647_v15, 0.0  ;;  %v7105_v37 = vadd.f32 %v9453_v1, %v14501_v34  ;;  %v7560_v46 = vadd.f32 %v14573_v59, %v7559_v63  ;;  %v15793_v63 = vld [vmem:[#allocation69_spill] sm:$0xff] }
 0x3a1   :  { %v7562_v12 = vpop.f32.mrf.mxu1  ;;  %v7103_v39 = vadd.f32 %v6986_v5, %v14504_v22  ;;  %v7689_v43 = vsel %vm3732_vm8, %v7648_v9, 0.0  ;;  %v7688_v3 = vadd.f32 %v7687_v44, %v7686_v4  ;;  %v7174_v36 = vmax.f32 %v7138_v25, 0.0  ;;  %v6999_v7 = vpop.f32.mrf.mxu0 }
 0x3a2   :  { %v7250_v48 = vadd.f32 %v7249_v47, %v7248_v13  ;;  %v7251_v27 = vsel %vm3732_vm8, %v7209_v23, 0.0  ;;  %v7141_v54 = vadd.f32 %v14590_v32, %v7105_v37  ;;  %v7650_v17 = vmax.f32 %v7560_v46, 0.0  ;;  %v15794_v47 = vld [vmem:[#allocation64_spill] sm:$0xff]  ;;  %v15795_v37 = vld [vmem:[#allocation87_spill] sm:$0xff] }
 0x3a3   :  { %v9498_v42 = vpop.f32.mrf.mxu1  ;;  %v7139_v58 = vadd.f32 %v14590_v32, %v7103_v39  ;;  %v7691_v34 = vsel %vm3732_vm8, %v7649_v50, 0.0  ;;  %v7690_v1 = vadd.f32 %v7689_v43, %v7688_v3  ;;  %v7210_v45 = vmul.f32 %v15793_v63, %v7174_v36  ;;  %v9457_v56 = vpop.f32.mrf.mxu0 }
 0x3a4   :  { %v7252_v22 = vadd.f32 %v7251_v27, %v7250_v48  ;;  %v7212_v4 = vmul.f32 %v15794_v47, %v7176_v31  ;;  %v7652_v51 = vmax.f32 %v7568_v33, 0.0  ;;  %v7177_v10 = vmax.f32 %v7141_v54, 0.0  ;;  %v15796_v31 = vld [vmem:[#allocation86_spill] sm:$0xff] }
 0x3a5   :  { %v7575_v9 = vpop.f32.mrf.mxu1  ;;  %v7175_v5 = vmax.f32 %v7139_v58, 0.0  ;;  %v7253_v61 = vsel %vm3732_vm8, %v7210_v45, 0.0  ;;  %v7692_v23 = vadd.f32 %v7691_v34, %v7690_v1  ;;  %v7571_v60 = vadd.f32 %v14573_v59, %v9495_v20  ;;  %v7002_v13 = vpop.f32.mrf.mxu0 }
 0x3a6   :  { %v7108_v15 = vadd.f32 %v9456_v29, %v14507_v6  ;;  %v7254_v25 = vadd.f32 %v7253_v61, %v7252_v22  ;;  %v7693_v44 = vsel %vm3732_vm8, %v7650_v17, 0.0  ;;  %v7563_v39 = vadd.f32 %v14573_v59, %v7562_v12 }
 0x3a7   :  { %v9499_v50 = vpop.f32.mrf.mxu1  ;;  %v7211_v46 = vmul.f32 %v15795_v37, %v7175_v5  ;;  %v7213_v33 = vmul.f32 %v15796_v31, %v7177_v10  ;;  %v7694_v43 = vadd.f32 %v7693_v44, %v7692_v23  ;;  %v7106_v3 = vadd.f32 %v6999_v7, %v14510_v28  ;;  %v9460_v36 = vpop.f32.mrf.mxu0  ;;  %v15797_v37 = vld [vmem:[#allocation32_spill] sm:$0xff] }
 0x3a8   :  { %v7144_v48 = vadd.f32 %v14590_v32, %v7108_v15  ;;  %v7257_v6 = vsel %vm3732_vm8, %v7212_v4, 0.0  ;;  %v7651_v27 = vmax.f32 %v7563_v39, 0.0  ;;  %v7584_v54 = vadd.f32 %v14573_v59, %v9498_v42  ;;  %v15798_v39 = vld [vmem:[#allocation92_spill] sm:$0xff] }
 0x3a9   :  { %v7578_v20 = vpop.f32.mrf.mxu1  ;;  %v7255_v29 = vsel %vm3732_vm8, %v7211_v46, 0.0  ;;  %v7697_v17 = vsel %vm3732_vm8, %v7652_v51, 0.0  ;;  %v7653_v12 = vmax.f32 %v7571_v60, 0.0  ;;  %v7142_v34 = vadd.f32 %v14590_v32, %v7106_v3  ;;  %v7015_v1 = vpop.f32.mrf.mxu0 }
 0x3aa   :  { %v7256_v58 = vadd.f32 %v7255_v29, %v7254_v25  ;;  %v7180_v45 = vmax.f32 %v7144_v48, 0.0  ;;  %v7695_v28 = vsel %vm3732_vm8, %v7651_v27, 0.0  ;;  %v7109_v7 = vadd.f32 %v9457_v56, %v14513_v24 }
 0x3ab   :  { %v9502_v63 = vpop.f32.mrf.mxu1  ;;  %v7576_v22 = vadd.f32 %v14573_v59, %v7575_v9  ;;  %v7259_v47 = vsel %vm3732_vm8, %v7213_v33, 0.0  ;;  %v7696_v10 = vadd.f32 %v7695_v28, %v7694_v43  ;;  %v7178_v42 = vmax.f32 %v7142_v34, 0.0  ;;  %v9461_v5 = vpop.f32.mrf.mxu0 }
 0x3ac   :  { %v7258_v4 = vadd.f32 %v7257_v6, %v7256_v58  ;;  %v7656_v61 = vmax.f32 %v7584_v54, 0.0  ;;  %v7145_v23 = vadd.f32 %v14590_v32, %v7109_v7  ;;  %v7107_v15 = vadd.f32 %v7002_v13, %v14516_v19 }
 0x3ad   :  { %v7591_v51 = vpop.f32.mrf.mxu1  ;;  %v7654_v60 = vmax.f32 %v7576_v22, 0.0  ;;  %v7699_v25 = vsel %vm3732_vm8, %v7653_v12, 0.0  ;;  %v7698_v44 = vadd.f32 %v7697_v17, %v7696_v10  ;;  %v7214_v24 = vmul.f32 %v15797_v37, %v7178_v42  ;;  %v7018_v9 = vpop.f32.mrf.mxu0 }
 0x3ae   :  { %v7260_v56 = vadd.f32 %v7259_v47, %v7258_v4  ;;  %v7216_v31 = vmul.f32 %v15798_v39, %v7180_v45  ;;  %v7181_v33 = vmax.f32 %v7145_v23, 0.0  ;;  %v7143_v43 = vadd.f32 %v14590_v32, %v7107_v15  ;;  %v15800_v47 = vld [vmem:[#allocation12_spill] sm:$0xff] }
 0x3af   :  { %v9503_v46 = vpop.f32.mrf.mxu1  ;;  %v7587_v48 = vadd.f32 %v14573_v59, %v9499_v50  ;;  %v7261_v3 = vsel %vm3732_vm8, %v7214_v24, 0.0  ;;  %v7700_v6 = vadd.f32 %v7699_v25, %v7698_v44  ;;  %v7112_v19 = vadd.f32 %v9460_v36, %v14519_v53  ;;  %v9464_v29 = vpop.f32.mrf.mxu0  ;;  %v15799_v36 = vld [vmem:[#allocation15_spill] sm:$0xff] }
 0x3b0   :  { %v7579_v13 = vadd.f32 %v14573_v59, %v7578_v20  ;;  %v7262_v54 = vadd.f32 %v7261_v3, %v7260_v56  ;;  %v7705_v17 = vsel %vm3732_vm8, %v7656_v61, 0.0  ;;  %v7701_v58 = vsel %vm3732_vm8, %v7654_v60, 0.0 }
 0x3b1   :  { %v7594_v27 = vpop.f32.mrf.mxu1  ;;  %v7179_v12 = vmax.f32 %v7143_v43, 0.0  ;;  %v7702_v34 = vadd.f32 %v7701_v58, %v7700_v6  ;;  %v7148_v45 = vadd.f32 %v14590_v32, %v7112_v19  ;;  %v7110_v50 = vadd.f32 %v7015_v1, %v14522_v14  ;;  %v7031_v7 = vpop.f32.mrf.mxu0  ;;  %v15801_v19 = vld [vmem:[#allocation9_spill] sm:$0xff] }
 0x3b2   :  { %v7655_v28 = vmax.f32 %v7579_v13, 0.0  ;;  %v7265_v53 = vsel %vm3732_vm8, %v7216_v31, 0.0  ;;  %v7217_v20 = vmul.f32 %v15799_v36, %v7181_v33  ;;  %v7600_v10 = vadd.f32 %v14573_v59, %v9502_v63 }
 0x3b3   :  { %v9506_v22 = vpop.f32.mrf.mxu1  ;;  %v7215_v4 = vmul.f32 %v15800_v47, %v7179_v12  ;;  %v7657_v42 = vmax.f32 %v7587_v48, 0.0  ;;  %v7146_v23 = vadd.f32 %v14590_v32, %v7110_v50  ;;  %v7113_v60 = vadd.f32 %v9461_v5, %v14525_v18  ;;  %v9465_v15 = vpop.f32.mrf.mxu0  ;;  %v15802_v12 = vld [vmem:[#allocation54_spill] sm:$0xff] }
 0x3b4   :  { %v7703_v61 = vsel %vm3732_vm8, %v7655_v28, 0.0  ;;  %v7184_v1 = vmax.f32 %v7148_v45, 0.0  ;;  %v7592_v37 = vadd.f32 %v14573_v59, %v7591_v51  ;;  %v7660_v39 = vmax.f32 %v7600_v10, 0.0 }
 0x3b5   :  { %v7607_v25 = vpop.f32.mrf.mxu1  ;;  %v7263_v14 = vsel %vm3732_vm8, %v7215_v4, 0.0  ;;  %v7704_v44 = vadd.f32 %v7703_v61, %v7702_v34  ;;  %v7182_v56 = vmax.f32 %v7146_v23, 0.0  ;;  %v7149_v63 = vadd.f32 %v14590_v32, %v7113_v60  ;;  %v7034_v31 = vpop.f32.mrf.mxu0  ;;  %v15803_v4 = vld [vmem:[#allocation22_spill] sm:$0xff] }
 0x3b6   :  { %v7264_v24 = vadd.f32 %v7263_v14, %v7262_v54  ;;  %v7267_v43 = vsel %vm3732_vm8, %v7217_v20, 0.0  ;;  %v7658_v18 = vmax.f32 %v7592_v37, 0.0  ;;  %v7111_v5 = vadd.f32 %v7018_v9, %v14528_v30  ;;  %v15804_v37 = vld [vmem:[#allocation4_spill] sm:$0xff] }
 0x3b7   :  { %v14697_v33 = vpop.f32.mrf.mxu1  ;;  %v7706_v48 = vadd.f32 %v7705_v17, %v7704_v44  ;;  %v7707_v6 = vsel %vm3732_vm8, %v7657_v42, 0.0  ;;  %v7218_v13 = vmul.f32 %v15801_v19, %v7182_v56  ;;  %v7185_v51 = vmax.f32 %v7149_v63, 0.0  ;;  %v9468_v54 = vpop.f32.mrf.mxu0 }
 0x3b8   :  { %v7266_v3 = vadd.f32 %v7265_v53, %v7264_v24  ;;  %v7220_v34 = vmul.f32 %v15802_v12, %v7184_v1  ;;  %v7147_v28 = vadd.f32 %v14590_v32, %v7111_v5  ;;  %v7603_v50 = vadd.f32 %v14573_v59, %v9503_v46 }
 0x3b9   :  { %v14703_v58 = vpop.f32.mrf.mxu1  ;;  %v7708_v45 = vadd.f32 %v7707_v6, %v7706_v48  ;;  %v7713_v36 = vsel %vm3732_vm8, %v7660_v39, 0.0  ;;  %v7709_v30 = vsel %vm3732_vm8, %v7658_v18, 0.0  ;;  %v7116_v9 = vadd.f32 %v9464_v29, %v14531_v62  ;;  %v7047_v53 = vpop.f32.mrf.mxu0 }
 0x3ba   :  { %v7268_v17 = vadd.f32 %v7267_v43, %v7266_v3  ;;  %v7269_v47 = vsel %vm3732_vm8, %v7218_v13, 0.0  ;;  %v7221_v10 = vmul.f32 %v15803_v4, %v7185_v51  ;;  %v7183_v42 = vmax.f32 %v7147_v28, 0.0 }
 0x3bb   :  { %v14711_v20 = vpop.f32.mrf.mxu1  ;;  %v7595_v61 = vadd.f32 %v14573_v59, %v7594_v27  ;;  %v7710_v60 = vadd.f32 %v7709_v30, %v7708_v45  ;;  %v7152_v46 = vadd.f32 %v14590_v32, %v7116_v9  ;;  %v7114_v14 = vadd.f32 %v7031_v7, %v14534_v57  ;;  %v9469_v1 = vpop.f32.mrf.mxu0  ;;  %v15806_v9 = vld [vmem:[#allocation11_spill] sm:$0xff] }
 0x3bc   :  { %v7270_v23 = vadd.f32 %v7269_v47, %v7268_v17  ;;  %v7219_v62 = vmul.f32 %v15804_v37, %v7183_v42  ;;  %v7661_v29 = vmax.f32 %v7603_v50, 0.0  ;;  %v7616_v56 = vadd.f32 %v14573_v59, %v9506_v22 }
 0x3bd   :  { %v7623_v44 = vpop.f32.mrf.mxu1  ;;  %v7659_v24 = vmax.f32 %v7595_v61, 0.0  ;;  %v7188_v39 = vmax.f32 %v7152_v46, 0.0  ;;  %v7150_v63 = vadd.f32 %v14590_v32, %v7114_v14  ;;  %v7117_v43 = vadd.f32 %v9465_v15, %v14537_v26  ;;  %v7050_v48 = vpop.f32.mrf.mxu0 }
 0x3be   :  { %v7608_v27 = vadd.f32 %v14573_v59, %v7607_v25  ;;  %v7271_v57 = vsel %vm3732_vm8, %v7219_v62, 0.0  ;;  %v7664_v5 = vmax.f32 %v7616_v56, 0.0  ;;  %v7115_v3 = vadd.f32 %v7034_v31, %v14540_v2  ;;  %v15805_v31 = vld [vmem:[#allocation101_spill] sm:$0xff] }
 0x3bf   :  { %v14723_v18 = vpop.f32.mrf.mxu1  ;;  %v7711_v7 = vsel %vm3732_vm8, %v7659_v24, 0.0  ;;  %v7273_v6 = vsel %vm3732_vm8, %v7220_v34, 0.0  ;;  %v7272_v22 = vadd.f32 %v7271_v57, %v7270_v23  ;;  %v7186_v13 = vmax.f32 %v7150_v63, 0.0  ;;  %v14729_v51 = vpop.f32.mrf.mxu0 }
 0x3c0   :  { %v7712_v19 = vadd.f32 %v7711_v7, %v7710_v60  ;;  %v7275_v15 = vsel %vm3732_vm8, %v7221_v10, 0.0  ;;  %v7153_v25 = vadd.f32 %v14590_v32, %v7117_v43  ;;  %v7662_v12 = vmax.f32 %v7608_v27, 0.0 }
 0x3c1   :  { %v14731_v26 = vpop.f32.mrf.mxu1  ;;  %v7151_v45 = vadd.f32 %v14590_v32, %v7115_v3  ;;  %v7274_v28 = vadd.f32 %v7273_v6, %v7272_v22  ;;  %v7715_v50 = vsel %vm3732_vm8, %v7661_v29, 0.0  ;;  %v7222_v34 = vmul.f32 %v15805_v31, %v7186_v13  ;;  %v14738_v17 = vpop.f32.mrf.mxu0  ;;  %v15807_v29 = vld [vmem:[#allocation110_spill] sm:$0xff] }
 0x3c2   :  { %v7714_v2 = vadd.f32 %v7713_v36, %v7712_v19  ;;  %v7224_v47 = vmul.f32 %v15806_v9, %v7188_v39  ;;  %v7721_v4 = vsel %vm3732_vm8, %v7664_v5, 0.0  ;;  %v7189_v10 = vmax.f32 %v7153_v25, 0.0 }
 0x3c3   :  { %v14740_v30 = vpop.f32.mrf.mxu1  ;;  %v7187_v42 = vmax.f32 %v7151_v45, 0.0  ;;  %v7276_v61 = vadd.f32 %v7275_v15, %v7274_v28  ;;  %v7619_v60 = vadd.f32 %v14573_v59, %v14697_v33  ;;  %v7120_v46 = vadd.f32 %v9468_v54, %v14543_v55  ;;  %v9473_v36 = vpop.f32.mrf.mxu0  ;;  %v15808_v54 = vld [vmem:[#allocation7_spill] sm:$0xff] }
 0x3c4   :  { %v7716_v23 = vadd.f32 %v7715_v50, %v7714_v2  ;;  %v7277_v37 = vsel %vm3732_vm8, %v7222_v34, 0.0  ;;  %v7717_v62 = vsel %vm3732_vm8, %v7662_v12, 0.0  ;;  %v7611_v56 = vadd.f32 %v14573_v59, %v14703_v58 }
 0x3c5   :  { %v9518_v14 = vpop.f32.mrf.mxu1  ;;  %v7223_v24 = vmul.f32 %v15807_v29, %v7187_v42  ;;  %v7278_v39 = vadd.f32 %v7277_v37, %v7276_v61  ;;  %v7156_v43 = vadd.f32 %v14590_v32, %v7120_v46  ;;  %v7118_v27 = vadd.f32 %v7047_v53, %v14546_v21  ;;  %v7066_v3 = vpop.f32.mrf.mxu0  ;;  %v15811_v29 = vld [vmem:[#allocation63_spill] sm:$0xff] }
 0x3c6   :  { %v7718_v63 = vadd.f32 %v7717_v62, %v7716_v23  ;;  %v7281_v55 = vsel %vm3732_vm8, %v7224_v47, 0.0  ;;  %v7225_v57 = vmul.f32 %v15808_v54, %v7189_v10  ;;  %v7663_v5 = vmax.f32 %v7611_v56, 0.0  ;;  %v15809_v10 = vld [vmem:[#allocation114_spill] sm:$0xff] }
 0x3c7   :  { %v7782_v33 = vpop.f32.mrf.mxu1  ;;  %v7279_v7 = vsel %vm3732_vm8, %v7223_v24, 0.0  ;;  %v7665_v22 = vmax.f32 %v7619_v60, 0.0  ;;  %v7192_v19 = vmax.f32 %v7156_v43, 0.0  ;;  %v7154_v58 = vadd.f32 %v14590_v32, %v7118_v27  ;;  %v9476_v47 = vpop.f32.mrf.mxu0 }
 0x3c8   :  { %v7280_v6 = vadd.f32 %v7279_v7, %v7278_v39  ;;  %v7719_v15 = vsel %vm3732_vm8, %v7663_v5, 0.0  ;;  %v7121_v25 = vadd.f32 %v9469_v1, %v14549_v49  ;;  %v7624_v21 = vadd.f32 %v14573_v59, %v7623_v44  ;;  %v15810_v44 = vld [vmem:[#allocation25_spill] sm:$0xff] }
 0x3c9   :  { %v9519_v13 = vpop.f32.mrf.mxu1  ;;  %v7119_v53 = vadd.f32 %v7050_v48, %v14552_v0  ;;  %v7720_v45 = vadd.f32 %v7719_v15, %v7718_v63  ;;  %v7190_v28 = vmax.f32 %v7154_v58, 0.0  ;;  %v7632_v50 = vadd.f32 %v14573_v59, %v14711_v20  ;;  %v7079_v56 = vpop.f32.mrf.mxu0  ;;  %v15812_v63 = vld [vmem:[#allocation61_spill] sm:$0xff] }
 0x3ca   :  { %v7282_v12 = vadd.f32 %v7281_v55, %v7280_v6  ;;  %v7283_v2 = vsel %vm3732_vm8, %v7225_v57, 0.0  ;;  %v7157_v31 = vadd.f32 %v14590_v32, %v7121_v25  ;;  %v7666_v34 = vmax.f32 %v7624_v21, 0.0 }
 0x3cb   :  { %v7155_v9 = vadd.f32 %v14590_v32, %v7119_v53  ;;  %v7228_v49 = vmul.f32 %v15809_v10, %v7192_v19  ;;  %v7722_v1 = vadd.f32 %v7721_v4, %v7720_v45  ;;  %v7226_v42 = vmul.f32 %v15810_v44, %v7190_v28  ;;  %v15815_v44 = vld [vmem:[#allocation14_spill] sm:$0xff] }
 0x3cc   :  { %v7284_v0 = vadd.f32 %v7283_v2, %v7282_v12  ;;  %v7723_v48 = vsel %vm3732_vm8, %v7665_v22, 0.0  ;;  %v7193_v61 = vmax.f32 %v7157_v31, 0.0  ;;  %v7668_v60 = vmax.f32 %v7632_v50, 0.0  ;;  %v15813_v12 = vld [vmem:[#allocation97_spill] sm:$0xff] }
 0x3cd   :  { %v7191_v23 = vmax.f32 %v7155_v9, 0.0  ;;  %v7285_v20 = vsel %vm3732_vm8, %v7226_v42, 0.0  ;;  %v7724_v46 = vadd.f32 %v7723_v48, %v7722_v1  ;;  %v7124_v14 = vadd.f32 %v14729_v51, %v14555_v8 }
 0x3ce   :  { %v7286_v37 = vadd.f32 %v7285_v20, %v7284_v0  ;;  %v7725_v62 = vsel %vm3732_vm8, %v7666_v34, 0.0  ;;  %v7627_v4 = vadd.f32 %v14573_v59, %v14731_v26  ;;  %v7289_v39 = vsel %vm3732_vm8, %v7228_v49, 0.0  ;;  %v15816_v20 = vld [vmem:[#allocation8_spill] sm:$0xff] }
 0x3cf   :  { %v7227_v24 = vmul.f32 %v15811_v29, %v7191_v23  ;;  %v7229_v43 = vmul.f32 %v15812_v63, %v7193_v61  ;;  %v7726_v27 = vadd.f32 %v7725_v62, %v7724_v46  ;;  %v7122_v33 = vadd.f32 %v14738_v17, %v14558_v11  ;;  %v9760_v11 = vld [vmem:[%s14840_s8] ss:$0 sm:$0xff]  ;;  %v15817_v63 = vld [vmem:[#allocation104_spill] sm:$0xff] }
 0x3d0   :  { %v7160_v8 = vadd.f32 %v14590_v32, %v7124_v14  ;;  %v7667_v51 = vmax.f32 %v7627_v4, 0.0  ;;  %v7125_v54 = vadd.f32 %v9473_v36, %v14561_v35  ;;  %v7729_v57 = vsel %vm3732_vm8, %v7668_v60, 0.0  ;;  %v9477_v36 = vpop.f32.mrf.mxu0 }
 0x3d1   :  { %v7287_v55 = vsel %vm3732_vm8, %v7227_v24, 0.0  ;;  %v7635_v26 = vadd.f32 %v14573_v59, %v14723_v18  ;;  %v7158_v5 = vadd.f32 %v14590_v32, %v7122_v33  ;;  %v7780_v17 = vadd.f32 %v9760_v11, %v14740_v30 }
 0x3d2   :  { %v7288_v7 = vadd.f32 %v7287_v55, %v7286_v37  ;;  %v7727_v6 = vsel %vm3732_vm8, %v7667_v51, 0.0  ;;  %v7161_v22 = vadd.f32 %v14590_v32, %v7125_v54  ;;  %v7123_v35 = vadd.f32 %v7066_v3, %v14564_v38  ;;  %v7082_v31 = vpop.f32.mrf.mxu0 }
 0x3d3   :  { %v7291_v19 = vsel %vm3732_vm8, %v7229_v43, 0.0  ;;  %v7728_v13 = vadd.f32 %v7727_v6, %v7726_v27  ;;  %v7194_v59 = vmax.f32 %v7158_v5, 0.0  ;;  %v7196_v18 = vmax.f32 %v7160_v8, 0.0  ;;  %v15818_v8 = vld [vmem:[#allocation88_spill] sm:$0xff] }
 0x3d4   :  { %v7290_v58 = vadd.f32 %v7289_v39, %v7288_v7  ;;  %v7785_v15 = vmax.f32 %v7780_v17, 0.0  ;;  %v7159_v25 = vadd.f32 %v14590_v32, %v7123_v35  ;;  %v7128_v21 = vadd.f32 %v9476_v47, %v14567_v52  ;;  %v15814_v52 = vld [vmem:[#allocation94_spill] sm:$0xff] }
 0x3d5   :  { %v7669_v53 = vmax.f32 %v7635_v26, 0.0  ;;  %v7230_v45 = vmul.f32 %v15813_v12, %v7194_v59  ;;  %v7197_v50 = vmax.f32 %v7161_v22, 0.0  ;;  %v7730_v30 = vadd.f32 %v7729_v57, %v7728_v13  ;;  %v15819_v26 = vld [vmem:[#allocation10_spill] sm:$0xff] }
 0x3d6   :  { %v7292_v28 = vadd.f32 %v7291_v19, %v7290_v58  ;;  %v7786_v38 = vsel %vm3732_vm8, %v7785_v15, 0.0  ;;  %v7195_v3 = vmax.f32 %v7159_v25, 0.0  ;;  %v7164_v2 = vadd.f32 %v14590_v32, %v7128_v21 }
 0x3d7   :  { %v7293_v34 = vsel %vm3732_vm8, %v7230_v45, 0.0  ;;  %v7787_v9 = vrot.slane %v7786_v38, 4  ;;  %v7126_v10 = vadd.f32 %v7079_v56, %v14576_v41  ;;  %v7129_v49 = vadd.f32 %v9477_v36, %v14581_v16  ;;  %v15821_v45 = vld [vmem:[#allocation93_spill] sm:$0xff] }
 0x3d8   :  { %v7232_v47 = vmul.f32 %v15814_v52, %v7196_v18  ;;  %v7294_v1 = vadd.f32 %v7293_v34, %v7292_v28  ;;  %v7231_v42 = vmul.f32 %v15815_v44, %v7195_v3  ;;  %v7731_v0 = vsel %vm3732_vm8, %v7669_v53, 0.0 }
 0x3d9   :  { %v7788_v48 = vadd.f32 %v7787_v9, %v7786_v38  ;;  %v7162_v61 = vadd.f32 %v14590_v32, %v7126_v10  ;;  %v7127_v23 = vadd.f32 %v7082_v31, %v14585_v40  ;;  %v7233_v60 = vmul.f32 %v15816_v20, %v7197_v50 }
 0x3da   :  { %v7295_v46 = vsel %vm3732_vm8, %v7231_v42, 0.0  ;;  %v7165_v41 = vadd.f32 %v14590_v32, %v7129_v49  ;;  %v7732_v14 = vadd.f32 %v7731_v0, %v7730_v30  ;;  %v7200_v37 = vmax.f32 %v7164_v2, 0.0  ;;  %v4318_v49 = vpop.permute.xlu1 %4317 }
 0x3db   :  { %v7296_v16 = vadd.f32 %v7295_v46, %v7294_v1  ;;  %v7198_v62 = vmax.f32 %v7162_v61, 0.0  ;;  %v7297_v29 = vsel %vm3732_vm8, %v7232_v47, 0.0  ;;  %v7789_v24 = vrot.slane %v7788_v48, 2 }
 0x3dc   :  { %v7163_v4 = vadd.f32 %v14590_v32, %v7127_v23  ;;  %v7733_v56 = vrot.slane %v7732_v14, 4  ;;  %v7299_v40 = vsel %vm3732_vm8, %v7233_v60, 0.0  ;;  %v7201_v27 = vmax.f32 %v7165_v41, 0.0  ;;  %v15820_v32 = vld [vmem:[#allocation44_spill] sm:$0xff] }
 0x3dd   :  { %v7298_v39 = vadd.f32 %v7297_v29, %v7296_v16  ;;  %v7234_v43 = vmul.f32 %v15817_v63, %v7198_v62  ;;  %v7236_v51 = vmul.f32 %v15818_v8, %v7200_v37  ;;  %v7790_v57 = vadd.f32 %v7789_v24, %v7788_v48 }
 0x3de   :  { %v7199_v33 = vmax.f32 %v7163_v4, 0.0  ;;  %v7734_v55 = vadd.f32 %v7733_v56, %v7732_v14  ;;  %v7237_v11 = vmul.f32 %v15820_v32, %v7201_v27  ;;  %v3804_v28 = vrot.slane %v15821_v45, 4  ;;  %v4322_v42 = vpop.permute.xlu1 %4321 }
 0x3df   :  { %v7300_v54 = vadd.f32 %v7299_v40, %v7298_v39  ;;  %v7301_v7 = vsel %vm3732_vm8, %v7234_v43, 0.0  ;;  %v7305_v19 = vsel %vm3732_vm8, %v7236_v51, 0.0  ;;  %v7791_v13 = vrot.slane %v7790_v57, 1 }
 0x3e0   :  { %v7235_v5 = vmul.f32 %v15819_v26, %v7199_v33  ;;  %v7735_v6 = vrot.slane %v7734_v55, 2  ;;  %v7307_v18 = vsel %vm3732_vm8, %v7237_v11, 0.0  ;;  %v3805_v30 = vadd.f32 %v3804_v28, %v15821_v45 }
 0x3e1   :  { %v7302_v22 = vadd.f32 %v7301_v7, %v7300_v54  ;;  %v7792_v53 = vadd.f32 %v7791_v13, %v7790_v57 }
 0x3e2   :  { %v7303_v17 = vsel %vm3732_vm8, %v7235_v5, 0.0  ;;  %v7736_v35 = vadd.f32 %v7735_v6, %v7734_v55  ;;  %v3806_v3 = vrot.slane %v3805_v30, 2 }
 0x3e3   :  { %v7304_v36 = vadd.f32 %v7303_v17, %v7302_v22  ;;  %v7793_v12 = vmul.f32 0.125, %v7792_v53 }
 0x3e4   :  { %v7737_v58 = vrot.slane %v7736_v35, 1  ;;  %v3807_v31 = vadd.f32 %v3806_v3, %v3805_v30 }
 0x3e5   :  { %v7306_v59 = vadd.f32 %v7305_v19, %v7304_v36 }
 0x3e6   :  { %v7738_v15 = vadd.f32 %v7737_v58, %v7736_v35  ;;  %v3808_v9 = vrot.slane %v3807_v31, 1 }
 0x3e7   :  { %v7308_v25 = vadd.f32 %v7307_v18, %v7306_v59 }
 0x3e8   :  { %v7739_v21 = vmul.f32 0.00390625, %v7738_v15  ;;  %v3809_v52 = vadd.f32 %v3808_v9, %v3807_v31 }
 0x3e9   :  { %v7309_v50 = vrot.slane %v7308_v25, 4 }
 0x3ea   :  { %7795 = vrot.lane.b32.xlu0 %v7739_v21, %s9763_s19  ;;  %v3810_v44 = vmul.f32 0.00390625, %v3809_v52 }
 0x3eb   :  { %v7310_v38 = vadd.f32 %v7309_v50, %v7308_v25 }
 0x3ec   :  { %v4324_v48 = vsel %vm3732_vm8, %v3810_v44, %v4318_v49 }
 0x3ed   :  { %v7311_v2 = vrot.slane %v7310_v38, 2  ;;  %v4326_v20 = vsel %vm4325_vm1, %v4324_v48, %v4322_v42 }
 0x3ee   :  { %7799 = vrot.lane.b32.xlu0 %v7793_v12, %s9764_s20  ;;  %v4328_v14 = vsel %vm4327_vm2, %v4326_v20, 0.0 }
 0x3ef   :  { %v7312_v34 = vadd.f32 %v7311_v2, %v7310_v38 }
 0x3f1   :  { %v7313_v10 = vrot.slane %v7312_v34, 1 }
 0x3f3   :  { %v7314_v47 = vadd.f32 %v7313_v10, %v7312_v34 }
 0x3f5   :  { %v7315_v0 = vmul.f32 0.00390625, %v7314_v47 }
 0x45c   :  { %v7796_v1 = vpop.permute.xlu0 %7795 }
 0x45d   :  { %v7802_v61 = vsel %vm3732_vm8, %v7315_v0, %v7796_v1 }
 0x460   :  { %v7800_v23 = vpop.permute.xlu0 %7799 }
 0x461   :  { %v7803_v60 = vsel %vm4325_vm1, %v7802_v61, %v7800_v23 }
 0x462   :  { %v7804_v46 = vsel %vm4327_vm2, %v7803_v60, 0.0 }
 0x463   :  { %v7806_v41 = vrot.slane %v7804_v46, 7 }
 0x465   :  { %v7809_v16 = vsel %vm7808_vm15, %v4328_v14, %v7806_v41 }
 0x466   :  { %7810 = vst [vmem:[%s14841_s9] sm:$0x3] %v7809_v16 }

</bundles_post_ra>
